<compile_context>
chip_gen: v7x
topology: tpu7x:2x2x1
jax: 0.10.0
libtpu: 0.0.40
codegen_flags: <defaults>
</compile_context>

<pallas_src>
import jax
import jax.numpy as jnp
from jax.experimental import pallas as pl
from jax.experimental.pallas import tpu as pltpu

EPS = 1e-5  # PyTorch BatchNorm default eps


def _halo(W):
    """Sublane-aligned halo so interior stores start on an 8-row boundary."""
    return ((W + 3 + 7) // 8) * 8


# ----------------------------------------------------------------------------- kernel

def _make_fused_kernel(H, W, F, num_res_blocks, has_mask):
    WP = W + 2
    NP = (H + 2) * WP                     # number of padded-board rows (e.g. 81)
    HALO = _halo(W)
    # flat-row offsets of the 9 conv taps in padded-board row-major order
    taps = tuple((kh - 1) * WP + (kw - 1) for kh in range(3) for kw in range(3))

    def kernel(*refs):
        n_in = 16 if has_mask else 15
        (stem_p, w0, b0, resw, resb, imask,
         hconv_w, hconv_b, pfc_w0, pfc_w1, pfc_b,
         vfc1_w, vfc1_b, vfc2_w, vfc2_b) = refs[:15]
        legal = refs[15] if has_mask else None
        pol_out, val_out = refs[n_in], refs[n_in + 1]
        buf_a, buf_b, patch = refs[n_in + 2:]

        mask = imask[...]                 # (NP, 1) f32: 1.0 on interior rows, 0.0 on padding

        # scratch persists across grid steps -> re-zero halo/padding every batch element
        buf_a[...] = jnp.zeros_like(buf_a)
        buf_b[...] = jnp.zeros_like(buf_b)

        # ---- stem: conv3x3(Cin->F) + folded BN + ReLU (bf16 MXU, f32 accumulate) ----
        y = jnp.dot(stem_p[...], w0[...], preferred_element_type=jnp.float32)   # (NP, F)
        act = jnp.maximum(y + b0[...], 0.0) * mask
        buf_a[HALO:HALO + NP, :] = act

        def conv3x3(src_ref, w_bf16):
            # in-kernel im2col: 9 shifted slices of the padded activation -> (NP, 9F) slab
            for k, t in enumerate(taps):
                s = HALO + t
                patch[:, k * F:(k + 1) * F] = src_ref[s:s + NP, :]
            return jnp.dot(patch[...].astype(jnp.bfloat16), w_bf16,
                           preferred_element_type=jnp.float32)                  # (NP, F)

        # ---- residual tower ---------------------------------------------------------
        for i in range(num_res_blocks):
            out1 = jnp.maximum(conv3x3(buf_a, resw[2 * i]) + resb[2 * i], 0.0) * mask
            buf_b[HALO:HALO + NP, :] = out1
            res = buf_a[HALO:HALO + NP, :]
            act = jnp.maximum(conv3x3(buf_b, resw[2 * i + 1]) + resb[2 * i + 1] + res,
                              0.0) * mask
            buf_a[HALO:HALO + NP, :] = act

        feat = buf_a[HALO:HALO + NP, :]                       # (NP, F) f32
        featb = feat.astype(jnp.bfloat16)

        # ---- both 1x1 head convs (+ folded BN + ReLU) share one dot ------------------
        heads = jnp.dot(featb, hconv_w[...], preferred_element_type=jnp.float32)
        heads = jnp.maximum(heads + hconv_b[...], 0.0)        # (NP, 3): [pol_c0, pol_c1, val]
        # (padding rows of `heads` are nonzero only through the bias; the padded FC
        #  weights below have zero rows there, so they contribute nothing.)

        # ---- policy head: FC + optional legal-move mask + log_softmax ----------------
        logits = (jnp.sum(heads[:, 0:1] * pfc_w0[...], axis=0, keepdims=True)
                  + jnp.sum(heads[:, 1:2] * pfc_w1[...], axis=0, keepdims=True)
                  + pfc_b[...])                               # (1, A)
        if has_mask:
            logits = jnp.where(legal[...] != 0, logits, jnp.float32(-1e9))
        m = jnp.max(logits, axis=-1, keepdims=True)
        z = logits - m
        lse = jnp.log(jnp.sum(jnp.exp(z), axis=-1, keepdims=True))
        pol_out[...] = z - lse

        # ---- value head: FC1 + ReLU + FC2 + tanh -------------------------------------
        h = jnp.maximum(jnp.sum(heads[:, 2:3] * vfc1_w[...], axis=0, keepdims=True)
                        + vfc1_b[...], 0.0)                   # (1, 32)
        v = jnp.tanh(jnp.sum(h * vfc2_w[...], axis=-1, keepdims=True) + vfc2_b[...])
        val_out[...] = v                                      # (1, 1)

    return kernel


# ----------------------------------------------------------------------------- glue

def _fold_bn(gamma, beta, mean, var):
    scale = gamma / jnp.sqrt(var + EPS)
    shift = beta - mean * scale
    return scale, shift


def _pad_board_rows(w_hw, H, W):
    """(H*W, N) rows indexed by h*W+w  ->  ((H+2)*(W+2), N) padded-board row order
    with zero rows at the padding positions."""
    N = w_hw.shape[-1]
    w = w_hw.reshape(H, W, N)
    w = jnp.pad(w, ((1, 1), (1, 1), (0, 0)))
    return w.reshape((H + 2) * (W + 2), N)


def _stem_patches(x_nchw):
    """(B, Cin, H, W) NCHW -> (B, (H+2)*(W+2), 9*Cin) im2col evaluated at every
    padded-board row (padding-row outputs are masked inside the kernel).
    Column order is (kh, kw, cin): a PyTorch Conv2d weight (Cout, Cin, 3, 3) maps to
    our (9*Cin, Cout) layout via w.transpose(2, 3, 1, 0).reshape(9*Cin, Cout)."""
    B, Cin, H, W = x_nchw.shape
    x = jnp.transpose(x_nchw, (0, 2, 3, 1)).astype(jnp.float32)       # NHWC
    xp = jnp.pad(x, ((0, 0), (2, 2), (2, 2), (0, 0)))                 # pad by 2 (halo)
    cols = [xp[:, kh:kh + H + 2, kw:kw + W + 2, :]
            for kh in range(3) for kw in range(3)]
    p = jnp.concatenate(cols, axis=-1)                                # (B, H+2, W+2, 9*Cin)
    return p.reshape(B, (H + 2) * (W + 2), 9 * Cin)


# ----------------------------------------------------------------------------- params

def init_params(key, board_size=7, in_channels=2, num_res_blocks=3,
                num_filters=64, max_actions=24):
    def nrm(k, shape, s=0.1):
        return s * jax.random.normal(k, shape, dtype=jnp.float32)

    keys = iter(jax.random.split(key, 64))
    p = {}

    def bn(c):
        return dict(
            gamma=1.0 + nrm(next(keys), (c,), 0.05),
            beta=nrm(next(keys), (c,), 0.05),
            mean=nrm(next(keys), (c,), 0.05),
            var=1.0 + 0.05 * jnp.abs(jax.random.normal(next(keys), (c,), dtype=jnp.float32)),
        )

    # conv weights stored as (9*Cin, Cout); row order (kh, kw, cin)  (see _stem_patches)
    p['conv_w'] = nrm(next(keys), (9 * in_channels, num_filters))
    p['bn'] = bn(num_filters)

    p['res'] = []
    for _ in range(num_res_blocks):
        p['res'].append(dict(
            w1=nrm(next(keys), (9 * num_filters, num_filters)), bn1=bn(num_filters),
            w2=nrm(next(keys), (9 * num_filters, num_filters)), bn2=bn(num_filters)))

    # 1x1 head convs stored (Cin, Cout)
    p['policy_conv_w'] = nrm(next(keys), (num_filters, 2))
    p['policy_bn'] = bn(2)
    # Linear weights stored input-major (in, out) == PyTorch weight.T;
    # policy_fc rows follow PyTorch's NCHW flatten order  c*H*W + h*W + w.
    p['policy_fc_w'] = nrm(next(keys), (2 * board_size * board_size, max_actions))
    p['policy_fc_b'] = nrm(next(keys), (1, max_actions))

    p['value_conv_w'] = nrm(next(keys), (num_filters, 1))
    p['value_bn'] = bn(1)
    p['value_fc1_w'] = nrm(next(keys), (board_size * board_size, 32))
    p['value_fc1_b'] = nrm(next(keys), (1, 32))
    p['value_fc2_w'] = nrm(next(keys), (1, 32))       # == PyTorch Linear(32, 1).weight
    p['value_fc2_b'] = nrm(next(keys), (1, 1))
    return p


# ----------------------------------------------------------------------------- forward

def alphazero_forward(params, x_nchw, legal_moves_mask=None):
    """x_nchw: (B, in_channels, H, W) float32 (PyTorch layout).
       legal_moves_mask: optional (B, max_actions) bool.
       Returns (log_policy (B, max_actions), value (B, 1))."""
    B, Cin, H, W = x_nchw.shape
    F = params['conv_w'].shape[1]
    nb = len(params['res'])
    A = params['policy_fc_w'].shape[1]
    HW = H * W
    NP = (H + 2) * (W + 2)
    HALO = _halo(W)
    NT = ((HALO + NP + HALO + 7) // 8) * 8
    f32, bf16 = jnp.float32, jnp.bfloat16

    # ---- trace-time prep (plain JAX, constant-foldable): BN fold, bf16 cast, relayout
    stem_p = _stem_patches(x_nchw).astype(bf16)                        # (B, NP, 9*Cin)

    s0, sh0 = _fold_bn(**params['bn'])
    w0 = (params['conv_w'] * s0[None, :]).astype(bf16)                 # (9*Cin, F)
    b0 = sh0.reshape(1, F).astype(f32)

    resw, resb = [], []
    for rb in params['res']:
        s1, sh1 = _fold_bn(**rb['bn1'])
        s2, sh2 = _fold_bn(**rb['bn2'])
        resw.append(rb['w1'] * s1[None, :]); resb.append(sh1)
        resw.append(rb['w2'] * s2[None, :]); resb.append(sh2)
    resw = jnp.stack(resw).astype(bf16)                                # (2*nb, 9F, F)
    resb = jnp.stack(resb).reshape(2 * nb, 1, F).astype(f32)

    imask = jnp.pad(jnp.ones((H, W, 1), f32), ((1, 1), (1, 1), (0, 0))).reshape(NP, 1)

    ps, psh = _fold_bn(**params['policy_bn'])
    vs, vsh = _fold_bn(**params['value_bn'])
    hconv_w = jnp.concatenate([params['policy_conv_w'] * ps[None, :],
                               params['value_conv_w'] * vs[None, :]], axis=1).astype(bf16)
    hconv_b = jnp.concatenate([psh, vsh]).reshape(1, 3).astype(f32)

    pfc_w = params['policy_fc_w'].astype(f32)                          # (2*HW, A), NCHW order
    pfc_w0 = _pad_board_rows(pfc_w[:HW], H, W)                         # channel-0 rows
    pfc_w1 = _pad_board_rows(pfc_w[HW:], H, W)                         # channel-1 rows
    pfc_b = params['policy_fc_b'].reshape(1, A).astype(f32)

    vfc1_w = _pad_board_rows(params['value_fc1_w'].astype(f32), H, W)  # (NP, 32)
    vfc1_b = params['value_fc1_b'].reshape(1, -1).astype(f32)
    vfc2_w = params['value_fc2_w'].reshape(1, -1).astype(f32)          # (1, 32)
    vfc2_b = params['value_fc2_b'].reshape(1, 1).astype(f32)

    has_mask = legal_moves_mask is not None

    def batched(trailing):     # per-batch-element block, leading batch dim squeezed
        n = len(trailing)
        return pl.BlockSpec((None,) + tuple(trailing), lambda b: (b,) + (0,) * n)

    def shared(arr):           # whole array, same block every grid step (fetched once)
        nd = arr.ndim
        return pl.BlockSpec(arr.shape, lambda b: (0,) * nd)

    inputs = [stem_p, w0, b0, resw, resb, imask, hconv_w, hconv_b,
              pfc_w0, pfc_w1, pfc_b, vfc1_w, vfc1_b, vfc2_w, vfc2_b]
    in_specs = [batched((NP, 9 * Cin))] + [shared(a) for a in inputs[1:]]
    if has_mask:
        inputs.append(legal_moves_mask.astype(jnp.int32).reshape(B, 1, A))
        in_specs.append(batched((1, A)))

    kernel = _make_fused_kernel(H, W, F, nb, has_mask)

    pol, val = pl.pallas_call(
        kernel,
        out_shape=(jax.ShapeDtypeStruct((B, 1, A), f32),
                   jax.ShapeDtypeStruct((B, 1, 1), f32)),
        grid_spec=pltpu.PrefetchScalarGridSpec(
            num_scalar_prefetch=0,
            grid=(B,),
            in_specs=in_specs,
            out_specs=[batched((1, A)), batched((1, 1))],
            scratch_shapes=[pltpu.VMEM((NT, F), f32),        # padded activation (buf_a)
                            pltpu.VMEM((NT, F), f32),        # padded intermediate (buf_b)
                            pltpu.VMEM((NP, 9 * F), f32)]),  # im2col patch slab
        compiler_params=pltpu.CompilerParams(
            dimension_semantics=("parallel",)),               # v7x: shard batch over 2 TCs
    )(*inputs)

    return pol.reshape(B, A), val.reshape(B, 1)


# ----------------------------------------------------------------------------- main

if __name__ == "__main__":
    board_size = 7
    in_channels = 2
    num_res_blocks = 3
    num_filters = 64
    max_actions = 24
    batch = 2

    key = jax.random.PRNGKey(0)
    k_param, k_x = jax.random.split(key)
    params = init_params(k_param, board_size, in_channels, num_res_blocks,
                         num_filters, max_actions)
    x = jax.random.normal(k_x, (batch, in_channels, board_size, board_size),
                          dtype=jnp.float32)
    legal_mask = jnp.ones((batch, max_actions), dtype=jnp.bool_)

    fwd = jax.jit(alphazero_forward)
    log_policy, value = fwd(params, x, legal_mask)
    jax.block_until_ready((log_policy, value))

    # no-mask specialization path (all-ones mask is a no-op, results must agree)
    fwd_nomask = jax.jit(lambda p, xx: alphazero_forward(p, xx, None))
    lp2, v2 = fwd_nomask(params, x)
    jax.block_until_ready((lp2, v2))

    assert log_policy.shape == (batch, max_actions)
    assert value.shape == (batch, 1)
    assert jnp.allclose(jnp.sum(jnp.exp(log_policy), axis=1), 1.0, atol=1e-4)
    assert bool(jnp.all(jnp.abs(value) <= 1.0))
    assert jnp.allclose(log_policy, lp2, atol=1e-4, rtol=1e-4)
    assert jnp.allclose(value, v2, atol=1e-5, rtol=1e-5)

    print("KERNEL_OK")
</pallas_src>

<mosaic_0001>
module attributes {stable_mosaic.version = 11 : i64} {
  func.func @kernel(%arg0: i32, %arg1: memref<1x81x18xbf16, #tpu.memory_space<vmem>>, %arg2: memref<18x64xbf16, #tpu.memory_space<vmem>>, %arg3: memref<1x64xf32, #tpu.memory_space<vmem>>, %arg4: memref<6x576x64xbf16, #tpu.memory_space<vmem>>, %arg5: memref<6x1x64xf32, #tpu.memory_space<vmem>>, %arg6: memref<81x1xf32, #tpu.memory_space<vmem>>, %arg7: memref<64x3xbf16, #tpu.memory_space<vmem>>, %arg8: memref<1x3xf32, #tpu.memory_space<vmem>>, %arg9: memref<81x24xf32, #tpu.memory_space<vmem>>, %arg10: memref<81x24xf32, #tpu.memory_space<vmem>>, %arg11: memref<1x24xf32, #tpu.memory_space<vmem>>, %arg12: memref<81x32xf32, #tpu.memory_space<vmem>>, %arg13: memref<1x32xf32, #tpu.memory_space<vmem>>, %arg14: memref<1x32xf32, #tpu.memory_space<vmem>>, %arg15: memref<1x1xf32, #tpu.memory_space<vmem>>, %arg16: memref<1x1x24xi32, #tpu.memory_space<vmem>>, %arg17: memref<1x1x24xf32, #tpu.memory_space<vmem>>, %arg18: memref<1x1x1xf32, #tpu.memory_space<vmem>>, %arg19: memref<120x64xf32, #tpu.memory_space<vmem>>, %arg20: memref<120x64xf32, #tpu.memory_space<vmem>>, %arg21: memref<81x576xf32, #tpu.memory_space<vmem>>) attributes {dimension_semantics = [#tpu.dimension_semantics<parallel>], iteration_bounds = array<i64: 2>, scalar_prefetch = 0 : i64, scratch_operands = 3 : i64, tpu.core_type = #tpu.core_type<tc>, window_params = [{transform_indices = @transform_0, window_bounds = array<i64: 1, 81, 18>}, {pipeline_mode = #tpu.pipeline_mode<synchronous>, transform_indices = @transform_1, window_bounds = array<i64: 18, 64>}, {pipeline_mode = #tpu.pipeline_mode<synchronous>, transform_indices = @transform_2, window_bounds = array<i64: 1, 64>}, {pipeline_mode = #tpu.pipeline_mode<synchronous>, transform_indices = @transform_3, window_bounds = array<i64: 6, 576, 64>}, {pipeline_mode = #tpu.pipeline_mode<synchronous>, transform_indices = @transform_4, window_bounds = array<i64: 6, 1, 64>}, {pipeline_mode = #tpu.pipeline_mode<synchronous>, transform_indices = @transform_5, window_bounds = array<i64: 81, 1>}, {pipeline_mode = #tpu.pipeline_mode<synchronous>, transform_indices = @transform_6, window_bounds = array<i64: 64, 3>}, {pipeline_mode = #tpu.pipeline_mode<synchronous>, transform_indices = @transform_7, window_bounds = array<i64: 1, 3>}, {pipeline_mode = #tpu.pipeline_mode<synchronous>, transform_indices = @transform_8, window_bounds = array<i64: 81, 24>}, {pipeline_mode = #tpu.pipeline_mode<synchronous>, transform_indices = @transform_9, window_bounds = array<i64: 81, 24>}, {pipeline_mode = #tpu.pipeline_mode<synchronous>, transform_indices = @transform_10, window_bounds = array<i64: 1, 24>}, {pipeline_mode = #tpu.pipeline_mode<synchronous>, transform_indices = @transform_11, window_bounds = array<i64: 81, 32>}, {pipeline_mode = #tpu.pipeline_mode<synchronous>, transform_indices = @transform_12, window_bounds = array<i64: 1, 32>}, {pipeline_mode = #tpu.pipeline_mode<synchronous>, transform_indices = @transform_13, window_bounds = array<i64: 1, 32>}, {pipeline_mode = #tpu.pipeline_mode<synchronous>, transform_indices = @transform_14, window_bounds = array<i64: 1, 1>}, {transform_indices = @transform_15, window_bounds = array<i64: 1, 1, 24>}, {transform_indices = @transform_16, window_bounds = array<i64: 1, 1, 24>}, {transform_indices = @transform_17, window_bounds = array<i64: 1, 1, 1>}]} {
    %c0 = arith.constant 0 : index
    %c0_0 = arith.constant 0 : index
    %0 = vector.load %arg6[%c0, %c0_0] : memref<81x1xf32, #tpu.memory_space<vmem>>, vector<81x1xf32>
    %cst = arith.constant 0.000000e+00 : f32
    %1 = vector.broadcast %cst : f32 to vector<120x64xf32>
    %c0_1 = arith.constant 0 : index
    %c0_2 = arith.constant 0 : index
    %2 = vector.load %arg19[%c0_1, %c0_2] : memref<120x64xf32, #tpu.memory_space<vmem>>, vector<120x64xf32>
    tpu.vector_store %arg19[%c0_1, %c0_2], %1 {strides = array<i32>} : memref<120x64xf32, #tpu.memory_space<vmem>>, vector<120x64xf32>,
    %cst_3 = arith.constant 0.000000e+00 : f32
    %3 = vector.broadcast %cst_3 : f32 to vector<120x64xf32>
    %c0_4 = arith.constant 0 : index
    %c0_5 = arith.constant 0 : index
    %4 = vector.load %arg20[%c0_4, %c0_5] : memref<120x64xf32, #tpu.memory_space<vmem>>, vector<120x64xf32>
    tpu.vector_store %arg20[%c0_4, %c0_5], %3 {strides = array<i32>} : memref<120x64xf32, #tpu.memory_space<vmem>>, vector<120x64xf32>,
    %c0_6 = arith.constant 0 : index
    %c0_7 = arith.constant 0 : index
    %c0_8 = arith.constant 0 : index
    %5 = vector.load %arg1[%c0_6, %c0_7, %c0_8] : memref<1x81x18xbf16, #tpu.memory_space<vmem>>, vector<1x81x18xbf16>
    %6 = vector.shape_cast %5 : vector<1x81x18xbf16> to vector<81x18xbf16>
    %c0_9 = arith.constant 0 : index
    %c0_10 = arith.constant 0 : index
    %7 = vector.load %arg2[%c0_9, %c0_10] : memref<18x64xbf16, #tpu.memory_space<vmem>>, vector<18x64xbf16>
    %cst_11 = arith.constant dense<0.000000e+00> : vector<81x64xf32>
    %8 = tpu.matmul %6, %7, %cst_11 {dimension_numbers = #tpu.dot_dimension_numbers<[1], [0], [0], [1], [0, 0, 1, 1], [], []>} : vector<81x18xbf16>, vector<18x64xbf16>, vector<81x64xf32> -> vector<81x64xf32>
    %c0_12 = arith.constant 0 : index
    %c0_13 = arith.constant 0 : index
    %9 = vector.load %arg3[%c0_12, %c0_13] : memref<1x64xf32, #tpu.memory_space<vmem>>, vector<1x64xf32>
    %10 = vector.broadcast %9 : vector<1x64xf32> to vector<81x64xf32>
    %11 = arith.addf %8, %10 : vector<81x64xf32>
    %cst_14 = arith.constant 0.000000e+00 : f32
    %12 = vector.broadcast %cst_14 : f32 to vector<81x64xf32>
    %13 = arith.maximumf %11, %12 : vector<81x64xf32>
    %14 = vector.broadcast %0 : vector<81x1xf32> to vector<81x64xf32>
    %15 = arith.mulf %13, %14 : vector<81x64xf32>
    %c16 = arith.constant 16 : index
    %c0_15 = arith.constant 0 : index
    %16 = vector.load %arg19[%c16, %c0_15] : memref<120x64xf32, #tpu.memory_space<vmem>>, vector<81x64xf32>
    tpu.vector_store %arg19[%c16, %c0_15], %15 {strides = array<i32>} : memref<120x64xf32, #tpu.memory_space<vmem>>, vector<81x64xf32>,
    %c0_16 = arith.constant 0 : index
    %c0_17 = arith.constant 0 : index
    %c0_18 = arith.constant 0 : index
    %17 = vector.load %arg4[%c0_16, %c0_17, %c0_18] : memref<6x576x64xbf16, #tpu.memory_space<vmem>>, vector<1x576x64xbf16>
    %18 = vector.shape_cast %17 : vector<1x576x64xbf16> to vector<576x64xbf16>
    %c6 = arith.constant 6 : index
    %c0_19 = arith.constant 0 : index
    %19 = vector.load %arg19[%c6, %c0_19] : memref<120x64xf32, #tpu.memory_space<vmem>>, vector<81x64xf32>
    %c0_20 = arith.constant 0 : index
    %c0_21 = arith.constant 0 : index
    %20 = vector.load %arg21[%c0_20, %c0_21] : memref<81x576xf32, #tpu.memory_space<vmem>>, vector<81x64xf32>
    tpu.vector_store %arg21[%c0_20, %c0_21], %19 {strides = array<i32>} : memref<81x576xf32, #tpu.memory_space<vmem>>, vector<81x64xf32>,
    %c7 = arith.constant 7 : index
    %c0_22 = arith.constant 0 : index
    %21 = vector.load %arg19[%c7, %c0_22] : memref<120x64xf32, #tpu.memory_space<vmem>>, vector<81x64xf32>
    %c0_23 = arith.constant 0 : index
    %c64 = arith.constant 64 : index
    %22 = vector.load %arg21[%c0_23, %c64] : memref<81x576xf32, #tpu.memory_space<vmem>>, vector<81x64xf32>
    tpu.vector_store %arg21[%c0_23, %c64], %21 {strides = array<i32>} : memref<81x576xf32, #tpu.memory_space<vmem>>, vector<81x64xf32>,
    %c8 = arith.constant 8 : index
    %c0_24 = arith.constant 0 : index
    %23 = vector.load %arg19[%c8, %c0_24] : memref<120x64xf32, #tpu.memory_space<vmem>>, vector<81x64xf32>
    %c0_25 = arith.constant 0 : index
    %c128 = arith.constant 128 : index
    %24 = vector.load %arg21[%c0_25, %c128] : memref<81x576xf32, #tpu.memory_space<vmem>>, vector<81x64xf32>
    tpu.vector_store %arg21[%c0_25, %c128], %23 {strides = array<i32>} : memref<81x576xf32, #tpu.memory_space<vmem>>, vector<81x64xf32>,
    %c15 = arith.constant 15 : index
    %c0_26 = arith.constant 0 : index
    %25 = vector.load %arg19[%c15, %c0_26] : memref<120x64xf32, #tpu.memory_space<vmem>>, vector<81x64xf32>
    %c0_27 = arith.constant 0 : index
    %c192 = arith.constant 192 : index
    %26 = vector.load %arg21[%c0_27, %c192] : memref<81x576xf32, #tpu.memory_space<vmem>>, vector<81x64xf32>
    tpu.vector_store %arg21[%c0_27, %c192], %25 {strides = array<i32>} : memref<81x576xf32, #tpu.memory_space<vmem>>, vector<81x64xf32>,
    %c16_28 = arith.constant 16 : index
    %c0_29 = arith.constant 0 : index
    %27 = vector.load %arg19[%c16_28, %c0_29] : memref<120x64xf32, #tpu.memory_space<vmem>>, vector<81x64xf32>
    %c0_30 = arith.constant 0 : index
    %c256 = arith.constant 256 : index
    %28 = vector.load %arg21[%c0_30, %c256] : memref<81x576xf32, #tpu.memory_space<vmem>>, vector<81x64xf32>
    tpu.vector_store %arg21[%c0_30, %c256], %27 {strides = array<i32>} : memref<81x576xf32, #tpu.memory_space<vmem>>, vector<81x64xf32>,
    %c17 = arith.constant 17 : index
    %c0_31 = arith.constant 0 : index
    %29 = vector.load %arg19[%c17, %c0_31] : memref<120x64xf32, #tpu.memory_space<vmem>>, vector<81x64xf32>
    %c0_32 = arith.constant 0 : index
    %c320 = arith.constant 320 : index
    %30 = vector.load %arg21[%c0_32, %c320] : memref<81x576xf32, #tpu.memory_space<vmem>>, vector<81x64xf32>
    tpu.vector_store %arg21[%c0_32, %c320], %29 {strides = array<i32>} : memref<81x576xf32, #tpu.memory_space<vmem>>, vector<81x64xf32>,
    %c24 = arith.constant 24 : index
    %c0_33 = arith.constant 0 : index
    %31 = vector.load %arg19[%c24, %c0_33] : memref<120x64xf32, #tpu.memory_space<vmem>>, vector<81x64xf32>
    %c0_34 = arith.constant 0 : index
    %c384 = arith.constant 384 : index
    %32 = vector.load %arg21[%c0_34, %c384] : memref<81x576xf32, #tpu.memory_space<vmem>>, vector<81x64xf32>
    tpu.vector_store %arg21[%c0_34, %c384], %31 {strides = array<i32>} : memref<81x576xf32, #tpu.memory_space<vmem>>, vector<81x64xf32>,
    %c25 = arith.constant 25 : index
    %c0_35 = arith.constant 0 : index
    %33 = vector.load %arg19[%c25, %c0_35] : memref<120x64xf32, #tpu.memory_space<vmem>>, vector<81x64xf32>
    %c0_36 = arith.constant 0 : index
    %c448 = arith.constant 448 : index
    %34 = vector.load %arg21[%c0_36, %c448] : memref<81x576xf32, #tpu.memory_space<vmem>>, vector<81x64xf32>
    tpu.vector_store %arg21[%c0_36, %c448], %33 {strides = array<i32>} : memref<81x576xf32, #tpu.memory_space<vmem>>, vector<81x64xf32>,
    %c26 = arith.constant 26 : index
    %c0_37 = arith.constant 0 : index
    %35 = vector.load %arg19[%c26, %c0_37] : memref<120x64xf32, #tpu.memory_space<vmem>>, vector<81x64xf32>
    %c0_38 = arith.constant 0 : index
    %c512 = arith.constant 512 : index
    %36 = vector.load %arg21[%c0_38, %c512] : memref<81x576xf32, #tpu.memory_space<vmem>>, vector<81x64xf32>
    tpu.vector_store %arg21[%c0_38, %c512], %35 {strides = array<i32>} : memref<81x576xf32, #tpu.memory_space<vmem>>, vector<81x64xf32>,
    %c0_39 = arith.constant 0 : index
    %c0_40 = arith.constant 0 : index
    %37 = vector.load %arg21[%c0_39, %c0_40] : memref<81x576xf32, #tpu.memory_space<vmem>>, vector<81x576xf32>
    %38 = arith.truncf %37 : vector<81x576xf32> to vector<81x576xbf16>
    %cst_41 = arith.constant dense<0.000000e+00> : vector<81x64xf32>
    %39 = tpu.matmul %38, %18, %cst_41 {dimension_numbers = #tpu.dot_dimension_numbers<[1], [0], [0], [1], [0, 0, 1, 1], [], []>} : vector<81x576xbf16>, vector<576x64xbf16>, vector<81x64xf32> -> vector<81x64xf32>
    %c0_42 = arith.constant 0 : index
    %c0_43 = arith.constant 0 : index
    %c0_44 = arith.constant 0 : index
    %40 = vector.load %arg5[%c0_42, %c0_43, %c0_44] : memref<6x1x64xf32, #tpu.memory_space<vmem>>, vector<1x1x64xf32>
    %41 = vector.shape_cast %40 : vector<1x1x64xf32> to vector<1x64xf32>
    %42 = vector.broadcast %41 : vector<1x64xf32> to vector<81x64xf32>
    %43 = arith.addf %39, %42 : vector<81x64xf32>
    %cst_45 = arith.constant 0.000000e+00 : f32
    %44 = vector.broadcast %cst_45 : f32 to vector<81x64xf32>
    %45 = arith.maximumf %43, %44 : vector<81x64xf32>
    %46 = vector.broadcast %0 : vector<81x1xf32> to vector<81x64xf32>
    %47 = arith.mulf %45, %46 : vector<81x64xf32>
    %c16_46 = arith.constant 16 : index
    %c0_47 = arith.constant 0 : index
    %48 = vector.load %arg20[%c16_46, %c0_47] : memref<120x64xf32, #tpu.memory_space<vmem>>, vector<81x64xf32>
    tpu.vector_store %arg20[%c16_46, %c0_47], %47 {strides = array<i32>} : memref<120x64xf32, #tpu.memory_space<vmem>>, vector<81x64xf32>,
    %c16_48 = arith.constant 16 : index
    %c0_49 = arith.constant 0 : index
    %49 = vector.load %arg19[%c16_48, %c0_49] : memref<120x64xf32, #tpu.memory_space<vmem>>, vector<81x64xf32>
    %c1 = arith.constant 1 : index
    %c0_50 = arith.constant 0 : index
    %c0_51 = arith.constant 0 : index
    %50 = vector.load %arg4[%c1, %c0_50, %c0_51] : memref<6x576x64xbf16, #tpu.memory_space<vmem>>, vector<1x576x64xbf16>
    %51 = vector.shape_cast %50 : vector<1x576x64xbf16> to vector<576x64xbf16>
    %c6_52 = arith.constant 6 : index
    %c0_53 = arith.constant 0 : index
    %52 = vector.load %arg20[%c6_52, %c0_53] : memref<120x64xf32, #tpu.memory_space<vmem>>, vector<81x64xf32>
    %c0_54 = arith.constant 0 : index
    %c0_55 = arith.constant 0 : index
    %53 = vector.load %arg21[%c0_54, %c0_55] : memref<81x576xf32, #tpu.memory_space<vmem>>, vector<81x64xf32>
    tpu.vector_store %arg21[%c0_54, %c0_55], %52 {strides = array<i32>} : memref<81x576xf32, #tpu.memory_space<vmem>>, vector<81x64xf32>,
    %c7_56 = arith.constant 7 : index
    %c0_57 = arith.constant 0 : index
    %54 = vector.load %arg20[%c7_56, %c0_57] : memref<120x64xf32, #tpu.memory_space<vmem>>, vector<81x64xf32>
    %c0_58 = arith.constant 0 : index
    %c64_59 = arith.constant 64 : index
    %55 = vector.load %arg21[%c0_58, %c64_59] : memref<81x576xf32, #tpu.memory_space<vmem>>, vector<81x64xf32>
    tpu.vector_store %arg21[%c0_58, %c64_59], %54 {strides = array<i32>} : memref<81x576xf32, #tpu.memory_space<vmem>>, vector<81x64xf32>,
    %c8_60 = arith.constant 8 : index
    %c0_61 = arith.constant 0 : index
    %56 = vector.load %arg20[%c8_60, %c0_61] : memref<120x64xf32, #tpu.memory_space<vmem>>, vector<81x64xf32>
    %c0_62 = arith.constant 0 : index
    %c128_63 = arith.constant 128 : index
    %57 = vector.load %arg21[%c0_62, %c128_63] : memref<81x576xf32, #tpu.memory_space<vmem>>, vector<81x64xf32>
    tpu.vector_store %arg21[%c0_62, %c128_63], %56 {strides = array<i32>} : memref<81x576xf32, #tpu.memory_space<vmem>>, vector<81x64xf32>,
    %c15_64 = arith.constant 15 : index
    %c0_65 = arith.constant 0 : index
    %58 = vector.load %arg20[%c15_64, %c0_65] : memref<120x64xf32, #tpu.memory_space<vmem>>, vector<81x64xf32>
    %c0_66 = arith.constant 0 : index
    %c192_67 = arith.constant 192 : index
    %59 = vector.load %arg21[%c0_66, %c192_67] : memref<81x576xf32, #tpu.memory_space<vmem>>, vector<81x64xf32>
    tpu.vector_store %arg21[%c0_66, %c192_67], %58 {strides = array<i32>} : memref<81x576xf32, #tpu.memory_space<vmem>>, vector<81x64xf32>,
    %c16_68 = arith.constant 16 : index
    %c0_69 = arith.constant 0 : index
    %60 = vector.load %arg20[%c16_68, %c0_69] : memref<120x64xf32, #tpu.memory_space<vmem>>, vector<81x64xf32>
    %c0_70 = arith.constant 0 : index
    %c256_71 = arith.constant 256 : index
    %61 = vector.load %arg21[%c0_70, %c256_71] : memref<81x576xf32, #tpu.memory_space<vmem>>, vector<81x64xf32>
    tpu.vector_store %arg21[%c0_70, %c256_71], %60 {strides = array<i32>} : memref<81x576xf32, #tpu.memory_space<vmem>>, vector<81x64xf32>,
    %c17_72 = arith.constant 17 : index
    %c0_73 = arith.constant 0 : index
    %62 = vector.load %arg20[%c17_72, %c0_73] : memref<120x64xf32, #tpu.memory_space<vmem>>, vector<81x64xf32>
    %c0_74 = arith.constant 0 : index
    %c320_75 = arith.constant 320 : index
    %63 = vector.load %arg21[%c0_74, %c320_75] : memref<81x576xf32, #tpu.memory_space<vmem>>, vector<81x64xf32>
    tpu.vector_store %arg21[%c0_74, %c320_75], %62 {strides = array<i32>} : memref<81x576xf32, #tpu.memory_space<vmem>>, vector<81x64xf32>,
    %c24_76 = arith.constant 24 : index
    %c0_77 = arith.constant 0 : index
    %64 = vector.load %arg20[%c24_76, %c0_77] : memref<120x64xf32, #tpu.memory_space<vmem>>, vector<81x64xf32>
    %c0_78 = arith.constant 0 : index
    %c384_79 = arith.constant 384 : index
    %65 = vector.load %arg21[%c0_78, %c384_79] : memref<81x576xf32, #tpu.memory_space<vmem>>, vector<81x64xf32>
    tpu.vector_store %arg21[%c0_78, %c384_79], %64 {strides = array<i32>} : memref<81x576xf32, #tpu.memory_space<vmem>>, vector<81x64xf32>,
    %c25_80 = arith.constant 25 : index
    %c0_81 = arith.constant 0 : index
    %66 = vector.load %arg20[%c25_80, %c0_81] : memref<120x64xf32, #tpu.memory_space<vmem>>, vector<81x64xf32>
    %c0_82 = arith.constant 0 : index
    %c448_83 = arith.constant 448 : index
    %67 = vector.load %arg21[%c0_82, %c448_83] : memref<81x576xf32, #tpu.memory_space<vmem>>, vector<81x64xf32>
    tpu.vector_store %arg21[%c0_82, %c448_83], %66 {strides = array<i32>} : memref<81x576xf32, #tpu.memory_space<vmem>>, vector<81x64xf32>,
    %c26_84 = arith.constant 26 : index
    %c0_85 = arith.constant 0 : index
    %68 = vector.load %arg20[%c26_84, %c0_85] : memref<120x64xf32, #tpu.memory_space<vmem>>, vector<81x64xf32>
    %c0_86 = arith.constant 0 : index
    %c512_87 = arith.constant 512 : index
    %69 = vector.load %arg21[%c0_86, %c512_87] : memref<81x576xf32, #tpu.memory_space<vmem>>, vector<81x64xf32>
    tpu.vector_store %arg21[%c0_86, %c512_87], %68 {strides = array<i32>} : memref<81x576xf32, #tpu.memory_space<vmem>>, vector<81x64xf32>,
    %c0_88 = arith.constant 0 : index
    %c0_89 = arith.constant 0 : index
    %70 = vector.load %arg21[%c0_88, %c0_89] : memref<81x576xf32, #tpu.memory_space<vmem>>, vector<81x576xf32>
    %71 = arith.truncf %70 : vector<81x576xf32> to vector<81x576xbf16>
    %cst_90 = arith.constant dense<0.000000e+00> : vector<81x64xf32>
    %72 = tpu.matmul %71, %51, %cst_90 {dimension_numbers = #tpu.dot_dimension_numbers<[1], [0], [0], [1], [0, 0, 1, 1], [], []>} : vector<81x576xbf16>, vector<576x64xbf16>, vector<81x64xf32> -> vector<81x64xf32>
    %c1_91 = arith.constant 1 : index
    %c0_92 = arith.constant 0 : index
    %c0_93 = arith.constant 0 : index
    %73 = vector.load %arg5[%c1_91, %c0_92, %c0_93] : memref<6x1x64xf32, #tpu.memory_space<vmem>>, vector<1x1x64xf32>
    %74 = vector.shape_cast %73 : vector<1x1x64xf32> to vector<1x64xf32>
    %75 = vector.broadcast %74 : vector<1x64xf32> to vector<81x64xf32>
    %76 = arith.addf %72, %75 : vector<81x64xf32>
    %77 = arith.addf %76, %49 : vector<81x64xf32>
    %cst_94 = arith.constant 0.000000e+00 : f32
    %78 = vector.broadcast %cst_94 : f32 to vector<81x64xf32>
    %79 = arith.maximumf %77, %78 : vector<81x64xf32>
    %80 = vector.broadcast %0 : vector<81x1xf32> to vector<81x64xf32>
    %81 = arith.mulf %79, %80 : vector<81x64xf32>
    %c16_95 = arith.constant 16 : index
    %c0_96 = arith.constant 0 : index
    %82 = vector.load %arg19[%c16_95, %c0_96] : memref<120x64xf32, #tpu.memory_space<vmem>>, vector<81x64xf32>
    tpu.vector_store %arg19[%c16_95, %c0_96], %81 {strides = array<i32>} : memref<120x64xf32, #tpu.memory_space<vmem>>, vector<81x64xf32>,
    %c2 = arith.constant 2 : index
    %c0_97 = arith.constant 0 : index
    %c0_98 = arith.constant 0 : index
    %83 = vector.load %arg4[%c2, %c0_97, %c0_98] : memref<6x576x64xbf16, #tpu.memory_space<vmem>>, vector<1x576x64xbf16>
    %84 = vector.shape_cast %83 : vector<1x576x64xbf16> to vector<576x64xbf16>
    %c6_99 = arith.constant 6 : index
    %c0_100 = arith.constant 0 : index
    %85 = vector.load %arg19[%c6_99, %c0_100] : memref<120x64xf32, #tpu.memory_space<vmem>>, vector<81x64xf32>
    %c0_101 = arith.constant 0 : index
    %c0_102 = arith.constant 0 : index
    %86 = vector.load %arg21[%c0_101, %c0_102] : memref<81x576xf32, #tpu.memory_space<vmem>>, vector<81x64xf32>
    tpu.vector_store %arg21[%c0_101, %c0_102], %85 {strides = array<i32>} : memref<81x576xf32, #tpu.memory_space<vmem>>, vector<81x64xf32>,
    %c7_103 = arith.constant 7 : index
    %c0_104 = arith.constant 0 : index
    %87 = vector.load %arg19[%c7_103, %c0_104] : memref<120x64xf32, #tpu.memory_space<vmem>>, vector<81x64xf32>
    %c0_105 = arith.constant 0 : index
    %c64_106 = arith.constant 64 : index
    %88 = vector.load %arg21[%c0_105, %c64_106] : memref<81x576xf32, #tpu.memory_space<vmem>>, vector<81x64xf32>
    tpu.vector_store %arg21[%c0_105, %c64_106], %87 {strides = array<i32>} : memref<81x576xf32, #tpu.memory_space<vmem>>, vector<81x64xf32>,
    %c8_107 = arith.constant 8 : index
    %c0_108 = arith.constant 0 : index
    %89 = vector.load %arg19[%c8_107, %c0_108] : memref<120x64xf32, #tpu.memory_space<vmem>>, vector<81x64xf32>
    %c0_109 = arith.constant 0 : index
    %c128_110 = arith.constant 128 : index
    %90 = vector.load %arg21[%c0_109, %c128_110] : memref<81x576xf32, #tpu.memory_space<vmem>>, vector<81x64xf32>
    tpu.vector_store %arg21[%c0_109, %c128_110], %89 {strides = array<i32>} : memref<81x576xf32, #tpu.memory_space<vmem>>, vector<81x64xf32>,
    %c15_111 = arith.constant 15 : index
    %c0_112 = arith.constant 0 : index
    %91 = vector.load %arg19[%c15_111, %c0_112] : memref<120x64xf32, #tpu.memory_space<vmem>>, vector<81x64xf32>
    %c0_113 = arith.constant 0 : index
    %c192_114 = arith.constant 192 : index
    %92 = vector.load %arg21[%c0_113, %c192_114] : memref<81x576xf32, #tpu.memory_space<vmem>>, vector<81x64xf32>
    tpu.vector_store %arg21[%c0_113, %c192_114], %91 {strides = array<i32>} : memref<81x576xf32, #tpu.memory_space<vmem>>, vector<81x64xf32>,
    %c16_115 = arith.constant 16 : index
    %c0_116 = arith.constant 0 : index
    %93 = vector.load %arg19[%c16_115, %c0_116] : memref<120x64xf32, #tpu.memory_space<vmem>>, vector<81x64xf32>
    %c0_117 = arith.constant 0 : index
    %c256_118 = arith.constant 256 : index
    %94 = vector.load %arg21[%c0_117, %c256_118] : memref<81x576xf32, #tpu.memory_space<vmem>>, vector<81x64xf32>
    tpu.vector_store %arg21[%c0_117, %c256_118], %93 {strides = array<i32>} : memref<81x576xf32, #tpu.memory_space<vmem>>, vector<81x64xf32>,
    %c17_119 = arith.constant 17 : index
    %c0_120 = arith.constant 0 : index
    %95 = vector.load %arg19[%c17_119, %c0_120] : memref<120x64xf32, #tpu.memory_space<vmem>>, vector<81x64xf32>
    %c0_121 = arith.constant 0 : index
    %c320_122 = arith.constant 320 : index
    %96 = vector.load %arg21[%c0_121, %c320_122] : memref<81x576xf32, #tpu.memory_space<vmem>>, vector<81x64xf32>
    tpu.vector_store %arg21[%c0_121, %c320_122], %95 {strides = array<i32>} : memref<81x576xf32, #tpu.memory_space<vmem>>, vector<81x64xf32>,
    %c24_123 = arith.constant 24 : index
    %c0_124 = arith.constant 0 : index
    %97 = vector.load %arg19[%c24_123, %c0_124] : memref<120x64xf32, #tpu.memory_space<vmem>>, vector<81x64xf32>
    %c0_125 = arith.constant 0 : index
    %c384_126 = arith.constant 384 : index
    %98 = vector.load %arg21[%c0_125, %c384_126] : memref<81x576xf32, #tpu.memory_space<vmem>>, vector<81x64xf32>
    tpu.vector_store %arg21[%c0_125, %c384_126], %97 {strides = array<i32>} : memref<81x576xf32, #tpu.memory_space<vmem>>, vector<81x64xf32>,
    %c25_127 = arith.constant 25 : index
    %c0_128 = arith.constant 0 : index
    %99 = vector.load %arg19[%c25_127, %c0_128] : memref<120x64xf32, #tpu.memory_space<vmem>>, vector<81x64xf32>
    %c0_129 = arith.constant 0 : index
    %c448_130 = arith.constant 448 : index
    %100 = vector.load %arg21[%c0_129, %c448_130] : memref<81x576xf32, #tpu.memory_space<vmem>>, vector<81x64xf32>
    tpu.vector_store %arg21[%c0_129, %c448_130], %99 {strides = array<i32>} : memref<81x576xf32, #tpu.memory_space<vmem>>, vector<81x64xf32>,
    %c26_131 = arith.constant 26 : index
    %c0_132 = arith.constant 0 : index
    %101 = vector.load %arg19[%c26_131, %c0_132] : memref<120x64xf32, #tpu.memory_space<vmem>>, vector<81x64xf32>
    %c0_133 = arith.constant 0 : index
    %c512_134 = arith.constant 512 : index
    %102 = vector.load %arg21[%c0_133, %c512_134] : memref<81x576xf32, #tpu.memory_space<vmem>>, vector<81x64xf32>
    tpu.vector_store %arg21[%c0_133, %c512_134], %101 {strides = array<i32>} : memref<81x576xf32, #tpu.memory_space<vmem>>, vector<81x64xf32>,
    %c0_135 = arith.constant 0 : index
    %c0_136 = arith.constant 0 : index
    %103 = vector.load %arg21[%c0_135, %c0_136] : memref<81x576xf32, #tpu.memory_space<vmem>>, vector<81x576xf32>
    %104 = arith.truncf %103 : vector<81x576xf32> to vector<81x576xbf16>
    %cst_137 = arith.constant dense<0.000000e+00> : vector<81x64xf32>
    %105 = tpu.matmul %104, %84, %cst_137 {dimension_numbers = #tpu.dot_dimension_numbers<[1], [0], [0], [1], [0, 0, 1, 1], [], []>} : vector<81x576xbf16>, vector<576x64xbf16>, vector<81x64xf32> -> vector<81x64xf32>
    %c2_138 = arith.constant 2 : index
    %c0_139 = arith.constant 0 : index
    %c0_140 = arith.constant 0 : index
    %106 = vector.load %arg5[%c2_138, %c0_139, %c0_140] : memref<6x1x64xf32, #tpu.memory_space<vmem>>, vector<1x1x64xf32>
    %107 = vector.shape_cast %106 : vector<1x1x64xf32> to vector<1x64xf32>
    %108 = vector.broadcast %107 : vector<1x64xf32> to vector<81x64xf32>
    %109 = arith.addf %105, %108 : vector<81x64xf32>
    %cst_141 = arith.constant 0.000000e+00 : f32
    %110 = vector.broadcast %cst_141 : f32 to vector<81x64xf32>
    %111 = arith.maximumf %109, %110 : vector<81x64xf32>
    %112 = vector.broadcast %0 : vector<81x1xf32> to vector<81x64xf32>
    %113 = arith.mulf %111, %112 : vector<81x64xf32>
    %c16_142 = arith.constant 16 : index
    %c0_143 = arith.constant 0 : index
    %114 = vector.load %arg20[%c16_142, %c0_143] : memref<120x64xf32, #tpu.memory_space<vmem>>, vector<81x64xf32>
    tpu.vector_store %arg20[%c16_142, %c0_143], %113 {strides = array<i32>} : memref<120x64xf32, #tpu.memory_space<vmem>>, vector<81x64xf32>,
    %c16_144 = arith.constant 16 : index
    %c0_145 = arith.constant 0 : index
    %115 = vector.load %arg19[%c16_144, %c0_145] : memref<120x64xf32, #tpu.memory_space<vmem>>, vector<81x64xf32>
    %c3 = arith.constant 3 : index
    %c0_146 = arith.constant 0 : index
    %c0_147 = arith.constant 0 : index
    %116 = vector.load %arg4[%c3, %c0_146, %c0_147] : memref<6x576x64xbf16, #tpu.memory_space<vmem>>, vector<1x576x64xbf16>
    %117 = vector.shape_cast %116 : vector<1x576x64xbf16> to vector<576x64xbf16>
    %c6_148 = arith.constant 6 : index
    %c0_149 = arith.constant 0 : index
    %118 = vector.load %arg20[%c6_148, %c0_149] : memref<120x64xf32, #tpu.memory_space<vmem>>, vector<81x64xf32>
    %c0_150 = arith.constant 0 : index
    %c0_151 = arith.constant 0 : index
    %119 = vector.load %arg21[%c0_150, %c0_151] : memref<81x576xf32, #tpu.memory_space<vmem>>, vector<81x64xf32>
    tpu.vector_store %arg21[%c0_150, %c0_151], %118 {strides = array<i32>} : memref<81x576xf32, #tpu.memory_space<vmem>>, vector<81x64xf32>,
    %c7_152 = arith.constant 7 : index
    %c0_153 = arith.constant 0 : index
    %120 = vector.load %arg20[%c7_152, %c0_153] : memref<120x64xf32, #tpu.memory_space<vmem>>, vector<81x64xf32>
    %c0_154 = arith.constant 0 : index
    %c64_155 = arith.constant 64 : index
    %121 = vector.load %arg21[%c0_154, %c64_155] : memref<81x576xf32, #tpu.memory_space<vmem>>, vector<81x64xf32>
    tpu.vector_store %arg21[%c0_154, %c64_155], %120 {strides = array<i32>} : memref<81x576xf32, #tpu.memory_space<vmem>>, vector<81x64xf32>,
    %c8_156 = arith.constant 8 : index
    %c0_157 = arith.constant 0 : index
    %122 = vector.load %arg20[%c8_156, %c0_157] : memref<120x64xf32, #tpu.memory_space<vmem>>, vector<81x64xf32>
    %c0_158 = arith.constant 0 : index
    %c128_159 = arith.constant 128 : index
    %123 = vector.load %arg21[%c0_158, %c128_159] : memref<81x576xf32, #tpu.memory_space<vmem>>, vector<81x64xf32>
    tpu.vector_store %arg21[%c0_158, %c128_159], %122 {strides = array<i32>} : memref<81x576xf32, #tpu.memory_space<vmem>>, vector<81x64xf32>,
    %c15_160 = arith.constant 15 : index
    %c0_161 = arith.constant 0 : index
    %124 = vector.load %arg20[%c15_160, %c0_161] : memref<120x64xf32, #tpu.memory_space<vmem>>, vector<81x64xf32>
    %c0_162 = arith.constant 0 : index
    %c192_163 = arith.constant 192 : index
    %125 = vector.load %arg21[%c0_162, %c192_163] : memref<81x576xf32, #tpu.memory_space<vmem>>, vector<81x64xf32>
    tpu.vector_store %arg21[%c0_162, %c192_163], %124 {strides = array<i32>} : memref<81x576xf32, #tpu.memory_space<vmem>>, vector<81x64xf32>,
    %c16_164 = arith.constant 16 : index
    %c0_165 = arith.constant 0 : index
    %126 = vector.load %arg20[%c16_164, %c0_165] : memref<120x64xf32, #tpu.memory_space<vmem>>, vector<81x64xf32>
    %c0_166 = arith.constant 0 : index
    %c256_167 = arith.constant 256 : index
    %127 = vector.load %arg21[%c0_166, %c256_167] : memref<81x576xf32, #tpu.memory_space<vmem>>, vector<81x64xf32>
    tpu.vector_store %arg21[%c0_166, %c256_167], %126 {strides = array<i32>} : memref<81x576xf32, #tpu.memory_space<vmem>>, vector<81x64xf32>,
    %c17_168 = arith.constant 17 : index
    %c0_169 = arith.constant 0 : index
    %128 = vector.load %arg20[%c17_168, %c0_169] : memref<120x64xf32, #tpu.memory_space<vmem>>, vector<81x64xf32>
    %c0_170 = arith.constant 0 : index
    %c320_171 = arith.constant 320 : index
    %129 = vector.load %arg21[%c0_170, %c320_171] : memref<81x576xf32, #tpu.memory_space<vmem>>, vector<81x64xf32>
    tpu.vector_store %arg21[%c0_170, %c320_171], %128 {strides = array<i32>} : memref<81x576xf32, #tpu.memory_space<vmem>>, vector<81x64xf32>,
    %c24_172 = arith.constant 24 : index
    %c0_173 = arith.constant 0 : index
    %130 = vector.load %arg20[%c24_172, %c0_173] : memref<120x64xf32, #tpu.memory_space<vmem>>, vector<81x64xf32>
    %c0_174 = arith.constant 0 : index
    %c384_175 = arith.constant 384 : index
    %131 = vector.load %arg21[%c0_174, %c384_175] : memref<81x576xf32, #tpu.memory_space<vmem>>, vector<81x64xf32>
    tpu.vector_store %arg21[%c0_174, %c384_175], %130 {strides = array<i32>} : memref<81x576xf32, #tpu.memory_space<vmem>>, vector<81x64xf32>,
    %c25_176 = arith.constant 25 : index
    %c0_177 = arith.constant 0 : index
    %132 = vector.load %arg20[%c25_176, %c0_177] : memref<120x64xf32, #tpu.memory_space<vmem>>, vector<81x64xf32>
    %c0_178 = arith.constant 0 : index
    %c448_179 = arith.constant 448 : index
    %133 = vector.load %arg21[%c0_178, %c448_179] : memref<81x576xf32, #tpu.memory_space<vmem>>, vector<81x64xf32>
    tpu.vector_store %arg21[%c0_178, %c448_179], %132 {strides = array<i32>} : memref<81x576xf32, #tpu.memory_space<vmem>>, vector<81x64xf32>,
    %c26_180 = arith.constant 26 : index
    %c0_181 = arith.constant 0 : index
    %134 = vector.load %arg20[%c26_180, %c0_181] : memref<120x64xf32, #tpu.memory_space<vmem>>, vector<81x64xf32>
    %c0_182 = arith.constant 0 : index
    %c512_183 = arith.constant 512 : index
    %135 = vector.load %arg21[%c0_182, %c512_183] : memref<81x576xf32, #tpu.memory_space<vmem>>, vector<81x64xf32>
    tpu.vector_store %arg21[%c0_182, %c512_183], %134 {strides = array<i32>} : memref<81x576xf32, #tpu.memory_space<vmem>>, vector<81x64xf32>,
    %c0_184 = arith.constant 0 : index
    %c0_185 = arith.constant 0 : index
    %136 = vector.load %arg21[%c0_184, %c0_185] : memref<81x576xf32, #tpu.memory_space<vmem>>, vector<81x576xf32>
    %137 = arith.truncf %136 : vector<81x576xf32> to vector<81x576xbf16>
    %cst_186 = arith.constant dense<0.000000e+00> : vector<81x64xf32>
    %138 = tpu.matmul %137, %117, %cst_186 {dimension_numbers = #tpu.dot_dimension_numbers<[1], [0], [0], [1], [0, 0, 1, 1], [], []>} : vector<81x576xbf16>, vector<576x64xbf16>, vector<81x64xf32> -> vector<81x64xf32>
    %c3_187 = arith.constant 3 : index
    %c0_188 = arith.constant 0 : index
    %c0_189 = arith.constant 0 : index
    %139 = vector.load %arg5[%c3_187, %c0_188, %c0_189] : memref<6x1x64xf32, #tpu.memory_space<vmem>>, vector<1x1x64xf32>
    %140 = vector.shape_cast %139 : vector<1x1x64xf32> to vector<1x64xf32>
    %141 = vector.broadcast %140 : vector<1x64xf32> to vector<81x64xf32>
    %142 = arith.addf %138, %141 : vector<81x64xf32>
    %143 = arith.addf %142, %115 : vector<81x64xf32>
    %cst_190 = arith.constant 0.000000e+00 : f32
    %144 = vector.broadcast %cst_190 : f32 to vector<81x64xf32>
    %145 = arith.maximumf %143, %144 : vector<81x64xf32>
    %146 = vector.broadcast %0 : vector<81x1xf32> to vector<81x64xf32>
    %147 = arith.mulf %145, %146 : vector<81x64xf32>
    %c16_191 = arith.constant 16 : index
    %c0_192 = arith.constant 0 : index
    %148 = vector.load %arg19[%c16_191, %c0_192] : memref<120x64xf32, #tpu.memory_space<vmem>>, vector<81x64xf32>
    tpu.vector_store %arg19[%c16_191, %c0_192], %147 {strides = array<i32>} : memref<120x64xf32, #tpu.memory_space<vmem>>, vector<81x64xf32>,
    %c4 = arith.constant 4 : index
    %c0_193 = arith.constant 0 : index
    %c0_194 = arith.constant 0 : index
    %149 = vector.load %arg4[%c4, %c0_193, %c0_194] : memref<6x576x64xbf16, #tpu.memory_space<vmem>>, vector<1x576x64xbf16>
    %150 = vector.shape_cast %149 : vector<1x576x64xbf16> to vector<576x64xbf16>
    %c6_195 = arith.constant 6 : index
    %c0_196 = arith.constant 0 : index
    %151 = vector.load %arg19[%c6_195, %c0_196] : memref<120x64xf32, #tpu.memory_space<vmem>>, vector<81x64xf32>
    %c0_197 = arith.constant 0 : index
    %c0_198 = arith.constant 0 : index
    %152 = vector.load %arg21[%c0_197, %c0_198] : memref<81x576xf32, #tpu.memory_space<vmem>>, vector<81x64xf32>
    tpu.vector_store %arg21[%c0_197, %c0_198], %151 {strides = array<i32>} : memref<81x576xf32, #tpu.memory_space<vmem>>, vector<81x64xf32>,
    %c7_199 = arith.constant 7 : index
    %c0_200 = arith.constant 0 : index
    %153 = vector.load %arg19[%c7_199, %c0_200] : memref<120x64xf32, #tpu.memory_space<vmem>>, vector<81x64xf32>
    %c0_201 = arith.constant 0 : index
    %c64_202 = arith.constant 64 : index
    %154 = vector.load %arg21[%c0_201, %c64_202] : memref<81x576xf32, #tpu.memory_space<vmem>>, vector<81x64xf32>
    tpu.vector_store %arg21[%c0_201, %c64_202], %153 {strides = array<i32>} : memref<81x576xf32, #tpu.memory_space<vmem>>, vector<81x64xf32>,
    %c8_203 = arith.constant 8 : index
    %c0_204 = arith.constant 0 : index
    %155 = vector.load %arg19[%c8_203, %c0_204] : memref<120x64xf32, #tpu.memory_space<vmem>>, vector<81x64xf32>
    %c0_205 = arith.constant 0 : index
    %c128_206 = arith.constant 128 : index
    %156 = vector.load %arg21[%c0_205, %c128_206] : memref<81x576xf32, #tpu.memory_space<vmem>>, vector<81x64xf32>
    tpu.vector_store %arg21[%c0_205, %c128_206], %155 {strides = array<i32>} : memref<81x576xf32, #tpu.memory_space<vmem>>, vector<81x64xf32>,
    %c15_207 = arith.constant 15 : index
    %c0_208 = arith.constant 0 : index
    %157 = vector.load %arg19[%c15_207, %c0_208] : memref<120x64xf32, #tpu.memory_space<vmem>>, vector<81x64xf32>
    %c0_209 = arith.constant 0 : index
    %c192_210 = arith.constant 192 : index
    %158 = vector.load %arg21[%c0_209, %c192_210] : memref<81x576xf32, #tpu.memory_space<vmem>>, vector<81x64xf32>
    tpu.vector_store %arg21[%c0_209, %c192_210], %157 {strides = array<i32>} : memref<81x576xf32, #tpu.memory_space<vmem>>, vector<81x64xf32>,
    %c16_211 = arith.constant 16 : index
    %c0_212 = arith.constant 0 : index
    %159 = vector.load %arg19[%c16_211, %c0_212] : memref<120x64xf32, #tpu.memory_space<vmem>>, vector<81x64xf32>
    %c0_213 = arith.constant 0 : index
    %c256_214 = arith.constant 256 : index
    %160 = vector.load %arg21[%c0_213, %c256_214] : memref<81x576xf32, #tpu.memory_space<vmem>>, vector<81x64xf32>
    tpu.vector_store %arg21[%c0_213, %c256_214], %159 {strides = array<i32>} : memref<81x576xf32, #tpu.memory_space<vmem>>, vector<81x64xf32>,
    %c17_215 = arith.constant 17 : index
    %c0_216 = arith.constant 0 : index
    %161 = vector.load %arg19[%c17_215, %c0_216] : memref<120x64xf32, #tpu.memory_space<vmem>>, vector<81x64xf32>
    %c0_217 = arith.constant 0 : index
    %c320_218 = arith.constant 320 : index
    %162 = vector.load %arg21[%c0_217, %c320_218] : memref<81x576xf32, #tpu.memory_space<vmem>>, vector<81x64xf32>
    tpu.vector_store %arg21[%c0_217, %c320_218], %161 {strides = array<i32>} : memref<81x576xf32, #tpu.memory_space<vmem>>, vector<81x64xf32>,
    %c24_219 = arith.constant 24 : index
    %c0_220 = arith.constant 0 : index
    %163 = vector.load %arg19[%c24_219, %c0_220] : memref<120x64xf32, #tpu.memory_space<vmem>>, vector<81x64xf32>
    %c0_221 = arith.constant 0 : index
    %c384_222 = arith.constant 384 : index
    %164 = vector.load %arg21[%c0_221, %c384_222] : memref<81x576xf32, #tpu.memory_space<vmem>>, vector<81x64xf32>
    tpu.vector_store %arg21[%c0_221, %c384_222], %163 {strides = array<i32>} : memref<81x576xf32, #tpu.memory_space<vmem>>, vector<81x64xf32>,
    %c25_223 = arith.constant 25 : index
    %c0_224 = arith.constant 0 : index
    %165 = vector.load %arg19[%c25_223, %c0_224] : memref<120x64xf32, #tpu.memory_space<vmem>>, vector<81x64xf32>
    %c0_225 = arith.constant 0 : index
    %c448_226 = arith.constant 448 : index
    %166 = vector.load %arg21[%c0_225, %c448_226] : memref<81x576xf32, #tpu.memory_space<vmem>>, vector<81x64xf32>
    tpu.vector_store %arg21[%c0_225, %c448_226], %165 {strides = array<i32>} : memref<81x576xf32, #tpu.memory_space<vmem>>, vector<81x64xf32>,
    %c26_227 = arith.constant 26 : index
    %c0_228 = arith.constant 0 : index
    %167 = vector.load %arg19[%c26_227, %c0_228] : memref<120x64xf32, #tpu.memory_space<vmem>>, vector<81x64xf32>
    %c0_229 = arith.constant 0 : index
    %c512_230 = arith.constant 512 : index
    %168 = vector.load %arg21[%c0_229, %c512_230] : memref<81x576xf32, #tpu.memory_space<vmem>>, vector<81x64xf32>
    tpu.vector_store %arg21[%c0_229, %c512_230], %167 {strides = array<i32>} : memref<81x576xf32, #tpu.memory_space<vmem>>, vector<81x64xf32>,
    %c0_231 = arith.constant 0 : index
    %c0_232 = arith.constant 0 : index
    %169 = vector.load %arg21[%c0_231, %c0_232] : memref<81x576xf32, #tpu.memory_space<vmem>>, vector<81x576xf32>
    %170 = arith.truncf %169 : vector<81x576xf32> to vector<81x576xbf16>
    %cst_233 = arith.constant dense<0.000000e+00> : vector<81x64xf32>
    %171 = tpu.matmul %170, %150, %cst_233 {dimension_numbers = #tpu.dot_dimension_numbers<[1], [0], [0], [1], [0, 0, 1, 1], [], []>} : vector<81x576xbf16>, vector<576x64xbf16>, vector<81x64xf32> -> vector<81x64xf32>
    %c4_234 = arith.constant 4 : index
    %c0_235 = arith.constant 0 : index
    %c0_236 = arith.constant 0 : index
    %172 = vector.load %arg5[%c4_234, %c0_235, %c0_236] : memref<6x1x64xf32, #tpu.memory_space<vmem>>, vector<1x1x64xf32>
    %173 = vector.shape_cast %172 : vector<1x1x64xf32> to vector<1x64xf32>
    %174 = vector.broadcast %173 : vector<1x64xf32> to vector<81x64xf32>
    %175 = arith.addf %171, %174 : vector<81x64xf32>
    %cst_237 = arith.constant 0.000000e+00 : f32
    %176 = vector.broadcast %cst_237 : f32 to vector<81x64xf32>
    %177 = arith.maximumf %175, %176 : vector<81x64xf32>
    %178 = vector.broadcast %0 : vector<81x1xf32> to vector<81x64xf32>
    %179 = arith.mulf %177, %178 : vector<81x64xf32>
    %c16_238 = arith.constant 16 : index
    %c0_239 = arith.constant 0 : index
    %180 = vector.load %arg20[%c16_238, %c0_239] : memref<120x64xf32, #tpu.memory_space<vmem>>, vector<81x64xf32>
    tpu.vector_store %arg20[%c16_238, %c0_239], %179 {strides = array<i32>} : memref<120x64xf32, #tpu.memory_space<vmem>>, vector<81x64xf32>,
    %c16_240 = arith.constant 16 : index
    %c0_241 = arith.constant 0 : index
    %181 = vector.load %arg19[%c16_240, %c0_241] : memref<120x64xf32, #tpu.memory_space<vmem>>, vector<81x64xf32>
    %c5 = arith.constant 5 : index
    %c0_242 = arith.constant 0 : index
    %c0_243 = arith.constant 0 : index
    %182 = vector.load %arg4[%c5, %c0_242, %c0_243] : memref<6x576x64xbf16, #tpu.memory_space<vmem>>, vector<1x576x64xbf16>
    %183 = vector.shape_cast %182 : vector<1x576x64xbf16> to vector<576x64xbf16>
    %c6_244 = arith.constant 6 : index
    %c0_245 = arith.constant 0 : index
    %184 = vector.load %arg20[%c6_244, %c0_245] : memref<120x64xf32, #tpu.memory_space<vmem>>, vector<81x64xf32>
    %c0_246 = arith.constant 0 : index
    %c0_247 = arith.constant 0 : index
    %185 = vector.load %arg21[%c0_246, %c0_247] : memref<81x576xf32, #tpu.memory_space<vmem>>, vector<81x64xf32>
    tpu.vector_store %arg21[%c0_246, %c0_247], %184 {strides = array<i32>} : memref<81x576xf32, #tpu.memory_space<vmem>>, vector<81x64xf32>,
    %c7_248 = arith.constant 7 : index
    %c0_249 = arith.constant 0 : index
    %186 = vector.load %arg20[%c7_248, %c0_249] : memref<120x64xf32, #tpu.memory_space<vmem>>, vector<81x64xf32>
    %c0_250 = arith.constant 0 : index
    %c64_251 = arith.constant 64 : index
    %187 = vector.load %arg21[%c0_250, %c64_251] : memref<81x576xf32, #tpu.memory_space<vmem>>, vector<81x64xf32>
    tpu.vector_store %arg21[%c0_250, %c64_251], %186 {strides = array<i32>} : memref<81x576xf32, #tpu.memory_space<vmem>>, vector<81x64xf32>,
    %c8_252 = arith.constant 8 : index
    %c0_253 = arith.constant 0 : index
    %188 = vector.load %arg20[%c8_252, %c0_253] : memref<120x64xf32, #tpu.memory_space<vmem>>, vector<81x64xf32>
    %c0_254 = arith.constant 0 : index
    %c128_255 = arith.constant 128 : index
    %189 = vector.load %arg21[%c0_254, %c128_255] : memref<81x576xf32, #tpu.memory_space<vmem>>, vector<81x64xf32>
    tpu.vector_store %arg21[%c0_254, %c128_255], %188 {strides = array<i32>} : memref<81x576xf32, #tpu.memory_space<vmem>>, vector<81x64xf32>,
    %c15_256 = arith.constant 15 : index
    %c0_257 = arith.constant 0 : index
    %190 = vector.load %arg20[%c15_256, %c0_257] : memref<120x64xf32, #tpu.memory_space<vmem>>, vector<81x64xf32>
    %c0_258 = arith.constant 0 : index
    %c192_259 = arith.constant 192 : index
    %191 = vector.load %arg21[%c0_258, %c192_259] : memref<81x576xf32, #tpu.memory_space<vmem>>, vector<81x64xf32>
    tpu.vector_store %arg21[%c0_258, %c192_259], %190 {strides = array<i32>} : memref<81x576xf32, #tpu.memory_space<vmem>>, vector<81x64xf32>,
    %c16_260 = arith.constant 16 : index
    %c0_261 = arith.constant 0 : index
    %192 = vector.load %arg20[%c16_260, %c0_261] : memref<120x64xf32, #tpu.memory_space<vmem>>, vector<81x64xf32>
    %c0_262 = arith.constant 0 : index
    %c256_263 = arith.constant 256 : index
    %193 = vector.load %arg21[%c0_262, %c256_263] : memref<81x576xf32, #tpu.memory_space<vmem>>, vector<81x64xf32>
    tpu.vector_store %arg21[%c0_262, %c256_263], %192 {strides = array<i32>} : memref<81x576xf32, #tpu.memory_space<vmem>>, vector<81x64xf32>,
    %c17_264 = arith.constant 17 : index
    %c0_265 = arith.constant 0 : index
    %194 = vector.load %arg20[%c17_264, %c0_265] : memref<120x64xf32, #tpu.memory_space<vmem>>, vector<81x64xf32>
    %c0_266 = arith.constant 0 : index
    %c320_267 = arith.constant 320 : index
    %195 = vector.load %arg21[%c0_266, %c320_267] : memref<81x576xf32, #tpu.memory_space<vmem>>, vector<81x64xf32>
    tpu.vector_store %arg21[%c0_266, %c320_267], %194 {strides = array<i32>} : memref<81x576xf32, #tpu.memory_space<vmem>>, vector<81x64xf32>,
    %c24_268 = arith.constant 24 : index
    %c0_269 = arith.constant 0 : index
    %196 = vector.load %arg20[%c24_268, %c0_269] : memref<120x64xf32, #tpu.memory_space<vmem>>, vector<81x64xf32>
    %c0_270 = arith.constant 0 : index
    %c384_271 = arith.constant 384 : index
    %197 = vector.load %arg21[%c0_270, %c384_271] : memref<81x576xf32, #tpu.memory_space<vmem>>, vector<81x64xf32>
    tpu.vector_store %arg21[%c0_270, %c384_271], %196 {strides = array<i32>} : memref<81x576xf32, #tpu.memory_space<vmem>>, vector<81x64xf32>,
    %c25_272 = arith.constant 25 : index
    %c0_273 = arith.constant 0 : index
    %198 = vector.load %arg20[%c25_272, %c0_273] : memref<120x64xf32, #tpu.memory_space<vmem>>, vector<81x64xf32>
    %c0_274 = arith.constant 0 : index
    %c448_275 = arith.constant 448 : index
    %199 = vector.load %arg21[%c0_274, %c448_275] : memref<81x576xf32, #tpu.memory_space<vmem>>, vector<81x64xf32>
    tpu.vector_store %arg21[%c0_274, %c448_275], %198 {strides = array<i32>} : memref<81x576xf32, #tpu.memory_space<vmem>>, vector<81x64xf32>,
    %c26_276 = arith.constant 26 : index
    %c0_277 = arith.constant 0 : index
    %200 = vector.load %arg20[%c26_276, %c0_277] : memref<120x64xf32, #tpu.memory_space<vmem>>, vector<81x64xf32>
    %c0_278 = arith.constant 0 : index
    %c512_279 = arith.constant 512 : index
    %201 = vector.load %arg21[%c0_278, %c512_279] : memref<81x576xf32, #tpu.memory_space<vmem>>, vector<81x64xf32>
    tpu.vector_store %arg21[%c0_278, %c512_279], %200 {strides = array<i32>} : memref<81x576xf32, #tpu.memory_space<vmem>>, vector<81x64xf32>,
    %c0_280 = arith.constant 0 : index
    %c0_281 = arith.constant 0 : index
    %202 = vector.load %arg21[%c0_280, %c0_281] : memref<81x576xf32, #tpu.memory_space<vmem>>, vector<81x576xf32>
    %203 = arith.truncf %202 : vector<81x576xf32> to vector<81x576xbf16>
    %cst_282 = arith.constant dense<0.000000e+00> : vector<81x64xf32>
    %204 = tpu.matmul %203, %183, %cst_282 {dimension_numbers = #tpu.dot_dimension_numbers<[1], [0], [0], [1], [0, 0, 1, 1], [], []>} : vector<81x576xbf16>, vector<576x64xbf16>, vector<81x64xf32> -> vector<81x64xf32>
    %c5_283 = arith.constant 5 : index
    %c0_284 = arith.constant 0 : index
    %c0_285 = arith.constant 0 : index
    %205 = vector.load %arg5[%c5_283, %c0_284, %c0_285] : memref<6x1x64xf32, #tpu.memory_space<vmem>>, vector<1x1x64xf32>
    %206 = vector.shape_cast %205 : vector<1x1x64xf32> to vector<1x64xf32>
    %207 = vector.broadcast %206 : vector<1x64xf32> to vector<81x64xf32>
    %208 = arith.addf %204, %207 : vector<81x64xf32>
    %209 = arith.addf %208, %181 : vector<81x64xf32>
    %cst_286 = arith.constant 0.000000e+00 : f32
    %210 = vector.broadcast %cst_286 : f32 to vector<81x64xf32>
    %211 = arith.maximumf %209, %210 : vector<81x64xf32>
    %212 = vector.broadcast %0 : vector<81x1xf32> to vector<81x64xf32>
    %213 = arith.mulf %211, %212 : vector<81x64xf32>
    %c16_287 = arith.constant 16 : index
    %c0_288 = arith.constant 0 : index
    %214 = vector.load %arg19[%c16_287, %c0_288] : memref<120x64xf32, #tpu.memory_space<vmem>>, vector<81x64xf32>
    tpu.vector_store %arg19[%c16_287, %c0_288], %213 {strides = array<i32>} : memref<120x64xf32, #tpu.memory_space<vmem>>, vector<81x64xf32>,
    %c16_289 = arith.constant 16 : index
    %c0_290 = arith.constant 0 : index
    %215 = vector.load %arg19[%c16_289, %c0_290] : memref<120x64xf32, #tpu.memory_space<vmem>>, vector<81x64xf32>
    %216 = arith.truncf %215 : vector<81x64xf32> to vector<81x64xbf16>
    %c0_291 = arith.constant 0 : index
    %c0_292 = arith.constant 0 : index
    %217 = vector.load %arg7[%c0_291, %c0_292] : memref<64x3xbf16, #tpu.memory_space<vmem>>, vector<64x3xbf16>
    %cst_293 = arith.constant dense<0.000000e+00> : vector<81x3xf32>
    %218 = tpu.matmul %216, %217, %cst_293 {dimension_numbers = #tpu.dot_dimension_numbers<[1], [0], [0], [1], [0, 0, 1, 1], [], []>} : vector<81x64xbf16>, vector<64x3xbf16>, vector<81x3xf32> -> vector<81x3xf32>
    %c0_294 = arith.constant 0 : index
    %c0_295 = arith.constant 0 : index
    %219 = vector.load %arg8[%c0_294, %c0_295] : memref<1x3xf32, #tpu.memory_space<vmem>>, vector<1x3xf32>
    %220 = vector.broadcast %219 : vector<1x3xf32> to vector<81x3xf32>
    %221 = arith.addf %218, %220 : vector<81x3xf32>
    %cst_296 = arith.constant 0.000000e+00 : f32
    %222 = vector.broadcast %cst_296 : f32 to vector<81x3xf32>
    %223 = arith.maximumf %221, %222 : vector<81x3xf32>
    %224 = vector.extract_strided_slice %223 {offsets = [0, 0], sizes = [81, 1], strides = [1, 1]} : vector<81x3xf32> to vector<81x1xf32>
    %c0_297 = arith.constant 0 : index
    %c0_298 = arith.constant 0 : index
    %225 = vector.load %arg9[%c0_297, %c0_298] : memref<81x24xf32, #tpu.memory_space<vmem>>, vector<81x24xf32>
    %226 = vector.broadcast %224 : vector<81x1xf32> to vector<81x24xf32>
    %227 = arith.mulf %226, %225 : vector<81x24xf32>
    %cst_299 = arith.constant dense<0.000000e+00> : vector<24xf32>
    %228 = vector.multi_reduction <add>, %227, %cst_299 [0] : vector<81x24xf32> to vector<24xf32>
    %229 = vector.shape_cast %228 : vector<24xf32> to vector<1x24xf32>
    %230 = vector.extract_strided_slice %223 {offsets = [0, 1], sizes = [81, 1], strides = [1, 1]} : vector<81x3xf32> to vector<81x1xf32>
    %c0_300 = arith.constant 0 : index
    %c0_301 = arith.constant 0 : index
    %231 = vector.load %arg10[%c0_300, %c0_301] : memref<81x24xf32, #tpu.memory_space<vmem>>, vector<81x24xf32>
    %232 = vector.broadcast %230 : vector<81x1xf32> to vector<81x24xf32>
    %233 = arith.mulf %232, %231 : vector<81x24xf32>
    %cst_302 = arith.constant dense<0.000000e+00> : vector<24xf32>
    %234 = vector.multi_reduction <add>, %233, %cst_302 [0] : vector<81x24xf32> to vector<24xf32>
    %235 = vector.shape_cast %234 : vector<24xf32> to vector<1x24xf32>
    %236 = arith.addf %229, %235 : vector<1x24xf32>
    %c0_303 = arith.constant 0 : index
    %c0_304 = arith.constant 0 : index
    %237 = vector.load %arg11[%c0_303, %c0_304] : memref<1x24xf32, #tpu.memory_space<vmem>>, vector<1x24xf32>
    %238 = arith.addf %236, %237 : vector<1x24xf32>
    %c0_305 = arith.constant 0 : index
    %c0_306 = arith.constant 0 : index
    %c0_307 = arith.constant 0 : index
    %239 = vector.load %arg16[%c0_305, %c0_306, %c0_307] : memref<1x1x24xi32, #tpu.memory_space<vmem>>, vector<1x1x24xi32>
    %240 = vector.shape_cast %239 : vector<1x1x24xi32> to vector<1x24xi32>
    %c0_i32 = arith.constant 0 : i32
    %241 = vector.broadcast %c0_i32 : i32 to vector<1x24xi32>
    %242 = arith.cmpi ne, %240, %241 : vector<1x24xi32>
    %cst_308 = arith.constant -1.000000e+09 : f32
    %243 = vector.broadcast %cst_308 : f32 to vector<1x24xf32>
    %244 = arith.select %242, %238, %243 : vector<1x24xi1>, vector<1x24xf32>
    %cst_309 = arith.constant dense<0xFF800000> : vector<1xf32>
    %245 = vector.multi_reduction <maximumf>, %244, %cst_309 [1] : vector<1x24xf32> to vector<1xf32>
    %246 = vector.shape_cast %245 : vector<1xf32> to vector<1x1xf32>
    %247 = vector.broadcast %246 : vector<1x1xf32> to vector<1x24xf32>
    %248 = arith.subf %244, %247 : vector<1x24xf32>
    %249 = math.exp %248 : vector<1x24xf32>
    %cst_310 = arith.constant dense<0.000000e+00> : vector<1xf32>
    %250 = vector.multi_reduction <add>, %249, %cst_310 [1] : vector<1x24xf32> to vector<1xf32>
    %251 = vector.shape_cast %250 : vector<1xf32> to vector<1x1xf32>
    %252 = math.log %251 : vector<1x1xf32>
    %253 = vector.broadcast %252 : vector<1x1xf32> to vector<1x24xf32>
    %254 = arith.subf %248, %253 : vector<1x24xf32>
    %c0_311 = arith.constant 0 : index
    %c0_312 = arith.constant 0 : index
    %c0_313 = arith.constant 0 : index
    %255 = vector.load %arg17[%c0_311, %c0_312, %c0_313] : memref<1x1x24xf32, #tpu.memory_space<vmem>>, vector<1x1x24xf32>
    %256 = vector.shape_cast %255 : vector<1x1x24xf32> to vector<1x24xf32>
    %257 = vector.shape_cast %254 : vector<1x24xf32> to vector<1x1x24xf32>
    tpu.vector_store %arg17[%c0_311, %c0_312, %c0_313], %257 {strides = array<i32>} : memref<1x1x24xf32, #tpu.memory_space<vmem>>, vector<1x1x24xf32>,
    %258 = vector.extract_strided_slice %223 {offsets = [0, 2], sizes = [81, 1], strides = [1, 1]} : vector<81x3xf32> to vector<81x1xf32>
    %c0_314 = arith.constant 0 : index
    %c0_315 = arith.constant 0 : index
    %259 = vector.load %arg12[%c0_314, %c0_315] : memref<81x32xf32, #tpu.memory_space<vmem>>, vector<81x32xf32>
    %260 = vector.broadcast %258 : vector<81x1xf32> to vector<81x32xf32>
    %261 = arith.mulf %260, %259 : vector<81x32xf32>
    %cst_316 = arith.constant dense<0.000000e+00> : vector<32xf32>
    %262 = vector.multi_reduction <add>, %261, %cst_316 [0] : vector<81x32xf32> to vector<32xf32>
    %263 = vector.shape_cast %262 : vector<32xf32> to vector<1x32xf32>
    %c0_317 = arith.constant 0 : index
    %c0_318 = arith.constant 0 : index
    %264 = vector.load %arg13[%c0_317, %c0_318] : memref<1x32xf32, #tpu.memory_space<vmem>>, vector<1x32xf32>
    %265 = arith.addf %263, %264 : vector<1x32xf32>
    %cst_319 = arith.constant 0.000000e+00 : f32
    %266 = vector.broadcast %cst_319 : f32 to vector<1x32xf32>
    %267 = arith.maximumf %265, %266 : vector<1x32xf32>
    %c0_320 = arith.constant 0 : index
    %c0_321 = arith.constant 0 : index
    %268 = vector.load %arg14[%c0_320, %c0_321] : memref<1x32xf32, #tpu.memory_space<vmem>>, vector<1x32xf32>
    %269 = arith.mulf %267, %268 : vector<1x32xf32>
    %cst_322 = arith.constant dense<0.000000e+00> : vector<1xf32>
    %270 = vector.multi_reduction <add>, %269, %cst_322 [1] : vector<1x32xf32> to vector<1xf32>
    %271 = vector.shape_cast %270 : vector<1xf32> to vector<1x1xf32>
    %c0_323 = arith.constant 0 : index
    %c0_324 = arith.constant 0 : index
    %272 = vector.load %arg15[%c0_323, %c0_324] : memref<1x1xf32, #tpu.memory_space<vmem>>, vector<1x1xf32>
    %273 = arith.addf %271, %272 : vector<1x1xf32>
    %274 = math.tanh %273 : vector<1x1xf32>
    %c0_325 = arith.constant 0 : index
    %c0_326 = arith.constant 0 : index
    %c0_327 = arith.constant 0 : index
    %275 = vector.load %arg18[%c0_325, %c0_326, %c0_327] : memref<1x1x1xf32, #tpu.memory_space<vmem>>, vector<1x1x1xf32>
    %276 = vector.shape_cast %275 : vector<1x1x1xf32> to vector<1x1xf32>
    %277 = vector.shape_cast %274 : vector<1x1xf32> to vector<1x1x1xf32>
    tpu.vector_store %arg18[%c0_325, %c0_326, %c0_327], %277 {strides = array<i32>} : memref<1x1x1xf32, #tpu.memory_space<vmem>>, vector<1x1x1xf32>,
    return
  }
  func.func @transform_0(%arg0: i32) -> (i32, i32, i32) {
    %c0_i32 = arith.constant 0 : i32
    %c0_i32_0 = arith.constant 0 : i32
    %c0_i32_1 = arith.constant 0 : i32
    return %arg0, %c0_i32, %c0_i32_0 : i32, i32, i32
  }
  func.func @transform_1(%arg0: i32) -> (i32, i32) {
    %c0_i32 = arith.constant 0 : i32
    %c0_i32_0 = arith.constant 0 : i32
    %c0_i32_1 = arith.constant 0 : i32
    return %c0_i32, %c0_i32_0 : i32, i32
  }
  func.func @transform_2(%arg0: i32) -> (i32, i32) {
    %c0_i32 = arith.constant 0 : i32
    %c0_i32_0 = arith.constant 0 : i32
    %c0_i32_1 = arith.constant 0 : i32
    return %c0_i32, %c0_i32_0 : i32, i32
  }
  func.func @transform_3(%arg0: i32) -> (i32, i32, i32) {
    %c0_i32 = arith.constant 0 : i32
    %c0_i32_0 = arith.constant 0 : i32
    %c0_i32_1 = arith.constant 0 : i32
    %c0_i32_2 = arith.constant 0 : i32
    return %c0_i32, %c0_i32_0, %c0_i32_1 : i32, i32, i32
  }
  func.func @transform_4(%arg0: i32) -> (i32, i32, i32) {
    %c0_i32 = arith.constant 0 : i32
    %c0_i32_0 = arith.constant 0 : i32
    %c0_i32_1 = arith.constant 0 : i32
    %c0_i32_2 = arith.constant 0 : i32
    return %c0_i32, %c0_i32_0, %c0_i32_1 : i32, i32, i32
  }
  func.func @transform_5(%arg0: i32) -> (i32, i32) {
    %c0_i32 = arith.constant 0 : i32
    %c0_i32_0 = arith.constant 0 : i32
    %c0_i32_1 = arith.constant 0 : i32
    return %c0_i32, %c0_i32_0 : i32, i32
  }
  func.func @transform_6(%arg0: i32) -> (i32, i32) {
    %c0_i32 = arith.constant 0 : i32
    %c0_i32_0 = arith.constant 0 : i32
    %c0_i32_1 = arith.constant 0 : i32
    return %c0_i32, %c0_i32_0 : i32, i32
  }
  func.func @transform_7(%arg0: i32) -> (i32, i32) {
    %c0_i32 = arith.constant 0 : i32
    %c0_i32_0 = arith.constant 0 : i32
    %c0_i32_1 = arith.constant 0 : i32
    return %c0_i32, %c0_i32_0 : i32, i32
  }
  func.func @transform_8(%arg0: i32) -> (i32, i32) {
    %c0_i32 = arith.constant 0 : i32
    %c0_i32_0 = arith.constant 0 : i32
    %c0_i32_1 = arith.constant 0 : i32
    return %c0_i32, %c0_i32_0 : i32, i32
  }
  func.func @transform_9(%arg0: i32) -> (i32, i32) {
    %c0_i32 = arith.constant 0 : i32
    %c0_i32_0 = arith.constant 0 : i32
    %c0_i32_1 = arith.constant 0 : i32
    return %c0_i32, %c0_i32_0 : i32, i32
  }
  func.func @transform_10(%arg0: i32) -> (i32, i32) {
    %c0_i32 = arith.constant 0 : i32
    %c0_i32_0 = arith.constant 0 : i32
    %c0_i32_1 = arith.constant 0 : i32
    return %c0_i32, %c0_i32_0 : i32, i32
  }
  func.func @transform_11(%arg0: i32) -> (i32, i32) {
    %c0_i32 = arith.constant 0 : i32
    %c0_i32_0 = arith.constant 0 : i32
    %c0_i32_1 = arith.constant 0 : i32
    return %c0_i32, %c0_i32_0 : i32, i32
  }
  func.func @transform_12(%arg0: i32) -> (i32, i32) {
    %c0_i32 = arith.constant 0 : i32
    %c0_i32_0 = arith.constant 0 : i32
    %c0_i32_1 = arith.constant 0 : i32
    return %c0_i32, %c0_i32_0 : i32, i32
  }
  func.func @transform_13(%arg0: i32) -> (i32, i32) {
    %c0_i32 = arith.constant 0 : i32
    %c0_i32_0 = arith.constant 0 : i32
    %c0_i32_1 = arith.constant 0 : i32
    return %c0_i32, %c0_i32_0 : i32, i32
  }
  func.func @transform_14(%arg0: i32) -> (i32, i32) {
    %c0_i32 = arith.constant 0 : i32
    %c0_i32_0 = arith.constant 0 : i32
    %c0_i32_1 = arith.constant 0 : i32
    return %c0_i32, %c0_i32_0 : i32, i32
  }
  func.func @transform_15(%arg0: i32) -> (i32, i32, i32) {
    %c0_i32 = arith.constant 0 : i32
    %c0_i32_0 = arith.constant 0 : i32
    %c0_i32_1 = arith.constant 0 : i32
    return %arg0, %c0_i32, %c0_i32_0 : i32, i32, i32
  }
  func.func @transform_16(%arg0: i32) -> (i32, i32, i32) {
    %c0_i32 = arith.constant 0 : i32
    %c0_i32_0 = arith.constant 0 : i32
    %c0_i32_1 = arith.constant 0 : i32
    return %arg0, %c0_i32, %c0_i32_0 : i32, i32, i32
  }
  func.func @transform_17(%arg0: i32) -> (i32, i32, i32) {
    %c0_i32 = arith.constant 0 : i32
    %c0_i32_0 = arith.constant 0 : i32
    %c0_i32_1 = arith.constant 0 : i32
    return %arg0, %c0_i32, %c0_i32_0 : i32, i32, i32
  }
}

</mosaic_0001>

<bundles_post_ra>
// kernel: alphazero_forward.1
= control target key start
LH: loop header
LB: loop body
LE: loop exit
PB: predicated region body
PF: predicated region fallthrough
CT: control target
= control target key end

     0   :  { %s12313_s0 = inlined_call_operand.vmem [shape: bf16[2,81,18], index: 0, kind: input, shape index: {}]   ;;  %s12314_s1 = inlined_call_operand.vmem [shape: bf16[18,64], index: 1, kind: input, shape index: {}]   ;;  %s12315_s2 = inlined_call_operand.vmem [shape: f32[1,64], index: 2, kind: input, shape index: {}]   ;;  %s12316_s3 = inlined_call_operand.vmem [shape: bf16[6,576,64], index: 3, kind: input, shape index: {}]   ;;  %s12317_s4 = inlined_call_operand.vmem [shape: f32[6,1,64], index: 4, kind: input, shape index: {}]   ;;  %s12318_s5 = inlined_call_operand.vmem [shape: f32[81,1], index: 5, kind: input, shape index: {}]   ;;  %s12319_s6 = inlined_call_operand.vmem [shape: bf16[64,3], index: 6, kind: input, shape index: {}]   ;;  %s12320_s7 = inlined_call_operand.vmem [shape: f32[1,3], index: 7, kind: input, shape index: {}]   ;;  %s12321_s8 = inlined_call_operand.vmem [shape: f32[81,24], index: 8, kind: input, shape index: {}]   ;;  %s12322_s9 = inlined_call_operand.vmem [shape: f32[81,24], index: 9, kind: input, shape index: {}]   ;;  %s12323_s10 = inlined_call_operand.vmem [shape: f32[1,24], index: 10, kind: input, shape index: {}]   ;;  %s12324_s11 = inlined_call_operand.vmem [shape: f32[81,32], index: 11, kind: input, shape index: {}]   ;;  %s12325_s12 = inlined_call_operand.vmem [shape: f32[1,32], index: 12, kind: input, shape index: {}]   ;;  %s12326_s13 = inlined_call_operand.vmem [shape: f32[1,32], index: 13, kind: input, shape index: {}]   ;;  %s12327_s14 = inlined_call_operand.<no memory space> [shape: f32[1,1], index: 14, kind: input, shape index: {}]   ;;  %s12328_s15 = inlined_call_operand.vmem [shape: s32[2,1,24], index: 15, kind: input, shape index: {}]   ;;  %s12329_s16 = inlined_call_operand.hbm [shape: f32[2,1,24], index: 16, kind: output, shape index: {0}]   ;;  %s12330_s17 = inlined_call_operand.vmem [shape: f32[2,1,1], index: 17, kind: output, shape index: {1}]  }
   0x1   :  { %12338 = sst [smem:[#allocation14_spill]] %s12313_s0  ;;  %v23_v0 = vstv %s12327_s14 }
   0x2   :  { %12339 = sst [smem:[#allocation15_spill]] %s12314_s1  ;;  %24 = vst [vmem:[#allocation5] sm:$0x1] %v23_v0 }
   0x3   :  { %25 = vsyncpa [#allocation7], 0 }
   0x4   :  { %27 = vsyncpa [#allocation7 + $0x1], 0  ;;  %s9780_s26 = smov 0   ;;  %s9782_s27 = smov 0  }
   0x5   :  { %s9784_s28 = smov 0   ;;  %s9786_s29 = smov 0  }
   0x6 LB: > { %12340 = sst [smem:[#allocation9_spill]] %s9667_s26  ;;  %s9801_s14 = sadd.s32 4294967295, %s9679_s29   ;;  %s9679_s29 = sphi %s9786_s29, %s12351_s29   ;;  %s9675_s28 = sphi %s9784_s28, %s12353_s28   ;;  %s9671_s27 = sphi %s9782_s27, %s12355_s27   ;;  %s9667_s26 = sphi %s9780_s26, %s12354_s26  }
   0x7   : > { %12341 = sst [smem:[#allocation10_spill]] %s9675_s28  ;;  %s7805_s0 = sadd.s32 4294967294, %s9679_s29  }
   0x8   : > { %s9805_s30 = sadd.s32 1, %s9679_s29   ;;  %s386_s18 = sadd.s32 1, %s9675_s28 }
   0x9   : > { %12342 = sst [smem:[#allocation11_spill]] %s9805_s30  ;;  %s383_s19 = ssub.s32 %s9679_s29, %s9805_s30 }
   0xa   : > { %p396_p0 = scmp.ne.s32.totalorder %s9675_s28, %s9671_s27  ;;  %p384_p1 = scmp.eq.s32.totalorder %s383_s19, 0 }
   0xb   : > { %p397_p2 = scmp.eq.s32.totalorder %s9801_s14, 1  ;;  %p402_p3 = scmp.ne.s32.totalorder %s9671_s27, %s9667_s26 }
   0xc   : > { %p403_p4 = scmp.eq.s32.totalorder %s7805_s0, 1  ;;  %p7808_p7 = scmp.ge.s32.totalorder %s9679_s29, 1 }
   0xd   : > { %s9816_s1 = scalar_select %p384_p1, %s9675_s28, %s386_s18  }
   0xe   : > { %p9818_p5 = por %p397_p2, %p396_p0  ;;  %p9822_p6 = por %p403_p4, %p402_p3 }
   0xf   : > { %12343 = sst [smem:[#allocation12_spill]] %s9816_s1  ;;  %p503_p8 = scmp.lt.s32.totalorder %s9679_s29, 3 }
  0x10   : > { %s12345_s21 = scalar_select %p9822_p6, 1, 0 }
  0x11   : > { %p504_p9 = pnand %p7808_p7, %p503_p8 }
  0x12   : > { %12346 = sst [smem:[#allocation13_spill]] %s12345_s21  ;;  %s12347_s24 = sld [smem:[#allocation15_spill]] (!%p504_p9)  ;;  %vm691_vm0 = vcmask (!%p504_p9), 1040384   ;;  %v572_v3 = vld [vmem:[%s12318_s5] sm:$0xff] (!%p504_p9)  ;;  %v9681_v4 = vmov (!%p504_p9), 0   ;;  %v574_v5 = vld [vmem:[%s12318_s5 + $0x10] sm:$0xff] (!%p504_p9) }
  0x13   : > { %507 = sbr.rel (%p504_p9) target bundleno = 3497 (0xda9), region = 84  ;;  %p560_p10 = scmp.lt.s32.totalorder (!%p504_p9), %s9801_s14, 1  ;;  %9366 = vset.pattern.permute.xlu0 (!%p504_p9), %v9681_v4  ;;  %vm672_vm1 = vcmask (!%p504_p9), 146432   ;;  %v573_v7 = vld [vmem:[%s12318_s5 + $0x8] sm:$0xff] (!%p504_p9)  ;;  %9367 = vset.pattern.permute.xlu1 (!%p504_p9), %v9681_v4  ;;  %v575_v8 = vld [vmem:[%s12318_s5 + $0x18] sm:$0xff] (!%p504_p9)  ;;  %v576_v9 = vld [vmem:[%s12318_s5 + $0x20] sm:$0xff] (!%p504_p9) }
  0x14   : > { %788 = vperm.xlu0 (!%p504_p9), %9366, %v572_v3   ;;  %798 = vperm.xlu1 (!%p504_p9), %9367, %v574_v5   ;;  %s12348_s23 = sld [smem:[#allocation14_spill]] (!%p504_p9)  ;;  %v577_v13 = vld [vmem:[%s12318_s5 + $0x28] sm:$0xff] (!%p504_p9)  ;;  %v578_v14 = vld [vmem:[%s12318_s5 + $0x30] sm:$0xff] (!%p504_p9)  ;;  %v579_v16 = vld [vmem:[%s12318_s5 + $0x38] sm:$0xff] (!%p504_p9)  ;;  %vm583_vm2 = vcmask (!%p504_p9), 523264   ;;  %v9682_v21 = vmov (!%p504_p9), 0.0  }
  0x15   : > { %v580_v18 = vld [vmem:[%s12318_s5 + $0x40] sm:$0xff] (!%p504_p9)  ;;  %v581_v19 = vld [vmem:[%s12318_s5 + $0x48] sm:$0xff] (!%p504_p9)  ;;  %v582_v20 = vld [vmem:[%s12318_s5 + $0x50] sm:$0x1] (!%p504_p9)  ;;  %588 = vst.msk [vmem:[#allocation2 + $0x20] sm:$0xff] (!%p504_p9), %vm583_vm2, %v9682_v21  ;;  %vm862_vm3 = vcmask (!%p504_p9), 516096  }
  0x16   : > { %584 = vst.msk [vmem:[#allocation2] sm:$0xff] (!%p504_p9), %vm583_vm2, %v9682_v21  ;;  %585 = vst.msk [vmem:[#allocation2 + $0x8] sm:$0xff] (!%p504_p9), %vm583_vm2, %v9682_v21  ;;  %v9391_v24 = vld [vmem:[%s12316_s3 + $0x40] sm:$0xff] (!%p504_p9)   ;;  %v9393_v26 = vld [vmem:[%s12316_s3 + $0x48] sm:$0xff] (!%p504_p9)   ;;  %vm1013_vm4 = vcmask (!%p504_p9), 1048064   ;;  %vm1024_vm5 = vcmask (!%p504_p9), 1040896  }
  0x17   : > { %586 = vst.msk [vmem:[#allocation2 + $0x10] sm:$0xff] (!%p504_p9), %vm583_vm2, %v9682_v21  ;;  %587 = vst.msk [vmem:[#allocation2 + $0x18] sm:$0xff] (!%p504_p9), %vm583_vm2, %v9682_v21  ;;  %v9392_v25 = vld [vmem:[%s12316_s3] sm:$0xff] (!%p504_p9)   ;;  %v9394_v27 = vld [vmem:[%s12316_s3 + $0x8] sm:$0xff] (!%p504_p9)   ;;  %vm7454_vm6 = vcmask (!%p504_p9), 195584   ;;  %vm7474_vm7 = vcmask (!%p504_p9), 188416  }
  0x18   : > { %v9383_v1 = vld [vmem:[%s12347_s24] sm:$0xff] (!%p504_p9)   ;;  %v9384_v2 = vld [vmem:[%s12347_s24 + $0x8] ss:$0 sps:$4 sm:$0x11] (!%p504_p9)   ;;  %793 = vperm.xlu0 (!%p504_p9), %9366, %v573_v7   ;;  %803 = vperm.xlu1 (!%p504_p9), %9367, %v575_v8   ;;  %589 = vst.msk [vmem:[#allocation2 + $0x28] sm:$0xff] (!%p504_p9), %vm583_vm2, %v9682_v21  ;;  %590 = vst.msk [vmem:[#allocation2 + $0x30] sm:$0xff] (!%p504_p9), %vm583_vm2, %v9682_v21 }
  0x19   : > { %9164 = vmatprep.subr.bf16.mxu1 (!%p504_p9), %v9383_v1  ;;  %v693_v6 = vsel (!%p504_p9), %vm691_vm0, %v9384_v2, 0  ;;  %591 = vst.msk [vmem:[#allocation2 + $0x38] sm:$0xff] (!%p504_p9), %vm583_vm2, %v9682_v21  ;;  %592 = vst.msk [vmem:[#allocation2 + $0x40] sm:$0xff] (!%p504_p9), %vm583_vm2, %v9682_v21  ;;  %v9395_v29 = vld [vmem:[%s12316_s3 + $0x50] sm:$0xff] (!%p504_p9)   ;;  %v9397_v31 = vld [vmem:[%s12316_s3 + $0x58] sm:$0xff] (!%p504_p9)   ;;  %s9683_s24 = smov (!%p504_p9), 64  }
  0x1a   : > { %9165 = vmatpush3.bf16.msra.mxu1 %v9383_v1  ;;  %s9839_s1 = scalar_select %p560_p10, %s9801_s14, 1  ;;  %593 = vst.msk [vmem:[#allocation2 + $0x48] sm:$0xff] %vm583_vm2, %v9682_v21  ;;  %594 = vst.msk [vmem:[#allocation2 + $0x50] sm:$0xff] %vm583_vm2, %v9682_v21  ;;  %v9396_v30 = vld [vmem:[%s12316_s3 + $0x10] sm:$0xff]   ;;  %v9398_v32 = vld [vmem:[%s12316_s3 + $0x18] sm:$0xff]   ;;  %vm7661_vm8 = vcmask 261120  }
  0x1b   : > { %9320 = vmatprep.subr.msk.bf16.mxu1 %vm691_vm0, %v9384_v2  ;;  %595 = vst.msk [vmem:[#allocation2 + $0x58] sm:$0xff] %vm583_vm2, %v9682_v21  ;;  %596 = vst.msk [vmem:[#allocation2 + $0x60] sm:$0xff] %vm583_vm2, %v9682_v21  ;;  %v9399_v33 = vld [vmem:[%s12316_s3 + $0x60] sm:$0xff]   ;;  %v9401_v53 = vld [vmem:[%s12316_s3 + $0x68] sm:$0xff]   ;;  %vm7681_vm10 = vcmask 253952   ;;  %vm7701_vm11 = vcmask 0  }
  0x1c   : > { %s9321_s25 = smul.u32 44, %s9839_s1  ;;  %808 = vperm.xlu0 %9366, %v576_v9   ;;  %813 = vperm.xlu1 %9367, %v577_v13   ;;  %597 = vst.msk [vmem:[#allocation2 + $0x68] sm:$0xff] %vm583_vm2, %v9682_v21  ;;  %599 = vst.msk [vmem:[#allocation3] sm:$0xff] %vm583_vm2, %v9682_v21  ;;  %v9957_v37 = vld [vmem:[%s12315_s2] ss:$0 sm:$0xff]  ;;  %v9402_v58 = vld [vmem:[%s12316_s3 + $0x28] sm:$0xff]   ;;  %s567_s21 = scalar_lea.vmem %s12328_s15, %s9839_s1 }
  0x1d   : > { %600 = vst.msk [vmem:[#allocation3 + $0x8] sm:$0xff] %vm583_vm2, %v9682_v21  ;;  %601 = vst.msk [vmem:[#allocation3 + $0x10] sm:$0xff] %vm583_vm2, %v9682_v21  ;;  %v1026_v28 = vld [vmem:[#allocation2 + $0x8] sm:$0xff]  ;;  %v9400_v48 = vld [vmem:[%s12316_s3 + $0x20] sm:$0xff]   ;;  %s553_s0 = sand.u32 1, %s9671_s27   ;;  %s8459_s18 = sshll.u32 %s9801_s14, 4 }
  0x1e   : > { %9167 = vmatpush3.bf16.msra.mxu1 %v693_v6  ;;  %s9856_s30 = scalar_lea.vmem %s12348_s23, %s9321_s25  ;;  %602 = vst.msk [vmem:[#allocation3 + $0x18] sm:$0xff] %vm583_vm2, %v9682_v21  ;;  %603 = vst.msk [vmem:[#allocation3 + $0x20] sm:$0xff] %vm583_vm2, %v9682_v21  ;;  %v936_v59 = vld [vmem:[#allocation2 + $0x6] sm:$0xff]  ;;  %v9403_v1 = vld [vmem:[%s12316_s3 + $0x70] sm:$0xff]   ;;  %s570_s25 = scalar_lea.vmem %s12330_s17, %s9839_s1 }
  0x1f   : > { %v9385_v10 = vld [vmem:[%s9856_s30] sm:$0xff]   ;;  %v9386_v11 = vld [vmem:[%s9856_s30 + $0x8] sm:$0xff]   ;;  %v9387_v12 = vld [vmem:[%s9856_s30 + $0x10] sm:$0xff]   ;;  %604 = vst.msk [vmem:[#allocation3 + $0x28] sm:$0xff] %vm583_vm2, %v9682_v21  ;;  %8470 = vmatprep.subr.bf16.mxu1 %v9391_v24  ;;  %s554_s19 = scalar_lea.vmem [#allocation6], %s553_s0  ;;  %s12270_s23 = scalar_lea.hbm %s12329_s16, %s8459_s18 }
  0x20   : > { %9168 = vmatprep.mubr.msk.bf16.mxu1 %vm672_vm1, %v9385_v10  ;;  %v9388_v15 = vld [vmem:[%s9856_s30 + $0x18] sm:$0xff]   ;;  %v9389_v17 = vld [vmem:[%s9856_s30 + $0x20] sm:$0xff]   ;;  %818 = vperm.xlu0 %9366, %v578_v14   ;;  %605 = vst.msk [vmem:[#allocation3 + $0x30] sm:$0xff] %vm583_vm2, %v9682_v21  ;;  %606 = vst.msk [vmem:[#allocation3 + $0x38] sm:$0xff] %vm583_vm2, %v9682_v21  ;;  %s7704_s1 = scalar_lea.sflag [#allocation7], %s553_s0  ;;  %s9686_s14 = smov [#allocation6]  }
  0x21   : > { %9169 = vmatmul.mubr.msk.bf16.vlgmr.msra.gmra.mrb[0].mxu1 %vm672_vm1, %v9386_v11  ;;  %823 = vperm.xlu1 %9367, %v579_v16   ;;  %607 = vst.msk [vmem:[#allocation3 + $0x40] sm:$0xff] %vm583_vm2, %v9682_v21  ;;  %608 = vst.msk [vmem:[#allocation3 + $0x48] sm:$0xff] %vm583_vm2, %v9682_v21  ;;  %v9390_v22 = vld [vmem:[%s9856_s30 + $0x28] ss:$0 sps:$4 sm:$0x11]   ;;  %v9404_v8 = vld [vmem:[%s12316_s3 + $0x30] sm:$0xff]  }
  0x22   : > { %9172 = vmatprep.mubr.msk.bf16.mxu1 %vm672_vm1, %v9387_v12  ;;  %609 = vst.msk [vmem:[#allocation3 + $0x50] sm:$0xff] %vm583_vm2, %v9682_v21  ;;  %610 = vst.msk [vmem:[#allocation3 + $0x58] sm:$0xff] %vm583_vm2, %v9682_v21  ;;  %8471 = vmatpush3.bf16.msra.mxu1 %v9392_v25  ;;  %v9405_v13 = vld [vmem:[%s12316_s3 + $0x78] sm:$0xff]   ;;  %s9621_s26 = sshll.u32 %s9686_s14, 4  ;;  %s9622_s26 = int_to_ptr.vmem [resolvable:$false] %s9621_s26 }
  0x23   : > { %611 = vst.msk [vmem:[#allocation3 + $0x60] sm:$0xff] %vm583_vm2, %v9682_v21  ;;  %612 = vst.msk [vmem:[#allocation3 + $0x68] sm:$0xff] %vm583_vm2, %v9682_v21  ;;  %v1299_v23 = vld [vmem:[#allocation2 + $0x62] sm:$0xff]  ;;  %8472 = vmatprep.subr.bf16.mxu1 %v9393_v26 }
  0x24   : > { %828 = vperm.xlu0 %9366, %v580_v18   ;;  %1310 = vst.msk [vmem:[#allocation4 + $0x188] sm:$0xff] %vm583_vm2, %v1299_v23  ;;  %1037 = vst.msk [vmem:[#allocation4 + $0x8] sm:$0xff] %vm583_vm2, %v1026_v28 }
  0x25   : > { %833 = vperm.xlu1 %9367, %v581_v19   ;;  %947 = vst.msk [vmem:[#allocation4] sm:$0xff] %vm583_vm2, %v936_v59 }
  0x26   : > { %8473 = vmatpush3.bf16.msra.mxu1 %v9394_v27 }
  0x27   : > { %8474 = vmatprep.subr.bf16.mxu1 %v9395_v29 }
  0x28   : > { %838 = vperm.xlu0 %9366, %v582_v20  }
  0x29   : > { %9173 = vmatmul.mubr.msk.bf16.gmra.mrb[4].mxu1 %vm672_vm1, %v9388_v15 }
  0x2a   : > { %9176 = vmatprep.mubr.msk.bf16.mxu1 %vm672_vm1, %v9389_v17  ;;  %8475 = vmatpush3.bf16.msra.mxu1 %v9396_v30 }
  0x2b   : > { %8476 = vmatprep.subr.bf16.mxu1 %v9397_v31 }
  0x2e   : > { %8477 = vmatpush3.bf16.msra.mxu1 %v9398_v32  ;;  %v958_v32 = vld [vmem:[#allocation2 + $0x7] sm:$0xff] }
  0x2f   : > { %8478 = vmatprep.subr.bf16.mxu1 %v9399_v33 }
  0x31   : > { %9177 = vmatmul.mubr.msk.bf16.gmra.mrb[8].mxu1 %vm672_vm1, %v9390_v22 }
  0x32   : > { %8479 = vmatpush3.bf16.msra.mxu1 %v9400_v48  ;;  %v10044_v48 = vld [vmem:[%s12316_s3 + $0x100] sm:$0xff]  }
  0x33   : > { %8480 = vmatprep.subr.bf16.mxu1 %v9401_v53 }
  0x36   : > { %8481 = vmatpush3.bf16.msra.mxu1 %v9402_v58 }
  0x37   : > { %8482 = vmatprep.subr.bf16.mxu1 %v9403_v1 }
  0x3a   : > { %8483 = vmatpush3.bf16.msra.mxu1 %v9404_v8 }
  0x3b   : > { %8484 = vmatprep.subr.bf16.mxu1 %v9405_v13 }
  0x93   : > { %v9948_v34 = vpop.permute.xlu0 %788  ;;  %v9950_v35 = vpop.permute.xlu1 %798 }
  0x97   : > { %v9952_v36 = vpop.permute.xlu0 %793  ;;  %v9959_v39 = vpop.permute.xlu1 %803 }
  0x9b   : > { %v9962_v42 = vpop.permute.xlu0 %808  ;;  %v9977_v57 = vpop.permute.xlu1 %813 }
  0x9f   : > { %v9982_v60 = vpop.permute.xlu0 %818 }
  0xa0   : > { %v10005_v15 = vpop.permute.xlu1 %823 }
  0xa3   : > { %v10003_v14 = vpop.permute.xlu0 %828 }
  0xf4   : > { %v9170_v38 = vpop.f32.mrb[0].mxu1 }
  0xf5   : > { %v738_v40 = vadd.f32 %v9170_v38, %v9957_v37  ;;  %v729_v41 = vpop.f32.mrb[1].mxu1 }
  0xf6   : > { %v730_v43 = vadd.f32 %v9957_v37, %v729_v41  ;;  %v9171_v44 = vpop.f32.mrb[2].mxu1 }
  0xf7   : > { %v777_v45 = vmax.f32 %v738_v40, 0.0  ;;  %v741_v46 = vadd.f32 %v9171_v44, %v9957_v37  ;;  %v732_v47 = vpop.f32.mrb[3].mxu1 }
  0xf8   : > { %v775_v49 = vmax.f32 %v730_v43, 0.0  ;;  %v733_v50 = vadd.f32 %v9957_v37, %v732_v47  ;;  %v9406_v43 = vld [vmem:[%s12316_s3 + $0x38] sm:$0xff]  }
  0xf9   : > { %v843_v51 = vmul.f32 %v9950_v35, %v777_v45  ;;  %v778_v52 = vmax.f32 %v741_v46, 0.0  ;;  %v10035_v45 = vpop.permute.xlu0 %838  ;;  %8485 = vmatpush3.bf16.msra.mxu1 %v9406_v43  ;;  %v9421_v43 = vld [vmem:[%s12316_s3 + $0xa8] sm:$0xff]  }
  0xfa   : > { %v841_v54 = vmul.f32 %v9948_v34, %v775_v49  ;;  %v776_v55 = vmax.f32 %v733_v50, 0.0  ;;  %9180 = vmatprep.subr.bf16.mxu1 %v10044_v48 }
  0xfb   : > { %854 = vst.msk [vmem:[#allocation2 + $0x20] sm:$0xff] %vm583_vm2, %v843_v51  ;;  %v844_v56 = vmul.f32 %v9959_v39, %v778_v52 }
  0xfc   : > { %852 = vst.msk [vmem:[#allocation2 + $0x10] sm:$0xff] %vm583_vm2, %v841_v54  ;;  %v842_v61 = vmul.f32 %v9952_v36, %v776_v55  ;;  %v9174_v62 = vpop.f32.mrb[4].mxu1  ;;  %v10054_v55 = vpop.permute.xlu1 %833 }
  0xfd   : > { %855 = vst.msk [vmem:[#allocation2 + $0x28] sm:$0xff] %vm583_vm2, %v844_v56  ;;  %v754_v63 = vadd.f32 %v9174_v62, %v9957_v37  ;;  %v745_v0 = vpop.f32.mrb[5].mxu1 }
  0xfe   : > { %853 = vst.msk [vmem:[#allocation2 + $0x18] sm:$0xff] %vm583_vm2, %v842_v61  ;;  %v746_v2 = vadd.f32 %v9957_v37, %v745_v0  ;;  %v9175_v3 = vpop.f32.mrb[6].mxu1 }
  0xff   : > { %v781_v5 = vmax.f32 %v754_v63, 0.0  ;;  %v757_v6 = vadd.f32 %v9175_v3, %v9957_v37  ;;  %v748_v7 = vpop.f32.mrb[7].mxu1 }
 0x100   : > { %v779_v9 = vmax.f32 %v746_v2, 0.0  ;;  %v749_v10 = vadd.f32 %v9957_v37, %v748_v7 }
 0x101   : > { %v847_v11 = vmul.f32 %v9982_v60, %v781_v5  ;;  %v782_v12 = vmax.f32 %v757_v6, 0.0 }
 0x102   : > { %v845_v16 = vmul.f32 %v9962_v42, %v779_v9  ;;  %v780_v17 = vmax.f32 %v749_v10, 0.0  ;;  %v1029_v18 = vld [vmem:[#allocation2 + $0x20] sm:$0xff] }
 0x103   : > { %858 = vst.msk [vmem:[#allocation2 + $0x40] sm:$0xff] %vm583_vm2, %v847_v11  ;;  %v848_v19 = vmul.f32 %v10005_v15, %v782_v12  ;;  %v1048_v20 = vld [vmem:[#allocation2 + $0xf] sm:$0xff]  ;;  %1040 = vst.msk [vmem:[#allocation4 + $0x80] sm:$0xff] %vm583_vm2, %v1029_v18  ;;  %v9409_v12 = vld [vmem:[%s12316_s3 + $0xc0] sm:$0xff]  }
 0x104   : > { %v1027_v21 = vld [vmem:[#allocation2 + $0x10] sm:$0xff]  ;;  %1214 = vst.msk [vmem:[#allocation4 + $0x40] sm:$0xff] %vm583_vm2, %v1029_v18  ;;  %1127 = vst.msk [vmem:[#allocation4 + $0x60] sm:$0xff] %vm583_vm2, %v1029_v18  ;;  %v1291_v23 = vld [vmem:[#allocation2 + $0x22] sm:$0xff]  ;;  %v846_v24 = vmul.f32 %v9977_v57, %v780_v17  ;;  %v9178_v25 = vpop.f32.mrb[8].mxu1  ;;  %1070 = vrot.lane.b32.xlu0 %v1048_v20, %s9683_s24  ;;  %8522 = vmatprep.subr.bf16.mxu0 %v9409_v12 }
 0x105   : > { %v937_v22 = vld [vmem:[#allocation2 + $0xe] sm:$0xff]  ;;  %856 = vst.msk [vmem:[#allocation2 + $0x30] sm:$0xff] %vm583_vm2, %v845_v16  ;;  %1038 = vst.msk [vmem:[#allocation4 + $0x30] sm:$0xff] %vm583_vm2, %v1027_v21  ;;  %v1290_v26 = vld [vmem:[#allocation2 + $0x1a] sm:$0xff]  ;;  %v770_v27 = vadd.f32 %v9178_v25, %v9957_v37  ;;  %v761_v28 = vpop.f32.mrb[9].mxu1 }
 0x106   : > { %948 = vst.msk [vmem:[#allocation4 + $0x28] sm:$0xff] %vm583_vm2, %v937_v22  ;;  %1125 = vst.msk [vmem:[#allocation4 + $0x10] sm:$0xff] %vm583_vm2, %v1027_v21  ;;  %v10022_v29 = vld [vmem:[#allocation2 + $0x17] sm:$0xff]  ;;  %v762_v30 = vadd.f32 %v9957_v37, %v761_v28  ;;  %v9179_v31 = vpop.f32.mrb[10].mxu1  ;;  %v1030_v49 = vld [vmem:[#allocation2 + $0x28] sm:$0xff] }
 0x107   : > { %1302 = vst.msk [vmem:[#allocation4 + $0x48] sm:$0xff] %vm583_vm2, %v1291_v23  ;;  %859 = vst.msk [vmem:[#allocation2 + $0x48] sm:$0xff] %vm583_vm2, %v848_v19  ;;  %1072 = vrot.lane.b32.xlu1 %v10022_v29, %s9683_s24  ;;  %v1028_v33 = vld [vmem:[#allocation2 + $0x18] sm:$0xff]  ;;  %v785_v38 = vmax.f32 %v770_v27, 0.0  ;;  %v764_v40 = vpop.f32.mrb[11].mxu1  ;;  %v940_v50 = vld [vmem:[#allocation2 + $0x26] sm:$0xff] }
 0x108   : > { %1301 = vst.msk [vmem:[#allocation4 + $0x20] sm:$0xff] %vm583_vm2, %v1290_v26  ;;  %857 = vst.msk [vmem:[#allocation2 + $0x38] sm:$0xff] %vm583_vm2, %v846_v24  ;;  %v939_v41 = vld [vmem:[#allocation2 + $0x1e] sm:$0xff]  ;;  %v938_v44 = vld [vmem:[#allocation2 + $0x16] sm:$0xff]  ;;  %v783_v46 = vmax.f32 %v762_v30, 0.0  ;;  %v765_v47 = vadd.f32 %v9957_v37, %v764_v40  ;;  %982 = vrot.lane.b32.xlu0 %v1048_v20, %s9683_s24 }
 0x109   : > { %1039 = vst.msk [vmem:[#allocation4 + $0x58] sm:$0xff] %vm583_vm2, %v1028_v33  ;;  %1213 = vst.msk [vmem:[#allocation4 + $0x18] sm:$0xff] %vm583_vm2, %v1028_v33  ;;  %v851_v51 = vmul.f32 %v10035_v45, %v785_v38  ;;  %v10057_v56 = vld [vmem:[#allocation2 + $0x27] sm:$0xff]  ;;  %v1050_v63 = vld [vmem:[#allocation2 + $0x1f] sm:$0xff] }
 0x10a   : > { %1126 = vst.msk [vmem:[#allocation4 + $0x38] sm:$0xff] %vm583_vm2, %v1028_v33  ;;  %950 = vst.msk [vmem:[#allocation4 + $0x78] sm:$0xff] %vm583_vm2, %v939_v41  ;;  %v849_v37 = vmul.f32 %v10003_v14, %v783_v46  ;;  %v784_v52 = vmax.f32 %v765_v47, 0.0  ;;  %v1033_v53 = vld [vmem:[#allocation2 + $0x40] sm:$0xff]  ;;  %v9411_v20 = vld [vmem:[%s12316_s3 + $0xc8] sm:$0xff]  }
 0x10b   : > { %949 = vst.msk [vmem:[#allocation4 + $0x50] sm:$0xff] %vm583_vm2, %v938_v44  ;;  %1041 = vst.msk [vmem:[#allocation4 + $0xa8] sm:$0xff] %vm583_vm2, %v1030_v49  ;;  %980 = vrot.lane.b32.xlu1 %v958_v32, %s9683_s24  ;;  %v9410_v18 = vld [vmem:[%s12316_s3 + $0x80] sm:$0xff]   ;;  %v9412_v23 = vld [vmem:[%s12316_s3 + $0x88] sm:$0xff]  }
 0x10c   : > { %951 = vst.msk [vmem:[#allocation4 + $0xa0] sm:$0xff] %vm583_vm2, %v940_v50  ;;  %1215 = vst.msk [vmem:[#allocation4 + $0x68] sm:$0xff] %vm583_vm2, %v1030_v49  ;;  %v1292_v54 = vld [vmem:[#allocation2 + $0x2a] sm:$0xff]  ;;  %v850_v59 = vmul.f32 %v10054_v55, %v784_v52  ;;  %1076 = vrot.lane.b32.xlu0 %v10057_v56, %s9683_s24  ;;  %8523 = vmatpush3.bf16.msra.mxu0 %v9410_v18  ;;  %v9416_v30 = vld [vmem:[%s12316_s3 + $0xd8] sm:$0xff]  }
 0x10d   : > { %1128 = vst.msk [vmem:[#allocation4 + $0x88] sm:$0xff] %vm583_vm2, %v1030_v49  ;;  %1044 = vst.msk [vmem:[#allocation4 + $0x120] sm:$0xff] %vm583_vm2, %v1033_v53  ;;  %v1031_v0 = vld [vmem:[#allocation2 + $0x30] sm:$0xff]  ;;  %8524 = vmatprep.subr.bf16.mxu0 %v9411_v20  ;;  %v9417_v32 = vld [vmem:[%s12316_s3 + $0x98] sm:$0xff]  }
 0x10e   : > { %863 = vst.msk [vmem:[#allocation2 + $0x60] sm:$0x1] %vm862_vm3, %v851_v51  ;;  %v1295_v58 = vld [vmem:[#allocation2 + $0x42] sm:$0xff]  ;;  %v941_v1 = vld [vmem:[#allocation2 + $0x2e] sm:$0xff]  ;;  %v9425_v51 = vld [vmem:[%s12316_s3 + $0xf8] sm:$0xff]  }
 0x10f   : > { %1218 = vst.msk [vmem:[#allocation4 + $0xe0] sm:$0xff] %vm583_vm2, %v1033_v53  ;;  %1131 = vst.msk [vmem:[#allocation4 + $0x100] sm:$0xff] %vm583_vm2, %v1033_v53  ;;  %v1293_v61 = vld [vmem:[#allocation2 + $0x32] sm:$0xff]  ;;  %v1294_v62 = vld [vmem:[#allocation2 + $0x3a] sm:$0xff]  ;;  %1074 = vrot.lane.b32.xlu1 %v1050_v63, %s9683_s24 }
 0x110   : > { %1303 = vst.msk [vmem:[#allocation4 + $0x70] sm:$0xff] %vm583_vm2, %v1292_v54  ;;  %860 = vst.msk [vmem:[#allocation2 + $0x50] sm:$0xff] %vm583_vm2, %v849_v37  ;;  %v1032_v2 = vld [vmem:[#allocation2 + $0x38] sm:$0xff]  ;;  %986 = vrot.lane.b32.xlu0 %v1050_v63, %s9683_s24  ;;  %v1034_v6 = vld [vmem:[#allocation2 + $0x48] sm:$0xff]  ;;  %8525 = vmatpush3.bf16.msra.mxu0 %v9412_v23 }
 0x111   : > { %1306 = vst.msk [vmem:[#allocation4 + $0xe8] sm:$0xff] %vm583_vm2, %v1295_v58  ;;  %1304 = vst.msk [vmem:[#allocation4 + $0x98] sm:$0xff] %vm583_vm2, %v1293_v61  ;;  %v943_v3 = vld [vmem:[#allocation2 + $0x3e] sm:$0xff]  ;;  %v942_v5 = vld [vmem:[#allocation2 + $0x36] sm:$0xff] }
 0x112   : > { %1305 = vst.msk [vmem:[#allocation4 + $0xc0] sm:$0xff] %vm583_vm2, %v1294_v62  ;;  %861 = vst.msk [vmem:[#allocation2 + $0x58] sm:$0xff] %vm583_vm2, %v850_v59  ;;  %v944_v7 = vld [vmem:[#allocation2 + $0x46] sm:$0xff]  ;;  %v1053_v11 = vld [vmem:[#allocation2 + $0x37] sm:$0xff] }
 0x113   : > { %1042 = vst.msk [vmem:[#allocation4 + $0xd0] sm:$0xff] %vm583_vm2, %v1031_v0  ;;  %952 = vst.msk [vmem:[#allocation4 + $0xc8] sm:$0xff] %vm583_vm2, %v941_v1  ;;  %984 = vrot.lane.b32.xlu1 %v10022_v29, %s9683_s24  ;;  %v1052_v17 = vld [vmem:[#allocation2 + $0x2f] sm:$0xff]  ;;  %v1055_v26 = vld [vmem:[#allocation2 + $0x47] sm:$0xff] }
 0x114   : > { %1043 = vst.msk [vmem:[#allocation4 + $0xf8] sm:$0xff] %vm583_vm2, %v1032_v2  ;;  %1216 = vst.msk [vmem:[#allocation4 + $0x90] sm:$0xff] %vm583_vm2, %v1031_v0  ;;  %1080 = vrot.lane.b32.xlu0 %v1053_v11, %s9683_s24  ;;  %v9413_v27 = vld [vmem:[%s12316_s3 + $0xd0] sm:$0xff]   ;;  %v1054_v28 = vld [vmem:[#allocation2 + $0x3f] sm:$0xff] }
 0x115   : > { %1217 = vst.msk [vmem:[#allocation4 + $0xb8] sm:$0xff] %vm583_vm2, %v1032_v2  ;;  %1130 = vst.msk [vmem:[#allocation4 + $0xd8] sm:$0xff] %vm583_vm2, %v1032_v2  ;;  %v1211_v8 = vld [vmem:[#allocation2 + $0x60] sm:$0xff]  ;;  %v9414_v29 = vld [vmem:[%s12316_s3 + $0x90] sm:$0xff]   ;;  %8526 = vmatprep.subr.bf16.mxu0 %v9413_v27 }
 0x116   : > { %1129 = vst.msk [vmem:[#allocation4 + $0xb0] sm:$0xff] %vm583_vm2, %v1031_v0  ;;  %954 = vst.msk [vmem:[#allocation4 + $0x118] sm:$0xff] %vm583_vm2, %v943_v3  ;;  %v1124_v9 = vld [vmem:[#allocation2 + $0x60] sm:$0x1]  ;;  %8527 = vmatpush3.bf16.msra.mxu0 %v9414_v29  ;;  %v9420_v41 = vld [vmem:[%s12316_s3 + $0xe8] sm:$0xff]  }
 0x117   : > { %953 = vst.msk [vmem:[#allocation4 + $0xf0] sm:$0xff] %vm583_vm2, %v942_v5  ;;  %1045 = vst.msk [vmem:[#allocation4 + $0x148] sm:$0xff] %vm583_vm2, %v1034_v6  ;;  %v1296_v10 = vld [vmem:[#allocation2 + $0x4a] sm:$0xff]  ;;  %1078 = vrot.lane.b32.xlu1 %v1052_v17, %s9683_s24  ;;  %v946_v22 = vld [vmem:[#allocation2 + $0x56] sm:$0x1]  ;;  %8528 = vmatprep.subr.bf16.mxu0 %v9416_v30 }
 0x118   : > { %1219 = vst.msk [vmem:[#allocation4 + $0x108] sm:$0xff] %vm583_vm2, %v1034_v6  ;;  %1132 = vst.msk [vmem:[#allocation4 + $0x128] sm:$0xff] %vm583_vm2, %v1034_v6  ;;  %v1035_v19 = vld [vmem:[#allocation2 + $0x50] sm:$0xff]  ;;  %990 = vrot.lane.b32.xlu0 %v1052_v17, %s9683_s24  ;;  %v9418_v38 = vld [vmem:[%s12316_s3 + $0xe0] sm:$0xff]  }
 0x119   : > { %955 = vst.msk [vmem:[#allocation4 + $0x140] sm:$0xff] %vm583_vm2, %v944_v7  ;;  %1222 = vst.msk [vmem:[#allocation4 + $0x180] sm:$0xff] %vm583_vm2, %v1211_v8  ;;  %v1297_v13 = vld [vmem:[#allocation2 + $0x52] sm:$0xff]  ;;  %v1298_v16 = vld [vmem:[#allocation2 + $0x5a] sm:$0xff] }
 0x11a   : > { %1135 = vst.msk [vmem:[#allocation4 + $0x1a0] sm:$0x1] %vm862_vm3, %v1124_v9  ;;  %v945_v21 = vld [vmem:[#allocation2 + $0x4e] sm:$0xff]  ;;  %957 = vst.msk [vmem:[#allocation4 + $0x190] sm:$0x1] %vm862_vm3, %v946_v22  ;;  %v1210_v25 = vld [vmem:[#allocation2 + $0x58] sm:$0xff]  ;;  %8529 = vmatpush3.bf16.msra.mxu0 %v9417_v32 }
 0x11b   : > { %1307 = vst.msk [vmem:[#allocation4 + $0x110] sm:$0xff] %vm583_vm2, %v1296_v10  ;;  %1308 = vst.msk [vmem:[#allocation4 + $0x138] sm:$0xff] %vm583_vm2, %v1297_v13  ;;  %v1036_v24 = vld [vmem:[#allocation2 + $0x58] sm:$0x1]  ;;  %988 = vrot.lane.b32.xlu1 %v10057_v56, %s9683_s24  ;;  %v1056_v33 = vld [vmem:[#allocation2 + $0x4f] sm:$0xff]  ;;  %8530 = vmatprep.subr.bf16.mxu0 %v9418_v38 }
 0x11c   : > { %1309 = vst.msk [vmem:[#allocation4 + $0x160] sm:$0xff] %vm583_vm2, %v1298_v16  ;;  %1046 = vst.msk [vmem:[#allocation4 + $0x170] sm:$0xff] %vm583_vm2, %v1035_v19  ;;  %1084 = vrot.lane.b32.xlu0 %v1055_v26, %s9683_s24  ;;  %v1057_v31 = vld [vmem:[#allocation2 + $0x57] sm:$0xff]  ;;  %v9419_v40 = vld [vmem:[%s12316_s3 + $0xa0] sm:$0xff]  }
 0x11d   : > { %1220 = vst.msk [vmem:[#allocation4 + $0x130] sm:$0xff] %vm583_vm2, %v1035_v19  ;;  %1133 = vst.msk [vmem:[#allocation4 + $0x150] sm:$0xff] %vm583_vm2, %v1035_v19  ;;  %v968_v44 = vld [vmem:[#allocation2 + $0x57] sm:$0x1]  ;;  %v1058_v47 = vld [vmem:[#allocation2 + $0x5f] sm:$0x1] }
 0x11e   : > { %956 = vst.msk [vmem:[#allocation4 + $0x168] sm:$0xff] %vm583_vm2, %v945_v21  ;;  %1221 = vst.msk [vmem:[#allocation4 + $0x158] sm:$0xff] %vm583_vm2, %v1210_v25  ;;  %8531 = vmatpush3.bf16.msra.mxu0 %v9419_v40  ;;  %v9423_v46 = vld [vmem:[%s12316_s3 + $0xf0] sm:$0xff]   ;;  %v1225_v50 = vld [vmem:[#allocation2 + $0x21] sm:$0xff] }
 0x11f   : > { %1047 = vst.msk [vmem:[#allocation4 + $0x198] sm:$0x1] %vm862_vm3, %v1036_v24  ;;  %1082 = vrot.lane.b32.xlu1 %v1054_v28, %s9683_s24  ;;  %8532 = vmatprep.subr.bf16.mxu0 %v9420_v41  ;;  %v9424_v49 = vld [vmem:[%s12316_s3 + $0xb0] sm:$0xff]   ;;  %v1224_v37 = vld [vmem:[#allocation2 + $0x19] sm:$0xff]  ;;  %v1229_v58 = vld [vmem:[#allocation2 + $0x41] sm:$0xff] }
 0x120   : > { %1134 = vst.msk [vmem:[#allocation4 + $0x178] sm:$0xff] %vm583_vm2, %v1210_v25  ;;  %994 = vrot.lane.b32.xlu0 %v1054_v28, %s9683_s24  ;;  %v9426_v52 = vld [vmem:[%s12316_s3 + $0xb8] sm:$0xff]   ;;  %v1226_v56 = vld [vmem:[#allocation2 + $0x29] sm:$0xff]  ;;  %v1212_v1 = vld [vmem:[#allocation2 + $0x68] sm:$0x1] }
 0x121   : > { %v1136_v53 = vld [vmem:[#allocation2 + $0x11] sm:$0xff]  ;;  %v1228_v59 = vld [vmem:[#allocation2 + $0x39] sm:$0xff]  ;;  %v1230_v0 = vld [vmem:[#allocation2 + $0x49] sm:$0xff]  ;;  %1223 = vst.msk [vmem:[#allocation4 + $0x1a8] sm:$0x1] %vm862_vm3, %v1212_v1 }
 0x122   : > { %8533 = vmatpush3.bf16.msra.mxu0 %v9421_v43  ;;  %v1227_v54 = vld [vmem:[#allocation2 + $0x31] sm:$0xff]  ;;  %v2356_v62 = vld [vmem:[#allocation3 + $0x62] sm:$0xff]  ;;  %v1300_v3 = vld [vmem:[#allocation2 + $0x6a] sm:$0x1] }
 0x123   : > { %992 = vrot.lane.b32.xlu1 %v1053_v11, %s9683_s24  ;;  %8534 = vmatprep.subr.bf16.mxu0 %v9423_v46  ;;  %v10173_v61 = vld [vmem:[#allocation4 + $0x188] sm:$0xff]  ;;  %v1233_v2 = vld [vmem:[#allocation2 + $0x61] sm:$0xff]  ;;  %1311 = vst.msk [vmem:[#allocation4 + $0x1b0] sm:$0x1] %vm862_vm3, %v1300_v3  ;;  %v1234_v8 = vld [vmem:[#allocation2 + $0x69] sm:$0x1] }
 0x124   : > { %1088 = vrot.lane.b32.xlu0 %v1057_v31, %s9683_s24  ;;  %2367 = vst.msk [vmem:[#allocation4 + $0x188] sm:$0xff] %vm583_vm2, %v2356_v62  ;;  %v1231_v63 = vld [vmem:[#allocation2 + $0x51] sm:$0xff]  ;;  %v1232_v5 = vld [vmem:[#allocation2 + $0x59] sm:$0xff]  ;;  %v1146_v6 = vld [vmem:[#allocation2 + $0x61] sm:$0x1] }
 0x125   : > { %v2357_v7 = vld [vmem:[#allocation3 + $0x6a] sm:$0x1]  ;;  %v9415_v32 = vld [vmem:[%s12316_s3 + $0x110] sm:$0xff]   ;;  %v9422_v43 = vld [vmem:[%s12316_s3 + $0x118] sm:$0xff]  }
 0x126   : > { %8535 = vmatpush3.bf16.msra.mxu0 %v9424_v49 }
 0x127   : > { %1086 = vrot.lane.b32.xlu1 %v1056_v33, %s9683_s24  ;;  %8536 = vmatprep.subr.bf16.mxu0 %v9425_v51 }
 0x128   : > { %998 = vrot.lane.b32.xlu0 %v1056_v33, %s9683_s24 }
 0x12a   : > { %8537 = vmatpush3.bf16.msra.mxu0 %v9426_v52  ;;  %v10189_v9 = vld [vmem:[#allocation4 + $0x1b0] sm:$0x1] }
 0x12b   : > { %996 = vrot.lane.b32.xlu1 %v1055_v26, %s9683_s24  ;;  %2368 = vst.msk [vmem:[#allocation4 + $0x1b0] sm:$0x1] %vm862_vm3, %v2357_v7  ;;  %v9408_v26 = vld [vmem:[%s12316_s3 + $0x108] sm:$0xff]  }
 0x12c   : > { %1000 = vrot.lane.b32.xlu0 %v968_v44, %s9683_s24 }
 0x12f   : > { %1090 = vrot.lane.b32.xlu1 %v1058_v47, %s9683_s24 }
 0x130   : > { %1248 = vrot.lane.b32.xlu0 %v1225_v50, %s9683_s24 }
 0x133   : > { %1246 = vrot.lane.b32.xlu1 %v1224_v37, %s9683_s24 }
 0x134   : > { %1160 = vrot.lane.b32.xlu0 %v1224_v37, %s9683_s24 }
 0x137   : > { %1158 = vrot.lane.b32.xlu1 %v1136_v53, %s9683_s24 }
 0x138   : > { %1252 = vrot.lane.b32.xlu0 %v1227_v54, %s9683_s24 }
 0x13b   : > { %1250 = vrot.lane.b32.xlu1 %v1226_v56, %s9683_s24 }
 0x13c   : > { %1164 = vrot.lane.b32.xlu0 %v1226_v56, %s9683_s24 }
 0x13f   : > { %1162 = vrot.lane.b32.xlu1 %v1225_v50, %s9683_s24 }
 0x140   : > { %1256 = vrot.lane.b32.xlu0 %v1229_v58, %s9683_s24 }
 0x143   : > { %1254 = vrot.lane.b32.xlu1 %v1228_v59, %s9683_s24 }
 0x144   : > { %1168 = vrot.lane.b32.xlu0 %v1228_v59, %s9683_s24 }
 0x147   : > { %1166 = vrot.lane.b32.xlu1 %v1227_v54, %s9683_s24 }
 0x148   : > { %1260 = vrot.lane.b32.xlu0 %v1231_v63, %s9683_s24 }
 0x14b   : > { %1258 = vrot.lane.b32.xlu1 %v1230_v0, %s9683_s24 }
 0x14c   : > { %1172 = vrot.lane.b32.xlu0 %v1230_v0, %s9683_s24 }
 0x14f   : > { %1170 = vrot.lane.b32.xlu1 %v1229_v58, %s9683_s24 }
 0x150   : > { %1264 = vrot.lane.b32.xlu0 %v1233_v2, %s9683_s24 }
 0x153   : > { %1262 = vrot.lane.b32.xlu1 %v1232_v5, %s9683_s24 }
 0x154   : > { %1176 = vrot.lane.b32.xlu0 %v1232_v5, %s9683_s24 }
 0x157   : > { %1174 = vrot.lane.b32.xlu1 %v1231_v63, %s9683_s24 }
 0x158   : > { %1178 = vrot.lane.b32.xlu0 %v1146_v6, %s9683_s24 }
 0x15b   : > { %1266 = vrot.lane.b32.xlu1 %v1234_v8, %s9683_s24 }
 0x176   : > { %v1071_v10 = vpop.permute.xlu0 %1070 }
 0x177   : > { %1103 = vst.msk [vmem:[#allocation4 + $0x8] sm:$0xff] %vm1013_vm4, %v1071_v10 }
 0x179   : > { %v1073_v11 = vpop.permute.xlu1 %1072 }
 0x17a   : > { %1104 = vst.msk [vmem:[#allocation4 + $0x30] sm:$0xff] %vm1013_vm4, %v1073_v11  ;;  %v983_v12 = vpop.permute.xlu0 %982 }
 0x17b   : > { %1015 = vst.msk [vmem:[#allocation4 + $0x28] sm:$0xff] %vm1013_vm4, %v983_v12 }
 0x17d   : > { %v981_v13 = vpop.permute.xlu1 %980 }
 0x17e   : > { %1014 = vst.msk [vmem:[#allocation4] sm:$0xff] %vm1013_vm4, %v981_v13  ;;  %v1077_v16 = vpop.permute.xlu0 %1076  ;;  %v1313_v18 = vld [vmem:[#allocation4 + $0x8] sm:$0xff] }
 0x17f   : > { %1106 = vst.msk [vmem:[#allocation4 + $0x80] sm:$0xff] %vm1013_vm4, %v1077_v16 }
 0x181   : > { %v1075_v17 = vpop.permute.xlu1 %1074  ;;  %v1318_v19 = vld [vmem:[#allocation4 + $0x30] sm:$0xff] }
 0x182   : > { %1105 = vst.msk [vmem:[#allocation4 + $0x58] sm:$0xff] %vm1013_vm4, %v1075_v17  ;;  %v1368_v20 = vpack.c.bf16 %v1318_v19, %v1313_v18  ;;  %v987_v21 = vpop.permute.xlu0 %986  ;;  %v1317_v24 = vld [vmem:[#allocation4 + $0x28] sm:$0xff] }
 0x183   : > { %1017 = vst.msk [vmem:[#allocation4 + $0x78] sm:$0xff] %vm1013_vm4, %v987_v21 }
 0x184   : > { %1670 = vmatprep.mubr.bf16.mxu1 %v1368_v20 }
 0x185   : > { %v985_v22 = vpop.permute.xlu1 %984  ;;  %v1312_v23 = vld [vmem:[#allocation4] sm:$0xff] }
 0x186   : > { %1016 = vst.msk [vmem:[#allocation4 + $0x50] sm:$0xff] %vm1013_vm4, %v985_v22  ;;  %v1367_v25 = vpack.c.bf16 %v1317_v24, %v1312_v23  ;;  %v1081_v27 = vpop.permute.xlu0 %1080  ;;  %v1328_v30 = vld [vmem:[#allocation4 + $0x80] sm:$0xff] }
 0x187   : > { %1108 = vst.msk [vmem:[#allocation4 + $0xd0] sm:$0xff] %vm1013_vm4, %v1081_v27 }
 0x188   : > { %1671 = vmatmul.mubr.bf16.vlgmr.msra.gmra.mrb[12].mxu1 %v1367_v25  ;;  %v1316_v25 = vld [vmem:[#allocation4 + $0x20] sm:$0xff] }
 0x189   : > { %9181 = vmatpush3.bf16.msra.mxu1 %v10044_v48  ;;  %v1079_v28 = vpop.permute.xlu1 %1078  ;;  %v1323_v29 = vld [vmem:[#allocation4 + $0x58] sm:$0xff] }
 0x18a   : > { %1107 = vst.msk [vmem:[#allocation4 + $0xa8] sm:$0xff] %vm1013_vm4, %v1079_v28  ;;  %v1373_v31 = vpack.c.bf16 %v1328_v30, %v1323_v29  ;;  %9182 = vmatprep.subr.bf16.mxu1 %v9408_v26  ;;  %v991_v33 = vpop.permute.xlu0 %990  ;;  %v1327_v41 = vld [vmem:[#allocation4 + $0x78] sm:$0xff] }
 0x18b   : > { %1019 = vst.msk [vmem:[#allocation4 + $0xc8] sm:$0xff] %vm1013_vm4, %v991_v33 }
 0x18c   : > { %1678 = vmatprep.mubr.bf16.mxu1 %v1373_v31 }
 0x18d   : > { %v989_v38 = vpop.permute.xlu1 %988  ;;  %v1322_v40 = vld [vmem:[#allocation4 + $0x50] sm:$0xff]  ;;  %9183 = vmatpush3.bf16.msra.mxu1 %v9408_v26  ;;  %v1321_v26 = vld [vmem:[#allocation4 + $0x48] sm:$0xff] }
 0x18e   : > { %1018 = vst.msk [vmem:[#allocation4 + $0xa0] sm:$0xff] %vm1013_vm4, %v989_v38  ;;  %v1372_v48 = vpack.c.bf16 %v1327_v41, %v1322_v40  ;;  %9184 = vmatprep.subr.bf16.mxu1 %v9415_v32  ;;  %v1085_v44 = vpop.permute.xlu0 %1084  ;;  %v1338_v49 = vld [vmem:[#allocation4 + $0xd0] sm:$0xff]  ;;  %v1371_v33 = vpack.c.bf16 %v1321_v26, %v1316_v25 }
 0x18f   : > { %1110 = vst.msk [vmem:[#allocation4 + $0x120] sm:$0xff] %vm1013_vm4, %v1085_v44  ;;  %v1331_v44 = vld [vmem:[#allocation4 + $0x98] sm:$0xff] }
 0x190   : > { %1679 = vmatmul.mubr.bf16.gmra.mrb[16].mxu1 %v1372_v48 }
 0x191   : > { %v1083_v46 = vpop.permute.xlu1 %1082  ;;  %v1333_v47 = vld [vmem:[#allocation4 + $0xa8] sm:$0xff]  ;;  %9185 = vmatpush3.bf16.msra.mxu1 %v9415_v32 }
 0x192   : > { %1109 = vst.msk [vmem:[#allocation4 + $0xf8] sm:$0xff] %vm1013_vm4, %v1083_v46  ;;  %v1378_v50 = vpack.c.bf16 %v1338_v49, %v1333_v47  ;;  %9186 = vmatprep.subr.bf16.mxu1 %v9422_v43  ;;  %v995_v51 = vpop.permute.xlu0 %994  ;;  %v1337_v53 = vld [vmem:[#allocation4 + $0xc8] sm:$0xff]  ;;  %v1336_v46 = vld [vmem:[#allocation4 + $0xc0] sm:$0xff] }
 0x193   : > { %1021 = vst.msk [vmem:[#allocation4 + $0x118] sm:$0xff] %vm1013_vm4, %v995_v51  ;;  %v1341_v47 = vld [vmem:[#allocation4 + $0xe8] sm:$0xff] }
 0x194   : > { %1686 = vmatprep.mubr.bf16.mxu1 %v1378_v50 }
 0x195   : > { %v993_v37 = vpop.permute.xlu1 %992  ;;  %v1332_v52 = vld [vmem:[#allocation4 + $0xa0] sm:$0xff]  ;;  %9187 = vmatpush3.bf16.msra.mxu1 %v9422_v43 }
 0x196   : > { %1020 = vst.msk [vmem:[#allocation4 + $0xf0] sm:$0xff] %vm1013_vm4, %v993_v37  ;;  %v1377_v54 = vpack.c.bf16 %v1337_v53, %v1332_v52  ;;  %v1089_v56 = vpop.permute.xlu0 %1088  ;;  %v1348_v62 = vld [vmem:[#allocation4 + $0x120] sm:$0xff]  ;;  %v1326_v37 = vld [vmem:[#allocation4 + $0x70] sm:$0xff] }
 0x197   : > { %1112 = vst.msk [vmem:[#allocation4 + $0x170] sm:$0xff] %vm1013_vm4, %v1089_v56  ;;  %v1376_v53 = vpack.c.bf16 %v1331_v44, %v1326_v37  ;;  %v1381_v56 = vpack.c.bf16 %v1341_v47, %v1336_v46 }
 0x198   : > { %1687 = vmatmul.mubr.bf16.gmra.mrb[20].mxu1 %v1377_v54 }
 0x199   : > { %v1087_v58 = vpop.permute.xlu1 %1086  ;;  %v1343_v59 = vld [vmem:[#allocation4 + $0xf8] sm:$0xff] }
 0x19a   : > { %1111 = vst.msk [vmem:[#allocation4 + $0x148] sm:$0xff] %vm1013_vm4, %v1087_v58  ;;  %v1383_v63 = vpack.c.bf16 %v1348_v62, %v1343_v59  ;;  %v999_v0 = vpop.permute.xlu0 %998  ;;  %v1347_v3 = vld [vmem:[#allocation4 + $0x118] sm:$0xff] }
 0x19b   : > { %1023 = vst.msk [vmem:[#allocation4 + $0x168] sm:$0xff] %vm1013_vm4, %v999_v0 }
 0x19c   : > { %1694 = vmatprep.mubr.bf16.mxu1 %v1383_v63 }
 0x19d   : > { %v997_v1 = vpop.permute.xlu1 %996  ;;  %v1342_v2 = vld [vmem:[#allocation4 + $0xf0] sm:$0xff] }
 0x19e   : > { %1022 = vst.msk [vmem:[#allocation4 + $0x140] sm:$0xff] %vm1013_vm4, %v997_v1  ;;  %v1382_v5 = vpack.c.bf16 %v1347_v3, %v1342_v2  ;;  %v1001_v6 = vpop.permute.xlu0 %1000  ;;  %v1358_v10 = vld [vmem:[#allocation4 + $0x170] sm:$0xff]  ;;  %v1351_v1 = vld [vmem:[#allocation4 + $0x138] sm:$0xff]  ;;  %v1356_v2 = vld [vmem:[#allocation4 + $0x160] sm:$0xff] }
 0x19f   : > { %1025 = vst.msk [vmem:[#allocation4 + $0x190] sm:$0x1] %vm1024_vm5, %v1001_v6 }
 0x1a0   : > { %1695 = vmatmul.mubr.bf16.gmra.mrb[24].mxu1 %v1382_v5 }
 0x1a1   : > { %v1091_v7 = vpop.permute.xlu1 %1090  ;;  %v1353_v8 = vld [vmem:[#allocation4 + $0x148] sm:$0xff] }
 0x1a2   : > { %1113 = vst.msk [vmem:[#allocation4 + $0x198] sm:$0x1] %vm1024_vm5, %v1091_v7  ;;  %v1388_v11 = vpack.c.bf16 %v1358_v10, %v1353_v8  ;;  %v1249_v12 = vpop.permute.xlu0 %1248  ;;  %v1357_v17 = vld [vmem:[#allocation4 + $0x168] sm:$0xff]  ;;  %v1346_v7 = vld [vmem:[#allocation4 + $0x110] sm:$0xff] }
 0x1a3   : > { %1280 = vst.msk [vmem:[#allocation4 + $0x40] sm:$0xff] %vm1013_vm4, %v1249_v12  ;;  %v1386_v10 = vpack.c.bf16 %v1351_v1, %v1346_v7  ;;  %v1391_v12 = vpack.c.bf16 %v10173_v61, %v1356_v2  ;;  %v1396_v61 = vpack.c.bf16 %v10189_v9, %v10189_v9 }
 0x1a4   : > { %1702 = vmatprep.mubr.bf16.mxu1 %v1388_v11 }
 0x1a5   : > { %v1247_v13 = vpop.permute.xlu1 %1246  ;;  %v1352_v16 = vld [vmem:[#allocation4 + $0x140] sm:$0xff] }
 0x1a6   : > { %1279 = vst.msk [vmem:[#allocation4 + $0x18] sm:$0xff] %vm1013_vm4, %v1247_v13  ;;  %v1387_v18 = vpack.c.bf16 %v1357_v17, %v1352_v16  ;;  %v1161_v19 = vpop.permute.xlu0 %1160  ;;  %v1362_v23 = vld [vmem:[#allocation4 + $0x190] sm:$0x1] }
 0x1a7   : > { %1192 = vst.msk [vmem:[#allocation4 + $0x38] sm:$0xff] %vm1013_vm4, %v1161_v19  ;;  %v1392_v30 = vpack.c.bf16 %v1362_v23, %v1362_v23 }
 0x1a8   : > { %1703 = vmatmul.mubr.bf16.gmra.mrb[28].mxu1 %v1387_v18 }
 0x1a9   : > { %v1363_v20 = vld [vmem:[#allocation4 + $0x198] sm:$0x1]  ;;  %v1159_v21 = vpop.permute.xlu1 %1158 }
 0x1aa   : > { %1191 = vst.msk [vmem:[#allocation4 + $0x10] sm:$0xff] %vm1013_vm4, %v1159_v21  ;;  %v1393_v22 = vpack.c.bf16 %v1363_v20, %v1363_v20  ;;  %v1253_v24 = vpop.permute.xlu0 %1252  ;;  %v1320_v29 = vld [vmem:[#allocation4 + $0x40] sm:$0xff] }
 0x1ab   : > { %1282 = vst.msk [vmem:[#allocation4 + $0x90] sm:$0xff] %vm1013_vm4, %v1253_v24 }
 0x1ac   : > { %1710 = vmatprep.mubr.bf16.mxu1 %v1393_v22 }
 0x1ad   : > { %v1251_v27 = vpop.permute.xlu1 %1250  ;;  %v1315_v28 = vld [vmem:[#allocation4 + $0x18] sm:$0xff] }
 0x1ae   : > { %1281 = vst.msk [vmem:[#allocation4 + $0x68] sm:$0xff] %vm1013_vm4, %v1251_v27  ;;  %v1370_v31 = vpack.c.bf16 %v1320_v29, %v1315_v28  ;;  %v1165_v32 = vpop.permute.xlu0 %1164  ;;  %v1319_v41 = vld [vmem:[#allocation4 + $0x38] sm:$0xff] }
 0x1af   : > { %1194 = vst.msk [vmem:[#allocation4 + $0x88] sm:$0xff] %vm1013_vm4, %v1165_v32 }
 0x1b0   : > { %1711 = vmatmul.mubr.bf16.gmra.mrb[32].mxu1 %v1392_v30  ;;  %1750 = vmatprep.mubr.bf16.mxu0 %v1370_v31 }
 0x1b1   : > { %v1163_v38 = vpop.permute.xlu1 %1162  ;;  %9188 = vmatprep.mubr.msk.bf16.mxu1 %vm583_vm2, %v1371_v33  ;;  %v1314_v40 = vld [vmem:[#allocation4 + $0x10] sm:$0xff] }
 0x1b2   : > { %1193 = vst.msk [vmem:[#allocation4 + $0x60] sm:$0xff] %vm1013_vm4, %v1163_v38  ;;  %v1369_v48 = vpack.c.bf16 %v1319_v41, %v1314_v40  ;;  %v1257_v43 = vpop.permute.xlu0 %1256  ;;  %v1330_v51 = vld [vmem:[#allocation4 + $0x90] sm:$0xff] }
 0x1b3   : > { %1284 = vst.msk [vmem:[#allocation4 + $0xe0] sm:$0xff] %vm1013_vm4, %v1257_v43  ;;  %v2269_v41 = vld [vmem:[#allocation3 + $0x68] sm:$0x1] }
 0x1b4   : > { %1751 = vmatmul.mubr.bf16.vlgmr.msra.gmra.mrb[0].mxu0 %v1369_v48 }
 0x1b5   : > { %v1255_v49 = vpop.permute.xlu1 %1254  ;;  %v1325_v50 = vld [vmem:[#allocation4 + $0x68] sm:$0xff] }
 0x1b6   : > { %1283 = vst.msk [vmem:[#allocation4 + $0xb8] sm:$0xff] %vm1013_vm4, %v1255_v49  ;;  %v1375_v52 = vpack.c.bf16 %v1330_v51, %v1325_v50  ;;  %v1169_v54 = vpop.permute.xlu0 %1168  ;;  %v1329_v62 = vld [vmem:[#allocation4 + $0x88] sm:$0xff] }
 0x1b7   : > { %1196 = vst.msk [vmem:[#allocation4 + $0xd8] sm:$0xff] %vm1013_vm4, %v1169_v54 }
 0x1b8   : > { %1758 = vmatprep.mubr.bf16.mxu0 %v1375_v52  ;;  %9189 = vmatmul.mubr.msk.bf16.vlgmr.msra.gmra.mrb[36].mxu1 %vm583_vm2, %v1376_v53 }
 0x1b9   : > { %v1167_v58 = vpop.permute.xlu1 %1166  ;;  %9192 = vmatprep.mubr.msk.bf16.mxu1 %vm583_vm2, %v1381_v56  ;;  %v1324_v59 = vld [vmem:[#allocation4 + $0x60] sm:$0xff] }
 0x1ba   : > { %1195 = vst.msk [vmem:[#allocation4 + $0xb0] sm:$0xff] %vm1013_vm4, %v1167_v58  ;;  %v1374_v63 = vpack.c.bf16 %v1329_v62, %v1324_v59  ;;  %v1261_v0 = vpop.permute.xlu0 %1260  ;;  %v1340_v6 = vld [vmem:[#allocation4 + $0xe0] sm:$0xff] }
 0x1bb   : > { %1286 = vst.msk [vmem:[#allocation4 + $0x130] sm:$0xff] %vm1013_vm4, %v1261_v0  ;;  %v9427_v0 = vld [vmem:[%s12316_s3 + $0x160] sm:$0xff]  }
 0x1bc   : > { %1759 = vmatmul.mubr.bf16.gmra.mrb[4].mxu0 %v1374_v63  ;;  %8584 = vmatprep.subr.bf16.mxu0 %v9427_v0 }
 0x1bd   : > { %v1259_v3 = vpop.permute.xlu1 %1258  ;;  %v1335_v5 = vld [vmem:[#allocation4 + $0xb8] sm:$0xff] }
 0x1be   : > { %1285 = vst.msk [vmem:[#allocation4 + $0x108] sm:$0xff] %vm1013_vm4, %v1259_v3  ;;  %v1380_v8 = vpack.c.bf16 %v1340_v6, %v1335_v5  ;;  %v1173_v11 = vpop.permute.xlu0 %1172  ;;  %v1339_v17 = vld [vmem:[#allocation4 + $0xd8] sm:$0xff]  ;;  %v9428_v5 = vld [vmem:[%s12316_s3 + $0x120] sm:$0xff]  }
 0x1bf   : > { %1198 = vst.msk [vmem:[#allocation4 + $0x128] sm:$0xff] %vm1013_vm4, %v1173_v11  ;;  %v9429_v6 = vld [vmem:[%s12316_s3 + $0x168] sm:$0xff]   ;;  %8585 = vmatpush3.bf16.msra.mxu0 %v9428_v5  ;;  %v9431_v11 = vld [vmem:[%s12316_s3 + $0x170] sm:$0xff]  }
 0x1c0   : > { %1766 = vmatprep.mubr.bf16.mxu0 %v1380_v8  ;;  %9193 = vmatmul.mubr.msk.bf16.gmra.mrb[40].mxu1 %vm583_vm2, %v1386_v10  ;;  %v9430_v10 = vld [vmem:[%s12316_s3 + $0x128] sm:$0xff]  }
 0x1c1   : > { %v1171_v13 = vpop.permute.xlu1 %1170  ;;  %9196 = vmatprep.mubr.msk.bf16.mxu1 %vm583_vm2, %v1391_v12  ;;  %v1334_v16 = vld [vmem:[#allocation4 + $0xb0] sm:$0xff]  ;;  %8586 = vmatprep.subr.bf16.mxu0 %v9429_v6 }
 0x1c2   : > { %1197 = vst.msk [vmem:[#allocation4 + $0x100] sm:$0xff] %vm1013_vm4, %v1171_v13  ;;  %v1379_v18 = vpack.c.bf16 %v1339_v17, %v1334_v16  ;;  %v1265_v19 = vpop.permute.xlu0 %1264  ;;  %v1350_v22 = vld [vmem:[#allocation4 + $0x130] sm:$0xff]  ;;  %v9432_v13 = vld [vmem:[%s12316_s3 + $0x130] sm:$0xff]  }
 0x1c3   : > { %1288 = vst.msk [vmem:[#allocation4 + $0x180] sm:$0xff] %vm1013_vm4, %v1265_v19  ;;  %8587 = vmatpush3.bf16.msra.mxu0 %v9430_v10  ;;  %v2083_v16 = vld [vmem:[#allocation3 + $0x8] sm:$0xff] }
 0x1c4   : > { %1767 = vmatmul.mubr.bf16.gmra.mrb[8].mxu0 %v1379_v18  ;;  %8588 = vmatprep.subr.bf16.mxu0 %v9431_v11  ;;  %v9433_v18 = vld [vmem:[%s12316_s3 + $0x178] sm:$0xff]   ;;  %2094 = vst.msk [vmem:[#allocation4 + $0x8] sm:$0xff] %vm583_vm2, %v2083_v16 }
 0x1c5   : > { %v1263_v20 = vpop.permute.xlu1 %1262  ;;  %v1345_v21 = vld [vmem:[#allocation4 + $0x108] sm:$0xff] }
 0x1c6   : > { %1287 = vst.msk [vmem:[#allocation4 + $0x158] sm:$0xff] %vm1013_vm4, %v1263_v20  ;;  %v1385_v23 = vpack.c.bf16 %v1350_v22, %v1345_v21  ;;  %v1177_v24 = vpop.permute.xlu0 %1176  ;;  %v1349_v27 = vld [vmem:[#allocation4 + $0x128] sm:$0xff] }
 0x1c7   : > { %1200 = vst.msk [vmem:[#allocation4 + $0x178] sm:$0xff] %vm1013_vm4, %v1177_v24  ;;  %8589 = vmatpush3.bf16.msra.mxu0 %v9432_v13  ;;  %v9434_v22 = vld [vmem:[%s12316_s3 + $0x138] sm:$0xff]  }
 0x1c8   : > { %1774 = vmatprep.mubr.bf16.mxu0 %v1385_v23  ;;  %9197 = vmatmul.mubr.msk.bf16.gmra.mrb[44].mxu1 %vm583_vm2, %v1396_v61  ;;  %v9435_v23 = vld [vmem:[%s12316_s3 + $0x180] sm:$0xff]  }
 0x1c9   : > { %v1175_v25 = vpop.permute.xlu1 %1174  ;;  %v1344_v26 = vld [vmem:[#allocation4 + $0x100] sm:$0xff]  ;;  %8590 = vmatprep.subr.bf16.mxu0 %v9433_v18  ;;  %v1995_v11 = vld [vmem:[#allocation3 + $0x6] sm:$0xff] }
 0x1ca   : > { %1199 = vst.msk [vmem:[#allocation4 + $0x150] sm:$0xff] %vm1013_vm4, %v1175_v25  ;;  %v1384_v28 = vpack.c.bf16 %v1349_v27, %v1344_v26  ;;  %v1360_v29 = vld [vmem:[#allocation4 + $0x180] sm:$0xff]  ;;  %v1179_v9 = vpop.permute.xlu0 %1178  ;;  %v9436_v25 = vld [vmem:[%s12316_s3 + $0x140] sm:$0xff]   ;;  %v9437_v27 = vld [vmem:[%s12316_s3 + $0x188] sm:$0xff]  }
 0x1cb   : > { %1201 = vst.msk [vmem:[#allocation4 + $0x1a0] sm:$0x1] %vm1024_vm5, %v1179_v9  ;;  %8591 = vmatpush3.bf16.msra.mxu0 %v9434_v22 }
 0x1cc   : > { %1775 = vmatmul.mubr.bf16.gmra.mrb[12].mxu0 %v1384_v28  ;;  %8592 = vmatprep.subr.bf16.mxu0 %v9435_v23  ;;  %2006 = vst.msk [vmem:[#allocation4] sm:$0xff] %vm583_vm2, %v1995_v11  ;;  %v10369_v11 = vld [vmem:[%s12316_s3 + $0x220] sm:$0xff]  }
 0x1cd   : > { %v1267_v30 = vpop.permute.xlu1 %1266  ;;  %v1355_v31 = vld [vmem:[#allocation4 + $0x158] sm:$0xff] }
 0x1ce   : > { %1289 = vst.msk [vmem:[#allocation4 + $0x1a8] sm:$0x1] %vm1024_vm5, %v1267_v30  ;;  %v1390_v32 = vpack.c.bf16 %v1360_v29, %v1355_v31  ;;  %v1359_v38 = vld [vmem:[#allocation4 + $0x178] sm:$0xff] }
 0x1cf   : > { %8593 = vmatpush3.bf16.msra.mxu0 %v9436_v25  ;;  %v9438_v31 = vld [vmem:[%s12316_s3 + $0x148] sm:$0xff]  }
 0x1d0   : > { %1782 = vmatprep.mubr.bf16.mxu0 %v1390_v32  ;;  %8594 = vmatprep.subr.bf16.mxu0 %v9437_v27 }
 0x1d1   : > { %v1354_v33 = vld [vmem:[#allocation4 + $0x150] sm:$0xff] }
 0x1d2   : > { %v1389_v40 = vpack.c.bf16 %v1359_v38, %v1354_v33  ;;  %v1364_v43 = vld [vmem:[#allocation4 + $0x1a0] sm:$0x1] }
 0x1d3   : > { %v1394_v46 = vpack.c.bf16 %v1364_v43, %v1364_v43  ;;  %8595 = vmatpush3.bf16.msra.mxu0 %v9438_v31 }
 0x1d4   : > { %1783 = vmatmul.mubr.bf16.gmra.mrb[16].mxu0 %v1389_v40 }
 0x1d5   : > { %v1365_v48 = vld [vmem:[#allocation4 + $0x1a8] sm:$0x1] }
 0x1d6   : > { %2280 = vst.msk [vmem:[#allocation4 + $0x1a8] sm:$0x1] %vm862_vm3, %v2269_v41  ;;  %v1395_v44 = vpack.c.bf16 %v1365_v48, %v1365_v48  ;;  %v10318_v41 = vld [vmem:[%s12317_s4] ss:$0 sm:$0xff] }
 0x1d8   : > { %1790 = vmatprep.mubr.bf16.mxu0 %v1395_v44 }
 0x1dc   : > { %1791 = vmatmul.mubr.bf16.gmra.mrb[20].mxu0 %v1394_v46 }
 0x25b   : > { %v8486_v47 = vpop.f32.mrb[12].mxu1 }
 0x25c   : > { %v8487_v49 = vpop.f32.mrb[13].mxu1 }
 0x25d   : > { %v8488_v50 = vadd.f32 %v8487_v49, %v8486_v47  ;;  %v8489_v51 = vpop.f32.mrb[14].mxu1 }
 0x25e   : > { %v8490_v37 = vpop.f32.mrb[15].mxu1 }
 0x25f   : > { %v10258_v52 = vadd.f32 %v8490_v37, %v8489_v51  ;;  %v1673_v46 = vadd.f32 %v8488_v50, %v10318_v41  ;;  %v9439_v50 = vld [vmem:[%s12316_s3 + $0x190] sm:$0xff]  }
 0x260   : > { %8596 = vmatprep.subr.bf16.mxu0 %v9439_v50 }
 0x261   : > { %v1676_v37 = vadd.f32 %v10258_v52, %v10318_v41 }
 0x263   : > { %v8492_v53 = vpop.f32.mrb[16].mxu1 }
 0x264   : > { %v8493_v54 = vpop.f32.mrb[17].mxu1 }
 0x265   : > { %v10260_v56 = vadd.f32 %v8493_v54, %v8492_v53  ;;  %v8495_v58 = vpop.f32.mrb[18].mxu1 }
 0x266   : > { %v8496_v59 = vpop.f32.mrb[19].mxu1 }
 0x267   : > { %v10262_v62 = vadd.f32 %v8496_v59, %v8495_v58  ;;  %v1681_v52 = vadd.f32 %v10260_v56, %v10318_v41 }
 0x26b   : > { %v8498_v63 = vpop.f32.mrb[20].mxu1 }
 0x26c   : > { %v8499_v1 = vpop.f32.mrb[21].mxu1 }
 0x26d   : > { %v10267_v2 = vadd.f32 %v8499_v1, %v8498_v63  ;;  %v8501_v3 = vpop.f32.mrb[22].mxu1 }
 0x26e   : > { %v8502_v7 = vpop.f32.mrb[23].mxu1 }
 0x26f   : > { %v10275_v8 = vadd.f32 %v8502_v7, %v8501_v3 }
 0x273   : > { %v8504_v12 = vpop.f32.mrb[24].mxu1 }
 0x274   : > { %v8505_v17 = vpop.f32.mrb[25].mxu1 }
 0x275   : > { %v10290_v19 = vadd.f32 %v8505_v17, %v8504_v12  ;;  %v8507_v61 = vpop.f32.mrb[26].mxu1 }
 0x276   : > { %v8508_v20 = vpop.f32.mrb[27].mxu1 }
 0x277   : > { %v10292_v21 = vadd.f32 %v8508_v20, %v8507_v61  ;;  %v9440_v61 = vld [vmem:[%s12316_s3 + $0x150] sm:$0xff]   ;;  %v1684_v20 = vadd.f32 %v10262_v62, %v10318_v41  ;;  %v9441_v62 = vld [vmem:[%s12316_s3 + $0x198] sm:$0xff]  }
 0x278   : > { %8597 = vmatpush3.bf16.msra.mxu0 %v9440_v61 }
 0x279   : > { %8598 = vmatprep.subr.bf16.mxu0 %v9441_v62 }
 0x27b   : > { %v8510_v24 = vpop.f32.mrb[28].mxu1 }
 0x27c   : > { %v8511_v26 = vpop.f32.mrb[29].mxu1 }
 0x27d   : > { %v10306_v28 = vadd.f32 %v8511_v26, %v8510_v24  ;;  %v8513_v29 = vpop.f32.mrb[30].mxu1 }
 0x27e   : > { %v8514_v9 = vpop.f32.mrb[31].mxu1 }
 0x27f   : > { %v10308_v30 = vadd.f32 %v8514_v9, %v8513_v29 }
 0x283   : > { %v8516_v32 = vpop.f32.mrb[32].mxu1 }
 0x284   : > { %v8517_v33 = vpop.f32.mrb[33].mxu1 }
 0x285   : > { %v10313_v38 = vadd.f32 %v8517_v33, %v8516_v32  ;;  %v8519_v40 = vpop.f32.mrb[34].mxu1 }
 0x286   : > { %v8520_v48 = vpop.f32.mrb[35].mxu1 }
 0x287   : > { %v8538_v43 = vpop.f32.mrb[0].mxu0  ;;  %v9442_v48 = vld [vmem:[%s12316_s3 + $0x158] sm:$0xff]  }
 0x288   : > { %v8539_v44 = vpop.f32.mrb[1].mxu0  ;;  %8599 = vmatpush3.bf16.msra.mxu0 %v9442_v48 }
 0x289   : > { %v8540_v47 = vadd.f32 %v8539_v44, %v8538_v43  ;;  %v8541_v49 = vpop.f32.mrb[2].mxu0  ;;  %v1689_v43 = vadd.f32 %v10267_v2, %v10318_v41  ;;  %9200 = vmatprep.subr.bf16.mxu0 %v10369_v11 }
 0x28a   : > { %v8542_v51 = vpop.f32.mrb[3].mxu0 }
 0x28b   : > { %v8543_v53 = vadd.f32 %v8542_v51, %v8541_v49  ;;  %v9190_v54 = vpop.f32.mrb[36].mxu1  ;;  %v1753_v58 = vadd.f32 %v8540_v47, %v1673_v46 }
 0x28c   : > { %v1832_v59 = vpop.f32.mrb[37].mxu1 }
 0x28d   : > { %v1833_v63 = vadd.f32 %v1832_v59, %v1753_v58  ;;  %v9191_v0 = vpop.f32.mrb[38].mxu1  ;;  %v1756_v1 = vadd.f32 %v8543_v53, %v1676_v37  ;;  %v1692_v58 = vadd.f32 %v10275_v8, %v10318_v41 }
 0x28e   : > { %v1835_v3 = vpop.f32.mrb[39].mxu1 }
 0x28f   : > { %v1878_v5 = vmax.f32 %v1833_v63, 0.0  ;;  %v1836_v6 = vadd.f32 %v1835_v3, %v1756_v1  ;;  %v8544_v7 = vpop.f32.mrb[4].mxu0  ;;  %v2017_v3 = vld [vmem:[#allocation3 + $0x7] sm:$0xff] }
 0x290   : > { %v8545_v10 = vpop.f32.mrb[5].mxu0 }
 0x291   : > { %v1889_v12 = vmul.f32 %v1878_v5, %v9948_v34  ;;  %v1879_v13 = vmax.f32 %v1836_v6, 0.0  ;;  %v8546_v16 = vadd.f32 %v8545_v10, %v8544_v7  ;;  %v8547_v17 = vpop.f32.mrb[6].mxu0 }
 0x292   : > { %v8548_v18 = vpop.f32.mrb[7].mxu0 }
 0x293   : > { %1900 = vst.msk [vmem:[#allocation3 + $0x10] sm:$0xff] %vm583_vm2, %v1889_v12  ;;  %v1890_v56 = vmul.f32 %v1879_v13, %v9952_v36  ;;  %v1761_v22 = vadd.f32 %v8546_v16, %v1681_v52  ;;  %v8549_v23 = vadd.f32 %v8548_v18, %v8547_v17  ;;  %v10337_v24 = vpop.f32.mrb[40].mxu1  ;;  %v1697_v18 = vadd.f32 %v10290_v19, %v10318_v41 }
 0x294   : > { %v1848_v25 = vpop.f32.mrb[41].mxu1 }
 0x295   : > { %1901 = vst.msk [vmem:[#allocation3 + $0x18] sm:$0xff] %vm583_vm2, %v1890_v56  ;;  %v1841_v26 = vadd.f32 %v9190_v54, %v1761_v22  ;;  %v1764_v27 = vadd.f32 %v8549_v23, %v1684_v20  ;;  %v10340_v29 = vpop.f32.mrb[42].mxu1 }
 0x296   : > { %v1851_v9 = vpop.f32.mrb[43].mxu1 }
 0x297   : > { %v1880_v31 = vmax.f32 %v1841_v26, 0.0  ;;  %v1844_v32 = vadd.f32 %v9191_v0, %v1764_v27  ;;  %v8550_v33 = vpop.f32.mrb[8].mxu0  ;;  %v1700_v27 = vadd.f32 %v10292_v21, %v10318_v41 }
 0x298   : > { %v8551_v40 = vpop.f32.mrb[9].mxu0 }
 0x299   : > { %v1891_v44 = vmul.f32 %v1880_v31, %v9950_v35  ;;  %v1881_v46 = vmax.f32 %v1844_v32, 0.0  ;;  %v8552_v47 = vadd.f32 %v8551_v40, %v8550_v33  ;;  %v8553_v49 = vpop.f32.mrb[10].mxu0 }
 0x29a   : > { %v8554_v51 = vpop.f32.mrb[11].mxu0  ;;  %v2105_v37 = vld [vmem:[#allocation3 + $0xf] sm:$0xff] }
 0x29b   : > { %v2084_v53 = vld [vmem:[#allocation3 + $0x10] sm:$0xff]  ;;  %1902 = vst.msk [vmem:[#allocation3 + $0x20] sm:$0xff] %vm583_vm2, %v1891_v44  ;;  %v1892_v59 = vmul.f32 %v1881_v46, %v9959_v39  ;;  %v1769_v63 = vadd.f32 %v8552_v47, %v1689_v43  ;;  %v8555_v0 = vadd.f32 %v8554_v51, %v8553_v49  ;;  %2127 = vrot.lane.b32.xlu1 %v2105_v37, %s9683_s24  ;;  %v10356_v2 = vpop.f32.mrb[44].mxu1 }
 0x29c   : > { %v1996_v54 = vld [vmem:[#allocation3 + $0xe] sm:$0xff]  ;;  %2095 = vst.msk [vmem:[#allocation4 + $0x30] sm:$0xff] %vm583_vm2, %v2084_v53  ;;  %2182 = vst.msk [vmem:[#allocation4 + $0x10] sm:$0xff] %vm583_vm2, %v2084_v53  ;;  %v2106_v1 = vld [vmem:[#allocation3 + $0x17] sm:$0xff]  ;;  %v10361_v5 = vpop.f32.mrb[45].mxu1  ;;  %v1705_v51 = vadd.f32 %v10306_v28, %v10318_v41 }
 0x29d   : > { %2007 = vst.msk [vmem:[#allocation4 + $0x28] sm:$0xff] %vm583_vm2, %v1996_v54  ;;  %v2085_v8 = vld [vmem:[#allocation3 + $0x18] sm:$0xff]  ;;  %1903 = vst.msk [vmem:[#allocation3 + $0x28] sm:$0xff] %vm583_vm2, %v1892_v59  ;;  %v1849_v6 = vadd.f32 %v1848_v25, %v1769_v63  ;;  %v1772_v7 = vadd.f32 %v8555_v0, %v1692_v58  ;;  %2129 = vrot.lane.b32.xlu0 %v2106_v1, %s9683_s24  ;;  %v9199_v10 = vpop.f32.mrb[46].mxu1 }
 0x29e   : > { %2096 = vst.msk [vmem:[#allocation4 + $0x58] sm:$0xff] %vm583_vm2, %v2085_v8  ;;  %v1997_v50 = vld [vmem:[#allocation3 + $0x16] sm:$0xff]  ;;  %2270 = vst.msk [vmem:[#allocation4 + $0x18] sm:$0xff] %vm583_vm2, %v2085_v8  ;;  %v10373_v52 = vpop.f32.mrb[47].mxu1 }
 0x29f   : > { %2183 = vst.msk [vmem:[#allocation4 + $0x38] sm:$0xff] %vm583_vm2, %v2085_v8  ;;  %2008 = vst.msk [vmem:[#allocation4 + $0x50] sm:$0xff] %vm583_vm2, %v1997_v50  ;;  %v1882_v12 = vmax.f32 %v1849_v6, 0.0  ;;  %v1852_v13 = vadd.f32 %v1851_v9, %v1772_v7  ;;  %v8556_v16 = vpop.f32.mrb[12].mxu0  ;;  %2039 = vrot.lane.b32.xlu1 %v2017_v3, %s9683_s24 }
 0x2a0   : > { %v8557_v17 = vpop.f32.mrb[13].mxu0 }
 0x2a1   : > { %v1893_v61 = vmul.f32 %v1882_v12, %v9962_v42  ;;  %v1883_v20 = vmax.f32 %v1852_v13, 0.0  ;;  %v8558_v56 = vadd.f32 %v8557_v17, %v8556_v16  ;;  %v8559_v22 = vpop.f32.mrb[14].mxu0  ;;  %2041 = vrot.lane.b32.xlu0 %v2105_v37, %s9683_s24  ;;  %v9445_v16 = vld [vmem:[%s12316_s3 + $0x1e0] sm:$0xff]  }
 0x2a2   : > { %v2347_v23 = vld [vmem:[#allocation3 + $0x1a] sm:$0xff]  ;;  %v8560_v25 = vpop.f32.mrb[15].mxu0  ;;  %v9446_v17 = vld [vmem:[%s12316_s3 + $0x1a0] sm:$0xff]   ;;  %8636 = vmatprep.subr.bf16.mxu1 %v9445_v16 }
 0x2a3   : > { %v2107_v26 = vld [vmem:[#allocation3 + $0x1f] sm:$0xff]  ;;  %2358 = vst.msk [vmem:[#allocation4 + $0x20] sm:$0xff] %vm583_vm2, %v2347_v23  ;;  %1904 = vst.msk [vmem:[#allocation3 + $0x30] sm:$0xff] %vm583_vm2, %v1893_v61  ;;  %v1894_v9 = vmul.f32 %v1883_v20, %v9977_v57  ;;  %v1777_v19 = vadd.f32 %v8558_v56, %v1697_v18  ;;  %v8561_v62 = vadd.f32 %v8560_v25, %v8559_v22  ;;  %8637 = vmatpush3.bf16.msra.mxu1 %v9446_v17  ;;  %v9448_v22 = vld [vmem:[%s12316_s3 + $0x1a8] sm:$0xff]  }
 0x2a4   : > { %2131 = vrot.lane.b32.xlu1 %v2107_v26, %s9683_s24  ;;  %v2086_v31 = vld [vmem:[#allocation3 + $0x20] sm:$0xff]  ;;  %v2087_v43 = vld [vmem:[#allocation3 + $0x28] sm:$0xff]  ;;  %v1713_v23 = vadd.f32 %v10313_v38, %v10318_v41 }
 0x2a5   : > { %v1998_v32 = vld [vmem:[#allocation3 + $0x1e] sm:$0xff]  ;;  %v2108_v40 = vld [vmem:[#allocation3 + $0x27] sm:$0xff]  ;;  %2097 = vst.msk [vmem:[#allocation4 + $0x80] sm:$0xff] %vm583_vm2, %v2086_v31  ;;  %2271 = vst.msk [vmem:[#allocation4 + $0x40] sm:$0xff] %vm583_vm2, %v2086_v31  ;;  %v1857_v21 = vadd.f32 %v10337_v24, %v1777_v19  ;;  %v1780_v48 = vadd.f32 %v8561_v62, %v1700_v27 }
 0x2a6   : > { %v2348_v33 = vld [vmem:[#allocation3 + $0x22] sm:$0xff]  ;;  %2009 = vst.msk [vmem:[#allocation4 + $0x78] sm:$0xff] %vm583_vm2, %v1998_v32  ;;  %2184 = vst.msk [vmem:[#allocation4 + $0x60] sm:$0xff] %vm583_vm2, %v2086_v31  ;;  %2133 = vrot.lane.b32.xlu0 %v2108_v40, %s9683_s24  ;;  %v2281_v16 = vld [vmem:[#allocation3 + $0x19] sm:$0xff] }
 0x2a7   : > { %2359 = vst.msk [vmem:[#allocation4 + $0x48] sm:$0xff] %vm583_vm2, %v2348_v33  ;;  %1905 = vst.msk [vmem:[#allocation3 + $0x38] sm:$0xff] %vm583_vm2, %v1894_v9  ;;  %v1999_v44 = vld [vmem:[#allocation3 + $0x26] sm:$0xff]  ;;  %v1884_v46 = vmax.f32 %v1857_v21, 0.0  ;;  %v1860_v47 = vadd.f32 %v10340_v29, %v1780_v48  ;;  %v8562_v49 = vpop.f32.mrb[16].mxu0  ;;  %v1708_v29 = vadd.f32 %v10308_v30, %v10318_v41  ;;  %v9449_v33 = vld [vmem:[%s12316_s3 + $0x1f0] sm:$0xff]  }
 0x2a8   : > { %2098 = vst.msk [vmem:[#allocation4 + $0xa8] sm:$0xff] %vm583_vm2, %v2087_v43  ;;  %2010 = vst.msk [vmem:[#allocation4 + $0xa0] sm:$0xff] %vm583_vm2, %v1999_v44  ;;  %2043 = vrot.lane.b32.xlu1 %v2106_v1, %s9683_s24  ;;  %v8563_v24 = vpop.f32.mrb[17].mxu0  ;;  %v9461_v17 = vld [vmem:[%s12316_s3 + $0x218] sm:$0xff]  }
 0x2a9   : > { %2272 = vst.msk [vmem:[#allocation4 + $0x68] sm:$0xff] %vm583_vm2, %v2087_v43  ;;  %2185 = vst.msk [vmem:[#allocation4 + $0x88] sm:$0xff] %vm583_vm2, %v2087_v43  ;;  %v1895_v37 = vmul.f32 %v1884_v46, %v9982_v60  ;;  %v1885_v53 = vmax.f32 %v1860_v47, 0.0  ;;  %v8564_v54 = vadd.f32 %v8563_v24, %v8562_v49  ;;  %v8565_v58 = vpop.f32.mrb[18].mxu0  ;;  %v9450_v46 = vld [vmem:[%s12316_s3 + $0x1b0] sm:$0xff]   ;;  %v9452_v47 = vld [vmem:[%s12316_s3 + $0x1f8] sm:$0xff]  }
 0x2aa   : > { %2045 = vrot.lane.b32.xlu0 %v2107_v26, %s9683_s24  ;;  %v2349_v59 = vld [vmem:[#allocation3 + $0x2a] sm:$0xff]  ;;  %v8566_v63 = vpop.f32.mrb[19].mxu0  ;;  %v9453_v49 = vld [vmem:[%s12316_s3 + $0x1b8] sm:$0xff]  }
 0x2ab   : > { %v2109_v0 = vld [vmem:[#allocation3 + $0x2f] sm:$0xff]  ;;  %2360 = vst.msk [vmem:[#allocation4 + $0x70] sm:$0xff] %vm583_vm2, %v2349_v59  ;;  %1906 = vst.msk [vmem:[#allocation3 + $0x40] sm:$0xff] %vm583_vm2, %v1895_v37  ;;  %v1896_v1 = vmul.f32 %v1885_v53, %v10005_v15  ;;  %v1785_v28 = vadd.f32 %v8564_v54, %v1705_v51  ;;  %v8567_v3 = vadd.f32 %v8566_v63, %v8565_v58 }
 0x2ac   : > { %2135 = vrot.lane.b32.xlu1 %v2109_v0, %s9683_s24  ;;  %v2088_v8 = vld [vmem:[#allocation3 + $0x30] sm:$0xff] }
 0x2ad   : > { %v2000_v6 = vld [vmem:[#allocation3 + $0x2e] sm:$0xff]  ;;  %2099 = vst.msk [vmem:[#allocation4 + $0xd0] sm:$0xff] %vm583_vm2, %v2088_v8  ;;  %2273 = vst.msk [vmem:[#allocation4 + $0x90] sm:$0xff] %vm583_vm2, %v2088_v8  ;;  %v1865_v30 = vadd.f32 %v10361_v5, %v1785_v28  ;;  %v1788_v50 = vadd.f32 %v8567_v3, %v1708_v29 }
 0x2ae   : > { %v2350_v7 = vld [vmem:[#allocation3 + $0x32] sm:$0xff]  ;;  %2011 = vst.msk [vmem:[#allocation4 + $0xc8] sm:$0xff] %vm583_vm2, %v2000_v6  ;;  %2186 = vst.msk [vmem:[#allocation4 + $0xb0] sm:$0xff] %vm583_vm2, %v2088_v8  ;;  %v9454_v29 = vld [vmem:[%s12316_s3 + $0x200] sm:$0xff]  }
 0x2af   : > { %v10412_v10 = vld [vmem:[#allocation3 + $0x37] sm:$0xff]  ;;  %2361 = vst.msk [vmem:[#allocation4 + $0x98] sm:$0xff] %vm583_vm2, %v2350_v7  ;;  %1907 = vst.msk [vmem:[#allocation3 + $0x48] sm:$0xff] %vm583_vm2, %v1896_v1  ;;  %v1886_v18 = vmax.f32 %v1865_v30, 0.0  ;;  %v1868_v61 = vadd.f32 %v10373_v52, %v1788_v50  ;;  %v8568_v20 = vpop.f32.mrb[20].mxu0  ;;  %v9455_v1 = vld [vmem:[%s12316_s3 + $0x1c0] sm:$0xff]  }
 0x2b0   : > { %2137 = vrot.lane.b32.xlu0 %v10412_v10, %s9683_s24  ;;  %v2089_v12 = vld [vmem:[#allocation3 + $0x38] sm:$0xff]  ;;  %v9447_v5 = vld [vmem:[%s12316_s3 + $0x1e8] sm:$0xff]   ;;  %2047 = vrot.lane.b32.xlu1 %v2108_v40, %s9683_s24  ;;  %v8569_v56 = vpop.f32.mrb[21].mxu0 }
 0x2b1   : > { %v2001_v13 = vld [vmem:[#allocation3 + $0x36] sm:$0xff]  ;;  %2100 = vst.msk [vmem:[#allocation4 + $0xf8] sm:$0xff] %vm583_vm2, %v2089_v12  ;;  %2274 = vst.msk [vmem:[#allocation4 + $0xb8] sm:$0xff] %vm583_vm2, %v2089_v12  ;;  %v1897_v25 = vmul.f32 %v1886_v18, %v10003_v14  ;;  %v1887_v26 = vmax.f32 %v1868_v61, 0.0  ;;  %v8570_v27 = vadd.f32 %v8569_v56, %v8568_v20  ;;  %v8571_v52 = vpop.f32.mrb[22].mxu0  ;;  %8638 = vmatprep.subr.bf16.mxu1 %v9447_v5  ;;  %v2282_v5 = vld [vmem:[#allocation3 + $0x21] sm:$0xff] }
 0x2b2   : > { %2012 = vst.msk [vmem:[#allocation4 + $0xf0] sm:$0xff] %vm583_vm2, %v2001_v13  ;;  %2187 = vst.msk [vmem:[#allocation4 + $0xd8] sm:$0xff] %vm583_vm2, %v2089_v12  ;;  %v2351_v9 = vld [vmem:[#allocation3 + $0x3a] sm:$0xff]  ;;  %v8572_v62 = vpop.f32.mrb[23].mxu0  ;;  %8639 = vmatpush3.bf16.msra.mxu1 %v9448_v22  ;;  %v9456_v28 = vld [vmem:[%s12316_s3 + $0x208] sm:$0xff]  }
 0x2b3   : > { %v2111_v19 = vld [vmem:[#allocation3 + $0x3f] sm:$0xff]  ;;  %2362 = vst.msk [vmem:[#allocation4 + $0xc0] sm:$0xff] %vm583_vm2, %v2351_v9  ;;  %1908 = vst.msk [vmem:[#allocation3 + $0x50] sm:$0xff] %vm583_vm2, %v1897_v25  ;;  %v1898_v31 = vmul.f32 %v1887_v26, %v10054_v55  ;;  %v1793_v32 = vadd.f32 %v8570_v27, %v1713_v23  ;;  %8640 = vmatprep.subr.bf16.mxu1 %v9449_v33  ;;  %v9457_v8 = vld [vmem:[%s12316_s3 + $0x1c8] sm:$0xff]  }
 0x2b4   : > { %2049 = vrot.lane.b32.xlu0 %v2109_v0, %s9683_s24  ;;  %2139 = vrot.lane.b32.xlu1 %v2111_v19, %s9683_s24  ;;  %v2090_v38 = vld [vmem:[#allocation3 + $0x40] sm:$0xff]  ;;  %v9460_v13 = vld [vmem:[%s12316_s3 + $0x1d0] sm:$0xff]   ;;  %v2283_v20 = vld [vmem:[#allocation3 + $0x29] sm:$0xff] }
 0x2b5   : > { %v2002_v41 = vld [vmem:[#allocation3 + $0x3e] sm:$0xff]  ;;  %2101 = vst.msk [vmem:[#allocation4 + $0x120] sm:$0xff] %vm583_vm2, %v2090_v38  ;;  %2275 = vst.msk [vmem:[#allocation4 + $0xe0] sm:$0xff] %vm583_vm2, %v2090_v38  ;;  %v1873_v48 = vadd.f32 %v10356_v2, %v1793_v32  ;;  %v2193_v61 = vld [vmem:[#allocation3 + $0x11] sm:$0xff] }
 0x2b6   : > { %v2352_v40 = vld [vmem:[#allocation3 + $0x42] sm:$0xff]  ;;  %2013 = vst.msk [vmem:[#allocation4 + $0x118] sm:$0xff] %vm583_vm2, %v2002_v41  ;;  %2188 = vst.msk [vmem:[#allocation4 + $0x100] sm:$0xff] %vm583_vm2, %v2090_v38  ;;  %8641 = vmatpush3.bf16.msra.mxu1 %v9450_v46  ;;  %v2284_v56 = vld [vmem:[#allocation3 + $0x31] sm:$0xff] }
 0x2b7   : > { %v2112_v21 = vld [vmem:[#allocation3 + $0x47] sm:$0xff]  ;;  %2363 = vst.msk [vmem:[#allocation4 + $0xe8] sm:$0xff] %vm583_vm2, %v2352_v40  ;;  %1909 = vst.msk [vmem:[#allocation3 + $0x58] sm:$0xff] %vm583_vm2, %v1898_v31  ;;  %v1888_v2 = vmax.f32 %v1873_v48, 0.0  ;;  %8642 = vmatprep.subr.bf16.mxu1 %v9452_v47  ;;  %v2285_v22 = vld [vmem:[#allocation3 + $0x39] sm:$0xff] }
 0x2b8   : > { %2141 = vrot.lane.b32.xlu0 %v2112_v21, %s9683_s24  ;;  %v2091_v43 = vld [vmem:[#allocation3 + $0x48] sm:$0xff]  ;;  %2051 = vrot.lane.b32.xlu1 %v10412_v10, %s9683_s24  ;;  %v9459_v10 = vld [vmem:[%s12316_s3 + $0x210] sm:$0xff]   ;;  %v9462_v18 = vld [vmem:[%s12316_s3 + $0x1d8] sm:$0xff]  }
 0x2b9   : > { %v2003_v44 = vld [vmem:[#allocation3 + $0x46] sm:$0xff]  ;;  %2102 = vst.msk [vmem:[#allocation4 + $0x148] sm:$0xff] %vm583_vm2, %v2091_v43  ;;  %2276 = vst.msk [vmem:[#allocation4 + $0x108] sm:$0xff] %vm583_vm2, %v2091_v43  ;;  %v1899_v24 = vmul.f32 %v1888_v2, %v10035_v45  ;;  %v3415_v31 = vld [vmem:[#allocation2 + $0x6a] sm:$0x1] }
 0x2ba   : > { %2014 = vst.msk [vmem:[#allocation4 + $0x140] sm:$0xff] %vm583_vm2, %v2003_v44  ;;  %2189 = vst.msk [vmem:[#allocation4 + $0x128] sm:$0xff] %vm583_vm2, %v2091_v43  ;;  %v2353_v51 = vld [vmem:[#allocation3 + $0x4a] sm:$0xff]  ;;  %8643 = vmatpush3.bf16.msra.mxu1 %v9453_v49  ;;  %v2005_v0 = vld [vmem:[#allocation3 + $0x56] sm:$0x1] }
 0x2bb   : > { %v2113_v37 = vld [vmem:[#allocation3 + $0x4f] sm:$0xff]  ;;  %2364 = vst.msk [vmem:[#allocation4 + $0x110] sm:$0xff] %vm583_vm2, %v2353_v51  ;;  %8644 = vmatprep.subr.bf16.mxu1 %v9454_v29  ;;  %v2027_v30 = vld [vmem:[#allocation3 + $0x57] sm:$0x1]  ;;  %v2286_v23 = vld [vmem:[#allocation3 + $0x41] sm:$0xff] }
 0x2bc   : > { %2053 = vrot.lane.b32.xlu0 %v2111_v19, %s9683_s24  ;;  %1910 = vst.msk [vmem:[#allocation3 + $0x60] sm:$0x1] %vm862_vm3, %v1899_v24  ;;  %2143 = vrot.lane.b32.xlu1 %v2113_v37, %s9683_s24  ;;  %v2092_v53 = vld [vmem:[#allocation3 + $0x50] sm:$0xff]  ;;  %2016 = vst.msk [vmem:[#allocation4 + $0x190] sm:$0x1] %vm862_vm3, %v2005_v0  ;;  %v10530_v25 = vld [vmem:[#allocation4 + $0x188] sm:$0xff] }
 0x2bd   : > { %v2004_v54 = vld [vmem:[#allocation3 + $0x4e] sm:$0xff]  ;;  %2103 = vst.msk [vmem:[#allocation4 + $0x170] sm:$0xff] %vm583_vm2, %v2092_v53  ;;  %2277 = vst.msk [vmem:[#allocation4 + $0x130] sm:$0xff] %vm583_vm2, %v2092_v53  ;;  %v2290_v19 = vld [vmem:[#allocation3 + $0x61] sm:$0xff] }
 0x2be   : > { %v2354_v58 = vld [vmem:[#allocation3 + $0x52] sm:$0xff]  ;;  %2015 = vst.msk [vmem:[#allocation4 + $0x168] sm:$0xff] %vm583_vm2, %v2004_v54  ;;  %2190 = vst.msk [vmem:[#allocation4 + $0x150] sm:$0xff] %vm583_vm2, %v2092_v53  ;;  %8645 = vmatpush3.bf16.msra.mxu1 %v9455_v1  ;;  %v2115_v7 = vld [vmem:[#allocation3 + $0x5f] sm:$0x1] }
 0x2bf   : > { %v2114_v59 = vld [vmem:[#allocation3 + $0x57] sm:$0xff]  ;;  %2365 = vst.msk [vmem:[#allocation4 + $0x138] sm:$0xff] %vm583_vm2, %v2354_v58  ;;  %8646 = vmatprep.subr.bf16.mxu1 %v9456_v28  ;;  %v3414_v26 = vld [vmem:[#allocation2 + $0x62] sm:$0xff]  ;;  %v10542_v62 = vld [vmem:[#allocation4 + $0x1b0] sm:$0x1] }
 0x2c0   : > { %2145 = vrot.lane.b32.xlu0 %v2114_v59, %s9683_s24  ;;  %v2093_v63 = vld [vmem:[#allocation3 + $0x58] sm:$0x1]  ;;  %2055 = vrot.lane.b32.xlu1 %v2112_v21, %s9683_s24  ;;  %3425 = vst.msk [vmem:[#allocation4 + $0x188] sm:$0xff] %vm583_vm2, %v3414_v26  ;;  %v2287_v27 = vld [vmem:[#allocation3 + $0x49] sm:$0xff]  ;;  %v2203_v38 = vld [vmem:[#allocation3 + $0x61] sm:$0x1] }
 0x2c1   : > { %2104 = vst.msk [vmem:[#allocation4 + $0x198] sm:$0x1] %vm862_vm3, %v2093_v63  ;;  %v2267_v3 = vld [vmem:[#allocation3 + $0x58] sm:$0xff]  ;;  %3426 = vst.msk [vmem:[#allocation4 + $0x1b0] sm:$0x1] %vm862_vm3, %v3415_v31  ;;  %v9444_v53 = vld [vmem:[%s12316_s3 + $0x228] sm:$0xff]  }
 0x2c2   : > { %2278 = vst.msk [vmem:[#allocation4 + $0x158] sm:$0xff] %vm583_vm2, %v2267_v3  ;;  %2191 = vst.msk [vmem:[#allocation4 + $0x178] sm:$0xff] %vm583_vm2, %v2267_v3  ;;  %8647 = vmatpush3.bf16.msra.mxu1 %v9457_v8  ;;  %v2288_v52 = vld [vmem:[#allocation3 + $0x51] sm:$0xff]  ;;  %v2291_v32 = vld [vmem:[#allocation3 + $0x69] sm:$0x1] }
 0x2c3   : > { %v2355_v6 = vld [vmem:[#allocation3 + $0x5a] sm:$0xff]  ;;  %8648 = vmatprep.subr.bf16.mxu1 %v9459_v10 }
 0x2c4   : > { %2057 = vrot.lane.b32.xlu0 %v2113_v37, %s9683_s24  ;;  %2366 = vst.msk [vmem:[#allocation4 + $0x160] sm:$0xff] %vm583_vm2, %v2355_v6  ;;  %2147 = vrot.lane.b32.xlu1 %v2115_v7, %s9683_s24  ;;  %v2268_v50 = vld [vmem:[#allocation3 + $0x60] sm:$0xff]  ;;  %v9451_v29 = vld [vmem:[%s12316_s3 + $0x230] sm:$0xff]  }
 0x2c5   : > { %v2181_v12 = vld [vmem:[#allocation3 + $0x60] sm:$0x1]  ;;  %2279 = vst.msk [vmem:[#allocation4 + $0x180] sm:$0xff] %vm583_vm2, %v2268_v50 }
 0x2c6   : > { %2192 = vst.msk [vmem:[#allocation4 + $0x1a0] sm:$0x1] %vm862_vm3, %v2181_v12  ;;  %8649 = vmatpush3.bf16.msra.mxu1 %v9460_v13  ;;  %v2289_v9 = vld [vmem:[#allocation3 + $0x59] sm:$0xff] }
 0x2c7   : > { %8650 = vmatprep.subr.bf16.mxu1 %v9461_v17  ;;  %v9458_v6 = vld [vmem:[%s12316_s3 + $0x238] sm:$0xff]  }
 0x2c8   : > { %2059 = vrot.lane.b32.xlu0 %v2027_v30, %s9683_s24  ;;  %2303 = vrot.lane.b32.xlu1 %v2281_v16, %s9683_s24 }
 0x2ca   : > { %8651 = vmatpush3.bf16.msra.mxu1 %v9462_v18 }
 0x2cc   : > { %2305 = vrot.lane.b32.xlu0 %v2282_v5, %s9683_s24  ;;  %2215 = vrot.lane.b32.xlu1 %v2193_v61, %s9683_s24 }
 0x2d0   : > { %2217 = vrot.lane.b32.xlu0 %v2281_v16, %s9683_s24  ;;  %2307 = vrot.lane.b32.xlu1 %v2283_v20, %s9683_s24 }
 0x2d4   : > { %2309 = vrot.lane.b32.xlu0 %v2284_v56, %s9683_s24  ;;  %2219 = vrot.lane.b32.xlu1 %v2282_v5, %s9683_s24 }
 0x2d8   : > { %2221 = vrot.lane.b32.xlu0 %v2283_v20, %s9683_s24  ;;  %2311 = vrot.lane.b32.xlu1 %v2285_v22, %s9683_s24 }
 0x2dc   : > { %2313 = vrot.lane.b32.xlu0 %v2286_v23, %s9683_s24  ;;  %2223 = vrot.lane.b32.xlu1 %v2284_v56, %s9683_s24 }
 0x2e0   : > { %2225 = vrot.lane.b32.xlu0 %v2285_v22, %s9683_s24  ;;  %2315 = vrot.lane.b32.xlu1 %v2287_v27, %s9683_s24 }
 0x2e4   : > { %2317 = vrot.lane.b32.xlu0 %v2288_v52, %s9683_s24  ;;  %2227 = vrot.lane.b32.xlu1 %v2286_v23, %s9683_s24 }
 0x2e8   : > { %2229 = vrot.lane.b32.xlu0 %v2287_v27, %s9683_s24  ;;  %2319 = vrot.lane.b32.xlu1 %v2289_v9, %s9683_s24 }
 0x2ec   : > { %2321 = vrot.lane.b32.xlu0 %v2290_v19, %s9683_s24  ;;  %2231 = vrot.lane.b32.xlu1 %v2288_v52, %s9683_s24 }
 0x2f0   : > { %2233 = vrot.lane.b32.xlu0 %v2289_v9, %s9683_s24  ;;  %2323 = vrot.lane.b32.xlu1 %v2291_v32, %s9683_s24 }
 0x2f4   : > { %2235 = vrot.lane.b32.xlu0 %v2203_v38, %s9683_s24 }
 0x30d   : > { %v2128_v41 = vpop.permute.xlu1 %2127 }
 0x30e   : > { %2160 = vst.msk [vmem:[#allocation4 + $0x8] sm:$0xff] %vm1013_vm4, %v2128_v41 }
 0x30f   : > { %v2130_v33 = vpop.permute.xlu0 %2129 }
 0x310   : > { %2161 = vst.msk [vmem:[#allocation4 + $0x30] sm:$0xff] %vm1013_vm4, %v2130_v33 }
 0x311   : > { %v2040_v40 = vpop.permute.xlu1 %2039 }
 0x312   : > { %2072 = vst.msk [vmem:[#allocation4] sm:$0xff] %vm1013_vm4, %v2040_v40 }
 0x313   : > { %v2042_v21 = vpop.permute.xlu0 %2041 }
 0x314   : > { %2073 = vst.msk [vmem:[#allocation4 + $0x28] sm:$0xff] %vm1013_vm4, %v2042_v21 }
 0x315   : > { %v2370_v44 = vld [vmem:[#allocation4 + $0x8] sm:$0xff] }
 0x316   : > { %v2132_v48 = vpop.permute.xlu1 %2131 }
 0x317   : > { %2162 = vst.msk [vmem:[#allocation4 + $0x58] sm:$0xff] %vm1013_vm4, %v2132_v48  ;;  %v2375_v46 = vld [vmem:[#allocation4 + $0x30] sm:$0xff] }
 0x318   : > { %v2134_v43 = vpop.permute.xlu0 %2133  ;;  %v2425_v47 = vpack.c.bf16 %v2375_v46, %v2370_v44 }
 0x319   : > { %2163 = vst.msk [vmem:[#allocation4 + $0x80] sm:$0xff] %vm1013_vm4, %v2134_v43  ;;  %v2369_v49 = vld [vmem:[#allocation4] sm:$0xff] }
 0x31a   : > { %v2044_v2 = vpop.permute.xlu1 %2043  ;;  %2728 = vmatprep.mubr.bf16.mxu0 %v2425_v47 }
 0x31b   : > { %2074 = vst.msk [vmem:[#allocation4 + $0x50] sm:$0xff] %vm1013_vm4, %v2044_v2  ;;  %v2374_v51 = vld [vmem:[#allocation4 + $0x28] sm:$0xff] }
 0x31c   : > { %v2046_v24 = vpop.permute.xlu0 %2045  ;;  %v2424_v37 = vpack.c.bf16 %v2374_v51, %v2369_v49 }
 0x31d   : > { %2075 = vst.msk [vmem:[#allocation4 + $0x78] sm:$0xff] %vm1013_vm4, %v2046_v24 }
 0x31e   : > { %v2136_v54 = vpop.permute.xlu1 %2135  ;;  %2729 = vmatmul.mubr.bf16.vlgmr.msra.gmra.mrb[24].mxu0 %v2424_v37  ;;  %v2380_v59 = vld [vmem:[#allocation4 + $0x58] sm:$0xff]  ;;  %v2378_v37 = vld [vmem:[#allocation4 + $0x48] sm:$0xff] }
 0x31f   : > { %2164 = vst.msk [vmem:[#allocation4 + $0xa8] sm:$0xff] %vm1013_vm4, %v2136_v54  ;;  %9201 = vmatpush3.bf16.msra.mxu0 %v10369_v11 }
 0x320   : > { %v2385_v63 = vld [vmem:[#allocation4 + $0x80] sm:$0xff]  ;;  %9202 = vmatprep.subr.bf16.mxu0 %v9444_v53 }
 0x321   : > { %v2430_v0 = vpack.c.bf16 %v2385_v63, %v2380_v59 }
 0x322   : > { %v2138_v58 = vpop.permute.xlu0 %2137  ;;  %v2048_v1 = vpop.permute.xlu1 %2047  ;;  %v2379_v3 = vld [vmem:[#allocation4 + $0x50] sm:$0xff] }
 0x323   : > { %2165 = vst.msk [vmem:[#allocation4 + $0xd0] sm:$0xff] %vm1013_vm4, %v2138_v58  ;;  %2076 = vst.msk [vmem:[#allocation4 + $0xa0] sm:$0xff] %vm1013_vm4, %v2048_v1  ;;  %2736 = vmatprep.mubr.bf16.mxu0 %v2430_v0  ;;  %9203 = vmatpush3.bf16.msra.mxu0 %v9444_v53  ;;  %v2373_v0 = vld [vmem:[#allocation4 + $0x20] sm:$0xff] }
 0x324   : > { %v2384_v8 = vld [vmem:[#allocation4 + $0x78] sm:$0xff]  ;;  %9204 = vmatprep.subr.bf16.mxu0 %v9451_v29  ;;  %v2428_v1 = vpack.c.bf16 %v2378_v37, %v2373_v0 }
 0x325   : > { %v2429_v11 = vpack.c.bf16 %v2384_v8, %v2379_v3 }
 0x326   : > { %v2050_v28 = vpop.permute.xlu0 %2049  ;;  %v2140_v7 = vpop.permute.xlu1 %2139  ;;  %v2390_v30 = vld [vmem:[#allocation4 + $0xa8] sm:$0xff] }
 0x327   : > { %2077 = vst.msk [vmem:[#allocation4 + $0xc8] sm:$0xff] %vm1013_vm4, %v2050_v28  ;;  %2166 = vst.msk [vmem:[#allocation4 + $0xf8] sm:$0xff] %vm1013_vm4, %v2140_v7  ;;  %2737 = vmatmul.mubr.bf16.gmra.mrb[28].mxu0 %v2429_v11  ;;  %v2388_v7 = vld [vmem:[#allocation4 + $0x98] sm:$0xff] }
 0x328   : > { %9205 = vmatpush3.bf16.msra.mxu0 %v9451_v29 }
 0x329   : > { %9206 = vmatprep.subr.bf16.mxu0 %v9458_v6 }
 0x32a   : > { %v2142_v10 = vpop.permute.xlu0 %2141  ;;  %v2395_v50 = vld [vmem:[#allocation4 + $0xd0] sm:$0xff]  ;;  %v2052_v13 = vpop.permute.xlu1 %2051  ;;  %v2389_v17 = vld [vmem:[#allocation4 + $0xa0] sm:$0xff] }
 0x32b   : > { %2167 = vst.msk [vmem:[#allocation4 + $0x120] sm:$0xff] %vm1013_vm4, %v2142_v10  ;;  %v2435_v12 = vpack.c.bf16 %v2395_v50, %v2390_v30  ;;  %2078 = vst.msk [vmem:[#allocation4 + $0xf0] sm:$0xff] %vm1013_vm4, %v2052_v13  ;;  %v2398_v10 = vld [vmem:[#allocation4 + $0xe8] sm:$0xff]  ;;  %v2383_v13 = vld [vmem:[#allocation4 + $0x70] sm:$0xff] }
 0x32c   : > { %9207 = vmatpush3.bf16.msra.mxu0 %v9458_v6 }
 0x32d   : > { %2744 = vmatprep.mubr.bf16.mxu0 %v2435_v12 }
 0x32e   : > { %v2054_v16 = vpop.permute.xlu0 %2053  ;;  %v2394_v5 = vld [vmem:[#allocation4 + $0xc8] sm:$0xff]  ;;  %v2144_v61 = vpop.permute.xlu1 %2143  ;;  %v2400_v56 = vld [vmem:[#allocation4 + $0xf8] sm:$0xff] }
 0x32f   : > { %2079 = vst.msk [vmem:[#allocation4 + $0x118] sm:$0xff] %vm1013_vm4, %v2054_v16  ;;  %v2434_v18 = vpack.c.bf16 %v2394_v5, %v2389_v17  ;;  %2168 = vst.msk [vmem:[#allocation4 + $0x148] sm:$0xff] %vm1013_vm4, %v2144_v61  ;;  %v2433_v17 = vpack.c.bf16 %v2388_v7, %v2383_v13  ;;  %v2393_v5 = vld [vmem:[#allocation4 + $0xc0] sm:$0xff] }
 0x330   : > { %v2438_v61 = vpack.c.bf16 %v2398_v10, %v2393_v5 }
 0x331   : > { %2745 = vmatmul.mubr.bf16.gmra.mrb[32].mxu0 %v2434_v18 }
 0x332   : > { %v2146_v20 = vpop.permute.xlu0 %2145  ;;  %v2405_v22 = vld [vmem:[#allocation4 + $0x120] sm:$0xff]  ;;  %v2056_v26 = vpop.permute.xlu1 %2055  ;;  %v2399_v52 = vld [vmem:[#allocation4 + $0xf0] sm:$0xff] }
 0x333   : > { %2169 = vst.msk [vmem:[#allocation4 + $0x170] sm:$0xff] %vm1013_vm4, %v2146_v20  ;;  %v2440_v23 = vpack.c.bf16 %v2405_v22, %v2400_v56  ;;  %2080 = vst.msk [vmem:[#allocation4 + $0x140] sm:$0xff] %vm1013_vm4, %v2056_v26 }
 0x335   : > { %2752 = vmatprep.mubr.bf16.mxu0 %v2440_v23 }
 0x336   : > { %v2058_v27 = vpop.permute.xlu0 %2057  ;;  %v2404_v9 = vld [vmem:[#allocation4 + $0x118] sm:$0xff]  ;;  %v2148_v31 = vpop.permute.xlu1 %2147  ;;  %v2410_v38 = vld [vmem:[#allocation4 + $0x148] sm:$0xff] }
 0x337   : > { %2081 = vst.msk [vmem:[#allocation4 + $0x168] sm:$0xff] %vm1013_vm4, %v2058_v27  ;;  %v2439_v19 = vpack.c.bf16 %v2404_v9, %v2399_v52  ;;  %v2408_v27 = vld [vmem:[#allocation4 + $0x138] sm:$0xff]  ;;  %v2413_v52 = vld [vmem:[#allocation4 + $0x160] sm:$0xff] }
 0x338   : > { %2170 = vst.msk [vmem:[#allocation4 + $0x198] sm:$0x1] %vm1024_vm5, %v2148_v31 }
 0x339   : > { %2753 = vmatmul.mubr.bf16.gmra.mrb[36].mxu0 %v2439_v19 }
 0x33a   : > { %v2060_v32 = vpop.permute.xlu0 %2059  ;;  %v2415_v41 = vld [vmem:[#allocation4 + $0x170] sm:$0xff]  ;;  %v2304_v40 = vpop.permute.xlu1 %2303  ;;  %v2409_v48 = vld [vmem:[#allocation4 + $0x140] sm:$0xff] }
 0x33b   : > { %2082 = vst.msk [vmem:[#allocation4 + $0x190] sm:$0x1] %vm1024_vm5, %v2060_v32  ;;  %v2445_v33 = vpack.c.bf16 %v2415_v41, %v2410_v38  ;;  %v2403_v32 = vld [vmem:[#allocation4 + $0x110] sm:$0xff] }
 0x33c   : > { %2336 = vst.msk [vmem:[#allocation4 + $0x18] sm:$0xff] %vm1013_vm4, %v2304_v40  ;;  %v2443_v41 = vpack.c.bf16 %v2408_v27, %v2403_v32  ;;  %v2448_v40 = vpack.c.bf16 %v10530_v25, %v2413_v52  ;;  %v2453_v25 = vpack.c.bf16 %v10542_v62, %v10542_v62  ;;  %v9464_v32 = vld [vmem:[%s12316_s3 + $0x240] sm:$0xff]  }
 0x33d   : > { %2760 = vmatprep.mubr.bf16.mxu0 %v2445_v33 }
 0x33e   : > { %v2306_v21 = vpop.permute.xlu0 %2305  ;;  %v2414_v43 = vld [vmem:[#allocation4 + $0x168] sm:$0xff]  ;;  %v2216_v46 = vpop.permute.xlu1 %2215 }
 0x33f   : > { %2337 = vst.msk [vmem:[#allocation4 + $0x40] sm:$0xff] %vm1013_vm4, %v2306_v21  ;;  %v2444_v44 = vpack.c.bf16 %v2414_v43, %v2409_v48  ;;  %v2420_v47 = vld [vmem:[#allocation4 + $0x198] sm:$0x1]  ;;  %2248 = vst.msk [vmem:[#allocation4 + $0x10] sm:$0xff] %vm1013_vm4, %v2216_v46 }
 0x340   : > { %v2450_v2 = vpack.c.bf16 %v2420_v47, %v2420_v47 }
 0x341   : > { %2761 = vmatmul.mubr.bf16.gmra.mrb[40].mxu0 %v2444_v44 }
 0x342   : > { %v2218_v49 = vpop.permute.xlu0 %2217  ;;  %2768 = vmatprep.mubr.bf16.mxu0 %v2450_v2  ;;  %v2308_v24 = vpop.permute.xlu1 %2307  ;;  %v2419_v51 = vld [vmem:[#allocation4 + $0x190] sm:$0x1] }
 0x343   : > { %2249 = vst.msk [vmem:[#allocation4 + $0x38] sm:$0xff] %vm1013_vm4, %v2218_v49  ;;  %2338 = vst.msk [vmem:[#allocation4 + $0x68] sm:$0xff] %vm1013_vm4, %v2308_v24  ;;  %v2372_v54 = vld [vmem:[#allocation4 + $0x18] sm:$0xff]  ;;  %v2449_v59 = vpack.c.bf16 %v2419_v51, %v2419_v51 }
 0x346   : > { %v2310_v53 = vpop.permute.xlu0 %2309  ;;  %v2377_v58 = vld [vmem:[#allocation4 + $0x40] sm:$0xff]  ;;  %v2220_v29 = vpop.permute.xlu1 %2219  ;;  %v2371_v3 = vld [vmem:[#allocation4 + $0x10] sm:$0xff] }
 0x347   : > { %2339 = vst.msk [vmem:[#allocation4 + $0x90] sm:$0xff] %vm1013_vm4, %v2310_v53  ;;  %v2427_v63 = vpack.c.bf16 %v2377_v58, %v2372_v54  ;;  %2250 = vst.msk [vmem:[#allocation4 + $0x60] sm:$0xff] %vm1013_vm4, %v2220_v29 }
 0x349   : > { %2769 = vmatmul.mubr.bf16.gmra.mrb[44].mxu0 %v2449_v59  ;;  %2808 = vmatprep.mubr.bf16.mxu1 %v2427_v63 }
 0x34a   : > { %v2222_v28 = vpop.permute.xlu0 %2221  ;;  %9208 = vmatprep.mubr.msk.bf16.mxu0 %vm583_vm2, %v2428_v1  ;;  %v2376_v8 = vld [vmem:[#allocation4 + $0x38] sm:$0xff]  ;;  %v2312_v6 = vpop.permute.xlu1 %2311  ;;  %v2382_v50 = vld [vmem:[#allocation4 + $0x68] sm:$0xff] }
 0x34b   : > { %2251 = vst.msk [vmem:[#allocation4 + $0x88] sm:$0xff] %vm1013_vm4, %v2222_v28  ;;  %v2426_v11 = vpack.c.bf16 %v2376_v8, %v2371_v3  ;;  %2340 = vst.msk [vmem:[#allocation4 + $0xb8] sm:$0xff] %vm1013_vm4, %v2312_v6  ;;  %v3327_v1 = vld [vmem:[#allocation2 + $0x68] sm:$0x1] }
 0x34d   : > { %2809 = vmatmul.mubr.bf16.vlgmr.msra.gmra.mrb[48].mxu1 %v2426_v11 }
 0x34e   : > { %v2314_v30 = vpop.permute.xlu0 %2313  ;;  %v2387_v12 = vld [vmem:[#allocation4 + $0x90] sm:$0xff]  ;;  %v2224_v18 = vpop.permute.xlu1 %2223  ;;  %v2381_v56 = vld [vmem:[#allocation4 + $0x60] sm:$0xff] }
 0x34f   : > { %2341 = vst.msk [vmem:[#allocation4 + $0xe0] sm:$0xff] %vm1013_vm4, %v2314_v30  ;;  %v2432_v16 = vpack.c.bf16 %v2387_v12, %v2382_v50  ;;  %2252 = vst.msk [vmem:[#allocation4 + $0xb0] sm:$0xff] %vm1013_vm4, %v2224_v18 }
 0x351   : > { %2816 = vmatprep.mubr.bf16.mxu1 %v2432_v16  ;;  %9209 = vmatmul.mubr.msk.bf16.vlgmr.msra.gmra.mrb[48].mxu0 %vm583_vm2, %v2433_v17 }
 0x352   : > { %v2226_v20 = vpop.permute.xlu0 %2225  ;;  %9212 = vmatprep.mubr.msk.bf16.mxu0 %vm583_vm2, %v2438_v61  ;;  %v2386_v22 = vld [vmem:[#allocation4 + $0x88] sm:$0xff]  ;;  %v2316_v26 = vpop.permute.xlu1 %2315  ;;  %v2392_v19 = vld [vmem:[#allocation4 + $0xb8] sm:$0xff] }
 0x353   : > { %2253 = vst.msk [vmem:[#allocation4 + $0xd8] sm:$0xff] %vm1013_vm4, %v2226_v20  ;;  %v2431_v23 = vpack.c.bf16 %v2386_v22, %v2381_v56  ;;  %2342 = vst.msk [vmem:[#allocation4 + $0x108] sm:$0xff] %vm1013_vm4, %v2316_v26 }
 0x355   : > { %2817 = vmatmul.mubr.bf16.gmra.mrb[52].mxu1 %v2431_v23 }
 0x356   : > { %v2318_v9 = vpop.permute.xlu0 %2317  ;;  %v2397_v31 = vld [vmem:[#allocation4 + $0xe0] sm:$0xff]  ;;  %v2228_v33 = vpop.permute.xlu1 %2227  ;;  %v2391_v48 = vld [vmem:[#allocation4 + $0xb0] sm:$0xff] }
 0x357   : > { %2343 = vst.msk [vmem:[#allocation4 + $0x130] sm:$0xff] %vm1013_vm4, %v2318_v9  ;;  %v2437_v38 = vpack.c.bf16 %v2397_v31, %v2392_v19  ;;  %2254 = vst.msk [vmem:[#allocation4 + $0x100] sm:$0xff] %vm1013_vm4, %v2228_v33  ;;  %v9463_v9 = vld [vmem:[%s12316_s3 + $0x280] sm:$0xff]  }
 0x358   : > { %8698 = vmatprep.subr.bf16.mxu1 %v9463_v9  ;;  %v1911_v9 = vld [vmem:[#allocation2 + $0x10] sm:$0xff] }
 0x359   : > { %2824 = vmatprep.mubr.bf16.mxu1 %v2437_v38  ;;  %9213 = vmatmul.mubr.msk.bf16.gmra.mrb[52].mxu0 %vm583_vm2, %v2443_v41  ;;  %v9465_v38 = vld [vmem:[%s12316_s3 + $0x288] sm:$0xff]  }
 0x35a   : > { %v2230_v21 = vpop.permute.xlu0 %2229  ;;  %9216 = vmatprep.mubr.msk.bf16.mxu0 %vm583_vm2, %v2448_v40  ;;  %v2396_v43 = vld [vmem:[#allocation4 + $0xd8] sm:$0xff]  ;;  %v2320_v46 = vpop.permute.xlu1 %2319  ;;  %v2402_v2 = vld [vmem:[#allocation4 + $0x108] sm:$0xff]  ;;  %8699 = vmatpush3.bf16.msra.mxu1 %v9464_v32  ;;  %v9467_v40 = vld [vmem:[%s12316_s3 + $0x290] sm:$0xff]  }
 0x35b   : > { %2255 = vst.msk [vmem:[#allocation4 + $0x128] sm:$0xff] %vm1013_vm4, %v2230_v21  ;;  %v2436_v44 = vpack.c.bf16 %v2396_v43, %v2391_v48  ;;  %2344 = vst.msk [vmem:[#allocation4 + $0x158] sm:$0xff] %vm1013_vm4, %v2320_v46  ;;  %v9466_v41 = vld [vmem:[%s12316_s3 + $0x248] sm:$0xff]   ;;  %8700 = vmatprep.subr.bf16.mxu1 %v9465_v38 }
 0x35c   : > { %v3141_v46 = vld [vmem:[#allocation2 + $0x8] sm:$0xff] }
 0x35d   : > { %2825 = vmatmul.mubr.bf16.gmra.mrb[56].mxu1 %v2436_v44  ;;  %v9468_v44 = vld [vmem:[%s12316_s3 + $0x250] sm:$0xff]   ;;  %3152 = vst.msk [vmem:[#allocation4 + $0x8] sm:$0xff] %vm583_vm2, %v3141_v46 }
 0x35e   : > { %v2322_v47 = vpop.permute.xlu0 %2321  ;;  %v2407_v49 = vld [vmem:[#allocation4 + $0x130] sm:$0xff]  ;;  %v2232_v51 = vpop.permute.xlu1 %2231  ;;  %v2401_v53 = vld [vmem:[#allocation4 + $0x100] sm:$0xff]  ;;  %8701 = vmatpush3.bf16.msra.mxu1 %v9466_v41 }
 0x35f   : > { %2345 = vst.msk [vmem:[#allocation4 + $0x180] sm:$0xff] %vm1013_vm4, %v2322_v47  ;;  %v2442_v24 = vpack.c.bf16 %v2407_v49, %v2402_v2  ;;  %2256 = vst.msk [vmem:[#allocation4 + $0x150] sm:$0xff] %vm1013_vm4, %v2232_v51  ;;  %8702 = vmatprep.subr.bf16.mxu1 %v9467_v40  ;;  %v9469_v47 = vld [vmem:[%s12316_s3 + $0x298] sm:$0xff]  }
 0x360   : > { %v9470_v49 = vld [vmem:[%s12316_s3 + $0x258] sm:$0xff]  }
 0x361   : > { %2832 = vmatprep.mubr.bf16.mxu1 %v2442_v24  ;;  %9217 = vmatmul.mubr.msk.bf16.gmra.mrb[56].mxu0 %vm583_vm2, %v2453_v25  ;;  %v9471_v24 = vld [vmem:[%s12316_s3 + $0x2a0] sm:$0xff]  }
 0x362   : > { %v2234_v37 = vpop.permute.xlu0 %2233  ;;  %v2406_v54 = vld [vmem:[#allocation4 + $0x128] sm:$0xff]  ;;  %v2324_v59 = vpop.permute.xlu1 %2323  ;;  %v2412_v62 = vld [vmem:[#allocation4 + $0x158] sm:$0xff]  ;;  %8703 = vmatpush3.bf16.msra.mxu1 %v9468_v44 }
 0x363   : > { %2257 = vst.msk [vmem:[#allocation4 + $0x178] sm:$0xff] %vm1013_vm4, %v2234_v37  ;;  %v2441_v58 = vpack.c.bf16 %v2406_v54, %v2401_v53  ;;  %8704 = vmatprep.subr.bf16.mxu1 %v9469_v47  ;;  %v9475_v47 = vld [vmem:[%s12316_s3 + $0x2b0] sm:$0xff]  }
 0x364   : > { %2346 = vst.msk [vmem:[#allocation4 + $0x1a8] sm:$0x1] %vm1024_vm5, %v2324_v59 }
 0x365   : > { %2833 = vmatmul.mubr.bf16.gmra.mrb[60].mxu1 %v2441_v58  ;;  %v9472_v58 = vld [vmem:[%s12316_s3 + $0x260] sm:$0xff]  }
 0x366   : > { %v2417_v63 = vld [vmem:[#allocation4 + $0x180] sm:$0xff]  ;;  %v2236_v0 = vpop.permute.xlu0 %2235  ;;  %v2411_v28 = vld [vmem:[#allocation4 + $0x150] sm:$0xff]  ;;  %8705 = vmatpush3.bf16.msra.mxu1 %v9470_v49 }
 0x367   : > { %v2447_v29 = vpack.c.bf16 %v2417_v63, %v2412_v62  ;;  %2258 = vst.msk [vmem:[#allocation4 + $0x1a0] sm:$0x1] %vm1024_vm5, %v2236_v0  ;;  %8706 = vmatprep.subr.bf16.mxu1 %v9471_v24  ;;  %v9473_v62 = vld [vmem:[%s12316_s3 + $0x2a8] sm:$0xff]  }
 0x368   : > { %v9474_v0 = vld [vmem:[%s12316_s3 + $0x268] sm:$0xff]  }
 0x369   : > { %2840 = vmatprep.mubr.bf16.mxu1 %v2447_v29  ;;  %v3053_v49 = vld [vmem:[#allocation2 + $0x6] sm:$0xff] }
 0x36a   : > { %v2416_v3 = vld [vmem:[#allocation4 + $0x178] sm:$0xff]  ;;  %8707 = vmatpush3.bf16.msra.mxu1 %v9472_v58  ;;  %3064 = vst.msk [vmem:[#allocation4] sm:$0xff] %vm583_vm2, %v3053_v49 }
 0x36b   : > { %v2446_v8 = vpack.c.bf16 %v2416_v3, %v2411_v28  ;;  %v2422_v11 = vld [vmem:[#allocation4 + $0x1a8] sm:$0x1]  ;;  %8708 = vmatprep.subr.bf16.mxu1 %v9473_v62 }
 0x36c   : > { %3338 = vst.msk [vmem:[#allocation4 + $0x1a8] sm:$0x1] %vm862_vm3, %v3327_v1  ;;  %v2452_v6 = vpack.c.bf16 %v2422_v11, %v2422_v11 }
 0x36d   : > { %2841 = vmatmul.mubr.bf16.gmra.mrb[64].mxu1 %v2446_v8  ;;  %v10673_v8 = vld [vmem:[%s12317_s4 + $0x1] ss:$0 sm:$0xff] }
 0x36e   : > { %v2421_v7 = vld [vmem:[#allocation4 + $0x1a0] sm:$0x1]  ;;  %2848 = vmatprep.mubr.bf16.mxu1 %v2452_v6  ;;  %8709 = vmatpush3.bf16.msra.mxu1 %v9474_v0 }
 0x36f   : > { %v2451_v10 = vpack.c.bf16 %v2421_v7, %v2421_v7  ;;  %8710 = vmatprep.subr.bf16.mxu1 %v9475_v47 }
 0x375   : > { %2849 = vmatmul.mubr.bf16.gmra.mrb[68].mxu1 %v2451_v10 }
 0x3f1   : > { %v8600_v30 = vpop.f32.mrb[24].mxu0 }
 0x3f2   : > { %v8601_v50 = vpop.f32.mrb[25].mxu0 }
 0x3f3   : > { %v8602_v12 = vadd.f32 %v8601_v50, %v8600_v30  ;;  %v8603_v13 = vpop.f32.mrb[26].mxu0 }
 0x3f4   : > { %v8604_v16 = vpop.f32.mrb[27].mxu0 }
 0x3f5   : > { %v10613_v17 = vadd.f32 %v8604_v16, %v8603_v13  ;;  %v2731_v10 = vadd.f32 %v8602_v12, %v10673_v8 }
 0x3f7   : > { %v2734_v16 = vadd.f32 %v10613_v17, %v10673_v8 }
 0x3fa   : > { %v8606_v5 = vpop.f32.mrb[28].mxu0 }
 0x3fb   : > { %v8607_v18 = vpop.f32.mrb[29].mxu0 }
 0x3fc   : > { %v10615_v61 = vadd.f32 %v8607_v18, %v8606_v5  ;;  %v8609_v20 = vpop.f32.mrb[30].mxu0 }
 0x3fd   : > { %v8610_v56 = vpop.f32.mrb[31].mxu0 }
 0x3fe   : > { %v10617_v22 = vadd.f32 %v8610_v56, %v8609_v20  ;;  %v2739_v40 = vadd.f32 %v10615_v61, %v10673_v8 }
 0x400   : > { %v2742_v46 = vadd.f32 %v10617_v22, %v10673_v8  ;;  %v9476_v22 = vld [vmem:[%s12316_s3 + $0x270] sm:$0xff]  }
 0x401   : > { %8711 = vmatpush3.bf16.msra.mxu1 %v9476_v22 }
 0x404   : > { %v8612_v23 = vpop.f32.mrb[32].mxu0 }
 0x405   : > { %v8613_v26 = vpop.f32.mrb[33].mxu0 }
 0x406   : > { %v10619_v27 = vadd.f32 %v8613_v26, %v8612_v23  ;;  %v8615_v52 = vpop.f32.mrb[34].mxu0 }
 0x407   : > { %v8616_v19 = vpop.f32.mrb[35].mxu0 }
 0x408   : > { %v10624_v31 = vadd.f32 %v8616_v19, %v8615_v52 }
 0x40c   : > { %v8618_v33 = vpop.f32.mrb[36].mxu0 }
 0x40d   : > { %v8619_v21 = vpop.f32.mrb[37].mxu0 }
 0x40e   : > { %v10638_v48 = vadd.f32 %v8619_v21, %v8618_v33  ;;  %v8621_v43 = vpop.f32.mrb[38].mxu0  ;;  %v1912_v33 = vld [vmem:[#allocation2 + $0x18] sm:$0xff] }
 0x40f   : > { %v8622_v25 = vpop.f32.mrb[39].mxu0 }
 0x410   : > { %v10647_v2 = vadd.f32 %v8622_v25, %v8621_v43 }
 0x414   : > { %v8624_v51 = vpop.f32.mrb[40].mxu0 }
 0x415   : > { %v8625_v37 = vpop.f32.mrb[41].mxu0 }
 0x416   : > { %v10655_v53 = vadd.f32 %v8625_v37, %v8624_v51  ;;  %v8627_v54 = vpop.f32.mrb[42].mxu0 }
 0x417   : > { %v8628_v59 = vpop.f32.mrb[43].mxu0 }
 0x418   : > { %v10663_v63 = vadd.f32 %v8628_v59, %v8627_v54 }
 0x41c   : > { %v8630_v29 = vpop.f32.mrb[44].mxu0 }
 0x41d   : > { %v8631_v1 = vpop.f32.mrb[45].mxu0 }
 0x41e   : > { %v10668_v28 = vadd.f32 %v8631_v1, %v8630_v29  ;;  %v8633_v3 = vpop.f32.mrb[46].mxu0  ;;  %v1913_v1 = vld [vmem:[#allocation2 + $0x20] sm:$0xff] }
 0x41f   : > { %v8634_v11 = vpop.f32.mrb[47].mxu0 }
 0x420   : > { %v8652_v6 = vpop.f32.mrb[48].mxu1 }
 0x421   : > { %v8653_v7 = vpop.f32.mrb[49].mxu1 }
 0x422   : > { %v8654_v30 = vadd.f32 %v8653_v7, %v8652_v6  ;;  %v8655_v50 = vpop.f32.mrb[50].mxu1 }
 0x423   : > { %v8656_v13 = vpop.f32.mrb[51].mxu1 }
 0x424   : > { %v8657_v5 = vadd.f32 %v8656_v13, %v8655_v50  ;;  %v9210_v18 = vpop.f32.mrb[48].mxu0  ;;  %v2811_v20 = vadd.f32 %v8654_v30, %v2731_v10  ;;  %v1914_v10 = vld [vmem:[#allocation2 + $0x28] sm:$0xff]  ;;  %v9477_v50 = vld [vmem:[%s12316_s3 + $0x2b8] sm:$0xff]   ;;  %v2747_v13 = vadd.f32 %v10619_v27, %v10673_v8 }
 0x425   : > { %v2890_v56 = vpop.f32.mrb[49].mxu0  ;;  %8712 = vmatprep.subr.bf16.mxu1 %v9477_v50 }
 0x426   : > { %v2891_v23 = vadd.f32 %v2890_v56, %v2811_v20  ;;  %v9211_v26 = vpop.f32.mrb[50].mxu0  ;;  %v2814_v52 = vadd.f32 %v8657_v5, %v2734_v16  ;;  %v2750_v56 = vadd.f32 %v10624_v31, %v10673_v8 }
 0x427   : > { %v2893_v19 = vpop.f32.mrb[51].mxu0 }
 0x428   : > { %v2936_v32 = vadd.f32 %v2891_v23, %v1911_v9  ;;  %v2894_v38 = vadd.f32 %v2893_v19, %v2814_v52  ;;  %v8658_v41 = vpop.f32.mrb[52].mxu1 }
 0x429   : > { %v8659_v12 = vpop.f32.mrb[53].mxu1 }
 0x42a   : > { %v2947_v21 = vmax.f32 %v2936_v32, 0.0  ;;  %v2937_v43 = vadd.f32 %v2894_v38, %v1912_v33  ;;  %v8660_v17 = vadd.f32 %v8659_v12, %v8658_v41  ;;  %v8661_v44 = vpop.f32.mrb[54].mxu1 }
 0x42b   : > { %v8662_v25 = vpop.f32.mrb[55].mxu1 }
 0x42c   : > { %v2958_v24 = vmul.f32 %v2947_v21, %v9948_v34  ;;  %v2948_v51 = vmax.f32 %v2937_v43, 0.0  ;;  %v2819_v37 = vadd.f32 %v8660_v17, %v2739_v40  ;;  %v8663_v54 = vadd.f32 %v8662_v25, %v8661_v44  ;;  %v10686_v58 = vpop.f32.mrb[52].mxu0  ;;  %v1915_v40 = vld [vmem:[#allocation2 + $0x30] sm:$0xff] }
 0x42d   : > { %v2906_v61 = vpop.f32.mrb[53].mxu0 }
 0x42e   : > { %2969 = vst.msk [vmem:[#allocation2 + $0x10] sm:$0xff] %vm583_vm2, %v2958_v24  ;;  %v2959_v59 = vmul.f32 %v2948_v51, %v9952_v36  ;;  %v2899_v62 = vadd.f32 %v9210_v18, %v2819_v37  ;;  %v2822_v0 = vadd.f32 %v8663_v54, %v2742_v46  ;;  %v10694_v29 = vpop.f32.mrb[54].mxu0  ;;  %v3075_v46 = vld [vmem:[#allocation2 + $0x7] sm:$0xff] }
 0x42f   : > { %v2909_v3 = vpop.f32.mrb[55].mxu0  ;;  %v10729_v54 = vld [vmem:[%s12316_s3 + $0x340] sm:$0xff]  }
 0x430   : > { %2970 = vst.msk [vmem:[#allocation2 + $0x18] sm:$0xff] %vm583_vm2, %v2959_v59  ;;  %v2938_v11 = vadd.f32 %v2899_v62, %v1913_v1  ;;  %v2902_v6 = vadd.f32 %v9211_v26, %v2822_v0  ;;  %v8664_v7 = vpop.f32.mrb[56].mxu1  ;;  %v9478_v26 = vld [vmem:[%s12316_s3 + $0x278] sm:$0xff]   ;;  %v2755_v59 = vadd.f32 %v10638_v48, %v10673_v8 }
 0x431   : > { %v8665_v30 = vpop.f32.mrb[57].mxu1  ;;  %8713 = vmatpush3.bf16.msra.mxu1 %v9478_v26 }
 0x432   : > { %v2949_v16 = vmax.f32 %v2938_v11, 0.0  ;;  %v2939_v5 = vadd.f32 %v2902_v6, %v1914_v10  ;;  %v8666_v18 = vadd.f32 %v8665_v30, %v8664_v7  ;;  %v8667_v20 = vpop.f32.mrb[58].mxu1  ;;  %9220 = vmatprep.subr.bf16.mxu1 %v10729_v54  ;;  %v2758_v11 = vadd.f32 %v10647_v2, %v10673_v8 }
 0x433   : > { %v8668_v23 = vpop.f32.mrb[59].mxu1 }
 0x434   : > { %v2960_v52 = vmul.f32 %v2949_v16, %v9950_v35  ;;  %v2950_v9 = vmax.f32 %v2939_v5, 0.0  ;;  %v2827_v19 = vadd.f32 %v8666_v18, %v2747_v13  ;;  %v8669_v32 = vadd.f32 %v8668_v23, %v8667_v20  ;;  %v10708_v38 = vpop.f32.mrb[56].mxu0 }
 0x435   : > { %v3163_v27 = vld [vmem:[#allocation2 + $0xf] sm:$0xff]  ;;  %v10710_v41 = vpop.f32.mrb[57].mxu0 }
 0x436   : > { %v3142_v33 = vld [vmem:[#allocation2 + $0x10] sm:$0xff]  ;;  %2971 = vst.msk [vmem:[#allocation2 + $0x20] sm:$0xff] %vm583_vm2, %v2960_v52  ;;  %v2961_v31 = vmul.f32 %v2950_v9, %v9959_v39  ;;  %v2907_v21 = vadd.f32 %v2906_v61, %v2827_v19  ;;  %v2830_v43 = vadd.f32 %v8669_v32, %v2750_v56  ;;  %3185 = vrot.lane.b32.xlu1 %v3163_v27, %s9683_s24  ;;  %v9219_v17 = vpop.f32.mrb[58].mxu0  ;;  %v1916_v61 = vld [vmem:[#allocation2 + $0x38] sm:$0xff]  ;;  %v1917_v56 = vld [vmem:[#allocation2 + $0x40] sm:$0xff] }
 0x437   : > { %v3054_v12 = vld [vmem:[#allocation2 + $0xe] sm:$0xff]  ;;  %3153 = vst.msk [vmem:[#allocation4 + $0x30] sm:$0xff] %vm583_vm2, %v3142_v33  ;;  %3240 = vst.msk [vmem:[#allocation4 + $0x10] sm:$0xff] %vm583_vm2, %v3142_v33  ;;  %v10718_v44 = vld [vmem:[#allocation2 + $0x17] sm:$0xff]  ;;  %v10720_v25 = vpop.f32.mrb[59].mxu0 }
 0x438   : > { %3065 = vst.msk [vmem:[#allocation4 + $0x28] sm:$0xff] %vm583_vm2, %v3054_v12  ;;  %v3143_v47 = vld [vmem:[#allocation2 + $0x18] sm:$0xff]  ;;  %2972 = vst.msk [vmem:[#allocation2 + $0x28] sm:$0xff] %vm583_vm2, %v2961_v31  ;;  %v2940_v49 = vadd.f32 %v2907_v21, %v1915_v40  ;;  %v2910_v24 = vadd.f32 %v2909_v3, %v2830_v43  ;;  %v8670_v51 = vpop.f32.mrb[60].mxu1  ;;  %3187 = vrot.lane.b32.xlu0 %v10718_v44, %s9683_s24  ;;  %v2766_v43 = vadd.f32 %v10663_v63, %v10673_v8 }
 0x439   : > { %3154 = vst.msk [vmem:[#allocation4 + $0x58] sm:$0xff] %vm583_vm2, %v3143_v47  ;;  %v3055_v37 = vld [vmem:[#allocation2 + $0x16] sm:$0xff]  ;;  %3328 = vst.msk [vmem:[#allocation4 + $0x18] sm:$0xff] %vm583_vm2, %v3143_v47  ;;  %v8671_v22 = vpop.f32.mrb[61].mxu1 }
 0x43a   : > { %3241 = vst.msk [vmem:[#allocation4 + $0x38] sm:$0xff] %vm583_vm2, %v3143_v47  ;;  %3066 = vst.msk [vmem:[#allocation4 + $0x50] sm:$0xff] %vm583_vm2, %v3055_v37  ;;  %v2951_v62 = vmax.f32 %v2940_v49, 0.0  ;;  %v2941_v0 = vadd.f32 %v2910_v24, %v1916_v61  ;;  %v8672_v1 = vadd.f32 %v8671_v22, %v8670_v51  ;;  %v8673_v3 = vpop.f32.mrb[62].mxu1  ;;  %3097 = vrot.lane.b32.xlu1 %v3075_v46, %s9683_s24  ;;  %v9481_v22 = vld [vmem:[%s12316_s3 + $0x300] sm:$0xff]  }
 0x43b   : > { %v8674_v6 = vpop.f32.mrb[63].mxu1  ;;  %8750 = vmatprep.subr.bf16.mxu0 %v9481_v22 }
 0x43c   : > { %v2962_v7 = vmul.f32 %v2951_v62, %v9962_v42  ;;  %v2952_v10 = vmax.f32 %v2941_v0, 0.0  ;;  %v2835_v30 = vadd.f32 %v8672_v1, %v2755_v59  ;;  %v8675_v50 = vadd.f32 %v8674_v6, %v8673_v3  ;;  %3099 = vrot.lane.b32.xlu0 %v3163_v27, %s9683_s24  ;;  %v1918_v27 = vld [vmem:[#allocation2 + $0x48] sm:$0xff]  ;;  %v1919_v59 = vld [vmem:[#allocation2 + $0x50] sm:$0xff]  ;;  %v9482_v6 = vld [vmem:[%s12316_s3 + $0x2c0] sm:$0xff]  }
 0x43d   : > { %v3165_v48 = vld [vmem:[#allocation2 + $0x1f] sm:$0xff]  ;;  %8751 = vmatpush3.bf16.msra.mxu0 %v9482_v6 }
 0x43e   : > { %v3144_v13 = vld [vmem:[#allocation2 + $0x20] sm:$0xff]  ;;  %2973 = vst.msk [vmem:[#allocation2 + $0x30] sm:$0xff] %vm583_vm2, %v2962_v7  ;;  %v2963_v16 = vmul.f32 %v2952_v10, %v9977_v57  ;;  %v2915_v5 = vadd.f32 %v10686_v58, %v2835_v30  ;;  %v2838_v18 = vadd.f32 %v8675_v50, %v2758_v11  ;;  %3189 = vrot.lane.b32.xlu1 %v3165_v48, %s9683_s24  ;;  %v1920_v7 = vld [vmem:[#allocation2 + $0x58] sm:$0xff] }
 0x43f   : > { %3155 = vst.msk [vmem:[#allocation4 + $0x80] sm:$0xff] %vm583_vm2, %v3144_v13  ;;  %v3056_v2 = vld [vmem:[#allocation2 + $0x1e] sm:$0xff]  ;;  %3329 = vst.msk [vmem:[#allocation4 + $0x40] sm:$0xff] %vm583_vm2, %v3144_v13  ;;  %v10749_v23 = vld [vmem:[#allocation2 + $0x27] sm:$0xff]  ;;  %v2771_v30 = vadd.f32 %v10668_v28, %v10673_v8 }
 0x440   : > { %3242 = vst.msk [vmem:[#allocation4 + $0x60] sm:$0xff] %vm583_vm2, %v3144_v13  ;;  %v3405_v20 = vld [vmem:[#allocation2 + $0x1a] sm:$0xff]  ;;  %3067 = vst.msk [vmem:[#allocation4 + $0x78] sm:$0xff] %vm583_vm2, %v3056_v2  ;;  %v3145_v26 = vld [vmem:[#allocation2 + $0x28] sm:$0xff]  ;;  %v2942_v58 = vadd.f32 %v2915_v5, %v1917_v56  ;;  %v2918_v52 = vadd.f32 %v10694_v29, %v2838_v18  ;;  %v8676_v9 = vpop.f32.mrb[64].mxu1  ;;  %3191 = vrot.lane.b32.xlu0 %v10749_v23, %s9683_s24  ;;  %v2763_v29 = vadd.f32 %v10655_v53, %v10673_v8 }
 0x441   : > { %3416 = vst.msk [vmem:[#allocation4 + $0x20] sm:$0xff] %vm583_vm2, %v3405_v20  ;;  %2974 = vst.msk [vmem:[#allocation2 + $0x38] sm:$0xff] %vm583_vm2, %v2963_v16  ;;  %v3057_v19 = vld [vmem:[#allocation2 + $0x26] sm:$0xff]  ;;  %v8677_v33 = vpop.f32.mrb[65].mxu1 }
 0x442   : > { %3156 = vst.msk [vmem:[#allocation4 + $0xa8] sm:$0xff] %vm583_vm2, %v3145_v26  ;;  %3330 = vst.msk [vmem:[#allocation4 + $0x68] sm:$0xff] %vm583_vm2, %v3145_v26  ;;  %v3406_v32 = vld [vmem:[#allocation2 + $0x22] sm:$0xff]  ;;  %v2953_v12 = vmax.f32 %v2942_v58, 0.0  ;;  %v2943_v31 = vadd.f32 %v2918_v52, %v1918_v27  ;;  %v8678_v40 = vadd.f32 %v8677_v33, %v8676_v9  ;;  %v8679_v21 = vpop.f32.mrb[66].mxu1  ;;  %3101 = vrot.lane.b32.xlu1 %v10718_v44, %s9683_s24 }
 0x443   : > { %3243 = vst.msk [vmem:[#allocation4 + $0x88] sm:$0xff] %vm583_vm2, %v3145_v26  ;;  %3068 = vst.msk [vmem:[#allocation4 + $0xa0] sm:$0xff] %vm583_vm2, %v3057_v19  ;;  %v8680_v17 = vpop.f32.mrb[67].mxu1  ;;  %v9484_v5 = vld [vmem:[%s12316_s3 + $0x2c8] sm:$0xff]   ;;  %v9485_v19 = vld [vmem:[%s12316_s3 + $0x310] sm:$0xff]  }
 0x444   : > { %3417 = vst.msk [vmem:[#allocation4 + $0x48] sm:$0xff] %vm583_vm2, %v3406_v32  ;;  %v2964_v46 = vmul.f32 %v2953_v12, %v9982_v60  ;;  %v2954_v47 = vmax.f32 %v2943_v31, 0.0  ;;  %v2843_v49 = vadd.f32 %v8678_v40, %v2763_v29  ;;  %v8681_v24 = vadd.f32 %v8680_v17, %v8679_v21  ;;  %3103 = vrot.lane.b32.xlu0 %v3165_v48, %s9683_s24  ;;  %v9486_v32 = vld [vmem:[%s12316_s3 + $0x2d0] sm:$0xff]   ;;  %v1921_v27 = vld [vmem:[#allocation2 + $0x60] sm:$0x1]  ;;  %v9488_v21 = vld [vmem:[%s12316_s3 + $0x318] sm:$0xff]  }
 0x445   : > { %v3167_v51 = vld [vmem:[#allocation2 + $0x2f] sm:$0xff]  ;;  %v9489_v17 = vld [vmem:[%s12316_s3 + $0x2d8] sm:$0xff]  }
 0x446   : > { %v3146_v53 = vld [vmem:[#allocation2 + $0x30] sm:$0xff]  ;;  %2975 = vst.msk [vmem:[#allocation2 + $0x40] sm:$0xff] %vm583_vm2, %v2964_v46  ;;  %v2965_v37 = vmul.f32 %v2954_v47, %v10005_v15  ;;  %v2923_v61 = vadd.f32 %v10710_v41, %v2843_v49  ;;  %v2846_v44 = vadd.f32 %v8681_v24, %v2766_v43  ;;  %3193 = vrot.lane.b32.xlu1 %v3167_v51, %s9683_s24 }
 0x447   : > { %3157 = vst.msk [vmem:[#allocation4 + $0xd0] sm:$0xff] %vm583_vm2, %v3146_v53  ;;  %v3058_v63 = vld [vmem:[#allocation2 + $0x2e] sm:$0xff]  ;;  %3331 = vst.msk [vmem:[#allocation4 + $0x90] sm:$0xff] %vm583_vm2, %v3146_v53 }
 0x448   : > { %3244 = vst.msk [vmem:[#allocation4 + $0xb0] sm:$0xff] %vm583_vm2, %v3146_v53  ;;  %v10780_v62 = vld [vmem:[#allocation2 + $0x37] sm:$0xff]  ;;  %3069 = vst.msk [vmem:[#allocation4 + $0xc8] sm:$0xff] %vm583_vm2, %v3058_v63  ;;  %v2944_v0 = vadd.f32 %v2923_v61, %v1919_v59  ;;  %v2926_v1 = vadd.f32 %v10720_v25, %v2846_v44  ;;  %v8682_v3 = vpop.f32.mrb[68].mxu1  ;;  %v9483_v25 = vld [vmem:[%s12316_s3 + $0x308] sm:$0xff]  }
 0x449   : > { %v3147_v41 = vld [vmem:[#allocation2 + $0x38] sm:$0xff]  ;;  %2976 = vst.msk [vmem:[#allocation2 + $0x48] sm:$0xff] %vm583_vm2, %v2965_v37  ;;  %3195 = vrot.lane.b32.xlu0 %v10780_v62, %s9683_s24  ;;  %v8683_v10 = vpop.f32.mrb[69].mxu1  ;;  %v3407_v18 = vld [vmem:[#allocation2 + $0x2a] sm:$0xff]  ;;  %8752 = vmatprep.subr.bf16.mxu0 %v9483_v25  ;;  %v9490_v61 = vld [vmem:[%s12316_s3 + $0x320] sm:$0xff]  }
 0x44a   : > { %3158 = vst.msk [vmem:[#allocation4 + $0xf8] sm:$0xff] %vm583_vm2, %v3147_v41  ;;  %v3059_v11 = vld [vmem:[#allocation2 + $0x36] sm:$0xff]  ;;  %3332 = vst.msk [vmem:[#allocation4 + $0xb8] sm:$0xff] %vm583_vm2, %v3147_v41  ;;  %v2955_v50 = vmax.f32 %v2944_v0, 0.0  ;;  %v2945_v48 = vadd.f32 %v2926_v1, %v1920_v7  ;;  %v8684_v13 = vadd.f32 %v8683_v10, %v8682_v3  ;;  %3105 = vrot.lane.b32.xlu1 %v10749_v23, %s9683_s24  ;;  %v8685_v16 = vpop.f32.mrb[70].mxu1  ;;  %8753 = vmatpush3.bf16.msra.mxu0 %v9484_v5  ;;  %v9491_v44 = vld [vmem:[%s12316_s3 + $0x2e0] sm:$0xff]  }
 0x44b   : > { %3245 = vst.msk [vmem:[#allocation4 + $0xd8] sm:$0xff] %vm583_vm2, %v3147_v41  ;;  %3070 = vst.msk [vmem:[#allocation4 + $0xf0] sm:$0xff] %vm583_vm2, %v3059_v11  ;;  %v3408_v2 = vld [vmem:[#allocation2 + $0x32] sm:$0xff]  ;;  %v8686_v20 = vpop.f32.mrb[71].mxu1  ;;  %8754 = vmatprep.subr.bf16.mxu0 %v9485_v19  ;;  %v9492_v63 = vld [vmem:[%s12316_s3 + $0x328] sm:$0xff]  }
 0x44c   : > { %3418 = vst.msk [vmem:[#allocation4 + $0x70] sm:$0xff] %vm583_vm2, %v3407_v18  ;;  %3419 = vst.msk [vmem:[#allocation4 + $0x98] sm:$0xff] %vm583_vm2, %v3408_v2  ;;  %v2966_v28 = vmul.f32 %v2955_v50, %v10003_v14  ;;  %v2956_v8 = vmax.f32 %v2945_v48, 0.0  ;;  %v2851_v56 = vadd.f32 %v8684_v13, %v2771_v30  ;;  %v9495_v1 = vld [vmem:[%s12316_s3 + $0x330] sm:$0xff]   ;;  %v3339_v25 = vld [vmem:[#allocation2 + $0x19] sm:$0xff] }
 0x44d   : > { %3107 = vrot.lane.b32.xlu0 %v3167_v51, %s9683_s24  ;;  %v3169_v23 = vld [vmem:[#allocation2 + $0x3f] sm:$0xff]  ;;  %v9496_v7 = vld [vmem:[%s12316_s3 + $0x2f0] sm:$0xff]  }
 0x44e   : > { %v3148_v26 = vld [vmem:[#allocation2 + $0x40] sm:$0xff]  ;;  %2977 = vst.msk [vmem:[#allocation2 + $0x50] sm:$0xff] %vm583_vm2, %v2966_v28  ;;  %v2967_v58 = vmul.f32 %v2956_v8, %v10054_v55  ;;  %v2931_v52 = vadd.f32 %v10708_v38, %v2851_v56  ;;  %3197 = vrot.lane.b32.xlu1 %v3169_v23, %s9683_s24  ;;  %8755 = vmatpush3.bf16.msra.mxu0 %v9486_v32  ;;  %v9497_v30 = vld [vmem:[%s12316_s3 + $0x338] sm:$0xff]   ;;  %v3341_v16 = vld [vmem:[#allocation2 + $0x29] sm:$0xff] }
 0x44f   : > { %3159 = vst.msk [vmem:[#allocation4 + $0x120] sm:$0xff] %vm583_vm2, %v3148_v26  ;;  %v3060_v9 = vld [vmem:[#allocation2 + $0x3e] sm:$0xff]  ;;  %3333 = vst.msk [vmem:[#allocation4 + $0xe0] sm:$0xff] %vm583_vm2, %v3148_v26  ;;  %8756 = vmatprep.subr.bf16.mxu0 %v9488_v21  ;;  %v3251_v13 = vld [vmem:[#allocation2 + $0x11] sm:$0xff] }
 0x450   : > { %3246 = vst.msk [vmem:[#allocation4 + $0x100] sm:$0xff] %vm583_vm2, %v3148_v26  ;;  %v3170_v38 = vld [vmem:[#allocation2 + $0x47] sm:$0xff]  ;;  %3071 = vst.msk [vmem:[#allocation4 + $0x118] sm:$0xff] %vm583_vm2, %v3060_v9  ;;  %v2946_v29 = vadd.f32 %v2931_v52, %v1921_v27  ;;  %v3409_v31 = vld [vmem:[#allocation2 + $0x3a] sm:$0xff] }
 0x451   : > { %v3149_v33 = vld [vmem:[#allocation2 + $0x48] sm:$0xff]  ;;  %2978 = vst.msk [vmem:[#allocation2 + $0x58] sm:$0xff] %vm583_vm2, %v2967_v58  ;;  %3199 = vrot.lane.b32.xlu0 %v3170_v38, %s9683_s24  ;;  %3420 = vst.msk [vmem:[#allocation4 + $0xc0] sm:$0xff] %vm583_vm2, %v3409_v31  ;;  %v9498_v48 = vld [vmem:[%s12316_s3 + $0x2f8] sm:$0xff]  }
 0x452   : > { %3160 = vst.msk [vmem:[#allocation4 + $0x148] sm:$0xff] %vm583_vm2, %v3149_v33  ;;  %v3061_v12 = vld [vmem:[#allocation2 + $0x46] sm:$0xff]  ;;  %3334 = vst.msk [vmem:[#allocation4 + $0x108] sm:$0xff] %vm583_vm2, %v3149_v33  ;;  %v2957_v43 = vmax.f32 %v2946_v29, 0.0  ;;  %3109 = vrot.lane.b32.xlu1 %v10780_v62, %s9683_s24  ;;  %8757 = vmatpush3.bf16.msra.mxu0 %v9489_v17  ;;  %v3342_v5 = vld [vmem:[#allocation2 + $0x31] sm:$0xff] }
 0x453   : > { %v3410_v40 = vld [vmem:[#allocation2 + $0x42] sm:$0xff]  ;;  %3247 = vst.msk [vmem:[#allocation4 + $0x128] sm:$0xff] %vm583_vm2, %v3149_v33  ;;  %3072 = vst.msk [vmem:[#allocation4 + $0x140] sm:$0xff] %vm583_vm2, %v3061_v12  ;;  %8758 = vmatprep.subr.bf16.mxu0 %v9490_v61  ;;  %v3343_v18 = vld [vmem:[#allocation2 + $0x39] sm:$0xff] }
 0x454   : > { %3421 = vst.msk [vmem:[#allocation4 + $0xe8] sm:$0xff] %vm583_vm2, %v3410_v40  ;;  %v2968_v46 = vmul.f32 %v2957_v43, %v10035_v45  ;;  %v9493_v62 = vld [vmem:[%s12316_s3 + $0x2e8] sm:$0xff]   ;;  %v10893_v20 = vld [vmem:[#allocation4 + $0x188] sm:$0xff]  ;;  %v10905_v58 = vld [vmem:[#allocation4 + $0x1b0] sm:$0x1] }
 0x455   : > { %3111 = vrot.lane.b32.xlu0 %v3169_v23, %s9683_s24  ;;  %v3171_v47 = vld [vmem:[#allocation2 + $0x4f] sm:$0xff]  ;;  %v3085_v6 = vld [vmem:[#allocation2 + $0x57] sm:$0x1]  ;;  %v3340_v50 = vld [vmem:[#allocation2 + $0x21] sm:$0xff] }
 0x456   : > { %2979 = vst.msk [vmem:[#allocation2 + $0x60] sm:$0x1] %vm862_vm3, %v2968_v46  ;;  %3201 = vrot.lane.b32.xlu1 %v3171_v47, %s9683_s24  ;;  %v3150_v49 = vld [vmem:[#allocation2 + $0x50] sm:$0xff]  ;;  %8759 = vmatpush3.bf16.msra.mxu0 %v9491_v44  ;;  %v3344_v2 = vld [vmem:[#allocation2 + $0x41] sm:$0xff]  ;;  %v3349_v9 = vld [vmem:[#allocation2 + $0x69] sm:$0x1] }
 0x457   : > { %v3062_v24 = vld [vmem:[#allocation2 + $0x4e] sm:$0xff]  ;;  %v3063_v51 = vld [vmem:[#allocation2 + $0x56] sm:$0x1]  ;;  %3161 = vst.msk [vmem:[#allocation4 + $0x170] sm:$0xff] %vm583_vm2, %v3150_v49  ;;  %3335 = vst.msk [vmem:[#allocation4 + $0x130] sm:$0xff] %vm583_vm2, %v3150_v49  ;;  %8760 = vmatprep.subr.bf16.mxu0 %v9492_v63 }
 0x458   : > { %v3172_v53 = vld [vmem:[#allocation2 + $0x57] sm:$0xff]  ;;  %3073 = vst.msk [vmem:[#allocation4 + $0x168] sm:$0xff] %vm583_vm2, %v3062_v24  ;;  %3248 = vst.msk [vmem:[#allocation4 + $0x150] sm:$0xff] %vm583_vm2, %v3150_v49  ;;  %v3411_v22 = vld [vmem:[#allocation2 + $0x4a] sm:$0xff] }
 0x459   : > { %3074 = vst.msk [vmem:[#allocation4 + $0x190] sm:$0x1] %vm862_vm3, %v3063_v51  ;;  %3203 = vrot.lane.b32.xlu0 %v3172_v53, %s9683_s24  ;;  %v3151_v37 = vld [vmem:[#allocation2 + $0x58] sm:$0x1]  ;;  %v3173_v0 = vld [vmem:[#allocation2 + $0x5f] sm:$0x1] }
 0x45a   : > { %3162 = vst.msk [vmem:[#allocation4 + $0x198] sm:$0x1] %vm862_vm3, %v3151_v37  ;;  %3113 = vrot.lane.b32.xlu1 %v3170_v38, %s9683_s24  ;;  %v3412_v59 = vld [vmem:[#allocation2 + $0x52] sm:$0xff]  ;;  %8761 = vmatpush3.bf16.msra.mxu0 %v9493_v62  ;;  %v4472_v28 = vld [vmem:[#allocation3 + $0x62] sm:$0xff]  ;;  %v3345_v8 = vld [vmem:[#allocation2 + $0x49] sm:$0xff] }
 0x45b   : > { %3422 = vst.msk [vmem:[#allocation4 + $0x110] sm:$0xff] %vm583_vm2, %v3411_v22  ;;  %3423 = vst.msk [vmem:[#allocation4 + $0x138] sm:$0xff] %vm583_vm2, %v3412_v59  ;;  %v3325_v41 = vld [vmem:[#allocation2 + $0x58] sm:$0xff]  ;;  %8762 = vmatprep.subr.bf16.mxu0 %v9495_v1  ;;  %v3348_v26 = vld [vmem:[#allocation2 + $0x61] sm:$0xff] }
 0x45c   : > { %3336 = vst.msk [vmem:[#allocation4 + $0x158] sm:$0xff] %vm583_vm2, %v3325_v41  ;;  %3249 = vst.msk [vmem:[#allocation4 + $0x178] sm:$0xff] %vm583_vm2, %v3325_v41  ;;  %v3346_v56 = vld [vmem:[#allocation2 + $0x51] sm:$0xff]  ;;  %v4473_v52 = vld [vmem:[#allocation3 + $0x6a] sm:$0x1] }
 0x45d   : > { %3115 = vrot.lane.b32.xlu0 %v3171_v47, %s9683_s24  ;;  %v3413_v3 = vld [vmem:[#allocation2 + $0x5a] sm:$0xff]  ;;  %4483 = vst.msk [vmem:[#allocation4 + $0x188] sm:$0xff] %vm583_vm2, %v4472_v28  ;;  %v9480_v24 = vld [vmem:[%s12316_s3 + $0x348] sm:$0xff]   ;;  %v9487_v63 = vld [vmem:[%s12316_s3 + $0x350] sm:$0xff]  }
 0x45e   : > { %3205 = vrot.lane.b32.xlu1 %v3173_v0, %s9683_s24  ;;  %v3326_v11 = vld [vmem:[#allocation2 + $0x60] sm:$0xff]  ;;  %3424 = vst.msk [vmem:[#allocation4 + $0x160] sm:$0xff] %vm583_vm2, %v3413_v3  ;;  %8763 = vmatpush3.bf16.msra.mxu0 %v9496_v7  ;;  %v9494_v0 = vld [vmem:[%s12316_s3 + $0x358] sm:$0xff]  }
 0x45f   : > { %3337 = vst.msk [vmem:[#allocation4 + $0x180] sm:$0xff] %vm583_vm2, %v3326_v11  ;;  %v3239_v10 = vld [vmem:[#allocation2 + $0x60] sm:$0x1]  ;;  %8764 = vmatprep.subr.bf16.mxu0 %v9497_v30  ;;  %v3261_v19 = vld [vmem:[#allocation2 + $0x61] sm:$0x1] }
 0x460   : > { %3250 = vst.msk [vmem:[#allocation4 + $0x1a0] sm:$0x1] %vm862_vm3, %v3239_v10  ;;  %v3347_v23 = vld [vmem:[#allocation2 + $0x59] sm:$0xff]  ;;  %4484 = vst.msk [vmem:[#allocation4 + $0x1b0] sm:$0x1] %vm862_vm3, %v4473_v52 }
 0x461   : > { %3117 = vrot.lane.b32.xlu0 %v3085_v6, %s9683_s24 }
 0x462   : > { %3361 = vrot.lane.b32.xlu1 %v3339_v25, %s9683_s24  ;;  %8765 = vmatpush3.bf16.msra.mxu0 %v9498_v48 }
 0x465   : > { %3363 = vrot.lane.b32.xlu0 %v3340_v50, %s9683_s24 }
 0x466   : > { %3273 = vrot.lane.b32.xlu1 %v3251_v13, %s9683_s24 }
 0x469   : > { %3275 = vrot.lane.b32.xlu0 %v3339_v25, %s9683_s24 }
 0x46a   : > { %3365 = vrot.lane.b32.xlu1 %v3341_v16, %s9683_s24 }
 0x46d   : > { %3367 = vrot.lane.b32.xlu0 %v3342_v5, %s9683_s24 }
 0x46e   : > { %3277 = vrot.lane.b32.xlu1 %v3340_v50, %s9683_s24 }
 0x471   : > { %3279 = vrot.lane.b32.xlu0 %v3341_v16, %s9683_s24 }
 0x472   : > { %3369 = vrot.lane.b32.xlu1 %v3343_v18, %s9683_s24 }
 0x475   : > { %3371 = vrot.lane.b32.xlu0 %v3344_v2, %s9683_s24 }
 0x476   : > { %3281 = vrot.lane.b32.xlu1 %v3342_v5, %s9683_s24 }
 0x479   : > { %3283 = vrot.lane.b32.xlu0 %v3343_v18, %s9683_s24 }
 0x47a   : > { %3373 = vrot.lane.b32.xlu1 %v3345_v8, %s9683_s24 }
 0x47d   : > { %3375 = vrot.lane.b32.xlu0 %v3346_v56, %s9683_s24 }
 0x47e   : > { %3285 = vrot.lane.b32.xlu1 %v3344_v2, %s9683_s24 }
 0x481   : > { %3287 = vrot.lane.b32.xlu0 %v3345_v8, %s9683_s24 }
 0x482   : > { %3377 = vrot.lane.b32.xlu1 %v3347_v23, %s9683_s24 }
 0x485   : > { %3379 = vrot.lane.b32.xlu0 %v3348_v26, %s9683_s24 }
 0x486   : > { %3289 = vrot.lane.b32.xlu1 %v3346_v56, %s9683_s24 }
 0x489   : > { %3291 = vrot.lane.b32.xlu0 %v3347_v23, %s9683_s24 }
 0x48a   : > { %3381 = vrot.lane.b32.xlu1 %v3349_v9, %s9683_s24 }
 0x48d   : > { %3293 = vrot.lane.b32.xlu0 %v3261_v19, %s9683_s24 }
 0x4a8   : > { %v3186_v32 = vpop.permute.xlu1 %3185 }
 0x4a9   : > { %3218 = vst.msk [vmem:[#allocation4 + $0x8] sm:$0xff] %vm1013_vm4, %v3186_v32 }
 0x4aa   : > { %v3188_v27 = vpop.permute.xlu0 %3187 }
 0x4ab   : > { %3219 = vst.msk [vmem:[#allocation4 + $0x30] sm:$0xff] %vm1013_vm4, %v3188_v27 }
 0x4ac   : > { %v3098_v38 = vpop.permute.xlu1 %3097 }
 0x4ad   : > { %3130 = vst.msk [vmem:[#allocation4] sm:$0xff] %vm1013_vm4, %v3098_v38 }
 0x4ae   : > { %v3100_v33 = vpop.permute.xlu0 %3099 }
 0x4af   : > { %3131 = vst.msk [vmem:[#allocation4 + $0x28] sm:$0xff] %vm1013_vm4, %v3100_v33 }
 0x4b0   : > { %v3190_v29 = vpop.permute.xlu1 %3189  ;;  %v3428_v31 = vld [vmem:[#allocation4 + $0x8] sm:$0xff] }
 0x4b1   : > { %3220 = vst.msk [vmem:[#allocation4 + $0x58] sm:$0xff] %vm1013_vm4, %v3190_v29 }
 0x4b2   : > { %v3192_v12 = vpop.permute.xlu0 %3191  ;;  %v3433_v40 = vld [vmem:[#allocation4 + $0x30] sm:$0xff] }
 0x4b3   : > { %3221 = vst.msk [vmem:[#allocation4 + $0x80] sm:$0xff] %vm1013_vm4, %v3192_v12  ;;  %v3483_v21 = vpack.c.bf16 %v3433_v40, %v3428_v31 }
 0x4b4   : > { %v3102_v43 = vpop.permute.xlu1 %3101  ;;  %v3427_v17 = vld [vmem:[#allocation4] sm:$0xff] }
 0x4b5   : > { %3132 = vst.msk [vmem:[#allocation4 + $0x50] sm:$0xff] %vm1013_vm4, %v3102_v43  ;;  %3786 = vmatprep.mubr.bf16.mxu1 %v3483_v21 }
 0x4b6   : > { %v3104_v46 = vpop.permute.xlu0 %3103  ;;  %v3432_v47 = vld [vmem:[#allocation4 + $0x28] sm:$0xff] }
 0x4b7   : > { %3133 = vst.msk [vmem:[#allocation4 + $0x78] sm:$0xff] %vm1013_vm4, %v3104_v46  ;;  %v3482_v49 = vpack.c.bf16 %v3432_v47, %v3427_v17 }
 0x4b8   : > { %v3194_v51 = vpop.permute.xlu1 %3193  ;;  %v3438_v37 = vld [vmem:[#allocation4 + $0x58] sm:$0xff] }
 0x4b9   : > { %3222 = vst.msk [vmem:[#allocation4 + $0xa8] sm:$0xff] %vm1013_vm4, %v3194_v51  ;;  %3787 = vmatmul.mubr.bf16.vlgmr.msra.gmra.mrb[72].mxu1 %v3482_v49  ;;  %v3436_v49 = vld [vmem:[#allocation4 + $0x48] sm:$0xff] }
 0x4ba   : > { %9221 = vmatpush3.bf16.msra.mxu1 %v10729_v54  ;;  %v3443_v61 = vld [vmem:[#allocation4 + $0x80] sm:$0xff] }
 0x4bb   : > { %v3196_v53 = vpop.permute.xlu0 %3195  ;;  %v3488_v44 = vpack.c.bf16 %v3443_v61, %v3438_v37  ;;  %9222 = vmatprep.subr.bf16.mxu1 %v9480_v24 }
 0x4bc   : > { %3223 = vst.msk [vmem:[#allocation4 + $0xd0] sm:$0xff] %vm1013_vm4, %v3196_v53  ;;  %v3106_v22 = vpop.permute.xlu1 %3105  ;;  %v3437_v62 = vld [vmem:[#allocation4 + $0x50] sm:$0xff] }
 0x4bd   : > { %3134 = vst.msk [vmem:[#allocation4 + $0xa0] sm:$0xff] %vm1013_vm4, %v3106_v22  ;;  %3794 = vmatprep.mubr.bf16.mxu1 %v3488_v44  ;;  %v3431_v44 = vld [vmem:[#allocation4 + $0x20] sm:$0xff] }
 0x4be   : > { %v3442_v41 = vld [vmem:[#allocation4 + $0x78] sm:$0xff]  ;;  %9223 = vmatpush3.bf16.msra.mxu1 %v9480_v24  ;;  %v3486_v22 = vpack.c.bf16 %v3436_v49, %v3431_v44 }
 0x4bf   : > { %v3108_v59 = vpop.permute.xlu0 %3107  ;;  %v3487_v54 = vpack.c.bf16 %v3442_v41, %v3437_v62  ;;  %9224 = vmatprep.subr.bf16.mxu1 %v9487_v63 }
 0x4c0   : > { %3135 = vst.msk [vmem:[#allocation4 + $0xc8] sm:$0xff] %vm1013_vm4, %v3108_v59  ;;  %v3198_v1 = vpop.permute.xlu1 %3197  ;;  %v3448_v11 = vld [vmem:[#allocation4 + $0xa8] sm:$0xff] }
 0x4c1   : > { %3224 = vst.msk [vmem:[#allocation4 + $0xf8] sm:$0xff] %vm1013_vm4, %v3198_v1  ;;  %3795 = vmatmul.mubr.bf16.gmra.mrb[76].mxu1 %v3487_v54  ;;  %v3446_v1 = vld [vmem:[#allocation4 + $0x98] sm:$0xff] }
 0x4c2   : > { %9225 = vmatpush3.bf16.msra.mxu1 %v9487_v63 }
 0x4c3   : > { %v3200_v3 = vpop.permute.xlu0 %3199  ;;  %v3453_v6 = vld [vmem:[#allocation4 + $0xd0] sm:$0xff]  ;;  %9226 = vmatprep.subr.bf16.mxu1 %v9494_v0 }
 0x4c4   : > { %3225 = vst.msk [vmem:[#allocation4 + $0x120] sm:$0xff] %vm1013_vm4, %v3200_v3  ;;  %v3493_v7 = vpack.c.bf16 %v3453_v6, %v3448_v11  ;;  %v3110_v10 = vpop.permute.xlu1 %3109  ;;  %v3447_v30 = vld [vmem:[#allocation4 + $0xa0] sm:$0xff]  ;;  %v3456_v3 = vld [vmem:[#allocation4 + $0xe8] sm:$0xff] }
 0x4c5   : > { %3136 = vst.msk [vmem:[#allocation4 + $0xf0] sm:$0xff] %vm1013_vm4, %v3110_v10  ;;  %v3441_v10 = vld [vmem:[#allocation4 + $0x70] sm:$0xff] }
 0x4c6   : > { %3802 = vmatprep.mubr.bf16.mxu1 %v3493_v7  ;;  %9227 = vmatpush3.bf16.msra.mxu1 %v9494_v0 }
 0x4c7   : > { %v3112_v25 = vpop.permute.xlu0 %3111  ;;  %v3452_v50 = vld [vmem:[#allocation4 + $0xc8] sm:$0xff] }
 0x4c8   : > { %3137 = vst.msk [vmem:[#allocation4 + $0x118] sm:$0xff] %vm1013_vm4, %v3112_v25  ;;  %v3492_v48 = vpack.c.bf16 %v3452_v50, %v3447_v30  ;;  %v3202_v13 = vpop.permute.xlu1 %3201  ;;  %v3458_v5 = vld [vmem:[#allocation4 + $0xf8] sm:$0xff]  ;;  %v3491_v30 = vpack.c.bf16 %v3446_v1, %v3441_v10  ;;  %v3451_v50 = vld [vmem:[#allocation4 + $0xc0] sm:$0xff] }
 0x4c9   : > { %3226 = vst.msk [vmem:[#allocation4 + $0x148] sm:$0xff] %vm1013_vm4, %v3202_v13  ;;  %v3496_v13 = vpack.c.bf16 %v3456_v3, %v3451_v50 }
 0x4ca   : > { %3803 = vmatmul.mubr.bf16.gmra.mrb[80].mxu1 %v3492_v48 }
 0x4cb   : > { %v3204_v16 = vpop.permute.xlu0 %3203  ;;  %v3463_v18 = vld [vmem:[#allocation4 + $0x120] sm:$0xff] }
 0x4cc   : > { %3227 = vst.msk [vmem:[#allocation4 + $0x170] sm:$0xff] %vm1013_vm4, %v3204_v16  ;;  %v3498_v2 = vpack.c.bf16 %v3463_v18, %v3458_v5  ;;  %v3114_v28 = vpop.permute.xlu1 %3113  ;;  %v3457_v56 = vld [vmem:[#allocation4 + $0xf0] sm:$0xff] }
 0x4cd   : > { %3138 = vst.msk [vmem:[#allocation4 + $0x140] sm:$0xff] %vm1013_vm4, %v3114_v28 }
 0x4ce   : > { %3810 = vmatprep.mubr.bf16.mxu1 %v3498_v2 }
 0x4cf   : > { %v3116_v8 = vpop.permute.xlu0 %3115  ;;  %v3462_v23 = vld [vmem:[#allocation4 + $0x118] sm:$0xff] }
 0x4d0   : > { %3139 = vst.msk [vmem:[#allocation4 + $0x168] sm:$0xff] %vm1013_vm4, %v3116_v8  ;;  %v3497_v26 = vpack.c.bf16 %v3462_v23, %v3457_v56  ;;  %v3206_v52 = vpop.permute.xlu1 %3205  ;;  %v3468_v19 = vld [vmem:[#allocation4 + $0x148] sm:$0xff]  ;;  %v3466_v8 = vld [vmem:[#allocation4 + $0x138] sm:$0xff]  ;;  %v3471_v56 = vld [vmem:[#allocation4 + $0x160] sm:$0xff] }
 0x4d1   : > { %3228 = vst.msk [vmem:[#allocation4 + $0x198] sm:$0x1] %vm1024_vm5, %v3206_v52 }
 0x4d2   : > { %3811 = vmatmul.mubr.bf16.gmra.mrb[84].mxu1 %v3497_v26 }
 0x4d3   : > { %v3118_v9 = vpop.permute.xlu0 %3117  ;;  %v3473_v32 = vld [vmem:[#allocation4 + $0x170] sm:$0xff] }
 0x4d4   : > { %3140 = vst.msk [vmem:[#allocation4 + $0x190] sm:$0x1] %vm1024_vm5, %v3118_v9  ;;  %v3503_v27 = vpack.c.bf16 %v3473_v32, %v3468_v19  ;;  %v3362_v38 = vpop.permute.xlu1 %3361  ;;  %v3467_v29 = vld [vmem:[#allocation4 + $0x140] sm:$0xff]  ;;  %v3461_v9 = vld [vmem:[#allocation4 + $0x110] sm:$0xff] }
 0x4d5   : > { %3394 = vst.msk [vmem:[#allocation4 + $0x18] sm:$0xff] %vm1013_vm4, %v3362_v38  ;;  %v3501_v32 = vpack.c.bf16 %v3466_v8, %v3461_v9  ;;  %v3506_v38 = vpack.c.bf16 %v10893_v20, %v3471_v56  ;;  %v3511_v20 = vpack.c.bf16 %v10905_v58, %v10905_v58 }
 0x4d6   : > { %3818 = vmatprep.mubr.bf16.mxu1 %v3503_v27 }
 0x4d7   : > { %v3364_v33 = vpop.permute.xlu0 %3363  ;;  %v3472_v12 = vld [vmem:[#allocation4 + $0x168] sm:$0xff] }
 0x4d8   : > { %3395 = vst.msk [vmem:[#allocation4 + $0x40] sm:$0xff] %vm1013_vm4, %v3364_v33  ;;  %v3502_v31 = vpack.c.bf16 %v3472_v12, %v3467_v29  ;;  %v3274_v40 = vpop.permute.xlu1 %3273  ;;  %v3478_v21 = vld [vmem:[#allocation4 + $0x198] sm:$0x1] }
 0x4d9   : > { %3306 = vst.msk [vmem:[#allocation4 + $0x10] sm:$0xff] %vm1013_vm4, %v3274_v40  ;;  %v3508_v43 = vpack.c.bf16 %v3478_v21, %v3478_v21 }
 0x4da   : > { %3819 = vmatmul.mubr.bf16.gmra.mrb[88].mxu1 %v3502_v31 }
 0x4db   : > { %v3276_v17 = vpop.permute.xlu0 %3275  ;;  %3826 = vmatprep.mubr.bf16.mxu1 %v3508_v43  ;;  %v3477_v47 = vld [vmem:[#allocation4 + $0x190] sm:$0x1] }
 0x4dc   : > { %3307 = vst.msk [vmem:[#allocation4 + $0x38] sm:$0xff] %vm1013_vm4, %v3276_v17  ;;  %v3366_v46 = vpop.permute.xlu1 %3365  ;;  %v3430_v51 = vld [vmem:[#allocation4 + $0x18] sm:$0xff]  ;;  %v3507_v37 = vpack.c.bf16 %v3477_v47, %v3477_v47 }
 0x4dd   : > { %3396 = vst.msk [vmem:[#allocation4 + $0x68] sm:$0xff] %vm1013_vm4, %v3366_v46 }
 0x4df   : > { %v3368_v24 = vpop.permute.xlu0 %3367  ;;  %v3435_v53 = vld [vmem:[#allocation4 + $0x40] sm:$0xff] }
 0x4e0   : > { %3397 = vst.msk [vmem:[#allocation4 + $0x90] sm:$0xff] %vm1013_vm4, %v3368_v24  ;;  %v3485_v61 = vpack.c.bf16 %v3435_v53, %v3430_v51  ;;  %v3278_v63 = vpop.permute.xlu1 %3277  ;;  %v3429_v62 = vld [vmem:[#allocation4 + $0x10] sm:$0xff] }
 0x4e1   : > { %3308 = vst.msk [vmem:[#allocation4 + $0x60] sm:$0xff] %vm1013_vm4, %v3278_v63 }
 0x4e2   : > { %3827 = vmatmul.mubr.bf16.gmra.mrb[92].mxu1 %v3507_v37  ;;  %3866 = vmatprep.mubr.bf16.mxu0 %v3485_v61 }
 0x4e3   : > { %v3280_v59 = vpop.permute.xlu0 %3279  ;;  %9228 = vmatprep.mubr.msk.bf16.mxu1 %vm583_vm2, %v3486_v22  ;;  %v3434_v41 = vld [vmem:[#allocation4 + $0x38] sm:$0xff]  ;;  %v4385_v22 = vld [vmem:[#allocation3 + $0x68] sm:$0x1] }
 0x4e4   : > { %3309 = vst.msk [vmem:[#allocation4 + $0x88] sm:$0xff] %vm1013_vm4, %v3280_v59  ;;  %v3484_v54 = vpack.c.bf16 %v3434_v41, %v3429_v62  ;;  %v3370_v0 = vpop.permute.xlu1 %3369  ;;  %v3440_v6 = vld [vmem:[#allocation4 + $0x68] sm:$0xff] }
 0x4e5   : > { %3398 = vst.msk [vmem:[#allocation4 + $0xb8] sm:$0xff] %vm1013_vm4, %v3370_v0 }
 0x4e6   : > { %3867 = vmatmul.mubr.bf16.vlgmr.msra.gmra.mrb[60].mxu0 %v3484_v54 }
 0x4e7   : > { %v3372_v11 = vpop.permute.xlu0 %3371  ;;  %v3445_v7 = vld [vmem:[#allocation4 + $0x90] sm:$0xff] }
 0x4e8   : > { %3399 = vst.msk [vmem:[#allocation4 + $0xe0] sm:$0xff] %vm1013_vm4, %v3372_v11  ;;  %v3490_v25 = vpack.c.bf16 %v3445_v7, %v3440_v6  ;;  %v3282_v48 = vpop.permute.xlu1 %3281  ;;  %v3439_v5 = vld [vmem:[#allocation4 + $0x60] sm:$0xff] }
 0x4e9   : > { %3310 = vst.msk [vmem:[#allocation4 + $0xb0] sm:$0xff] %vm1013_vm4, %v3282_v48 }
 0x4ea   : > { %3874 = vmatprep.mubr.bf16.mxu0 %v3490_v25  ;;  %9229 = vmatmul.mubr.msk.bf16.vlgmr.msra.gmra.mrb[96].mxu1 %vm583_vm2, %v3491_v30 }
 0x4eb   : > { %v3284_v16 = vpop.permute.xlu0 %3283  ;;  %9232 = vmatprep.mubr.msk.bf16.mxu1 %vm583_vm2, %v3496_v13  ;;  %v3444_v18 = vld [vmem:[#allocation4 + $0x88] sm:$0xff] }
 0x4ec   : > { %3311 = vst.msk [vmem:[#allocation4 + $0xd8] sm:$0xff] %vm1013_vm4, %v3284_v16  ;;  %v3489_v2 = vpack.c.bf16 %v3444_v18, %v3439_v5  ;;  %v3374_v28 = vpop.permute.xlu1 %3373  ;;  %v3450_v26 = vld [vmem:[#allocation4 + $0xb8] sm:$0xff] }
 0x4ed   : > { %3400 = vst.msk [vmem:[#allocation4 + $0x108] sm:$0xff] %vm1013_vm4, %v3374_v28  ;;  %v9499_v28 = vld [vmem:[%s12316_s3 + $0x3a0] sm:$0xff]  }
 0x4ee   : > { %3875 = vmatmul.mubr.bf16.gmra.mrb[64].mxu0 %v3489_v2  ;;  %8812 = vmatprep.subr.bf16.mxu0 %v9499_v28 }
 0x4ef   : > { %v3376_v23 = vpop.permute.xlu0 %3375  ;;  %v3455_v52 = vld [vmem:[#allocation4 + $0xe0] sm:$0xff] }
 0x4f0   : > { %3401 = vst.msk [vmem:[#allocation4 + $0x130] sm:$0xff] %vm1013_vm4, %v3376_v23  ;;  %v3495_v19 = vpack.c.bf16 %v3455_v52, %v3450_v26  ;;  %v3286_v27 = vpop.permute.xlu1 %3285  ;;  %v3449_v29 = vld [vmem:[#allocation4 + $0xb0] sm:$0xff]  ;;  %v9501_v52 = vld [vmem:[%s12316_s3 + $0x3a8] sm:$0xff]  }
 0x4f1   : > { %3312 = vst.msk [vmem:[#allocation4 + $0x100] sm:$0xff] %vm1013_vm4, %v3286_v27  ;;  %v9500_v26 = vld [vmem:[%s12316_s3 + $0x360] sm:$0xff]   ;;  %v9503_v27 = vld [vmem:[%s12316_s3 + $0x3b0] sm:$0xff]  }
 0x4f2   : > { %3882 = vmatprep.mubr.bf16.mxu0 %v3495_v19  ;;  %9233 = vmatmul.mubr.msk.bf16.gmra.mrb[100].mxu1 %vm583_vm2, %v3501_v32  ;;  %v9502_v32 = vld [vmem:[%s12316_s3 + $0x368] sm:$0xff]  }
 0x4f3   : > { %v3288_v33 = vpop.permute.xlu0 %3287  ;;  %9236 = vmatprep.mubr.msk.bf16.mxu1 %vm583_vm2, %v3506_v38  ;;  %v3454_v12 = vld [vmem:[#allocation4 + $0xd8] sm:$0xff]  ;;  %8813 = vmatpush3.bf16.msra.mxu0 %v9500_v26 }
 0x4f4   : > { %3313 = vst.msk [vmem:[#allocation4 + $0x128] sm:$0xff] %vm1013_vm4, %v3288_v33  ;;  %v3494_v31 = vpack.c.bf16 %v3454_v12, %v3449_v29  ;;  %v3378_v40 = vpop.permute.xlu1 %3377  ;;  %v3460_v43 = vld [vmem:[#allocation4 + $0x108] sm:$0xff]  ;;  %8814 = vmatprep.subr.bf16.mxu0 %v9501_v52  ;;  %v9504_v33 = vld [vmem:[%s12316_s3 + $0x370] sm:$0xff]   ;;  %v4199_v29 = vld [vmem:[#allocation3 + $0x8] sm:$0xff] }
 0x4f5   : > { %3402 = vst.msk [vmem:[#allocation4 + $0x158] sm:$0xff] %vm1013_vm4, %v3378_v40 }
 0x4f6   : > { %3883 = vmatmul.mubr.bf16.gmra.mrb[68].mxu0 %v3494_v31  ;;  %v9505_v31 = vld [vmem:[%s12316_s3 + $0x3b8] sm:$0xff]   ;;  %4210 = vst.msk [vmem:[#allocation4 + $0x8] sm:$0xff] %vm583_vm2, %v4199_v29 }
 0x4f7   : > { %v3380_v21 = vpop.permute.xlu0 %3379  ;;  %v3465_v17 = vld [vmem:[#allocation4 + $0x130] sm:$0xff]  ;;  %8815 = vmatpush3.bf16.msra.mxu0 %v9502_v32 }
 0x4f8   : > { %3403 = vst.msk [vmem:[#allocation4 + $0x180] sm:$0xff] %vm1013_vm4, %v3380_v21  ;;  %v3500_v46 = vpack.c.bf16 %v3465_v17, %v3460_v43  ;;  %v3290_v47 = vpop.permute.xlu1 %3289  ;;  %v3459_v24 = vld [vmem:[#allocation4 + $0x100] sm:$0xff]  ;;  %8816 = vmatprep.subr.bf16.mxu0 %v9503_v27  ;;  %v9506_v17 = vld [vmem:[%s12316_s3 + $0x378] sm:$0xff]  }
 0x4f9   : > { %3314 = vst.msk [vmem:[#allocation4 + $0x150] sm:$0xff] %vm1013_vm4, %v3290_v47  ;;  %v4111_v27 = vld [vmem:[#allocation3 + $0x6] sm:$0xff] }
 0x4fa   : > { %3890 = vmatprep.mubr.bf16.mxu0 %v3500_v46  ;;  %9237 = vmatmul.mubr.msk.bf16.gmra.mrb[104].mxu1 %vm583_vm2, %v3511_v20  ;;  %v9507_v46 = vld [vmem:[%s12316_s3 + $0x3c0] sm:$0xff]   ;;  %4122 = vst.msk [vmem:[#allocation4] sm:$0xff] %vm583_vm2, %v4111_v27 }
 0x4fb   : > { %v3292_v49 = vpop.permute.xlu0 %3291  ;;  %v3464_v51 = vld [vmem:[#allocation4 + $0x128] sm:$0xff]  ;;  %8817 = vmatpush3.bf16.msra.mxu0 %v9504_v33  ;;  %v11087_v27 = vld [vmem:[%s12316_s3 + $0x460] sm:$0xff]  }
 0x4fc   : > { %3315 = vst.msk [vmem:[#allocation4 + $0x178] sm:$0xff] %vm1013_vm4, %v3292_v49  ;;  %v3499_v53 = vpack.c.bf16 %v3464_v51, %v3459_v24  ;;  %v3382_v37 = vpop.permute.xlu1 %3381  ;;  %v3470_v58 = vld [vmem:[#allocation4 + $0x158] sm:$0xff]  ;;  %8818 = vmatprep.subr.bf16.mxu0 %v9505_v31  ;;  %v9508_v49 = vld [vmem:[%s12316_s3 + $0x380] sm:$0xff]  }
 0x4fd   : > { %3404 = vst.msk [vmem:[#allocation4 + $0x1a8] sm:$0x1] %vm1024_vm5, %v3382_v37  ;;  %v9509_v51 = vld [vmem:[%s12316_s3 + $0x3c8] sm:$0xff]  }
 0x4fe   : > { %3891 = vmatmul.mubr.bf16.gmra.mrb[72].mxu0 %v3499_v53 }
 0x4ff   : > { %v3475_v61 = vld [vmem:[#allocation4 + $0x180] sm:$0xff]  ;;  %v3294_v44 = vpop.permute.xlu0 %3293  ;;  %8819 = vmatpush3.bf16.msra.mxu0 %v9506_v17 }
 0x500   : > { %v3505_v63 = vpack.c.bf16 %v3475_v61, %v3470_v58  ;;  %3316 = vst.msk [vmem:[#allocation4 + $0x1a0] sm:$0x1] %vm1024_vm5, %v3294_v44  ;;  %v3469_v59 = vld [vmem:[#allocation4 + $0x150] sm:$0xff]  ;;  %8820 = vmatprep.subr.bf16.mxu0 %v9507_v46  ;;  %v9510_v44 = vld [vmem:[%s12316_s3 + $0x388] sm:$0xff]  }
 0x502   : > { %3898 = vmatprep.mubr.bf16.mxu0 %v3505_v63 }
 0x503   : > { %v3474_v62 = vld [vmem:[#allocation4 + $0x178] sm:$0xff]  ;;  %8821 = vmatpush3.bf16.msra.mxu0 %v9508_v49 }
 0x504   : > { %v3504_v41 = vpack.c.bf16 %v3474_v62, %v3469_v59  ;;  %v3480_v54 = vld [vmem:[#allocation4 + $0x1a8] sm:$0x1]  ;;  %8822 = vmatprep.subr.bf16.mxu0 %v9509_v51 }
 0x505   : > { %4396 = vst.msk [vmem:[#allocation4 + $0x1a8] sm:$0x1] %vm862_vm3, %v4385_v22  ;;  %v3510_v0 = vpack.c.bf16 %v3480_v54, %v3480_v54 }
 0x506   : > { %3899 = vmatmul.mubr.bf16.gmra.mrb[76].mxu0 %v3504_v41  ;;  %v11036_v41 = vld [vmem:[%s12317_s4 + $0x2] ss:$0 sm:$0xff] }
 0x507   : > { %v3479_v1 = vld [vmem:[#allocation4 + $0x1a0] sm:$0x1]  ;;  %3906 = vmatprep.mubr.bf16.mxu0 %v3510_v0  ;;  %8823 = vmatpush3.bf16.msra.mxu0 %v9510_v44 }
 0x508   : > { %v3509_v3 = vpack.c.bf16 %v3479_v1, %v3479_v1 }
 0x50e   : > { %3907 = vmatmul.mubr.bf16.gmra.mrb[80].mxu0 %v3509_v3 }
 0x58c   : > { %v8714_v11 = vpop.f32.mrb[72].mxu1 }
 0x58d   : > { %v8715_v6 = vpop.f32.mrb[73].mxu1 }
 0x58e   : > { %v8716_v7 = vadd.f32 %v8715_v6, %v8714_v11  ;;  %v8717_v10 = vpop.f32.mrb[74].mxu1 }
 0x58f   : > { %v8718_v25 = vpop.f32.mrb[75].mxu1 }
 0x590   : > { %v10976_v30 = vadd.f32 %v8718_v25, %v8717_v10  ;;  %v3789_v3 = vadd.f32 %v8716_v7, %v11036_v41  ;;  %v9511_v7 = vld [vmem:[%s12316_s3 + $0x3d0] sm:$0xff]  }
 0x591   : > { %8824 = vmatprep.subr.bf16.mxu0 %v9511_v7 }
 0x592   : > { %v3792_v25 = vadd.f32 %v10976_v30, %v11036_v41 }
 0x594   : > { %v8720_v50 = vpop.f32.mrb[76].mxu1 }
 0x595   : > { %v8721_v48 = vpop.f32.mrb[77].mxu1 }
 0x596   : > { %v10978_v13 = vadd.f32 %v8721_v48, %v8720_v50  ;;  %v8723_v16 = vpop.f32.mrb[78].mxu1 }
 0x597   : > { %v8724_v5 = vpop.f32.mrb[79].mxu1 }
 0x598   : > { %v10980_v18 = vadd.f32 %v8724_v5, %v8723_v16  ;;  %v3797_v30 = vadd.f32 %v10978_v13, %v11036_v41 }
 0x59d   : > { %v8726_v2 = vpop.f32.mrb[80].mxu1 }
 0x59e   : > { %v8727_v8 = vpop.f32.mrb[81].mxu1 }
 0x59f   : > { %v10985_v56 = vadd.f32 %v8727_v8, %v8726_v2  ;;  %v8729_v23 = vpop.f32.mrb[82].mxu1 }
 0x5a0   : > { %v8730_v9 = vpop.f32.mrb[83].mxu1 }
 0x5a1   : > { %v10993_v19 = vadd.f32 %v8730_v9, %v8729_v23 }
 0x5a5   : > { %v8732_v38 = vpop.f32.mrb[84].mxu1 }
 0x5a6   : > { %v8733_v12 = vpop.f32.mrb[85].mxu1 }
 0x5a7   : > { %v11008_v40 = vadd.f32 %v8733_v12, %v8732_v38  ;;  %v8735_v20 = vpop.f32.mrb[86].mxu1 }
 0x5a8   : > { %v8736_v21 = vpop.f32.mrb[87].mxu1 }
 0x5a9   : > { %v11010_v43 = vadd.f32 %v8736_v21, %v8735_v20  ;;  %v9512_v20 = vld [vmem:[%s12316_s3 + $0x390] sm:$0xff]   ;;  %v3800_v21 = vadd.f32 %v10980_v18, %v11036_v41  ;;  %v9513_v18 = vld [vmem:[%s12316_s3 + $0x3d8] sm:$0xff]  }
 0x5aa   : > { %8825 = vmatpush3.bf16.msra.mxu0 %v9512_v20 }
 0x5ab   : > { %8826 = vmatprep.subr.bf16.mxu0 %v9513_v18 }
 0x5ad   : > { %v8738_v47 = vpop.f32.mrb[88].mxu1 }
 0x5ae   : > { %v8739_v24 = vpop.f32.mrb[89].mxu1 }
 0x5af   : > { %v11024_v53 = vadd.f32 %v8739_v24, %v8738_v47  ;;  %v8741_v37 = vpop.f32.mrb[90].mxu1 }
 0x5b0   : > { %v8742_v58 = vpop.f32.mrb[91].mxu1 }
 0x5b1   : > { %v11026_v61 = vadd.f32 %v8742_v58, %v8741_v37 }
 0x5b5   : > { %v8744_v63 = vpop.f32.mrb[92].mxu1 }
 0x5b6   : > { %v8745_v22 = vpop.f32.mrb[93].mxu1 }
 0x5b7   : > { %v11031_v59 = vadd.f32 %v8745_v22, %v8744_v63  ;;  %v8747_v62 = vpop.f32.mrb[94].mxu1 }
 0x5b8   : > { %v8748_v54 = vpop.f32.mrb[95].mxu1 }
 0x5b9   : > { %v8766_v0 = vpop.f32.mrb[60].mxu0  ;;  %v9514_v54 = vld [vmem:[%s12316_s3 + $0x398] sm:$0xff]  }
 0x5ba   : > { %v8767_v1 = vpop.f32.mrb[61].mxu0  ;;  %8827 = vmatpush3.bf16.msra.mxu0 %v9514_v54 }
 0x5bb   : > { %v8768_v11 = vadd.f32 %v8767_v1, %v8766_v0  ;;  %v8769_v6 = vpop.f32.mrb[62].mxu0  ;;  %v3805_v0 = vadd.f32 %v10985_v56, %v11036_v41  ;;  %9240 = vmatprep.subr.bf16.mxu0 %v11087_v27 }
 0x5bc   : > { %v8770_v10 = vpop.f32.mrb[63].mxu0 }
 0x5bd   : > { %v8771_v50 = vadd.f32 %v8770_v10, %v8769_v6  ;;  %v9230_v48 = vpop.f32.mrb[96].mxu1  ;;  %v3869_v16 = vadd.f32 %v8768_v11, %v3789_v3 }
 0x5be   : > { %v3948_v5 = vpop.f32.mrb[97].mxu1 }
 0x5bf   : > { %v3949_v2 = vadd.f32 %v3948_v5, %v3869_v16  ;;  %v9231_v28 = vpop.f32.mrb[98].mxu1  ;;  %v3872_v8 = vadd.f32 %v8771_v50, %v3792_v25  ;;  %v3808_v16 = vadd.f32 %v10993_v19, %v11036_v41 }
 0x5c0   : > { %v3951_v23 = vpop.f32.mrb[99].mxu1 }
 0x5c1   : > { %v3994_v26 = vmax.f32 %v3949_v2, 0.0  ;;  %v3952_v52 = vadd.f32 %v3951_v23, %v3872_v8  ;;  %v8772_v9 = vpop.f32.mrb[64].mxu0  ;;  %v4133_v23 = vld [vmem:[#allocation3 + $0x7] sm:$0xff] }
 0x5c2   : > { %v8773_v32 = vpop.f32.mrb[65].mxu0 }
 0x5c3   : > { %v4005_v38 = vmul.f32 %v3994_v26, %v9948_v34  ;;  %v3995_v33 = vmax.f32 %v3952_v52, 0.0  ;;  %v8774_v29 = vadd.f32 %v8773_v32, %v8772_v9  ;;  %v8775_v12 = vpop.f32.mrb[66].mxu0 }
 0x5c4   : > { %v8776_v31 = vpop.f32.mrb[67].mxu0 }
 0x5c5   : > { %4016 = vst.msk [vmem:[#allocation3 + $0x10] sm:$0xff] %vm583_vm2, %v4005_v38  ;;  %v4006_v13 = vmul.f32 %v3995_v33, %v9952_v36  ;;  %v3877_v17 = vadd.f32 %v8774_v29, %v3797_v30  ;;  %v8777_v46 = vadd.f32 %v8776_v31, %v8775_v12  ;;  %v11055_v47 = vpop.f32.mrb[100].mxu1  ;;  %v3813_v31 = vadd.f32 %v11008_v40, %v11036_v41 }
 0x5c6   : > { %v3964_v49 = vpop.f32.mrb[101].mxu1 }
 0x5c7   : > { %4017 = vst.msk [vmem:[#allocation3 + $0x18] sm:$0xff] %vm583_vm2, %v4006_v13  ;;  %v3957_v24 = vadd.f32 %v9230_v48, %v3877_v17  ;;  %v3880_v51 = vadd.f32 %v8777_v46, %v3800_v21  ;;  %v11058_v37 = vpop.f32.mrb[102].mxu1 }
 0x5c8   : > { %v3967_v58 = vpop.f32.mrb[103].mxu1 }
 0x5c9   : > { %v3996_v44 = vmax.f32 %v3957_v24, 0.0  ;;  %v3960_v63 = vadd.f32 %v9231_v28, %v3880_v51  ;;  %v8778_v22 = vpop.f32.mrb[68].mxu0  ;;  %v3816_v51 = vadd.f32 %v11010_v43, %v11036_v41 }
 0x5ca   : > { %v8779_v62 = vpop.f32.mrb[69].mxu0 }
 0x5cb   : > { %v4007_v1 = vmul.f32 %v3996_v44, %v9950_v35  ;;  %v3997_v3 = vmax.f32 %v3960_v63, 0.0  ;;  %v8780_v11 = vadd.f32 %v8779_v62, %v8778_v22  ;;  %v8781_v6 = vpop.f32.mrb[70].mxu0 }
 0x5cc   : > { %v8782_v10 = vpop.f32.mrb[71].mxu0  ;;  %v4221_v25 = vld [vmem:[#allocation3 + $0xf] sm:$0xff] }
 0x5cd   : > { %v4200_v50 = vld [vmem:[#allocation3 + $0x10] sm:$0xff]  ;;  %4018 = vst.msk [vmem:[#allocation3 + $0x20] sm:$0xff] %vm583_vm2, %v4007_v1  ;;  %v4008_v5 = vmul.f32 %v3997_v3, %v9959_v39  ;;  %v3885_v2 = vadd.f32 %v8780_v11, %v3805_v0  ;;  %v8783_v28 = vadd.f32 %v8782_v10, %v8781_v6  ;;  %4243 = vrot.lane.b32.xlu1 %v4221_v25, %s9683_s24  ;;  %v11074_v56 = vpop.f32.mrb[104].mxu1 }
 0x5ce   : > { %v4112_v48 = vld [vmem:[#allocation3 + $0xe] sm:$0xff]  ;;  %4211 = vst.msk [vmem:[#allocation4 + $0x30] sm:$0xff] %vm583_vm2, %v4200_v50  ;;  %4298 = vst.msk [vmem:[#allocation4 + $0x10] sm:$0xff] %vm583_vm2, %v4200_v50  ;;  %v4222_v8 = vld [vmem:[#allocation3 + $0x17] sm:$0xff]  ;;  %v11079_v26 = vpop.f32.mrb[105].mxu1  ;;  %v3821_v10 = vadd.f32 %v11024_v53, %v11036_v41 }
 0x5cf   : > { %4123 = vst.msk [vmem:[#allocation4 + $0x28] sm:$0xff] %vm583_vm2, %v4112_v48  ;;  %v4201_v19 = vld [vmem:[#allocation3 + $0x18] sm:$0xff]  ;;  %4019 = vst.msk [vmem:[#allocation3 + $0x28] sm:$0xff] %vm583_vm2, %v4008_v5  ;;  %v3965_v52 = vadd.f32 %v3964_v49, %v3885_v2  ;;  %v3888_v9 = vadd.f32 %v8783_v28, %v3808_v16  ;;  %4245 = vrot.lane.b32.xlu0 %v4222_v8, %s9683_s24  ;;  %v9239_v32 = vpop.f32.mrb[106].mxu1 }
 0x5d0   : > { %4212 = vst.msk [vmem:[#allocation4 + $0x58] sm:$0xff] %vm583_vm2, %v4201_v19  ;;  %v4113_v7 = vld [vmem:[#allocation3 + $0x16] sm:$0xff]  ;;  %4386 = vst.msk [vmem:[#allocation4 + $0x18] sm:$0xff] %vm583_vm2, %v4201_v19  ;;  %v11091_v30 = vpop.f32.mrb[107].mxu1 }
 0x5d1   : > { %4299 = vst.msk [vmem:[#allocation4 + $0x38] sm:$0xff] %vm583_vm2, %v4201_v19  ;;  %4124 = vst.msk [vmem:[#allocation4 + $0x50] sm:$0xff] %vm583_vm2, %v4113_v7  ;;  %v3998_v38 = vmax.f32 %v3965_v52, 0.0  ;;  %v3968_v33 = vadd.f32 %v3967_v58, %v3888_v9  ;;  %v8784_v29 = vpop.f32.mrb[72].mxu0  ;;  %4155 = vrot.lane.b32.xlu1 %v4133_v23, %s9683_s24  ;;  %v9517_v52 = vld [vmem:[%s12316_s3 + $0x420] sm:$0xff]  }
 0x5d2   : > { %v8785_v12 = vpop.f32.mrb[73].mxu0  ;;  %8864 = vmatprep.subr.bf16.mxu1 %v9517_v52 }
 0x5d3   : > { %v4009_v20 = vmul.f32 %v3998_v38, %v9962_v42  ;;  %v3999_v21 = vmax.f32 %v3968_v33, 0.0  ;;  %v8786_v13 = vadd.f32 %v8785_v12, %v8784_v29  ;;  %v8787_v17 = vpop.f32.mrb[74].mxu0  ;;  %4157 = vrot.lane.b32.xlu0 %v4221_v25, %s9683_s24  ;;  %v9518_v33 = vld [vmem:[%s12316_s3 + $0x3e0] sm:$0xff]  }
 0x5d4   : > { %v8788_v46 = vpop.f32.mrb[75].mxu0  ;;  %v4223_v49 = vld [vmem:[#allocation3 + $0x1f] sm:$0xff]  ;;  %8865 = vmatpush3.bf16.msra.mxu1 %v9518_v33 }
 0x5d5   : > { %v4202_v24 = vld [vmem:[#allocation3 + $0x20] sm:$0xff]  ;;  %4020 = vst.msk [vmem:[#allocation3 + $0x30] sm:$0xff] %vm583_vm2, %v4009_v20  ;;  %v4010_v58 = vmul.f32 %v3999_v21, %v9977_v57  ;;  %v3893_v18 = vadd.f32 %v8786_v13, %v3813_v31  ;;  %v8789_v44 = vadd.f32 %v8788_v46, %v8787_v17  ;;  %4247 = vrot.lane.b32.xlu1 %v4223_v49, %s9683_s24  ;;  %v9520_v20 = vld [vmem:[%s12316_s3 + $0x3e8] sm:$0xff]  }
 0x5d6   : > { %4213 = vst.msk [vmem:[#allocation4 + $0x80] sm:$0xff] %vm583_vm2, %v4202_v24  ;;  %v4114_v40 = vld [vmem:[#allocation3 + $0x1e] sm:$0xff]  ;;  %4387 = vst.msk [vmem:[#allocation4 + $0x40] sm:$0xff] %vm583_vm2, %v4202_v24  ;;  %v4224_v22 = vld [vmem:[#allocation3 + $0x27] sm:$0xff]  ;;  %v3829_v46 = vadd.f32 %v11031_v59, %v11036_v41 }
 0x5d7   : > { %4300 = vst.msk [vmem:[#allocation4 + $0x60] sm:$0xff] %vm583_vm2, %v4202_v24  ;;  %v4463_v63 = vld [vmem:[#allocation3 + $0x1a] sm:$0xff]  ;;  %4125 = vst.msk [vmem:[#allocation4 + $0x78] sm:$0xff] %vm583_vm2, %v4114_v40  ;;  %v4203_v43 = vld [vmem:[#allocation3 + $0x28] sm:$0xff]  ;;  %v3973_v62 = vadd.f32 %v11055_v47, %v3893_v18  ;;  %v3896_v54 = vadd.f32 %v8789_v44, %v3816_v51  ;;  %4249 = vrot.lane.b32.xlu0 %v4224_v22, %s9683_s24 }
 0x5d8   : > { %4474 = vst.msk [vmem:[#allocation4 + $0x20] sm:$0xff] %vm583_vm2, %v4463_v63  ;;  %4021 = vst.msk [vmem:[#allocation3 + $0x38] sm:$0xff] %vm583_vm2, %v4010_v58  ;;  %v4115_v0 = vld [vmem:[#allocation3 + $0x26] sm:$0xff] }
 0x5d9   : > { %4214 = vst.msk [vmem:[#allocation4 + $0xa8] sm:$0xff] %vm583_vm2, %v4203_v43  ;;  %4388 = vst.msk [vmem:[#allocation4 + $0x68] sm:$0xff] %vm583_vm2, %v4203_v43  ;;  %v4464_v1 = vld [vmem:[#allocation3 + $0x22] sm:$0xff]  ;;  %v4000_v3 = vmax.f32 %v3973_v62, 0.0  ;;  %v3976_v11 = vadd.f32 %v11058_v37, %v3896_v54  ;;  %v8790_v6 = vpop.f32.mrb[76].mxu0  ;;  %4159 = vrot.lane.b32.xlu1 %v4222_v8, %s9683_s24  ;;  %v3824_v37 = vadd.f32 %v11026_v61, %v11036_v41  ;;  %v9521_v41 = vld [vmem:[%s12316_s3 + $0x430] sm:$0xff]  }
 0x5da   : > { %4301 = vst.msk [vmem:[#allocation4 + $0x88] sm:$0xff] %vm583_vm2, %v4203_v43  ;;  %4126 = vst.msk [vmem:[#allocation4 + $0xa0] sm:$0xff] %vm583_vm2, %v4115_v0  ;;  %v8791_v47 = vpop.f32.mrb[77].mxu0 }
 0x5db   : > { %4475 = vst.msk [vmem:[#allocation4 + $0x48] sm:$0xff] %vm583_vm2, %v4464_v1  ;;  %v4011_v25 = vmul.f32 %v4000_v3, %v9982_v60  ;;  %v4001_v50 = vmax.f32 %v3976_v11, 0.0  ;;  %v8792_v48 = vadd.f32 %v8791_v47, %v8790_v6  ;;  %v8793_v16 = vpop.f32.mrb[78].mxu0  ;;  %4161 = vrot.lane.b32.xlu0 %v4223_v49, %s9683_s24  ;;  %v9524_v11 = vld [vmem:[%s12316_s3 + $0x438] sm:$0xff]  }
 0x5dc   : > { %v8794_v5 = vpop.f32.mrb[79].mxu0  ;;  %v4225_v2 = vld [vmem:[#allocation3 + $0x2f] sm:$0xff]  ;;  %v9525_v6 = vld [vmem:[%s12316_s3 + $0x3f8] sm:$0xff]  }
 0x5dd   : > { %v4204_v28 = vld [vmem:[#allocation3 + $0x30] sm:$0xff]  ;;  %4022 = vst.msk [vmem:[#allocation3 + $0x40] sm:$0xff] %vm583_vm2, %v4011_v25  ;;  %v4012_v8 = vmul.f32 %v4001_v50, %v10005_v15  ;;  %v3901_v23 = vadd.f32 %v8792_v48, %v3821_v10  ;;  %v8795_v19 = vadd.f32 %v8794_v5, %v8793_v16  ;;  %4251 = vrot.lane.b32.xlu1 %v4225_v2, %s9683_s24 }
 0x5de   : > { %4215 = vst.msk [vmem:[#allocation4 + $0xd0] sm:$0xff] %vm583_vm2, %v4204_v28  ;;  %v4116_v53 = vld [vmem:[#allocation3 + $0x2e] sm:$0xff]  ;;  %4389 = vst.msk [vmem:[#allocation4 + $0x90] sm:$0xff] %vm583_vm2, %v4204_v28 }
 0x5df   : > { %4302 = vst.msk [vmem:[#allocation4 + $0xb0] sm:$0xff] %vm583_vm2, %v4204_v28  ;;  %v11135_v61 = vld [vmem:[#allocation3 + $0x37] sm:$0xff]  ;;  %4127 = vst.msk [vmem:[#allocation4 + $0xc8] sm:$0xff] %vm583_vm2, %v4116_v53  ;;  %v3981_v32 = vadd.f32 %v11079_v26, %v3901_v23  ;;  %v3904_v7 = vadd.f32 %v8795_v19, %v3824_v37  ;;  %v4465_v21 = vld [vmem:[#allocation3 + $0x2a] sm:$0xff] }
 0x5e0   : > { %v4205_v9 = vld [vmem:[#allocation3 + $0x38] sm:$0xff]  ;;  %4023 = vst.msk [vmem:[#allocation3 + $0x48] sm:$0xff] %vm583_vm2, %v4012_v8  ;;  %4253 = vrot.lane.b32.xlu0 %v11135_v61, %s9683_s24  ;;  %v9519_v26 = vld [vmem:[%s12316_s3 + $0x428] sm:$0xff]   ;;  %4476 = vst.msk [vmem:[#allocation4 + $0x70] sm:$0xff] %vm583_vm2, %v4465_v21 }
 0x5e1   : > { %4216 = vst.msk [vmem:[#allocation4 + $0xf8] sm:$0xff] %vm583_vm2, %v4205_v9  ;;  %v4117_v38 = vld [vmem:[#allocation3 + $0x36] sm:$0xff]  ;;  %4390 = vst.msk [vmem:[#allocation4 + $0xb8] sm:$0xff] %vm583_vm2, %v4205_v9  ;;  %v4002_v29 = vmax.f32 %v3981_v32, 0.0  ;;  %v3984_v12 = vadd.f32 %v11091_v30, %v3904_v7  ;;  %v8796_v31 = vpop.f32.mrb[80].mxu0  ;;  %4163 = vrot.lane.b32.xlu1 %v4224_v22, %s9683_s24  ;;  %8866 = vmatprep.subr.bf16.mxu1 %v9519_v26  ;;  %v9527_v28 = vld [vmem:[%s12316_s3 + $0x400] sm:$0xff]  }
 0x5e2   : > { %4303 = vst.msk [vmem:[#allocation4 + $0xd8] sm:$0xff] %vm583_vm2, %v4205_v9  ;;  %4128 = vst.msk [vmem:[#allocation4 + $0xf0] sm:$0xff] %vm583_vm2, %v4117_v38  ;;  %v4466_v13 = vld [vmem:[#allocation3 + $0x32] sm:$0xff]  ;;  %v8797_v17 = vpop.f32.mrb[81].mxu0  ;;  %8867 = vmatpush3.bf16.msra.mxu1 %v9520_v20  ;;  %v4399_v21 = vld [vmem:[#allocation3 + $0x29] sm:$0xff] }
 0x5e3   : > { %4477 = vst.msk [vmem:[#allocation4 + $0x98] sm:$0xff] %vm583_vm2, %v4466_v13  ;;  %v4013_v30 = vmul.f32 %v4002_v29, %v10003_v14  ;;  %v4003_v49 = vmax.f32 %v3984_v12, 0.0  ;;  %v8798_v24 = vadd.f32 %v8797_v17, %v8796_v31  ;;  %v8799_v51 = vpop.f32.mrb[82].mxu0  ;;  %v9522_v22 = vld [vmem:[%s12316_s3 + $0x3f0] sm:$0xff]   ;;  %8868 = vmatprep.subr.bf16.mxu1 %v9521_v41  ;;  %v9528_v37 = vld [vmem:[%s12316_s3 + $0x448] sm:$0xff]   ;;  %v9533_v29 = vld [vmem:[%s12316_s3 + $0x458] sm:$0xff]  }
 0x5e4   : > { %4165 = vrot.lane.b32.xlu0 %v4225_v2, %s9683_s24  ;;  %v4227_v58 = vld [vmem:[#allocation3 + $0x3f] sm:$0xff]  ;;  %v8800_v18 = vpop.f32.mrb[83].mxu0  ;;  %v9526_v2 = vld [vmem:[%s12316_s3 + $0x440] sm:$0xff]   ;;  %v9529_v19 = vld [vmem:[%s12316_s3 + $0x408] sm:$0xff]  }
 0x5e5   : > { %v4206_v44 = vld [vmem:[#allocation3 + $0x40] sm:$0xff]  ;;  %4024 = vst.msk [vmem:[#allocation3 + $0x50] sm:$0xff] %vm583_vm2, %v4013_v30  ;;  %v4014_v40 = vmul.f32 %v4003_v49, %v10054_v55  ;;  %v3909_v63 = vadd.f32 %v8798_v24, %v3829_v46  ;;  %4255 = vrot.lane.b32.xlu1 %v4227_v58, %s9683_s24  ;;  %v9532_v38 = vld [vmem:[%s12316_s3 + $0x410] sm:$0xff]   ;;  %v5530_v49 = vld [vmem:[#allocation2 + $0x62] sm:$0xff] }
 0x5e6   : > { %4217 = vst.msk [vmem:[#allocation4 + $0x120] sm:$0xff] %vm583_vm2, %v4206_v44  ;;  %v4118_v59 = vld [vmem:[#allocation3 + $0x3e] sm:$0xff]  ;;  %4391 = vst.msk [vmem:[#allocation4 + $0xe0] sm:$0xff] %vm583_vm2, %v4206_v44  ;;  %8869 = vmatpush3.bf16.msra.mxu1 %v9522_v22  ;;  %v4309_v20 = vld [vmem:[#allocation3 + $0x11] sm:$0xff] }
 0x5e7   : > { %4304 = vst.msk [vmem:[#allocation4 + $0x100] sm:$0xff] %vm583_vm2, %v4206_v44  ;;  %v4228_v43 = vld [vmem:[#allocation3 + $0x47] sm:$0xff]  ;;  %4129 = vst.msk [vmem:[#allocation4 + $0x118] sm:$0xff] %vm583_vm2, %v4118_v59  ;;  %v3989_v54 = vadd.f32 %v11074_v56, %v3909_v63  ;;  %v4467_v1 = vld [vmem:[#allocation3 + $0x3a] sm:$0xff]  ;;  %8870 = vmatprep.subr.bf16.mxu1 %v9524_v11 }
 0x5e8   : > { %v4207_v62 = vld [vmem:[#allocation3 + $0x48] sm:$0xff]  ;;  %4025 = vst.msk [vmem:[#allocation3 + $0x58] sm:$0xff] %vm583_vm2, %v4014_v40  ;;  %4257 = vrot.lane.b32.xlu0 %v4228_v43, %s9683_s24  ;;  %4478 = vst.msk [vmem:[#allocation4 + $0xc0] sm:$0xff] %vm583_vm2, %v4467_v1  ;;  %v4397_v26 = vld [vmem:[#allocation3 + $0x19] sm:$0xff] }
 0x5e9   : > { %4218 = vst.msk [vmem:[#allocation4 + $0x148] sm:$0xff] %vm583_vm2, %v4207_v62  ;;  %v4119_v0 = vld [vmem:[#allocation3 + $0x46] sm:$0xff]  ;;  %4392 = vst.msk [vmem:[#allocation4 + $0x108] sm:$0xff] %vm583_vm2, %v4207_v62  ;;  %v4004_v56 = vmax.f32 %v3989_v54, 0.0  ;;  %4167 = vrot.lane.b32.xlu1 %v11135_v61, %s9683_s24  ;;  %v9531_v61 = vld [vmem:[%s12316_s3 + $0x450] sm:$0xff]  }
 0x5ea   : > { %v4468_v3 = vld [vmem:[#allocation3 + $0x42] sm:$0xff]  ;;  %4305 = vst.msk [vmem:[#allocation4 + $0x128] sm:$0xff] %vm583_vm2, %v4207_v62  ;;  %4130 = vst.msk [vmem:[#allocation4 + $0x140] sm:$0xff] %vm583_vm2, %v4119_v0  ;;  %8871 = vmatpush3.bf16.msra.mxu1 %v9525_v6  ;;  %v4400_v13 = vld [vmem:[#allocation3 + $0x31] sm:$0xff] }
 0x5eb   : > { %4479 = vst.msk [vmem:[#allocation4 + $0xe8] sm:$0xff] %vm583_vm2, %v4468_v3  ;;  %v4015_v47 = vmul.f32 %v4004_v56, %v10035_v45  ;;  %8872 = vmatprep.subr.bf16.mxu1 %v9526_v2  ;;  %v4398_v12 = vld [vmem:[#allocation3 + $0x21] sm:$0xff]  ;;  %v4401_v17 = vld [vmem:[#allocation3 + $0x39] sm:$0xff]  ;;  %v5531_v40 = vld [vmem:[#allocation2 + $0x6a] sm:$0x1] }
 0x5ec   : > { %4169 = vrot.lane.b32.xlu0 %v4227_v58, %s9683_s24  ;;  %v4229_v10 = vld [vmem:[#allocation3 + $0x4f] sm:$0xff]  ;;  %v4143_v7 = vld [vmem:[#allocation3 + $0x57] sm:$0x1]  ;;  %v9534_v31 = vld [vmem:[%s12316_s3 + $0x418] sm:$0xff]  }
 0x5ed   : > { %4026 = vst.msk [vmem:[#allocation3 + $0x60] sm:$0x1] %vm862_vm3, %v4015_v47  ;;  %4259 = vrot.lane.b32.xlu1 %v4229_v10, %s9683_s24  ;;  %v4208_v25 = vld [vmem:[#allocation3 + $0x50] sm:$0xff]  ;;  %v4402_v46 = vld [vmem:[#allocation3 + $0x41] sm:$0xff]  ;;  %v4407_v63 = vld [vmem:[#allocation3 + $0x69] sm:$0x1] }
 0x5ee   : > { %v4120_v50 = vld [vmem:[#allocation3 + $0x4e] sm:$0xff]  ;;  %v4121_v48 = vld [vmem:[#allocation3 + $0x56] sm:$0x1]  ;;  %4219 = vst.msk [vmem:[#allocation4 + $0x170] sm:$0xff] %vm583_vm2, %v4208_v25  ;;  %4393 = vst.msk [vmem:[#allocation4 + $0x130] sm:$0xff] %vm583_vm2, %v4208_v25  ;;  %8873 = vmatpush3.bf16.msra.mxu1 %v9527_v28 }
 0x5ef   : > { %v4230_v16 = vld [vmem:[#allocation3 + $0x57] sm:$0xff]  ;;  %4131 = vst.msk [vmem:[#allocation4 + $0x168] sm:$0xff] %vm583_vm2, %v4120_v50  ;;  %4306 = vst.msk [vmem:[#allocation4 + $0x150] sm:$0xff] %vm583_vm2, %v4208_v25  ;;  %v4469_v8 = vld [vmem:[#allocation3 + $0x4a] sm:$0xff]  ;;  %8874 = vmatprep.subr.bf16.mxu1 %v9528_v37 }
 0x5f0   : > { %4132 = vst.msk [vmem:[#allocation4 + $0x190] sm:$0x1] %vm862_vm3, %v4121_v48  ;;  %4261 = vrot.lane.b32.xlu0 %v4230_v16, %s9683_s24  ;;  %v4209_v5 = vld [vmem:[#allocation3 + $0x58] sm:$0x1]  ;;  %v4231_v52 = vld [vmem:[#allocation3 + $0x5f] sm:$0x1] }
 0x5f1   : > { %4220 = vst.msk [vmem:[#allocation4 + $0x198] sm:$0x1] %vm862_vm3, %v4209_v5  ;;  %4171 = vrot.lane.b32.xlu1 %v4228_v43, %s9683_s24  ;;  %v4470_v23 = vld [vmem:[#allocation3 + $0x52] sm:$0xff]  ;;  %v11248_v30 = vld [vmem:[#allocation4 + $0x188] sm:$0xff]  ;;  %v4403_v24 = vld [vmem:[#allocation3 + $0x49] sm:$0xff] }
 0x5f2   : > { %4480 = vst.msk [vmem:[#allocation4 + $0x110] sm:$0xff] %vm583_vm2, %v4469_v8  ;;  %4481 = vst.msk [vmem:[#allocation4 + $0x138] sm:$0xff] %vm583_vm2, %v4470_v23  ;;  %v4383_v53 = vld [vmem:[#allocation3 + $0x58] sm:$0xff]  ;;  %8875 = vmatpush3.bf16.msra.mxu1 %v9529_v19  ;;  %v4406_v18 = vld [vmem:[#allocation3 + $0x61] sm:$0xff] }
 0x5f3   : > { %4394 = vst.msk [vmem:[#allocation4 + $0x158] sm:$0xff] %vm583_vm2, %v4383_v53  ;;  %4307 = vst.msk [vmem:[#allocation4 + $0x178] sm:$0xff] %vm583_vm2, %v4383_v53  ;;  %8876 = vmatprep.subr.bf16.mxu1 %v9531_v61  ;;  %v4404_v51 = vld [vmem:[#allocation3 + $0x51] sm:$0xff]  ;;  %v11260_v44 = vld [vmem:[#allocation4 + $0x1b0] sm:$0x1] }
 0x5f4   : > { %4173 = vrot.lane.b32.xlu0 %v4229_v10, %s9683_s24  ;;  %v4471_v9 = vld [vmem:[#allocation3 + $0x5a] sm:$0xff]  ;;  %5541 = vst.msk [vmem:[#allocation4 + $0x188] sm:$0xff] %vm583_vm2, %v5530_v49  ;;  %v9516_v50 = vld [vmem:[%s12316_s3 + $0x468] sm:$0xff]  }
 0x5f5   : > { %4263 = vrot.lane.b32.xlu1 %v4231_v52, %s9683_s24  ;;  %v4384_v32 = vld [vmem:[#allocation3 + $0x60] sm:$0xff]  ;;  %4482 = vst.msk [vmem:[#allocation4 + $0x160] sm:$0xff] %vm583_vm2, %v4471_v9  ;;  %v9523_v37 = vld [vmem:[%s12316_s3 + $0x470] sm:$0xff]  }
 0x5f6   : > { %4395 = vst.msk [vmem:[#allocation4 + $0x180] sm:$0xff] %vm583_vm2, %v4384_v32  ;;  %v4297_v33 = vld [vmem:[#allocation3 + $0x60] sm:$0x1]  ;;  %8877 = vmatpush3.bf16.msra.mxu1 %v9532_v38  ;;  %v4319_v59 = vld [vmem:[#allocation3 + $0x61] sm:$0x1] }
 0x5f7   : > { %4308 = vst.msk [vmem:[#allocation4 + $0x1a0] sm:$0x1] %vm862_vm3, %v4297_v33  ;;  %8878 = vmatprep.subr.bf16.mxu1 %v9533_v29  ;;  %v4405_v58 = vld [vmem:[#allocation3 + $0x59] sm:$0xff]  ;;  %5542 = vst.msk [vmem:[#allocation4 + $0x1b0] sm:$0x1] %vm862_vm3, %v5531_v40 }
 0x5f8   : > { %4175 = vrot.lane.b32.xlu0 %v4143_v7, %s9683_s24  ;;  %v9530_v52 = vld [vmem:[%s12316_s3 + $0x478] sm:$0xff]  }
 0x5f9   : > { %4419 = vrot.lane.b32.xlu1 %v4397_v26, %s9683_s24 }
 0x5fa   : > { %8879 = vmatpush3.bf16.msra.mxu1 %v9534_v31 }
 0x5fc   : > { %4421 = vrot.lane.b32.xlu0 %v4398_v12, %s9683_s24 }
 0x5fd   : > { %4331 = vrot.lane.b32.xlu1 %v4309_v20, %s9683_s24 }
 0x600   : > { %4333 = vrot.lane.b32.xlu0 %v4397_v26, %s9683_s24 }
 0x601   : > { %4423 = vrot.lane.b32.xlu1 %v4399_v21, %s9683_s24 }
 0x604   : > { %4425 = vrot.lane.b32.xlu0 %v4400_v13, %s9683_s24 }
 0x605   : > { %4335 = vrot.lane.b32.xlu1 %v4398_v12, %s9683_s24 }
 0x608   : > { %4337 = vrot.lane.b32.xlu0 %v4399_v21, %s9683_s24 }
 0x609   : > { %4427 = vrot.lane.b32.xlu1 %v4401_v17, %s9683_s24 }
 0x60c   : > { %4429 = vrot.lane.b32.xlu0 %v4402_v46, %s9683_s24 }
 0x60d   : > { %4339 = vrot.lane.b32.xlu1 %v4400_v13, %s9683_s24 }
 0x610   : > { %4341 = vrot.lane.b32.xlu0 %v4401_v17, %s9683_s24 }
 0x611   : > { %4431 = vrot.lane.b32.xlu1 %v4403_v24, %s9683_s24 }
 0x614   : > { %4433 = vrot.lane.b32.xlu0 %v4404_v51, %s9683_s24 }
 0x615   : > { %4343 = vrot.lane.b32.xlu1 %v4402_v46, %s9683_s24 }
 0x618   : > { %4345 = vrot.lane.b32.xlu0 %v4403_v24, %s9683_s24 }
 0x619   : > { %4435 = vrot.lane.b32.xlu1 %v4405_v58, %s9683_s24 }
 0x61c   : > { %4437 = vrot.lane.b32.xlu0 %v4406_v18, %s9683_s24 }
 0x61d   : > { %4347 = vrot.lane.b32.xlu1 %v4404_v51, %s9683_s24 }
 0x620   : > { %4349 = vrot.lane.b32.xlu0 %v4405_v58, %s9683_s24 }
 0x621   : > { %4439 = vrot.lane.b32.xlu1 %v4407_v63, %s9683_s24 }
 0x624   : > { %4351 = vrot.lane.b32.xlu0 %v4319_v59, %s9683_s24 }
 0x63f   : > { %v4244_v41 = vpop.permute.xlu1 %4243 }
 0x640   : > { %4276 = vst.msk [vmem:[#allocation4 + $0x8] sm:$0xff] %vm1013_vm4, %v4244_v41 }
 0x641   : > { %v4246_v22 = vpop.permute.xlu0 %4245 }
 0x642   : > { %4277 = vst.msk [vmem:[#allocation4 + $0x30] sm:$0xff] %vm1013_vm4, %v4246_v22 }
 0x643   : > { %v4156_v43 = vpop.permute.xlu1 %4155 }
 0x644   : > { %4188 = vst.msk [vmem:[#allocation4] sm:$0xff] %vm1013_vm4, %v4156_v43 }
 0x645   : > { %v4158_v62 = vpop.permute.xlu0 %4157 }
 0x646   : > { %4189 = vst.msk [vmem:[#allocation4 + $0x28] sm:$0xff] %vm1013_vm4, %v4158_v62 }
 0x647   : > { %v4248_v54 = vpop.permute.xlu1 %4247  ;;  %v4486_v1 = vld [vmem:[#allocation4 + $0x8] sm:$0xff] }
 0x648   : > { %4278 = vst.msk [vmem:[#allocation4 + $0x58] sm:$0xff] %vm1013_vm4, %v4248_v54 }
 0x649   : > { %v4250_v0 = vpop.permute.xlu0 %4249  ;;  %v4491_v3 = vld [vmem:[#allocation4 + $0x30] sm:$0xff] }
 0x64a   : > { %4279 = vst.msk [vmem:[#allocation4 + $0x80] sm:$0xff] %vm1013_vm4, %v4250_v0  ;;  %v4541_v11 = vpack.c.bf16 %v4491_v3, %v4486_v1 }
 0x64b   : > { %v4160_v56 = vpop.permute.xlu1 %4159  ;;  %v4485_v6 = vld [vmem:[#allocation4] sm:$0xff] }
 0x64c   : > { %4190 = vst.msk [vmem:[#allocation4 + $0x50] sm:$0xff] %vm1013_vm4, %v4160_v56  ;;  %4844 = vmatprep.mubr.bf16.mxu0 %v4541_v11 }
 0x64d   : > { %v4162_v47 = vpop.permute.xlu0 %4161  ;;  %v4490_v10 = vld [vmem:[#allocation4 + $0x28] sm:$0xff] }
 0x64e   : > { %4191 = vst.msk [vmem:[#allocation4 + $0x78] sm:$0xff] %vm1013_vm4, %v4162_v47  ;;  %v4540_v25 = vpack.c.bf16 %v4490_v10, %v4485_v6 }
 0x64f   : > { %v4252_v48 = vpop.permute.xlu1 %4251  ;;  %v4496_v5 = vld [vmem:[#allocation4 + $0x58] sm:$0xff] }
 0x650   : > { %4280 = vst.msk [vmem:[#allocation4 + $0xa8] sm:$0xff] %vm1013_vm4, %v4252_v48  ;;  %4845 = vmatmul.mubr.bf16.vlgmr.msra.gmra.mrb[84].mxu0 %v4540_v25  ;;  %v4494_v25 = vld [vmem:[#allocation4 + $0x48] sm:$0xff] }
 0x651   : > { %9241 = vmatpush3.bf16.msra.mxu0 %v11087_v27  ;;  %v4501_v2 = vld [vmem:[#allocation4 + $0x80] sm:$0xff] }
 0x652   : > { %v4254_v16 = vpop.permute.xlu0 %4253  ;;  %v4546_v28 = vpack.c.bf16 %v4501_v2, %v4496_v5  ;;  %9242 = vmatprep.subr.bf16.mxu0 %v9516_v50 }
 0x653   : > { %4281 = vst.msk [vmem:[#allocation4 + $0xd0] sm:$0xff] %vm1013_vm4, %v4254_v16  ;;  %v4164_v8 = vpop.permute.xlu1 %4163  ;;  %v4495_v19 = vld [vmem:[#allocation4 + $0x50] sm:$0xff] }
 0x654   : > { %4192 = vst.msk [vmem:[#allocation4 + $0xa0] sm:$0xff] %vm1013_vm4, %v4164_v8  ;;  %4852 = vmatprep.mubr.bf16.mxu0 %v4546_v28  ;;  %v4489_v28 = vld [vmem:[#allocation4 + $0x20] sm:$0xff] }
 0x655   : > { %v4500_v53 = vld [vmem:[#allocation4 + $0x78] sm:$0xff]  ;;  %9243 = vmatpush3.bf16.msra.mxu0 %v9516_v50  ;;  %v4544_v8 = vpack.c.bf16 %v4494_v25, %v4489_v28 }
 0x656   : > { %v4166_v23 = vpop.permute.xlu0 %4165  ;;  %v4545_v27 = vpack.c.bf16 %v4500_v53, %v4495_v19  ;;  %9244 = vmatprep.subr.bf16.mxu0 %v9523_v37 }
 0x657   : > { %4193 = vst.msk [vmem:[#allocation4 + $0xc8] sm:$0xff] %vm1013_vm4, %v4166_v23  ;;  %v4256_v61 = vpop.permute.xlu1 %4255  ;;  %v4506_v32 = vld [vmem:[#allocation4 + $0xa8] sm:$0xff] }
 0x658   : > { %4282 = vst.msk [vmem:[#allocation4 + $0xf8] sm:$0xff] %vm1013_vm4, %v4256_v61  ;;  %4853 = vmatmul.mubr.bf16.gmra.mrb[88].mxu0 %v4545_v27  ;;  %v4504_v61 = vld [vmem:[#allocation4 + $0x98] sm:$0xff] }
 0x659   : > { %9245 = vmatpush3.bf16.msra.mxu0 %v9523_v37 }
 0x65a   : > { %v4258_v9 = vpop.permute.xlu0 %4257  ;;  %v4511_v7 = vld [vmem:[#allocation4 + $0xd0] sm:$0xff]  ;;  %9246 = vmatprep.subr.bf16.mxu0 %v9530_v52 }
 0x65b   : > { %4283 = vst.msk [vmem:[#allocation4 + $0x120] sm:$0xff] %vm1013_vm4, %v4258_v9  ;;  %v4551_v38 = vpack.c.bf16 %v4511_v7, %v4506_v32  ;;  %v4168_v33 = vpop.permute.xlu1 %4167  ;;  %v4505_v29 = vld [vmem:[#allocation4 + $0xa0] sm:$0xff]  ;;  %v4514_v9 = vld [vmem:[#allocation4 + $0xe8] sm:$0xff] }
 0x65c   : > { %4194 = vst.msk [vmem:[#allocation4 + $0xf0] sm:$0xff] %vm1013_vm4, %v4168_v33  ;;  %v4499_v33 = vld [vmem:[#allocation4 + $0x70] sm:$0xff] }
 0x65d   : > { %4860 = vmatprep.mubr.bf16.mxu0 %v4551_v38  ;;  %9247 = vmatpush3.bf16.msra.mxu0 %v9530_v52 }
 0x65e   : > { %v4170_v26 = vpop.permute.xlu0 %4169  ;;  %v4510_v12 = vld [vmem:[#allocation4 + $0xc8] sm:$0xff] }
 0x65f   : > { %4195 = vst.msk [vmem:[#allocation4 + $0x118] sm:$0xff] %vm1013_vm4, %v4170_v26  ;;  %v4550_v31 = vpack.c.bf16 %v4510_v12, %v4505_v29  ;;  %v4260_v20 = vpop.permute.xlu1 %4259  ;;  %v4516_v13 = vld [vmem:[#allocation4 + $0xf8] sm:$0xff]  ;;  %v4549_v29 = vpack.c.bf16 %v4504_v61, %v4499_v33  ;;  %v4509_v12 = vld [vmem:[#allocation4 + $0xc0] sm:$0xff] }
 0x660   : > { %4284 = vst.msk [vmem:[#allocation4 + $0x148] sm:$0xff] %vm1013_vm4, %v4260_v20  ;;  %v4554_v20 = vpack.c.bf16 %v4514_v9, %v4509_v12 }
 0x661   : > { %4861 = vmatmul.mubr.bf16.gmra.mrb[92].mxu0 %v4550_v31 }
 0x662   : > { %v4262_v21 = vpop.permute.xlu0 %4261  ;;  %v4521_v17 = vld [vmem:[#allocation4 + $0x120] sm:$0xff] }
 0x663   : > { %4285 = vst.msk [vmem:[#allocation4 + $0x170] sm:$0xff] %vm1013_vm4, %v4262_v21  ;;  %v4556_v46 = vpack.c.bf16 %v4521_v17, %v4516_v13  ;;  %v4172_v49 = vpop.permute.xlu1 %4171  ;;  %v4515_v51 = vld [vmem:[#allocation4 + $0xf0] sm:$0xff] }
 0x664   : > { %4196 = vst.msk [vmem:[#allocation4 + $0x140] sm:$0xff] %vm1013_vm4, %v4172_v49 }
 0x665   : > { %4868 = vmatprep.mubr.bf16.mxu0 %v4556_v46 }
 0x666   : > { %v4174_v24 = vpop.permute.xlu0 %4173  ;;  %v4520_v58 = vld [vmem:[#allocation4 + $0x118] sm:$0xff] }
 0x667   : > { %4197 = vst.msk [vmem:[#allocation4 + $0x168] sm:$0xff] %vm1013_vm4, %v4174_v24  ;;  %v4555_v18 = vpack.c.bf16 %v4520_v58, %v4515_v51  ;;  %v4264_v40 = vpop.permute.xlu1 %4263  ;;  %v4526_v59 = vld [vmem:[#allocation4 + $0x148] sm:$0xff]  ;;  %v4524_v24 = vld [vmem:[#allocation4 + $0x138] sm:$0xff]  ;;  %v4529_v51 = vld [vmem:[#allocation4 + $0x160] sm:$0xff] }
 0x668   : > { %4286 = vst.msk [vmem:[#allocation4 + $0x198] sm:$0x1] %vm1024_vm5, %v4264_v40 }
 0x669   : > { %4869 = vmatmul.mubr.bf16.gmra.mrb[96].mxu0 %v4555_v18 }
 0x66a   : > { %v4176_v63 = vpop.permute.xlu0 %4175  ;;  %v4531_v41 = vld [vmem:[#allocation4 + $0x170] sm:$0xff] }
 0x66b   : > { %4198 = vst.msk [vmem:[#allocation4 + $0x190] sm:$0x1] %vm1024_vm5, %v4176_v63  ;;  %v4561_v22 = vpack.c.bf16 %v4531_v41, %v4526_v59  ;;  %v4420_v43 = vpop.permute.xlu1 %4419  ;;  %v4525_v54 = vld [vmem:[#allocation4 + $0x140] sm:$0xff]  ;;  %v4519_v63 = vld [vmem:[#allocation4 + $0x110] sm:$0xff] }
 0x66c   : > { %4452 = vst.msk [vmem:[#allocation4 + $0x18] sm:$0xff] %vm1013_vm4, %v4420_v43  ;;  %v4559_v41 = vpack.c.bf16 %v4524_v24, %v4519_v63  ;;  %v4564_v43 = vpack.c.bf16 %v11248_v30, %v4529_v51  ;;  %v4569_v30 = vpack.c.bf16 %v11260_v44, %v11260_v44  ;;  %v9536_v63 = vld [vmem:[%s12316_s3 + $0x480] sm:$0xff]  }
 0x66d   : > { %4876 = vmatprep.mubr.bf16.mxu0 %v4561_v22 }
 0x66e   : > { %v4422_v62 = vpop.permute.xlu0 %4421  ;;  %v4530_v0 = vld [vmem:[#allocation4 + $0x168] sm:$0xff] }
 0x66f   : > { %4453 = vst.msk [vmem:[#allocation4 + $0x40] sm:$0xff] %vm1013_vm4, %v4422_v62  ;;  %v4560_v1 = vpack.c.bf16 %v4530_v0, %v4525_v54  ;;  %v4332_v3 = vpop.permute.xlu1 %4331  ;;  %v4536_v11 = vld [vmem:[#allocation4 + $0x198] sm:$0x1] }
 0x670   : > { %4364 = vst.msk [vmem:[#allocation4 + $0x10] sm:$0xff] %vm1013_vm4, %v4332_v3  ;;  %v4566_v56 = vpack.c.bf16 %v4536_v11, %v4536_v11 }
 0x671   : > { %4877 = vmatmul.mubr.bf16.gmra.mrb[100].mxu0 %v4560_v1 }
 0x672   : > { %v4334_v6 = vpop.permute.xlu0 %4333  ;;  %4884 = vmatprep.mubr.bf16.mxu0 %v4566_v56  ;;  %v4535_v10 = vld [vmem:[#allocation4 + $0x190] sm:$0x1] }
 0x673   : > { %4365 = vst.msk [vmem:[#allocation4 + $0x38] sm:$0xff] %vm1013_vm4, %v4334_v6  ;;  %v4424_v47 = vpop.permute.xlu1 %4423  ;;  %v4488_v48 = vld [vmem:[#allocation4 + $0x18] sm:$0xff]  ;;  %v4565_v5 = vpack.c.bf16 %v4535_v10, %v4535_v10 }
 0x674   : > { %4454 = vst.msk [vmem:[#allocation4 + $0x68] sm:$0xff] %vm1013_vm4, %v4424_v47 }
 0x676   : > { %v4426_v50 = vpop.permute.xlu0 %4425  ;;  %v4493_v16 = vld [vmem:[#allocation4 + $0x40] sm:$0xff] }
 0x677   : > { %4455 = vst.msk [vmem:[#allocation4 + $0x90] sm:$0xff] %vm1013_vm4, %v4426_v50  ;;  %v4543_v2 = vpack.c.bf16 %v4493_v16, %v4488_v48  ;;  %v4336_v37 = vpop.permute.xlu1 %4335  ;;  %v4487_v19 = vld [vmem:[#allocation4 + $0x10] sm:$0xff] }
 0x678   : > { %4366 = vst.msk [vmem:[#allocation4 + $0x60] sm:$0xff] %vm1013_vm4, %v4336_v37 }
 0x679   : > { %4885 = vmatmul.mubr.bf16.gmra.mrb[104].mxu0 %v4565_v5  ;;  %4924 = vmatprep.mubr.bf16.mxu1 %v4543_v2 }
 0x67a   : > { %v4338_v23 = vpop.permute.xlu0 %4337  ;;  %9248 = vmatprep.mubr.msk.bf16.mxu0 %vm583_vm2, %v4544_v8  ;;  %v4492_v53 = vld [vmem:[#allocation4 + $0x38] sm:$0xff] }
 0x67b   : > { %4367 = vst.msk [vmem:[#allocation4 + $0x88] sm:$0xff] %vm1013_vm4, %v4338_v23  ;;  %v4542_v27 = vpack.c.bf16 %v4492_v53, %v4487_v19  ;;  %v4428_v52 = vpop.permute.xlu1 %4427  ;;  %v4498_v7 = vld [vmem:[#allocation4 + $0x68] sm:$0xff]  ;;  %v5443_v19 = vld [vmem:[#allocation2 + $0x68] sm:$0x1] }
 0x67c   : > { %4456 = vst.msk [vmem:[#allocation4 + $0xb8] sm:$0xff] %vm1013_vm4, %v4428_v52 }
 0x67d   : > { %4925 = vmatmul.mubr.bf16.vlgmr.msra.gmra.mrb[108].mxu1 %v4542_v27 }
 0x67e   : > { %v4430_v32 = vpop.permute.xlu0 %4429  ;;  %v4503_v38 = vld [vmem:[#allocation4 + $0x90] sm:$0xff] }
 0x67f   : > { %4457 = vst.msk [vmem:[#allocation4 + $0xe0] sm:$0xff] %vm1013_vm4, %v4430_v32  ;;  %v4548_v26 = vpack.c.bf16 %v4503_v38, %v4498_v7  ;;  %v4340_v31 = vpop.permute.xlu1 %4339  ;;  %v4497_v13 = vld [vmem:[#allocation4 + $0x60] sm:$0xff] }
 0x680   : > { %4368 = vst.msk [vmem:[#allocation4 + $0xb0] sm:$0xff] %vm1013_vm4, %v4340_v31 }
 0x681   : > { %4932 = vmatprep.mubr.bf16.mxu1 %v4548_v26  ;;  %9249 = vmatmul.mubr.msk.bf16.vlgmr.msra.gmra.mrb[108].mxu0 %vm583_vm2, %v4549_v29 }
 0x682   : > { %v4342_v21 = vpop.permute.xlu0 %4341  ;;  %9252 = vmatprep.mubr.msk.bf16.mxu0 %vm583_vm2, %v4554_v20  ;;  %v4502_v17 = vld [vmem:[#allocation4 + $0x88] sm:$0xff] }
 0x683   : > { %4369 = vst.msk [vmem:[#allocation4 + $0xd8] sm:$0xff] %vm1013_vm4, %v4342_v21  ;;  %v4547_v46 = vpack.c.bf16 %v4502_v17, %v4497_v13  ;;  %v4432_v49 = vpop.permute.xlu1 %4431  ;;  %v4508_v18 = vld [vmem:[#allocation4 + $0xb8] sm:$0xff] }
 0x684   : > { %4458 = vst.msk [vmem:[#allocation4 + $0x108] sm:$0xff] %vm1013_vm4, %v4432_v49 }
 0x685   : > { %4933 = vmatmul.mubr.bf16.gmra.mrb[112].mxu1 %v4547_v46 }
 0x686   : > { %v4434_v58 = vpop.permute.xlu0 %4433  ;;  %v4513_v40 = vld [vmem:[#allocation4 + $0xe0] sm:$0xff] }
 0x687   : > { %4459 = vst.msk [vmem:[#allocation4 + $0x130] sm:$0xff] %vm1013_vm4, %v4434_v58  ;;  %v4553_v59 = vpack.c.bf16 %v4513_v40, %v4508_v18  ;;  %v4344_v22 = vpop.permute.xlu1 %4343  ;;  %v4507_v54 = vld [vmem:[#allocation4 + $0xb0] sm:$0xff] }
 0x688   : > { %4370 = vst.msk [vmem:[#allocation4 + $0x100] sm:$0xff] %vm1013_vm4, %v4344_v22  ;;  %v9535_v40 = vld [vmem:[%s12316_s3 + $0x4c0] sm:$0xff]   ;;  %v9538_v22 = vld [vmem:[%s12316_s3 + $0x488] sm:$0xff]  }
 0x689   : > { %4940 = vmatprep.mubr.bf16.mxu1 %v4553_v59  ;;  %9253 = vmatmul.mubr.msk.bf16.gmra.mrb[112].mxu0 %vm583_vm2, %v4559_v41  ;;  %v9537_v41 = vld [vmem:[%s12316_s3 + $0x4c8] sm:$0xff]  }
 0x68a   : > { %v4346_v62 = vpop.permute.xlu0 %4345  ;;  %9256 = vmatprep.mubr.msk.bf16.mxu0 %vm583_vm2, %v4564_v43  ;;  %v4512_v0 = vld [vmem:[#allocation4 + $0xd8] sm:$0xff]  ;;  %8926 = vmatprep.subr.bf16.mxu1 %v9535_v40  ;;  %v9539_v43 = vld [vmem:[%s12316_s3 + $0x4d0] sm:$0xff]  }
 0x68b   : > { %4371 = vst.msk [vmem:[#allocation4 + $0x128] sm:$0xff] %vm1013_vm4, %v4346_v62  ;;  %v4552_v1 = vpack.c.bf16 %v4512_v0, %v4507_v54  ;;  %v4436_v3 = vpop.permute.xlu1 %4435  ;;  %v4518_v56 = vld [vmem:[#allocation4 + $0x108] sm:$0xff]  ;;  %8927 = vmatpush3.bf16.msra.mxu1 %v9536_v63 }
 0x68c   : > { %4460 = vst.msk [vmem:[#allocation4 + $0x158] sm:$0xff] %vm1013_vm4, %v4436_v3  ;;  %8928 = vmatprep.subr.bf16.mxu1 %v9537_v41 }
 0x68d   : > { %4941 = vmatmul.mubr.bf16.gmra.mrb[116].mxu1 %v4552_v1  ;;  %v5257_v1 = vld [vmem:[#allocation2 + $0x8] sm:$0xff] }
 0x68e   : > { %v4438_v11 = vpop.permute.xlu0 %4437  ;;  %v4523_v6 = vld [vmem:[#allocation4 + $0x130] sm:$0xff]  ;;  %5268 = vst.msk [vmem:[#allocation4 + $0x8] sm:$0xff] %vm583_vm2, %v5257_v1 }
 0x68f   : > { %4461 = vst.msk [vmem:[#allocation4 + $0x180] sm:$0xff] %vm1013_vm4, %v4438_v11  ;;  %v4558_v47 = vpack.c.bf16 %v4523_v6, %v4518_v56  ;;  %v4348_v10 = vpop.permute.xlu1 %4347  ;;  %v4517_v50 = vld [vmem:[#allocation4 + $0x100] sm:$0xff]  ;;  %8929 = vmatpush3.bf16.msra.mxu1 %v9538_v22  ;;  %v9541_v56 = vld [vmem:[%s12316_s3 + $0x4d8] sm:$0xff]  }
 0x690   : > { %4372 = vst.msk [vmem:[#allocation4 + $0x150] sm:$0xff] %vm1013_vm4, %v4348_v10  ;;  %8930 = vmatprep.subr.bf16.mxu1 %v9539_v43  ;;  %v9542_v6 = vld [vmem:[%s12316_s3 + $0x498] sm:$0xff]   ;;  %v9543_v10 = vld [vmem:[%s12316_s3 + $0x4e0] sm:$0xff]  }
 0x691   : > { %4948 = vmatprep.mubr.bf16.mxu1 %v4558_v47  ;;  %9257 = vmatmul.mubr.msk.bf16.gmra.mrb[116].mxu0 %vm583_vm2, %v4569_v30  ;;  %v9540_v30 = vld [vmem:[%s12316_s3 + $0x490] sm:$0xff]  }
 0x692   : > { %v4350_v25 = vpop.permute.xlu0 %4349  ;;  %v4522_v48 = vld [vmem:[#allocation4 + $0x128] sm:$0xff] }
 0x693   : > { %4373 = vst.msk [vmem:[#allocation4 + $0x178] sm:$0xff] %vm1013_vm4, %v4350_v25  ;;  %v4557_v16 = vpack.c.bf16 %v4522_v48, %v4517_v50  ;;  %v4440_v5 = vpop.permute.xlu1 %4439  ;;  %v4528_v44 = vld [vmem:[#allocation4 + $0x158] sm:$0xff]  ;;  %8931 = vmatpush3.bf16.msra.mxu1 %v9540_v30 }
 0x694   : > { %4462 = vst.msk [vmem:[#allocation4 + $0x1a8] sm:$0x1] %vm1024_vm5, %v4440_v5  ;;  %8932 = vmatprep.subr.bf16.mxu1 %v9541_v56  ;;  %v9544_v5 = vld [vmem:[%s12316_s3 + $0x4a0] sm:$0xff]  }
 0x695   : > { %4949 = vmatmul.mubr.bf16.gmra.mrb[120].mxu1 %v4557_v16  ;;  %v5169_v30 = vld [vmem:[#allocation2 + $0x6] sm:$0xff] }
 0x696   : > { %v4533_v2 = vld [vmem:[#allocation4 + $0x180] sm:$0xff]  ;;  %v4352_v28 = vpop.permute.xlu0 %4351  ;;  %5180 = vst.msk [vmem:[#allocation4] sm:$0xff] %vm583_vm2, %v5169_v30 }
 0x697   : > { %v4563_v37 = vpack.c.bf16 %v4533_v2, %v4528_v44  ;;  %4374 = vst.msk [vmem:[#allocation4 + $0x1a0] sm:$0x1] %vm1024_vm5, %v4352_v28  ;;  %v4527_v8 = vld [vmem:[#allocation4 + $0x150] sm:$0xff]  ;;  %8933 = vmatpush3.bf16.msra.mxu1 %v9542_v6 }
 0x698   : > { %8934 = vmatprep.subr.bf16.mxu1 %v9543_v10 }
 0x699   : > { %4956 = vmatprep.mubr.bf16.mxu1 %v4563_v37 }
 0x69a   : > { %v4532_v23 = vld [vmem:[#allocation4 + $0x178] sm:$0xff] }
 0x69b   : > { %v4562_v53 = vpack.c.bf16 %v4532_v23, %v4527_v8  ;;  %v4538_v27 = vld [vmem:[#allocation4 + $0x1a8] sm:$0x1]  ;;  %8935 = vmatpush3.bf16.msra.mxu1 %v9544_v5  ;;  %v11383_v23 = vld [vmem:[%s12317_s4 + $0x3] ss:$0 sm:$0xff] }
 0x69c   : > { %v4568_v52 = vpack.c.bf16 %v4538_v27, %v4538_v27  ;;  %5454 = vst.msk [vmem:[#allocation4 + $0x1a8] sm:$0x1] %vm862_vm3, %v5443_v19 }
 0x69d   : > { %4957 = vmatmul.mubr.bf16.gmra.mrb[124].mxu1 %v4562_v53 }
 0x69e   : > { %v4537_v61 = vld [vmem:[#allocation4 + $0x1a0] sm:$0x1]  ;;  %4964 = vmatprep.mubr.bf16.mxu1 %v4568_v52 }
 0x69f   : > { %v4567_v9 = vpack.c.bf16 %v4537_v61, %v4537_v61 }
 0x6a5   : > { %4965 = vmatmul.mubr.bf16.gmra.mrb[128].mxu1 %v4567_v9 }
 0x723   : > { %v8828_v32 = vpop.f32.mrb[84].mxu0 }
 0x724   : > { %v8829_v7 = vpop.f32.mrb[85].mxu0 }
 0x725   : > { %v8830_v38 = vadd.f32 %v8829_v7, %v8828_v32  ;;  %v8831_v33 = vpop.f32.mrb[86].mxu0 }
 0x726   : > { %v8832_v26 = vpop.f32.mrb[87].mxu0 }
 0x727   : > { %v8833_v29 = vadd.f32 %v8832_v26, %v8831_v33  ;;  %v4847_v52 = vadd.f32 %v8830_v38, %v11383_v23 }
 0x729   : > { %v4850_v7 = vadd.f32 %v8833_v29, %v11383_v23 }
 0x72b   : > { %v8834_v12 = vpop.f32.mrb[88].mxu0 }
 0x72c   : > { %v8835_v31 = vpop.f32.mrb[89].mxu0 }
 0x72d   : > { %v11331_v20 = vadd.f32 %v8835_v31, %v8834_v12  ;;  %v8837_v21 = vpop.f32.mrb[90].mxu0 }
 0x72e   : > { %v8838_v13 = vpop.f32.mrb[91].mxu0 }
 0x72f   : > { %v11333_v17 = vadd.f32 %v8838_v13, %v8837_v21  ;;  %v4855_v38 = vadd.f32 %v11331_v20, %v11383_v23 }
 0x734   : > { %v8840_v46 = vpop.f32.mrb[92].mxu0 }
 0x735   : > { %v8841_v49 = vpop.f32.mrb[93].mxu0 }
 0x736   : > { %v11335_v24 = vadd.f32 %v8841_v49, %v8840_v46  ;;  %v8843_v51 = vpop.f32.mrb[94].mxu0  ;;  %v4027_v49 = vld [vmem:[#allocation2 + $0x10] sm:$0xff] }
 0x737   : > { %v8844_v58 = vpop.f32.mrb[95].mxu0 }
 0x738   : > { %v11337_v18 = vadd.f32 %v8844_v58, %v8843_v51 }
 0x73c   : > { %v8846_v59 = vpop.f32.mrb[96].mxu0 }
 0x73d   : > { %v8847_v62 = vpop.f32.mrb[97].mxu0 }
 0x73e   : > { %v11354_v54 = vadd.f32 %v8847_v62, %v8846_v59  ;;  %v8849_v0 = vpop.f32.mrb[98].mxu0  ;;  %v4028_v59 = vld [vmem:[#allocation2 + $0x18] sm:$0xff] }
 0x73f   : > { %v8850_v3 = vpop.f32.mrb[99].mxu0 }
 0x740   : > { %v11360_v11 = vadd.f32 %v8850_v3, %v8849_v0  ;;  %v4858_v0 = vadd.f32 %v11333_v17, %v11383_v23  ;;  %v9545_v3 = vld [vmem:[%s12316_s3 + $0x4e8] sm:$0xff]  }
 0x741   : > { %8936 = vmatprep.subr.bf16.mxu1 %v9545_v3  ;;  %v9546_v17 = vld [vmem:[%s12316_s3 + $0x4a8] sm:$0xff]  }
 0x742   : > { %8937 = vmatpush3.bf16.msra.mxu1 %v9546_v17  ;;  %v5191_v3 = vld [vmem:[#allocation2 + $0x7] sm:$0xff]  ;;  %v4032_v17 = vld [vmem:[#allocation2 + $0x38] sm:$0xff] }
 0x744   : > { %v8852_v47 = vpop.f32.mrb[100].mxu0 }
 0x745   : > { %v8853_v25 = vpop.f32.mrb[101].mxu0 }
 0x746   : > { %v11371_v50 = vadd.f32 %v8853_v25, %v8852_v47  ;;  %v8855_v48 = vpop.f32.mrb[102].mxu0 }
 0x747   : > { %v8856_v16 = vpop.f32.mrb[103].mxu0 }
 0x748   : > { %v11376_v44 = vadd.f32 %v8856_v16, %v8855_v48 }
 0x74c   : > { %v8858_v2 = vpop.f32.mrb[104].mxu0 }
 0x74d   : > { %v8859_v28 = vpop.f32.mrb[105].mxu0 }
 0x74e   : > { %v11378_v37 = vadd.f32 %v8859_v28, %v8858_v2  ;;  %v8861_v8 = vpop.f32.mrb[106].mxu0  ;;  %v4029_v28 = vld [vmem:[#allocation2 + $0x20] sm:$0xff] }
 0x74f   : > { %v8862_v19 = vpop.f32.mrb[107].mxu0 }
 0x750   : > { %v8880_v53 = vpop.f32.mrb[108].mxu1 }
 0x751   : > { %v8881_v27 = vpop.f32.mrb[109].mxu1 }
 0x752   : > { %v8882_v61 = vadd.f32 %v8881_v27, %v8880_v53  ;;  %v8883_v9 = vpop.f32.mrb[110].mxu1 }
 0x753   : > { %v8884_v32 = vpop.f32.mrb[111].mxu1 }
 0x754   : > { %v8885_v33 = vadd.f32 %v8884_v32, %v8883_v9  ;;  %v9250_v26 = vpop.f32.mrb[108].mxu0  ;;  %v4927_v12 = vadd.f32 %v8882_v61, %v4847_v52  ;;  %v4030_v52 = vld [vmem:[#allocation2 + $0x28] sm:$0xff]  ;;  %v9547_v9 = vld [vmem:[%s12316_s3 + $0x4f0] sm:$0xff]  }
 0x755   : > { %v5006_v31 = vpop.f32.mrb[109].mxu0  ;;  %v9548_v32 = vld [vmem:[%s12316_s3 + $0x4b0] sm:$0xff]   ;;  %8938 = vmatprep.subr.bf16.mxu1 %v9547_v9 }
 0x756   : > { %v5007_v21 = vadd.f32 %v5006_v31, %v4927_v12  ;;  %v9251_v13 = vpop.f32.mrb[110].mxu0  ;;  %v4930_v46 = vadd.f32 %v8885_v33, %v4850_v7  ;;  %v4863_v7 = vadd.f32 %v11335_v24, %v11383_v23  ;;  %8939 = vmatpush3.bf16.msra.mxu1 %v9548_v32 }
 0x757   : > { %v5009_v51 = vpop.f32.mrb[111].mxu0 }
 0x758   : > { %v5052_v58 = vadd.f32 %v5007_v21, %v4027_v49  ;;  %v5010_v40 = vadd.f32 %v5009_v51, %v4930_v46  ;;  %v8886_v63 = vpop.f32.mrb[112].mxu1  ;;  %v4866_v21 = vadd.f32 %v11337_v18, %v11383_v23  ;;  %v4031_v18 = vld [vmem:[#allocation2 + $0x30] sm:$0xff] }
 0x759   : > { %v8887_v41 = vpop.f32.mrb[113].mxu1 }
 0x75a   : > { %v5063_v22 = vmax.f32 %v5052_v58, 0.0  ;;  %v5053_v43 = vadd.f32 %v5010_v40, %v4028_v59  ;;  %v8888_v29 = vadd.f32 %v8887_v41, %v8886_v63  ;;  %v8889_v62 = vpop.f32.mrb[114].mxu1 }
 0x75b   : > { %v8890_v1 = vpop.f32.mrb[115].mxu1 }
 0x75c   : > { %v5074_v56 = vmul.f32 %v5063_v22, %v9948_v34  ;;  %v5064_v6 = vmax.f32 %v5053_v43, 0.0  ;;  %v4935_v47 = vadd.f32 %v8888_v29, %v4855_v38  ;;  %v8891_v10 = vadd.f32 %v8890_v1, %v8889_v62  ;;  %v11395_v25 = vpop.f32.mrb[112].mxu0  ;;  %v9549_v62 = vld [vmem:[%s12316_s3 + $0x4f8] sm:$0xff]  }
 0x75d   : > { %v5022_v20 = vpop.f32.mrb[113].mxu0  ;;  %8940 = vmatprep.subr.bf16.mxu1 %v9549_v62  ;;  %v4882_v62 = vadd.f32 %v11376_v44, %v11383_v23 }
 0x75e   : > { %5085 = vst.msk [vmem:[#allocation2 + $0x10] sm:$0xff] %vm583_vm2, %v5074_v56  ;;  %v5075_v48 = vmul.f32 %v5064_v6, %v9952_v36  ;;  %v5015_v16 = vadd.f32 %v9250_v26, %v4935_v47  ;;  %v4938_v5 = vadd.f32 %v8891_v10, %v4858_v0  ;;  %v11403_v2 = vpop.f32.mrb[114].mxu0  ;;  %v9550_v0 = vld [vmem:[%s12316_s3 + $0x4b8] sm:$0xff]  }
 0x75f   : > { %v5025_v8 = vpop.f32.mrb[115].mxu0  ;;  %8941 = vmatpush3.bf16.msra.mxu1 %v9550_v0 }
 0x760   : > { %5086 = vst.msk [vmem:[#allocation2 + $0x18] sm:$0xff] %vm583_vm2, %v5075_v48  ;;  %v5054_v19 = vadd.f32 %v5015_v16, %v4029_v28  ;;  %v5018_v53 = vadd.f32 %v9251_v13, %v4938_v5  ;;  %v8892_v27 = vpop.f32.mrb[116].mxu1  ;;  %v4871_v16 = vadd.f32 %v11354_v54, %v11383_v23 }
 0x761   : > { %v8893_v61 = vpop.f32.mrb[117].mxu1 }
 0x762   : > { %v5065_v33 = vmax.f32 %v5054_v19, 0.0  ;;  %v5055_v26 = vadd.f32 %v5018_v53, %v4030_v52  ;;  %v8894_v12 = vadd.f32 %v8893_v61, %v8892_v27  ;;  %v8895_v31 = vpop.f32.mrb[118].mxu1  ;;  %v4874_v53 = vadd.f32 %v11360_v11, %v11383_v23 }
 0x763   : > { %v8896_v13 = vpop.f32.mrb[119].mxu1 }
 0x764   : > { %v5076_v46 = vmul.f32 %v5065_v33, %v9950_v35  ;;  %v5066_v49 = vmax.f32 %v5055_v26, 0.0  ;;  %v4943_v51 = vadd.f32 %v8894_v12, %v4863_v7  ;;  %v8897_v58 = vadd.f32 %v8896_v13, %v8895_v31  ;;  %v11417_v40 = vpop.f32.mrb[116].mxu0  ;;  %v11459_v31 = vld [vmem:[%s12316_s3 + $0x580] sm:$0xff]  }
 0x765   : > { %v5279_v63 = vld [vmem:[#allocation2 + $0xf] sm:$0xff]  ;;  %v11419_v59 = vpop.f32.mrb[117].mxu0  ;;  %v4033_v13 = vld [vmem:[#allocation2 + $0x40] sm:$0xff]  ;;  %9260 = vmatprep.subr.bf16.mxu1 %v11459_v31 }
 0x766   : > { %v5258_v24 = vld [vmem:[#allocation2 + $0x10] sm:$0xff]  ;;  %5087 = vst.msk [vmem:[#allocation2 + $0x20] sm:$0xff] %vm583_vm2, %v5076_v46  ;;  %v5077_v38 = vmul.f32 %v5066_v49, %v9959_v39  ;;  %v5023_v22 = vadd.f32 %v5022_v20, %v4943_v51  ;;  %v4946_v43 = vadd.f32 %v8897_v58, %v4866_v21  ;;  %5301 = vrot.lane.b32.xlu1 %v5279_v63, %s9683_s24  ;;  %v9259_v29 = vpop.f32.mrb[118].mxu0 }
 0x767   : > { %v5170_v41 = vld [vmem:[#allocation2 + $0xe] sm:$0xff]  ;;  %5269 = vst.msk [vmem:[#allocation4 + $0x30] sm:$0xff] %vm583_vm2, %v5258_v24  ;;  %5356 = vst.msk [vmem:[#allocation4 + $0x10] sm:$0xff] %vm583_vm2, %v5258_v24  ;;  %v11433_v1 = vld [vmem:[#allocation2 + $0x17] sm:$0xff]  ;;  %v11435_v30 = vpop.f32.mrb[119].mxu0 }
 0x768   : > { %5181 = vst.msk [vmem:[#allocation4 + $0x28] sm:$0xff] %vm583_vm2, %v5170_v41  ;;  %v5259_v56 = vld [vmem:[#allocation2 + $0x18] sm:$0xff]  ;;  %5088 = vst.msk [vmem:[#allocation2 + $0x28] sm:$0xff] %vm583_vm2, %v5077_v38  ;;  %v5056_v6 = vadd.f32 %v5023_v22, %v4031_v18  ;;  %v5026_v47 = vadd.f32 %v5025_v8, %v4946_v43  ;;  %v8898_v10 = vpop.f32.mrb[120].mxu1  ;;  %5303 = vrot.lane.b32.xlu0 %v11433_v1, %s9683_s24  ;;  %v4034_v41 = vld [vmem:[#allocation2 + $0x48] sm:$0xff] }
 0x769   : > { %5270 = vst.msk [vmem:[#allocation4 + $0x58] sm:$0xff] %vm583_vm2, %v5259_v56  ;;  %v5171_v20 = vld [vmem:[#allocation2 + $0x16] sm:$0xff]  ;;  %5444 = vst.msk [vmem:[#allocation4 + $0x18] sm:$0xff] %vm583_vm2, %v5259_v56  ;;  %v8899_v48 = vpop.f32.mrb[121].mxu1 }
 0x76a   : > { %5357 = vst.msk [vmem:[#allocation4 + $0x38] sm:$0xff] %vm583_vm2, %v5259_v56  ;;  %5182 = vst.msk [vmem:[#allocation4 + $0x50] sm:$0xff] %vm583_vm2, %v5171_v20  ;;  %v5067_v5 = vmax.f32 %v5056_v6, 0.0  ;;  %v5057_v28 = vadd.f32 %v5026_v47, %v4032_v17  ;;  %v8900_v8 = vadd.f32 %v8899_v48, %v8898_v10  ;;  %v8901_v19 = vpop.f32.mrb[122].mxu1  ;;  %5213 = vrot.lane.b32.xlu1 %v5191_v3, %s9683_s24  ;;  %v9552_v48 = vld [vmem:[%s12316_s3 + $0x540] sm:$0xff]  }
 0x76b   : > { %v8902_v27 = vpop.f32.mrb[123].mxu1  ;;  %8978 = vmatprep.subr.bf16.mxu0 %v9552_v48 }
 0x76c   : > { %v5078_v52 = vmul.f32 %v5067_v5, %v9962_v42  ;;  %v5068_v61 = vmax.f32 %v5057_v28, 0.0  ;;  %v4951_v9 = vadd.f32 %v8900_v8, %v4871_v16  ;;  %v8903_v32 = vadd.f32 %v8902_v27, %v8901_v19  ;;  %5215 = vrot.lane.b32.xlu0 %v5279_v63, %s9683_s24  ;;  %v9553_v16 = vld [vmem:[%s12316_s3 + $0x500] sm:$0xff]   ;;  %v4035_v5 = vld [vmem:[#allocation2 + $0x50] sm:$0xff]  ;;  %v4036_v19 = vld [vmem:[#allocation2 + $0x58] sm:$0xff] }
 0x76d   : > { %v5281_v7 = vld [vmem:[#allocation2 + $0x1f] sm:$0xff]  ;;  %8979 = vmatpush3.bf16.msra.mxu0 %v9553_v16  ;;  %v9565_v16 = vld [vmem:[%s12316_s3 + $0x528] sm:$0xff]  }
 0x76e   : > { %v5260_v33 = vld [vmem:[#allocation2 + $0x20] sm:$0xff]  ;;  %5089 = vst.msk [vmem:[#allocation2 + $0x30] sm:$0xff] %vm583_vm2, %v5078_v52  ;;  %v5079_v54 = vmul.f32 %v5068_v61, %v9977_v57  ;;  %v5031_v26 = vadd.f32 %v11395_v25, %v4951_v9  ;;  %v4954_v12 = vadd.f32 %v8903_v32, %v4874_v53  ;;  %5305 = vrot.lane.b32.xlu1 %v5281_v7, %s9683_s24  ;;  %v9555_v9 = vld [vmem:[%s12316_s3 + $0x508] sm:$0xff]  }
 0x76f   : > { %5271 = vst.msk [vmem:[#allocation4 + $0x80] sm:$0xff] %vm583_vm2, %v5260_v33  ;;  %v5172_v11 = vld [vmem:[#allocation2 + $0x1e] sm:$0xff]  ;;  %5445 = vst.msk [vmem:[#allocation4 + $0x40] sm:$0xff] %vm583_vm2, %v5260_v33  ;;  %v11463_v46 = vld [vmem:[#allocation2 + $0x27] sm:$0xff] }
 0x770   : > { %5358 = vst.msk [vmem:[#allocation4 + $0x60] sm:$0xff] %vm583_vm2, %v5260_v33  ;;  %v5521_v21 = vld [vmem:[#allocation2 + $0x1a] sm:$0xff]  ;;  %5183 = vst.msk [vmem:[#allocation4 + $0x78] sm:$0xff] %vm583_vm2, %v5172_v11  ;;  %v5261_v25 = vld [vmem:[#allocation2 + $0x28] sm:$0xff]  ;;  %v5058_v49 = vadd.f32 %v5031_v26, %v4033_v13  ;;  %v5034_v51 = vadd.f32 %v11403_v2, %v4954_v12  ;;  %v8904_v58 = vpop.f32.mrb[124].mxu1  ;;  %5307 = vrot.lane.b32.xlu0 %v11463_v46, %s9683_s24  ;;  %v4879_v2 = vadd.f32 %v11371_v50, %v11383_v23 }
 0x771   : > { %5532 = vst.msk [vmem:[#allocation4 + $0x20] sm:$0xff] %vm583_vm2, %v5521_v21  ;;  %5090 = vst.msk [vmem:[#allocation2 + $0x38] sm:$0xff] %vm583_vm2, %v5079_v54  ;;  %v5173_v63 = vld [vmem:[#allocation2 + $0x26] sm:$0xff]  ;;  %v8905_v38 = vpop.f32.mrb[125].mxu1 }
 0x772   : > { %5272 = vst.msk [vmem:[#allocation4 + $0xa8] sm:$0xff] %vm583_vm2, %v5261_v25  ;;  %5446 = vst.msk [vmem:[#allocation4 + $0x68] sm:$0xff] %vm583_vm2, %v5261_v25  ;;  %v5522_v24 = vld [vmem:[#allocation2 + $0x22] sm:$0xff]  ;;  %v5069_v18 = vmax.f32 %v5058_v49, 0.0  ;;  %v5059_v22 = vadd.f32 %v5034_v51, %v4034_v41  ;;  %v8906_v43 = vadd.f32 %v8905_v38, %v8904_v58  ;;  %v8907_v29 = vpop.f32.mrb[126].mxu1  ;;  %5217 = vrot.lane.b32.xlu1 %v11433_v1, %s9683_s24 }
 0x773   : > { %5359 = vst.msk [vmem:[#allocation4 + $0x88] sm:$0xff] %vm583_vm2, %v5261_v25  ;;  %5184 = vst.msk [vmem:[#allocation4 + $0xa0] sm:$0xff] %vm583_vm2, %v5173_v63  ;;  %v8908_v0 = vpop.f32.mrb[127].mxu1  ;;  %v9557_v63 = vld [vmem:[%s12316_s3 + $0x550] sm:$0xff]   ;;  %v4037_v41 = vld [vmem:[#allocation2 + $0x60] sm:$0x1] }
 0x774   : > { %5533 = vst.msk [vmem:[#allocation4 + $0x48] sm:$0xff] %vm583_vm2, %v5522_v24  ;;  %v5080_v3 = vmul.f32 %v5069_v18, %v9982_v60  ;;  %v5070_v56 = vmax.f32 %v5059_v22, 0.0  ;;  %v4959_v6 = vadd.f32 %v8906_v43, %v4879_v2  ;;  %v8909_v47 = vadd.f32 %v8908_v0, %v8907_v29  ;;  %5219 = vrot.lane.b32.xlu0 %v5281_v7, %s9683_s24  ;;  %v9558_v24 = vld [vmem:[%s12316_s3 + $0x510] sm:$0xff]   ;;  %v9559_v29 = vld [vmem:[%s12316_s3 + $0x558] sm:$0xff]  }
 0x775   : > { %v5283_v10 = vld [vmem:[#allocation2 + $0x2f] sm:$0xff]  ;;  %v4887_v7 = vadd.f32 %v11378_v37, %v11383_v23 }
 0x776   : > { %v5262_v50 = vld [vmem:[#allocation2 + $0x30] sm:$0xff]  ;;  %5091 = vst.msk [vmem:[#allocation2 + $0x40] sm:$0xff] %vm583_vm2, %v5080_v3  ;;  %v5081_v20 = vmul.f32 %v5070_v56, %v10005_v15  ;;  %v5039_v17 = vadd.f32 %v11419_v59, %v4959_v6  ;;  %v4962_v1 = vadd.f32 %v8909_v47, %v4882_v62  ;;  %5309 = vrot.lane.b32.xlu1 %v5283_v10, %s9683_s24  ;;  %v9560_v62 = vld [vmem:[%s12316_s3 + $0x518] sm:$0xff]  }
 0x777   : > { %5273 = vst.msk [vmem:[#allocation4 + $0xd0] sm:$0xff] %vm583_vm2, %v5262_v50  ;;  %v5174_v44 = vld [vmem:[#allocation2 + $0x2e] sm:$0xff]  ;;  %5447 = vst.msk [vmem:[#allocation4 + $0x90] sm:$0xff] %vm583_vm2, %v5262_v50 }
 0x778   : > { %5360 = vst.msk [vmem:[#allocation4 + $0xb0] sm:$0xff] %vm583_vm2, %v5262_v50  ;;  %v11498_v59 = vld [vmem:[#allocation2 + $0x37] sm:$0xff]  ;;  %5185 = vst.msk [vmem:[#allocation4 + $0xc8] sm:$0xff] %vm583_vm2, %v5174_v44  ;;  %v5060_v8 = vadd.f32 %v5039_v17, %v4035_v5  ;;  %v5042_v53 = vadd.f32 %v11435_v30, %v4962_v1  ;;  %v8910_v27 = vpop.f32.mrb[128].mxu1  ;;  %v9554_v30 = vld [vmem:[%s12316_s3 + $0x548] sm:$0xff]  }
 0x779   : > { %v5263_v28 = vld [vmem:[#allocation2 + $0x38] sm:$0xff]  ;;  %5092 = vst.msk [vmem:[#allocation2 + $0x48] sm:$0xff] %vm583_vm2, %v5081_v20  ;;  %5311 = vrot.lane.b32.xlu0 %v11498_v59, %s9683_s24  ;;  %v8911_v61 = vpop.f32.mrb[129].mxu1  ;;  %v5523_v32 = vld [vmem:[#allocation2 + $0x2a] sm:$0xff]  ;;  %8980 = vmatprep.subr.bf16.mxu0 %v9554_v30  ;;  %v9561_v17 = vld [vmem:[%s12316_s3 + $0x560] sm:$0xff]  }
 0x77a   : > { %5274 = vst.msk [vmem:[#allocation4 + $0xf8] sm:$0xff] %vm583_vm2, %v5263_v28  ;;  %v5175_v52 = vld [vmem:[#allocation2 + $0x36] sm:$0xff]  ;;  %5448 = vst.msk [vmem:[#allocation4 + $0xb8] sm:$0xff] %vm583_vm2, %v5263_v28  ;;  %v5071_v33 = vmax.f32 %v5060_v8, 0.0  ;;  %v5061_v54 = vadd.f32 %v5042_v53, %v4036_v19  ;;  %v8912_v26 = vadd.f32 %v8911_v61, %v8910_v27  ;;  %5221 = vrot.lane.b32.xlu1 %v11463_v46, %s9683_s24  ;;  %v8913_v12 = vpop.f32.mrb[130].mxu1  ;;  %8981 = vmatpush3.bf16.msra.mxu0 %v9555_v9  ;;  %v9562_v1 = vld [vmem:[%s12316_s3 + $0x520] sm:$0xff]  }
 0x77b   : > { %5361 = vst.msk [vmem:[#allocation4 + $0xd8] sm:$0xff] %vm583_vm2, %v5263_v28  ;;  %5186 = vst.msk [vmem:[#allocation4 + $0xf0] sm:$0xff] %vm583_vm2, %v5175_v52  ;;  %v5524_v11 = vld [vmem:[#allocation2 + $0x32] sm:$0xff]  ;;  %v8914_v21 = vpop.f32.mrb[131].mxu1  ;;  %8982 = vmatprep.subr.bf16.mxu0 %v9557_v63  ;;  %v9564_v44 = vld [vmem:[%s12316_s3 + $0x568] sm:$0xff]  }
 0x77c   : > { %5534 = vst.msk [vmem:[#allocation4 + $0x70] sm:$0xff] %vm583_vm2, %v5523_v32  ;;  %5535 = vst.msk [vmem:[#allocation4 + $0x98] sm:$0xff] %vm583_vm2, %v5524_v11  ;;  %v5082_v13 = vmul.f32 %v5071_v33, %v10003_v14  ;;  %v5072_v25 = vmax.f32 %v5061_v54, 0.0  ;;  %v4967_v49 = vadd.f32 %v8912_v26, %v4887_v7  ;;  %v9566_v8 = vld [vmem:[%s12316_s3 + $0x570] sm:$0xff]   ;;  %v5455_v30 = vld [vmem:[#allocation2 + $0x19] sm:$0xff] }
 0x77d   : > { %5223 = vrot.lane.b32.xlu0 %v5283_v10, %s9683_s24  ;;  %v5285_v37 = vld [vmem:[#allocation2 + $0x3f] sm:$0xff]  ;;  %v9567_v61 = vld [vmem:[%s12316_s3 + $0x530] sm:$0xff]  }
 0x77e   : > { %v5264_v23 = vld [vmem:[#allocation2 + $0x40] sm:$0xff]  ;;  %5093 = vst.msk [vmem:[#allocation2 + $0x50] sm:$0xff] %vm583_vm2, %v5082_v13  ;;  %v5083_v46 = vmul.f32 %v5072_v25, %v10054_v55  ;;  %v5047_v51 = vadd.f32 %v11417_v40, %v4967_v49  ;;  %5313 = vrot.lane.b32.xlu1 %v5285_v37, %s9683_s24  ;;  %8983 = vmatpush3.bf16.msra.mxu0 %v9558_v24  ;;  %v9568_v9 = vld [vmem:[%s12316_s3 + $0x578] sm:$0xff]   ;;  %v5457_v54 = vld [vmem:[#allocation2 + $0x29] sm:$0xff] }
 0x77f   : > { %5275 = vst.msk [vmem:[#allocation4 + $0x120] sm:$0xff] %vm583_vm2, %v5264_v23  ;;  %v5176_v58 = vld [vmem:[#allocation2 + $0x3e] sm:$0xff]  ;;  %5449 = vst.msk [vmem:[#allocation4 + $0xe0] sm:$0xff] %vm583_vm2, %v5264_v23  ;;  %8984 = vmatprep.subr.bf16.mxu0 %v9559_v29  ;;  %v5367_v33 = vld [vmem:[#allocation2 + $0x11] sm:$0xff] }
 0x780   : > { %5362 = vst.msk [vmem:[#allocation4 + $0x100] sm:$0xff] %vm583_vm2, %v5264_v23  ;;  %v5286_v38 = vld [vmem:[#allocation2 + $0x47] sm:$0xff]  ;;  %5187 = vst.msk [vmem:[#allocation4 + $0x118] sm:$0xff] %vm583_vm2, %v5176_v58  ;;  %v5062_v2 = vadd.f32 %v5047_v51, %v4037_v41  ;;  %v5525_v22 = vld [vmem:[#allocation2 + $0x3a] sm:$0xff] }
 0x781   : > { %v5265_v40 = vld [vmem:[#allocation2 + $0x48] sm:$0xff]  ;;  %5094 = vst.msk [vmem:[#allocation2 + $0x58] sm:$0xff] %vm583_vm2, %v5083_v46  ;;  %5315 = vrot.lane.b32.xlu0 %v5286_v38, %s9683_s24  ;;  %5536 = vst.msk [vmem:[#allocation4 + $0xc0] sm:$0xff] %vm583_vm2, %v5525_v22  ;;  %v9569_v7 = vld [vmem:[%s12316_s3 + $0x538] sm:$0xff]  }
 0x782   : > { %5276 = vst.msk [vmem:[#allocation4 + $0x148] sm:$0xff] %vm583_vm2, %v5265_v40  ;;  %v5177_v18 = vld [vmem:[#allocation2 + $0x46] sm:$0xff]  ;;  %5450 = vst.msk [vmem:[#allocation4 + $0x108] sm:$0xff] %vm583_vm2, %v5265_v40  ;;  %v5073_v0 = vmax.f32 %v5062_v2, 0.0  ;;  %5225 = vrot.lane.b32.xlu1 %v11498_v59, %s9683_s24  ;;  %8985 = vmatpush3.bf16.msra.mxu0 %v9560_v62  ;;  %v5458_v26 = vld [vmem:[#allocation2 + $0x31] sm:$0xff] }
 0x783   : > { %v5526_v43 = vld [vmem:[#allocation2 + $0x42] sm:$0xff]  ;;  %5363 = vst.msk [vmem:[#allocation4 + $0x128] sm:$0xff] %vm583_vm2, %v5265_v40  ;;  %5188 = vst.msk [vmem:[#allocation4 + $0x140] sm:$0xff] %vm583_vm2, %v5177_v18  ;;  %8986 = vmatprep.subr.bf16.mxu0 %v9561_v17  ;;  %v5459_v12 = vld [vmem:[#allocation2 + $0x39] sm:$0xff] }
 0x784   : > { %5537 = vst.msk [vmem:[#allocation4 + $0xe8] sm:$0xff] %vm583_vm2, %v5526_v43  ;;  %v5084_v3 = vmul.f32 %v5073_v0, %v10035_v45  ;;  %v5456_v32 = vld [vmem:[#allocation2 + $0x21] sm:$0xff]  ;;  %v11608_v21 = vld [vmem:[#allocation4 + $0x188] sm:$0xff]  ;;  %v11620_v46 = vld [vmem:[#allocation4 + $0x1b0] sm:$0x1] }
 0x785   : > { %5227 = vrot.lane.b32.xlu0 %v5285_v37, %s9683_s24  ;;  %v5287_v56 = vld [vmem:[#allocation2 + $0x4f] sm:$0xff]  ;;  %v5201_v52 = vld [vmem:[#allocation2 + $0x57] sm:$0x1]  ;;  %v5460_v11 = vld [vmem:[#allocation2 + $0x41] sm:$0xff] }
 0x786   : > { %5095 = vst.msk [vmem:[#allocation2 + $0x60] sm:$0x1] %vm862_vm3, %v5084_v3  ;;  %5317 = vrot.lane.b32.xlu1 %v5287_v56, %s9683_s24  ;;  %v5266_v6 = vld [vmem:[#allocation2 + $0x50] sm:$0xff]  ;;  %8987 = vmatpush3.bf16.msra.mxu0 %v9562_v1  ;;  %v6588_v13 = vld [vmem:[#allocation3 + $0x62] sm:$0xff]  ;;  %v6589_v51 = vld [vmem:[#allocation3 + $0x6a] sm:$0x1] }
 0x787   : > { %v5178_v47 = vld [vmem:[#allocation2 + $0x4e] sm:$0xff]  ;;  %v5179_v10 = vld [vmem:[#allocation2 + $0x56] sm:$0x1]  ;;  %5277 = vst.msk [vmem:[#allocation4 + $0x170] sm:$0xff] %vm583_vm2, %v5266_v6  ;;  %5451 = vst.msk [vmem:[#allocation4 + $0x130] sm:$0xff] %vm583_vm2, %v5266_v6  ;;  %8988 = vmatprep.subr.bf16.mxu0 %v9564_v44 }
 0x788   : > { %v5288_v50 = vld [vmem:[#allocation2 + $0x57] sm:$0xff]  ;;  %5189 = vst.msk [vmem:[#allocation4 + $0x168] sm:$0xff] %vm583_vm2, %v5178_v47  ;;  %5364 = vst.msk [vmem:[#allocation4 + $0x150] sm:$0xff] %vm583_vm2, %v5266_v6  ;;  %v5527_v48 = vld [vmem:[#allocation2 + $0x4a] sm:$0xff] }
 0x789   : > { %5190 = vst.msk [vmem:[#allocation4 + $0x190] sm:$0x1] %vm862_vm3, %v5179_v10  ;;  %5319 = vrot.lane.b32.xlu0 %v5288_v50, %s9683_s24  ;;  %v5267_v20 = vld [vmem:[#allocation2 + $0x58] sm:$0x1]  ;;  %v5289_v28 = vld [vmem:[#allocation2 + $0x5f] sm:$0x1] }
 0x78a   : > { %5278 = vst.msk [vmem:[#allocation4 + $0x198] sm:$0x1] %vm862_vm3, %v5267_v20  ;;  %5229 = vrot.lane.b32.xlu1 %v5286_v38, %s9683_s24  ;;  %v5528_v5 = vld [vmem:[#allocation2 + $0x52] sm:$0xff]  ;;  %8989 = vmatpush3.bf16.msra.mxu0 %v9565_v16  ;;  %v5461_v25 = vld [vmem:[#allocation2 + $0x49] sm:$0xff]  ;;  %v5464_v23 = vld [vmem:[#allocation2 + $0x61] sm:$0xff] }
 0x78b   : > { %5538 = vst.msk [vmem:[#allocation4 + $0x110] sm:$0xff] %vm583_vm2, %v5527_v48  ;;  %v5441_v59 = vld [vmem:[#allocation2 + $0x58] sm:$0xff]  ;;  %5539 = vst.msk [vmem:[#allocation4 + $0x138] sm:$0xff] %vm583_vm2, %v5528_v5  ;;  %8990 = vmatprep.subr.bf16.mxu0 %v9566_v8  ;;  %v5465_v58 = vld [vmem:[#allocation2 + $0x69] sm:$0x1] }
 0x78c   : > { %5452 = vst.msk [vmem:[#allocation4 + $0x158] sm:$0xff] %vm583_vm2, %v5441_v59  ;;  %5365 = vst.msk [vmem:[#allocation4 + $0x178] sm:$0xff] %vm583_vm2, %v5441_v59  ;;  %v5462_v49 = vld [vmem:[#allocation2 + $0x51] sm:$0xff]  ;;  %v5377_v63 = vld [vmem:[#allocation2 + $0x61] sm:$0x1] }
 0x78d   : > { %5231 = vrot.lane.b32.xlu0 %v5287_v56, %s9683_s24  ;;  %v5529_v19 = vld [vmem:[#allocation2 + $0x5a] sm:$0xff]  ;;  %6599 = vst.msk [vmem:[#allocation4 + $0x188] sm:$0xff] %vm583_vm2, %v6588_v13  ;;  %v9556_v47 = vld [vmem:[%s12316_s3 + $0x588] sm:$0xff]   ;;  %v9563_v44 = vld [vmem:[%s12316_s3 + $0x590] sm:$0xff]  }
 0x78e   : > { %5321 = vrot.lane.b32.xlu1 %v5289_v28, %s9683_s24  ;;  %v5442_v53 = vld [vmem:[#allocation2 + $0x60] sm:$0xff]  ;;  %5540 = vst.msk [vmem:[#allocation4 + $0x160] sm:$0xff] %vm583_vm2, %v5529_v19  ;;  %8991 = vmatpush3.bf16.msra.mxu0 %v9567_v61 }
 0x78f   : > { %v5355_v27 = vld [vmem:[#allocation2 + $0x60] sm:$0x1]  ;;  %5453 = vst.msk [vmem:[#allocation4 + $0x180] sm:$0xff] %vm583_vm2, %v5442_v53  ;;  %8992 = vmatprep.subr.bf16.mxu0 %v9568_v9 }
 0x790   : > { %5366 = vst.msk [vmem:[#allocation4 + $0x1a0] sm:$0x1] %vm862_vm3, %v5355_v27  ;;  %v5463_v37 = vld [vmem:[#allocation2 + $0x59] sm:$0xff]  ;;  %6600 = vst.msk [vmem:[#allocation4 + $0x1b0] sm:$0x1] %vm862_vm3, %v6589_v51 }
 0x791   : > { %5233 = vrot.lane.b32.xlu0 %v5201_v52, %s9683_s24 }
 0x792   : > { %5477 = vrot.lane.b32.xlu1 %v5455_v30, %s9683_s24  ;;  %8993 = vmatpush3.bf16.msra.mxu0 %v9569_v7 }
 0x795   : > { %5479 = vrot.lane.b32.xlu0 %v5456_v32, %s9683_s24 }
 0x796   : > { %5389 = vrot.lane.b32.xlu1 %v5367_v33, %s9683_s24 }
 0x799   : > { %5391 = vrot.lane.b32.xlu0 %v5455_v30, %s9683_s24 }
 0x79a   : > { %5481 = vrot.lane.b32.xlu1 %v5457_v54, %s9683_s24 }
 0x79d   : > { %5483 = vrot.lane.b32.xlu0 %v5458_v26, %s9683_s24 }
 0x79e   : > { %5393 = vrot.lane.b32.xlu1 %v5456_v32, %s9683_s24 }
 0x7a1   : > { %5395 = vrot.lane.b32.xlu0 %v5457_v54, %s9683_s24 }
 0x7a2   : > { %5485 = vrot.lane.b32.xlu1 %v5459_v12, %s9683_s24 }
 0x7a5   : > { %5487 = vrot.lane.b32.xlu0 %v5460_v11, %s9683_s24 }
 0x7a6   : > { %5397 = vrot.lane.b32.xlu1 %v5458_v26, %s9683_s24 }
 0x7a9   : > { %5399 = vrot.lane.b32.xlu0 %v5459_v12, %s9683_s24 }
 0x7aa   : > { %5489 = vrot.lane.b32.xlu1 %v5461_v25, %s9683_s24 }
 0x7ad   : > { %5491 = vrot.lane.b32.xlu0 %v5462_v49, %s9683_s24 }
 0x7ae   : > { %5401 = vrot.lane.b32.xlu1 %v5460_v11, %s9683_s24 }
 0x7b1   : > { %5403 = vrot.lane.b32.xlu0 %v5461_v25, %s9683_s24 }
 0x7b2   : > { %5493 = vrot.lane.b32.xlu1 %v5463_v37, %s9683_s24 }
 0x7b5   : > { %5495 = vrot.lane.b32.xlu0 %v5464_v23, %s9683_s24 }
 0x7b6   : > { %5405 = vrot.lane.b32.xlu1 %v5462_v49, %s9683_s24 }
 0x7b9   : > { %5407 = vrot.lane.b32.xlu0 %v5463_v37, %s9683_s24 }
 0x7ba   : > { %5497 = vrot.lane.b32.xlu1 %v5465_v58, %s9683_s24 }
 0x7bd   : > { %5409 = vrot.lane.b32.xlu0 %v5377_v63, %s9683_s24 }
 0x7d8   : > { %v5302_v24 = vpop.permute.xlu1 %5301 }
 0x7d9   : > { %5334 = vst.msk [vmem:[#allocation4 + $0x8] sm:$0xff] %vm1013_vm4, %v5302_v24 }
 0x7da   : > { %v5304_v41 = vpop.permute.xlu0 %5303 }
 0x7db   : > { %5335 = vst.msk [vmem:[#allocation4 + $0x30] sm:$0xff] %vm1013_vm4, %v5304_v41 }
 0x7dc   : > { %v5214_v38 = vpop.permute.xlu1 %5213 }
 0x7dd   : > { %5246 = vst.msk [vmem:[#allocation4] sm:$0xff] %vm1013_vm4, %v5214_v38 }
 0x7de   : > { %v5216_v40 = vpop.permute.xlu0 %5215 }
 0x7df   : > { %5247 = vst.msk [vmem:[#allocation4 + $0x28] sm:$0xff] %vm1013_vm4, %v5216_v40 }
 0x7e0   : > { %v5306_v2 = vpop.permute.xlu1 %5305  ;;  %v5544_v22 = vld [vmem:[#allocation4 + $0x8] sm:$0xff] }
 0x7e1   : > { %5336 = vst.msk [vmem:[#allocation4 + $0x58] sm:$0xff] %vm1013_vm4, %v5306_v2 }
 0x7e2   : > { %v5308_v18 = vpop.permute.xlu0 %5307  ;;  %v5549_v43 = vld [vmem:[#allocation4 + $0x30] sm:$0xff] }
 0x7e3   : > { %5337 = vst.msk [vmem:[#allocation4 + $0x80] sm:$0xff] %vm1013_vm4, %v5308_v18  ;;  %v5599_v29 = vpack.c.bf16 %v5549_v43, %v5544_v22 }
 0x7e4   : > { %v5218_v62 = vpop.permute.xlu1 %5217  ;;  %v5543_v0 = vld [vmem:[#allocation4] sm:$0xff] }
 0x7e5   : > { %5248 = vst.msk [vmem:[#allocation4 + $0x50] sm:$0xff] %vm1013_vm4, %v5218_v62  ;;  %5902 = vmatprep.mubr.bf16.mxu1 %v5599_v29 }
 0x7e6   : > { %v5220_v3 = vpop.permute.xlu0 %5219  ;;  %v5548_v56 = vld [vmem:[#allocation4 + $0x28] sm:$0xff] }
 0x7e7   : > { %5249 = vst.msk [vmem:[#allocation4 + $0x78] sm:$0xff] %vm1013_vm4, %v5220_v3  ;;  %v5598_v6 = vpack.c.bf16 %v5548_v56, %v5543_v0 }
 0x7e8   : > { %v5310_v10 = vpop.permute.xlu1 %5309  ;;  %v5554_v20 = vld [vmem:[#allocation4 + $0x58] sm:$0xff] }
 0x7e9   : > { %5338 = vst.msk [vmem:[#allocation4 + $0xa8] sm:$0xff] %vm1013_vm4, %v5310_v10  ;;  %5903 = vmatmul.mubr.bf16.vlgmr.msra.gmra.mrb[132].mxu1 %v5598_v6  ;;  %v5552_v6 = vld [vmem:[#allocation4 + $0x48] sm:$0xff] }
 0x7ea   : > { %v5559_v17 = vld [vmem:[#allocation4 + $0x80] sm:$0xff]  ;;  %9261 = vmatpush3.bf16.msra.mxu1 %v11459_v31  ;;  %v9570_v31 = vld [vmem:[%s12316_s3 + $0x598] sm:$0xff]  }
 0x7eb   : > { %v5312_v50 = vpop.permute.xlu0 %5311  ;;  %v5604_v1 = vpack.c.bf16 %v5559_v17, %v5554_v20  ;;  %9262 = vmatprep.subr.bf16.mxu1 %v9556_v47 }
 0x7ec   : > { %5339 = vst.msk [vmem:[#allocation4 + $0xd0] sm:$0xff] %vm1013_vm4, %v5312_v50  ;;  %v5222_v48 = vpop.permute.xlu1 %5221  ;;  %v5553_v5 = vld [vmem:[#allocation4 + $0x50] sm:$0xff] }
 0x7ed   : > { %5250 = vst.msk [vmem:[#allocation4 + $0xa0] sm:$0xff] %vm1013_vm4, %v5222_v48  ;;  %5910 = vmatprep.mubr.bf16.mxu1 %v5604_v1  ;;  %v5547_v1 = vld [vmem:[#allocation4 + $0x20] sm:$0xff] }
 0x7ee   : > { %v5558_v59 = vld [vmem:[#allocation4 + $0x78] sm:$0xff]  ;;  %9263 = vmatpush3.bf16.msra.mxu1 %v9556_v47  ;;  %v5602_v48 = vpack.c.bf16 %v5552_v6, %v5547_v1 }
 0x7ef   : > { %v5224_v16 = vpop.permute.xlu0 %5223  ;;  %v5603_v28 = vpack.c.bf16 %v5558_v59, %v5553_v5  ;;  %9264 = vmatprep.subr.bf16.mxu1 %v9563_v44 }
 0x7f0   : > { %5251 = vst.msk [vmem:[#allocation4 + $0xc8] sm:$0xff] %vm1013_vm4, %v5224_v16  ;;  %v5314_v8 = vpop.permute.xlu1 %5313  ;;  %v5564_v53 = vld [vmem:[#allocation4 + $0xa8] sm:$0xff] }
 0x7f1   : > { %5340 = vst.msk [vmem:[#allocation4 + $0xf8] sm:$0xff] %vm1013_vm4, %v5314_v8  ;;  %5911 = vmatmul.mubr.bf16.gmra.mrb[136].mxu1 %v5603_v28  ;;  %v5562_v8 = vld [vmem:[#allocation4 + $0x98] sm:$0xff] }
 0x7f2   : > { %9265 = vmatpush3.bf16.msra.mxu1 %v9563_v44 }
 0x7f3   : > { %v5316_v19 = vpop.permute.xlu0 %5315  ;;  %v5569_v27 = vld [vmem:[#allocation4 + $0xd0] sm:$0xff]  ;;  %9266 = vmatprep.subr.bf16.mxu1 %v9570_v31 }
 0x7f4   : > { %5341 = vst.msk [vmem:[#allocation4 + $0x120] sm:$0xff] %vm1013_vm4, %v5316_v19  ;;  %v5609_v52 = vpack.c.bf16 %v5569_v27, %v5564_v53  ;;  %v5226_v61 = vpop.permute.xlu1 %5225  ;;  %v5563_v9 = vld [vmem:[#allocation4 + $0xa0] sm:$0xff]  ;;  %v5572_v19 = vld [vmem:[#allocation4 + $0xe8] sm:$0xff] }
 0x7f5   : > { %5252 = vst.msk [vmem:[#allocation4 + $0xf0] sm:$0xff] %vm1013_vm4, %v5226_v61  ;;  %v5557_v61 = vld [vmem:[#allocation4 + $0x70] sm:$0xff] }
 0x7f6   : > { %5918 = vmatprep.mubr.bf16.mxu1 %v5609_v52  ;;  %9267 = vmatpush3.bf16.msra.mxu1 %v9570_v31 }
 0x7f7   : > { %v5228_v30 = vpop.permute.xlu0 %5227  ;;  %v5568_v32 = vld [vmem:[#allocation4 + $0xc8] sm:$0xff] }
 0x7f8   : > { %5253 = vst.msk [vmem:[#allocation4 + $0x118] sm:$0xff] %vm1013_vm4, %v5228_v30  ;;  %v5608_v7 = vpack.c.bf16 %v5568_v32, %v5563_v9  ;;  %v5318_v33 = vpop.permute.xlu1 %5317  ;;  %v5574_v26 = vld [vmem:[#allocation4 + $0xf8] sm:$0xff]  ;;  %v5607_v9 = vpack.c.bf16 %v5562_v8, %v5557_v61  ;;  %v5567_v32 = vld [vmem:[#allocation4 + $0xc0] sm:$0xff] }
 0x7f9   : > { %5342 = vst.msk [vmem:[#allocation4 + $0x148] sm:$0xff] %vm1013_vm4, %v5318_v33  ;;  %v5612_v33 = vpack.c.bf16 %v5572_v19, %v5567_v32 }
 0x7fa   : > { %5919 = vmatmul.mubr.bf16.gmra.mrb[140].mxu1 %v5608_v7 }
 0x7fb   : > { %v5320_v54 = vpop.permute.xlu0 %5319  ;;  %v5579_v12 = vld [vmem:[#allocation4 + $0x120] sm:$0xff] }
 0x7fc   : > { %5343 = vst.msk [vmem:[#allocation4 + $0x170] sm:$0xff] %vm1013_vm4, %v5320_v54  ;;  %v5614_v11 = vpack.c.bf16 %v5579_v12, %v5574_v26  ;;  %v5230_v13 = vpop.permute.xlu1 %5229  ;;  %v5573_v49 = vld [vmem:[#allocation4 + $0xf0] sm:$0xff] }
 0x7fd   : > { %5254 = vst.msk [vmem:[#allocation4 + $0x140] sm:$0xff] %vm1013_vm4, %v5230_v13 }
 0x7fe   : > { %5926 = vmatprep.mubr.bf16.mxu1 %v5614_v11 }
 0x7ff   : > { %v5232_v25 = vpop.permute.xlu0 %5231  ;;  %v5578_v37 = vld [vmem:[#allocation4 + $0x118] sm:$0xff] }
 0x800   : > { %5255 = vst.msk [vmem:[#allocation4 + $0x168] sm:$0xff] %vm1013_vm4, %v5232_v25  ;;  %v5613_v23 = vpack.c.bf16 %v5578_v37, %v5573_v49  ;;  %v5322_v51 = vpop.permute.xlu1 %5321  ;;  %v5584_v63 = vld [vmem:[#allocation4 + $0x148] sm:$0xff]  ;;  %v5582_v25 = vld [vmem:[#allocation4 + $0x138] sm:$0xff]  ;;  %v5587_v49 = vld [vmem:[#allocation4 + $0x160] sm:$0xff] }
 0x801   : > { %5344 = vst.msk [vmem:[#allocation4 + $0x198] sm:$0x1] %vm1024_vm5, %v5322_v51 }
 0x802   : > { %5927 = vmatmul.mubr.bf16.gmra.mrb[144].mxu1 %v5613_v23 }
 0x803   : > { %v5234_v58 = vpop.permute.xlu0 %5233  ;;  %v5589_v24 = vld [vmem:[#allocation4 + $0x170] sm:$0xff] }
 0x804   : > { %5256 = vst.msk [vmem:[#allocation4 + $0x190] sm:$0x1] %vm1024_vm5, %v5234_v58  ;;  %v5619_v41 = vpack.c.bf16 %v5589_v24, %v5584_v63  ;;  %v5478_v38 = vpop.permute.xlu1 %5477  ;;  %v5583_v2 = vld [vmem:[#allocation4 + $0x140] sm:$0xff]  ;;  %v5577_v58 = vld [vmem:[#allocation4 + $0x110] sm:$0xff] }
 0x805   : > { %5510 = vst.msk [vmem:[#allocation4 + $0x18] sm:$0xff] %vm1013_vm4, %v5478_v38  ;;  %v5617_v24 = vpack.c.bf16 %v5582_v25, %v5577_v58  ;;  %v5622_v38 = vpack.c.bf16 %v11608_v21, %v5587_v49  ;;  %v5627_v21 = vpack.c.bf16 %v11620_v46, %v11620_v46 }
 0x806   : > { %5934 = vmatprep.mubr.bf16.mxu1 %v5619_v41 }
 0x807   : > { %v5480_v40 = vpop.permute.xlu0 %5479  ;;  %v5588_v18 = vld [vmem:[#allocation4 + $0x168] sm:$0xff] }
 0x808   : > { %5511 = vst.msk [vmem:[#allocation4 + $0x40] sm:$0xff] %vm1013_vm4, %v5480_v40  ;;  %v5618_v22 = vpack.c.bf16 %v5588_v18, %v5583_v2  ;;  %v5390_v43 = vpop.permute.xlu1 %5389  ;;  %v5594_v29 = vld [vmem:[#allocation4 + $0x198] sm:$0x1] }
 0x809   : > { %5422 = vst.msk [vmem:[#allocation4 + $0x10] sm:$0xff] %vm1013_vm4, %v5390_v43  ;;  %v5624_v62 = vpack.c.bf16 %v5594_v29, %v5594_v29 }
 0x80a   : > { %5935 = vmatmul.mubr.bf16.gmra.mrb[148].mxu1 %v5618_v22 }
 0x80b   : > { %v5392_v0 = vpop.permute.xlu0 %5391  ;;  %5942 = vmatprep.mubr.bf16.mxu1 %v5624_v62  ;;  %v5593_v56 = vld [vmem:[#allocation4 + $0x190] sm:$0x1] }
 0x80c   : > { %5423 = vst.msk [vmem:[#allocation4 + $0x38] sm:$0xff] %vm1013_vm4, %v5392_v0  ;;  %v5482_v3 = vpop.permute.xlu1 %5481  ;;  %v5546_v10 = vld [vmem:[#allocation4 + $0x18] sm:$0xff]  ;;  %v5623_v20 = vpack.c.bf16 %v5593_v56, %v5593_v56 }
 0x80d   : > { %5512 = vst.msk [vmem:[#allocation4 + $0x68] sm:$0xff] %vm1013_vm4, %v5482_v3 }
 0x80f   : > { %v5484_v47 = vpop.permute.xlu0 %5483  ;;  %v5551_v50 = vld [vmem:[#allocation4 + $0x40] sm:$0xff] }
 0x810   : > { %5513 = vst.msk [vmem:[#allocation4 + $0x90] sm:$0xff] %vm1013_vm4, %v5484_v47  ;;  %v5601_v17 = vpack.c.bf16 %v5551_v50, %v5546_v10  ;;  %v5394_v44 = vpop.permute.xlu1 %5393  ;;  %v5545_v5 = vld [vmem:[#allocation4 + $0x10] sm:$0xff] }
 0x811   : > { %5424 = vst.msk [vmem:[#allocation4 + $0x60] sm:$0xff] %vm1013_vm4, %v5394_v44 }
 0x812   : > { %5943 = vmatmul.mubr.bf16.gmra.mrb[152].mxu1 %v5623_v20  ;;  %5982 = vmatprep.mubr.bf16.mxu0 %v5601_v17 }
 0x813   : > { %v5396_v16 = vpop.permute.xlu0 %5395  ;;  %9268 = vmatprep.mubr.msk.bf16.mxu1 %vm583_vm2, %v5602_v48  ;;  %v5550_v59 = vld [vmem:[#allocation4 + $0x38] sm:$0xff] }
 0x814   : > { %5425 = vst.msk [vmem:[#allocation4 + $0x88] sm:$0xff] %vm1013_vm4, %v5396_v16  ;;  %v5600_v28 = vpack.c.bf16 %v5550_v59, %v5545_v5  ;;  %v5486_v31 = vpop.permute.xlu1 %5485  ;;  %v5556_v27 = vld [vmem:[#allocation4 + $0x68] sm:$0xff]  ;;  %v6501_v5 = vld [vmem:[#allocation3 + $0x68] sm:$0x1] }
 0x815   : > { %5514 = vst.msk [vmem:[#allocation4 + $0xb8] sm:$0xff] %vm1013_vm4, %v5486_v31 }
 0x816   : > { %5983 = vmatmul.mubr.bf16.vlgmr.msra.gmra.mrb[120].mxu0 %v5600_v28 }
 0x817   : > { %v5488_v53 = vpop.permute.xlu0 %5487  ;;  %v5561_v52 = vld [vmem:[#allocation4 + $0x90] sm:$0xff] }
 0x818   : > { %5515 = vst.msk [vmem:[#allocation4 + $0xe0] sm:$0xff] %vm1013_vm4, %v5488_v53  ;;  %v5606_v30 = vpack.c.bf16 %v5561_v52, %v5556_v27  ;;  %v5398_v7 = vpop.permute.xlu1 %5397  ;;  %v5555_v26 = vld [vmem:[#allocation4 + $0x60] sm:$0xff]  ;;  %v6249_v53 = vld [vmem:[#allocation3 + $0x7] sm:$0xff] }
 0x819   : > { %5426 = vst.msk [vmem:[#allocation4 + $0xb0] sm:$0xff] %vm1013_vm4, %v5398_v7  ;;  %6271 = vrot.lane.b32.xlu1 %v6249_v53, %s9683_s24 }
 0x81a   : > { %5990 = vmatprep.mubr.bf16.mxu0 %v5606_v30  ;;  %9269 = vmatmul.mubr.msk.bf16.vlgmr.msra.gmra.mrb[156].mxu1 %vm583_vm2, %v5607_v9 }
 0x81b   : > { %v5400_v54 = vpop.permute.xlu0 %5399  ;;  %9272 = vmatprep.mubr.msk.bf16.mxu1 %vm583_vm2, %v5612_v33  ;;  %v5560_v12 = vld [vmem:[#allocation4 + $0x88] sm:$0xff] }
 0x81c   : > { %5427 = vst.msk [vmem:[#allocation4 + $0xd8] sm:$0xff] %vm1013_vm4, %v5400_v54  ;;  %v5605_v11 = vpack.c.bf16 %v5560_v12, %v5555_v26  ;;  %v5490_v13 = vpop.permute.xlu1 %5489  ;;  %v5566_v23 = vld [vmem:[#allocation4 + $0xb8] sm:$0xff] }
 0x81d   : > { %5516 = vst.msk [vmem:[#allocation4 + $0x108] sm:$0xff] %vm1013_vm4, %v5490_v13 }
 0x81e   : > { %5991 = vmatmul.mubr.bf16.gmra.mrb[124].mxu0 %v5605_v11 }
 0x81f   : > { %v5492_v37 = vpop.permute.xlu0 %5491  ;;  %v5571_v51 = vld [vmem:[#allocation4 + $0xe0] sm:$0xff] }
 0x820   : > { %5517 = vst.msk [vmem:[#allocation4 + $0x130] sm:$0xff] %vm1013_vm4, %v5492_v37  ;;  %v5611_v63 = vpack.c.bf16 %v5571_v51, %v5566_v23  ;;  %v5402_v41 = vpop.permute.xlu1 %5401  ;;  %v5565_v2 = vld [vmem:[#allocation4 + $0xb0] sm:$0xff] }
 0x821   : > { %5428 = vst.msk [vmem:[#allocation4 + $0x100] sm:$0xff] %vm1013_vm4, %v5402_v41 }
 0x822   : > { %5998 = vmatprep.mubr.bf16.mxu0 %v5611_v63  ;;  %9273 = vmatmul.mubr.msk.bf16.gmra.mrb[160].mxu1 %vm583_vm2, %v5617_v24 }
 0x823   : > { %v5404_v40 = vpop.permute.xlu0 %5403  ;;  %9276 = vmatprep.mubr.msk.bf16.mxu1 %vm583_vm2, %v5622_v38  ;;  %v5570_v18 = vld [vmem:[#allocation4 + $0xd8] sm:$0xff]  ;;  %v9571_v38 = vld [vmem:[%s12316_s3 + $0x5e0] sm:$0xff]  }
 0x824   : > { %5429 = vst.msk [vmem:[#allocation4 + $0x128] sm:$0xff] %vm1013_vm4, %v5404_v40  ;;  %v5610_v22 = vpack.c.bf16 %v5570_v18, %v5565_v2  ;;  %v5494_v43 = vpop.permute.xlu1 %5493  ;;  %v5576_v62 = vld [vmem:[#allocation4 + $0x108] sm:$0xff]  ;;  %v9572_v40 = vld [vmem:[%s12316_s3 + $0x5a0] sm:$0xff]   ;;  %9040 = vmatprep.subr.bf16.mxu0 %v9571_v38 }
 0x825   : > { %5518 = vst.msk [vmem:[#allocation4 + $0x158] sm:$0xff] %vm1013_vm4, %v5494_v43  ;;  %v6227_v2 = vld [vmem:[#allocation3 + $0x6] sm:$0xff]  ;;  %9041 = vmatpush3.bf16.msra.mxu0 %v9572_v40 }
 0x826   : > { %5999 = vmatmul.mubr.bf16.gmra.mrb[128].mxu0 %v5610_v22  ;;  %6238 = vst.msk [vmem:[#allocation4] sm:$0xff] %vm583_vm2, %v6227_v2  ;;  %v9573_v22 = vld [vmem:[%s12316_s3 + $0x5e8] sm:$0xff]   ;;  %v6315_v43 = vld [vmem:[#allocation3 + $0x8] sm:$0xff] }
 0x827   : > { %v5496_v29 = vpop.permute.xlu0 %5495  ;;  %v5581_v0 = vld [vmem:[#allocation4 + $0x130] sm:$0xff]  ;;  %6326 = vst.msk [vmem:[#allocation4 + $0x8] sm:$0xff] %vm583_vm2, %v6315_v43  ;;  %9042 = vmatprep.subr.bf16.mxu0 %v9573_v22 }
 0x828   : > { %5519 = vst.msk [vmem:[#allocation4 + $0x180] sm:$0xff] %vm1013_vm4, %v5496_v29  ;;  %v5616_v3 = vpack.c.bf16 %v5581_v0, %v5576_v62  ;;  %v5406_v56 = vpop.permute.xlu1 %5405  ;;  %v5575_v47 = vld [vmem:[#allocation4 + $0x100] sm:$0xff]  ;;  %v9574_v29 = vld [vmem:[%s12316_s3 + $0x5a8] sm:$0xff]  }
 0x829   : > { %5430 = vst.msk [vmem:[#allocation4 + $0x150] sm:$0xff] %vm1013_vm4, %v5406_v56  ;;  %9043 = vmatpush3.bf16.msra.mxu0 %v9574_v29 }
 0x82a   : > { %6006 = vmatprep.mubr.bf16.mxu0 %v5616_v3  ;;  %9277 = vmatmul.mubr.msk.bf16.gmra.mrb[164].mxu1 %vm583_vm2, %v5627_v21 }
 0x82b   : > { %v5408_v6 = vpop.permute.xlu0 %5407  ;;  %v5580_v10 = vld [vmem:[#allocation4 + $0x128] sm:$0xff] }
 0x82c   : > { %5431 = vst.msk [vmem:[#allocation4 + $0x178] sm:$0xff] %vm1013_vm4, %v5408_v6  ;;  %v5615_v50 = vpack.c.bf16 %v5580_v10, %v5575_v47  ;;  %v5498_v20 = vpop.permute.xlu1 %5497  ;;  %v5586_v46 = vld [vmem:[#allocation4 + $0x158] sm:$0xff] }
 0x82d   : > { %5520 = vst.msk [vmem:[#allocation4 + $0x1a8] sm:$0x1] %vm1024_vm5, %v5498_v20 }
 0x82e   : > { %6007 = vmatmul.mubr.bf16.gmra.mrb[132].mxu0 %v5615_v50 }
 0x82f   : > { %v5591_v17 = vld [vmem:[#allocation4 + $0x180] sm:$0xff]  ;;  %v5410_v1 = vpop.permute.xlu0 %5409 }
 0x830   : > { %v5621_v44 = vpack.c.bf16 %v5591_v17, %v5586_v46  ;;  %5432 = vst.msk [vmem:[#allocation4 + $0x1a0] sm:$0x1] %vm1024_vm5, %v5410_v1  ;;  %v5585_v48 = vld [vmem:[#allocation4 + $0x150] sm:$0xff] }
 0x831   : > { %v11727_v17 = vld [vmem:[%s12317_s4 + $0x4] ss:$0 sm:$0xff] }
 0x832   : > { %6014 = vmatprep.mubr.bf16.mxu0 %v5621_v44 }
 0x833   : > { %v5590_v16 = vld [vmem:[#allocation4 + $0x178] sm:$0xff] }
 0x834   : > { %v5620_v59 = vpack.c.bf16 %v5590_v16, %v5585_v48  ;;  %v5596_v28 = vld [vmem:[#allocation4 + $0x1a8] sm:$0x1] }
 0x835   : > { %v5626_v31 = vpack.c.bf16 %v5596_v28, %v5596_v28  ;;  %6512 = vst.msk [vmem:[#allocation4 + $0x1a8] sm:$0x1] %vm862_vm3, %v6501_v5 }
 0x836   : > { %6015 = vmatmul.mubr.bf16.gmra.mrb[136].mxu0 %v5620_v59 }
 0x837   : > { %v5595_v8 = vld [vmem:[#allocation4 + $0x1a0] sm:$0x1]  ;;  %6022 = vmatprep.mubr.bf16.mxu0 %v5626_v31 }
 0x838   : > { %v5625_v19 = vpack.c.bf16 %v5595_v8, %v5595_v8 }
 0x83e   : > { %6023 = vmatmul.mubr.bf16.gmra.mrb[140].mxu0 %v5625_v19 }
 0x8bc   : > { %v8942_v27 = vpop.f32.mrb[132].mxu1 }
 0x8bd   : > { %v8943_v52 = vpop.f32.mrb[133].mxu1 }
 0x8be   : > { %v8944_v61 = vadd.f32 %v8943_v52, %v8942_v27  ;;  %v8945_v30 = vpop.f32.mrb[134].mxu1 }
 0x8bf   : > { %v8946_v9 = vpop.f32.mrb[135].mxu1 }
 0x8c0   : > { %v8947_v32 = vadd.f32 %v8946_v9, %v8945_v30  ;;  %v5905_v16 = vadd.f32 %v8944_v61, %v11727_v17  ;;  %v9576_v61 = vld [vmem:[%s12316_s3 + $0x5b0] sm:$0xff]  }
 0x8c2   : > { %v5908_v31 = vadd.f32 %v8947_v32, %v11727_v17  ;;  %v9577_v32 = vld [vmem:[%s12316_s3 + $0x660] sm:$0xff]  }
 0x8c3   : > { %9092 = vmatprep.subr.bf16.mxu1 %v9577_v32 }
 0x8c4   : > { %v8948_v7 = vpop.f32.mrb[136].mxu1 }
 0x8c5   : > { %v8949_v33 = vpop.f32.mrb[137].mxu1 }
 0x8c6   : > { %v11692_v54 = vadd.f32 %v8949_v33, %v8948_v7  ;;  %v8951_v26 = vpop.f32.mrb[138].mxu1  ;;  %v9575_v33 = vld [vmem:[%s12316_s3 + $0x5f0] sm:$0xff]  }
 0x8c7   : > { %v8952_v12 = vpop.f32.mrb[139].mxu1  ;;  %9044 = vmatprep.subr.bf16.mxu0 %v9575_v33 }
 0x8c8   : > { %v11694_v11 = vadd.f32 %v8952_v12, %v8951_v26  ;;  %9045 = vmatpush3.bf16.msra.mxu0 %v9576_v61 }
 0x8ca   : > { %v5916_v22 = vadd.f32 %v11694_v11, %v11727_v17 }
 0x8cd   : > { %v8954_v13 = vpop.f32.mrb[140].mxu1 }
 0x8ce   : > { %v8955_v25 = vpop.f32.mrb[141].mxu1 }
 0x8cf   : > { %v11696_v49 = vadd.f32 %v8955_v25, %v8954_v13  ;;  %v8957_v37 = vpop.f32.mrb[142].mxu1  ;;  %v9578_v25 = vld [vmem:[%s12316_s3 + $0x5f8] sm:$0xff]  }
 0x8d0   : > { %v8958_v23 = vpop.f32.mrb[143].mxu1  ;;  %9046 = vmatprep.subr.bf16.mxu0 %v9578_v25 }
 0x8d1   : > { %v11698_v51 = vadd.f32 %v8958_v23, %v8957_v37  ;;  %v9579_v37 = vld [vmem:[%s12316_s3 + $0x620] sm:$0xff]  }
 0x8d2   : > { %9093 = vmatpush3.bf16.msra.mxu1 %v9579_v37  ;;  %v9585_v37 = vld [vmem:[%s12316_s3 + $0x670] sm:$0xff]  }
 0x8d5   : > { %v8960_v58 = vpop.f32.mrb[144].mxu1 }
 0x8d6   : > { %v8961_v63 = vpop.f32.mrb[145].mxu1 }
 0x8d7   : > { %v11700_v24 = vadd.f32 %v8961_v63, %v8960_v58  ;;  %v8963_v41 = vpop.f32.mrb[146].mxu1  ;;  %v6272_v58 = vpop.permute.xlu1 %6271  ;;  %v5913_v63 = vadd.f32 %v11692_v54, %v11727_v17 }
 0x8d8   : > { %v8964_v18 = vpop.f32.mrb[147].mxu1  ;;  %6304 = vst.msk [vmem:[#allocation4] sm:$0xff] %vm1013_vm4, %v6272_v58  ;;  %v9587_v58 = vld [vmem:[%s12316_s3 + $0x630] sm:$0xff]  }
 0x8d9   : > { %v11712_v21 = vadd.f32 %v8964_v18, %v8963_v41 }
 0x8dd   : > { %v8966_v62 = vpop.f32.mrb[148].mxu1 }
 0x8de   : > { %v8967_v0 = vpop.f32.mrb[149].mxu1 }
 0x8df   : > { %v11718_v3 = vadd.f32 %v8967_v0, %v8966_v62  ;;  %v8969_v56 = vpop.f32.mrb[150].mxu1 }
 0x8e0   : > { %v8970_v6 = vpop.f32.mrb[151].mxu1 }
 0x8e1   : > { %v11720_v47 = vadd.f32 %v8970_v6, %v8969_v56 }
 0x8e5   : > { %v8972_v10 = vpop.f32.mrb[152].mxu1 }
 0x8e6   : > { %v8973_v50 = vpop.f32.mrb[153].mxu1 }
 0x8e7   : > { %v11722_v20 = vadd.f32 %v8973_v50, %v8972_v10  ;;  %v8975_v46 = vpop.f32.mrb[154].mxu1 }
 0x8e8   : > { %v8976_v1 = vpop.f32.mrb[155].mxu1 }
 0x8e9   : > { %v8994_v44 = vpop.f32.mrb[120].mxu0 }
 0x8ea   : > { %v8995_v48 = vpop.f32.mrb[121].mxu0 }
 0x8eb   : > { %v8996_v5 = vadd.f32 %v8995_v48, %v8994_v44  ;;  %v8997_v59 = vpop.f32.mrb[122].mxu0  ;;  %v9580_v48 = vld [vmem:[%s12316_s3 + $0x5b8] sm:$0xff]  }
 0x8ec   : > { %v8998_v28 = vpop.f32.mrb[123].mxu0  ;;  %9047 = vmatpush3.bf16.msra.mxu0 %v9580_v48  ;;  %v5932_v48 = vadd.f32 %v11712_v21, %v11727_v17 }
 0x8ed   : > { %v8999_v8 = vadd.f32 %v8998_v28, %v8997_v59  ;;  %v9270_v19 = vpop.f32.mrb[156].mxu1  ;;  %v5985_v53 = vadd.f32 %v8996_v5, %v5905_v16  ;;  %v9581_v16 = vld [vmem:[%s12316_s3 + $0x668] sm:$0xff]   ;;  %v9582_v5 = vld [vmem:[%s12316_s3 + $0x600] sm:$0xff]   ;;  %v5921_v59 = vadd.f32 %v11696_v49, %v11727_v17 }
 0x8ee   : > { %v6064_v27 = vpop.f32.mrb[157].mxu1  ;;  %9094 = vmatprep.subr.bf16.mxu1 %v9581_v16  ;;  %9048 = vmatprep.subr.bf16.mxu0 %v9582_v5 }
 0x8ef   : > { %v6065_v52 = vadd.f32 %v6064_v27, %v5985_v53  ;;  %v9271_v30 = vpop.f32.mrb[158].mxu1  ;;  %v5988_v9 = vadd.f32 %v8999_v8, %v5908_v31  ;;  %v9583_v53 = vld [vmem:[%s12316_s3 + $0x628] sm:$0xff]   ;;  %v5924_v27 = vadd.f32 %v11698_v51, %v11727_v17 }
 0x8f0   : > { %v6067_v7 = vpop.f32.mrb[159].mxu1  ;;  %9095 = vmatpush3.bf16.msra.mxu1 %v9583_v53  ;;  %v9592_v53 = vld [vmem:[%s12316_s3 + $0x5d0] sm:$0xff]  }
 0x8f1   : > { %v6110_v26 = vmax.f32 %v6065_v52, 0.0  ;;  %v6068_v12 = vadd.f32 %v6067_v7, %v5988_v9  ;;  %v9000_v13 = vpop.f32.mrb[124].mxu0  ;;  %9096 = vmatprep.subr.bf16.mxu1 %v9585_v37 }
 0x8f2   : > { %v9001_v23 = vpop.f32.mrb[125].mxu0 }
 0x8f3   : > { %v6121_v41 = vmul.f32 %v6110_v26, %v9948_v34  ;;  %v6111_v38 = vmax.f32 %v6068_v12, 0.0  ;;  %v9002_v40 = vadd.f32 %v9001_v23, %v9000_v13  ;;  %v9003_v2 = vpop.f32.mrb[126].mxu0  ;;  %v9584_v26 = vld [vmem:[%s12316_s3 + $0x5c0] sm:$0xff]   ;;  %v9586_v23 = vld [vmem:[%s12316_s3 + $0x608] sm:$0xff]  }
 0x8f4   : > { %v9004_v18 = vpop.f32.mrb[127].mxu0  ;;  %9049 = vmatpush3.bf16.msra.mxu0 %v9584_v26  ;;  %9097 = vmatpush3.bf16.msra.mxu1 %v9587_v58 }
 0x8f5   : > { %6132 = vst.msk [vmem:[#allocation3 + $0x10] sm:$0xff] %vm583_vm2, %v6121_v41  ;;  %v6122_v43 = vmul.f32 %v6111_v38, %v9952_v36  ;;  %v5993_v29 = vadd.f32 %v9002_v40, %v5913_v63  ;;  %v9005_v54 = vadd.f32 %v9004_v18, %v9003_v2  ;;  %v11754_v62 = vpop.f32.mrb[160].mxu1  ;;  %9050 = vmatprep.subr.bf16.mxu0 %v9586_v23 }
 0x8f6   : > { %v6080_v0 = vpop.f32.mrb[161].mxu1 }
 0x8f7   : > { %6133 = vst.msk [vmem:[#allocation3 + $0x18] sm:$0xff] %vm583_vm2, %v6122_v43  ;;  %v6073_v56 = vadd.f32 %v9270_v19, %v5993_v29  ;;  %v5996_v6 = vadd.f32 %v9005_v54, %v5916_v22  ;;  %v11757_v10 = vpop.f32.mrb[162].mxu1  ;;  %v9588_v43 = vld [vmem:[%s12316_s3 + $0x5c8] sm:$0xff]   ;;  %v9589_v29 = vld [vmem:[%s12316_s3 + $0x678] sm:$0xff]   ;;  %v9590_v54 = vld [vmem:[%s12316_s3 + $0x610] sm:$0xff]  }
 0x8f8   : > { %v6083_v50 = vpop.f32.mrb[163].mxu1  ;;  %9051 = vmatpush3.bf16.msra.mxu0 %v9588_v43  ;;  %9098 = vmatprep.subr.bf16.mxu1 %v9589_v29 }
 0x8f9   : > { %v6112_v46 = vmax.f32 %v6073_v56, 0.0  ;;  %v6076_v1 = vadd.f32 %v9271_v30, %v5996_v6  ;;  %v9006_v44 = vpop.f32.mrb[128].mxu0  ;;  %9052 = vmatprep.subr.bf16.mxu0 %v9590_v54 }
 0x8fa   : > { %v9007_v11 = vpop.f32.mrb[129].mxu0 }
 0x8fb   : > { %v6123_v28 = vmul.f32 %v6112_v46, %v9950_v35  ;;  %v6113_v31 = vmax.f32 %v6076_v1, 0.0  ;;  %v9008_v8 = vadd.f32 %v9007_v11, %v9006_v44  ;;  %v9009_v19 = vpop.f32.mrb[130].mxu0  ;;  %v9591_v1 = vld [vmem:[%s12316_s3 + $0x638] sm:$0xff]  }
 0x8fc   : > { %v9010_v52 = vpop.f32.mrb[131].mxu0  ;;  %v6337_v30 = vld [vmem:[#allocation3 + $0xf] sm:$0xff]  ;;  %9099 = vmatpush3.bf16.msra.mxu1 %v9591_v1  ;;  %9053 = vmatpush3.bf16.msra.mxu0 %v9592_v53 }
 0x8fd   : > { %v6228_v9 = vld [vmem:[#allocation3 + $0xe] sm:$0xff]  ;;  %6134 = vst.msk [vmem:[#allocation3 + $0x20] sm:$0xff] %vm583_vm2, %v6123_v28  ;;  %v6124_v49 = vmul.f32 %v6113_v31, %v9959_v39  ;;  %v6001_v33 = vadd.f32 %v9008_v8, %v5921_v59  ;;  %v9011_v61 = vadd.f32 %v9010_v52, %v9009_v19  ;;  %6359 = vrot.lane.b32.xlu1 %v6337_v30, %s9683_s24  ;;  %v11780_v32 = vpop.f32.mrb[164].mxu1  ;;  %v9594_v52 = vld [vmem:[%s12316_s3 + $0x618] sm:$0xff]  }
 0x8fe   : > { %v6316_v7 = vld [vmem:[#allocation3 + $0x10] sm:$0xff]  ;;  %6273 = vrot.lane.b32.xlu0 %v6337_v30, %s9683_s24  ;;  %6239 = vst.msk [vmem:[#allocation4 + $0x28] sm:$0xff] %vm583_vm2, %v6228_v9  ;;  %v11785_v51 = vpop.f32.mrb[165].mxu1  ;;  %v6317_v41 = vld [vmem:[#allocation3 + $0x18] sm:$0xff]  ;;  %9054 = vmatprep.subr.bf16.mxu0 %v9594_v52 }
 0x8ff   : > { %6327 = vst.msk [vmem:[#allocation4 + $0x30] sm:$0xff] %vm583_vm2, %v6316_v7  ;;  %6414 = vst.msk [vmem:[#allocation4 + $0x10] sm:$0xff] %vm583_vm2, %v6316_v7  ;;  %v6081_v12 = vadd.f32 %v6080_v0, %v6001_v33  ;;  %v6004_v13 = vadd.f32 %v9011_v61, %v5924_v27  ;;  %v9279_v25 = vpop.f32.mrb[166].mxu1  ;;  %v6229_v38 = vld [vmem:[#allocation3 + $0x16] sm:$0xff]  ;;  %v5929_v0 = vadd.f32 %v11700_v24, %v11727_v17  ;;  %v9593_v27 = vld [vmem:[%s12316_s3 + $0x680] sm:$0xff]  }
 0x900   : > { %6135 = vst.msk [vmem:[#allocation3 + $0x28] sm:$0xff] %vm583_vm2, %v6124_v49  ;;  %v11800_v63 = vpop.f32.mrb[167].mxu1  ;;  %6328 = vst.msk [vmem:[#allocation4 + $0x58] sm:$0xff] %vm583_vm2, %v6317_v41  ;;  %9100 = vmatprep.subr.bf16.mxu1 %v9593_v27  ;;  %v6338_v54 = vld [vmem:[#allocation3 + $0x17] sm:$0xff] }
 0x901   : > { %v6114_v40 = vmax.f32 %v6081_v12, 0.0  ;;  %v6084_v2 = vadd.f32 %v6083_v50, %v6004_v13  ;;  %v9012_v18 = vpop.f32.mrb[132].mxu0  ;;  %6240 = vst.msk [vmem:[#allocation4 + $0x50] sm:$0xff] %vm583_vm2, %v6229_v38  ;;  %6502 = vst.msk [vmem:[#allocation4 + $0x18] sm:$0xff] %vm583_vm2, %v6317_v41  ;;  %v9596_v12 = vld [vmem:[%s12316_s3 + $0x5d8] sm:$0xff]   ;;  %v5940_v38 = vadd.f32 %v11720_v47, %v11727_v17  ;;  %v9599_v47 = vld [vmem:[%s12316_s3 + $0x690] sm:$0xff]  }
 0x902   : > { %6415 = vst.msk [vmem:[#allocation4 + $0x38] sm:$0xff] %vm583_vm2, %v6317_v41  ;;  %v9013_v22 = vpop.f32.mrb[133].mxu0  ;;  %v9597_v41 = vld [vmem:[%s12316_s3 + $0x688] sm:$0xff]   ;;  %9055 = vmatpush3.bf16.msra.mxu0 %v9596_v12 }
 0x903   : > { %v6125_v56 = vmul.f32 %v6114_v40, %v9962_v42  ;;  %v6115_v6 = vmax.f32 %v6084_v2, 0.0  ;;  %v9014_v50 = vadd.f32 %v9013_v22, %v9012_v18  ;;  %v9015_v46 = vpop.f32.mrb[134].mxu0  ;;  %v9598_v18 = vld [vmem:[%s12316_s3 + $0x648] sm:$0xff]  }
 0x904   : > { %v9016_v44 = vpop.f32.mrb[135].mxu0  ;;  %v6318_v11 = vld [vmem:[#allocation3 + $0x20] sm:$0xff] }
 0x905   : > { %6136 = vst.msk [vmem:[#allocation3 + $0x30] sm:$0xff] %vm583_vm2, %v6125_v56  ;;  %v6126_v24 = vmul.f32 %v6115_v6, %v9977_v57  ;;  %v6009_v16 = vadd.f32 %v9014_v50, %v5929_v0  ;;  %v9017_v5 = vadd.f32 %v9016_v44, %v9015_v46  ;;  %6329 = vst.msk [vmem:[#allocation4 + $0x80] sm:$0xff] %vm583_vm2, %v6318_v11  ;;  %v6230_v59 = vld [vmem:[#allocation3 + $0x1e] sm:$0xff] }
 0x906   : > { %6416 = vst.msk [vmem:[#allocation4 + $0x60] sm:$0xff] %vm583_vm2, %v6318_v11  ;;  %6503 = vst.msk [vmem:[#allocation4 + $0x40] sm:$0xff] %vm583_vm2, %v6318_v11  ;;  %v6579_v28 = vld [vmem:[#allocation3 + $0x1a] sm:$0xff] }
 0x907   : > { %v6253_v31 = vld [vmem:[#allocation3 + $0x27] sm:$0xff]  ;;  %6241 = vst.msk [vmem:[#allocation4 + $0x78] sm:$0xff] %vm583_vm2, %v6230_v59  ;;  %6590 = vst.msk [vmem:[#allocation4 + $0x20] sm:$0xff] %vm583_vm2, %v6579_v28  ;;  %v6089_v21 = vadd.f32 %v11754_v62, %v6009_v16  ;;  %v6012_v19 = vadd.f32 %v9017_v5, %v5932_v48  ;;  %v6339_v29 = vld [vmem:[#allocation3 + $0x1f] sm:$0xff]  ;;  %v5945_v5 = vadd.f32 %v11722_v20, %v11727_v17 }
 0x908   : > { %v6231_v8 = vld [vmem:[#allocation3 + $0x26] sm:$0xff]  ;;  %6137 = vst.msk [vmem:[#allocation3 + $0x38] sm:$0xff] %vm583_vm2, %v6126_v24  ;;  %6279 = vrot.lane.b32.xlu1 %v6253_v31, %s9683_s24  ;;  %6365 = vrot.lane.b32.xlu0 %v6253_v31, %s9683_s24  ;;  %v9600_v46 = vld [vmem:[%s12316_s3 + $0x650] sm:$0xff]  }
 0x909   : > { %6242 = vst.msk [vmem:[#allocation4 + $0xa0] sm:$0xff] %vm583_vm2, %v6231_v8  ;;  %v9595_v62 = vld [vmem:[%s12316_s3 + $0x640] sm:$0xff]   ;;  %v6116_v9 = vmax.f32 %v6089_v21, 0.0  ;;  %v6092_v7 = vadd.f32 %v11757_v10, %v6012_v19  ;;  %v9018_v49 = vpop.f32.mrb[136].mxu0  ;;  %v5937_v10 = vadd.f32 %v11718_v3, %v11727_v17  ;;  %v9601_v16 = vld [vmem:[%s12316_s3 + $0x698] sm:$0xff]  }
 0x90a   : > { %v6319_v30 = vld [vmem:[#allocation3 + $0x28] sm:$0xff]  ;;  %v9019_v61 = vpop.f32.mrb[137].mxu0  ;;  %9101 = vmatpush3.bf16.msra.mxu1 %v9595_v62  ;;  %v9602_v21 = vld [vmem:[%s12316_s3 + $0x658] sm:$0xff]  }
 0x90b   : > { %6330 = vst.msk [vmem:[#allocation4 + $0xa8] sm:$0xff] %vm583_vm2, %v6319_v30  ;;  %6417 = vst.msk [vmem:[#allocation4 + $0x88] sm:$0xff] %vm583_vm2, %v6319_v30  ;;  %v6580_v33 = vld [vmem:[#allocation3 + $0x22] sm:$0xff]  ;;  %v6127_v13 = vmul.f32 %v6116_v9, %v9982_v60  ;;  %v6117_v25 = vmax.f32 %v6092_v7, 0.0  ;;  %v9020_v37 = vadd.f32 %v9019_v61, %v9018_v49  ;;  %v9021_v23 = vpop.f32.mrb[138].mxu0  ;;  %9102 = vmatprep.subr.bf16.mxu1 %v9597_v41  ;;  %v6513_v52 = vld [vmem:[#allocation3 + $0x19] sm:$0xff] }
 0x90c   : > { %6504 = vst.msk [vmem:[#allocation4 + $0x68] sm:$0xff] %vm583_vm2, %v6319_v30  ;;  %v6427_v26 = vld [vmem:[#allocation3 + $0x21] sm:$0xff]  ;;  %6591 = vst.msk [vmem:[#allocation4 + $0x48] sm:$0xff] %vm583_vm2, %v6580_v33  ;;  %v9022_v58 = vpop.f32.mrb[139].mxu0  ;;  %v6232_v22 = vld [vmem:[#allocation3 + $0x2e] sm:$0xff] }
 0x90d   : > { %6451 = vrot.lane.b32.xlu1 %v6427_v26, %s9683_s24  ;;  %6537 = vrot.lane.b32.xlu0 %v6427_v26, %s9683_s24  ;;  %6138 = vst.msk [vmem:[#allocation3 + $0x40] sm:$0xff] %vm583_vm2, %v6127_v13  ;;  %v6128_v3 = vmul.f32 %v6117_v25, %v10005_v15  ;;  %v9023_v40 = vadd.f32 %v9022_v58, %v9021_v23  ;;  %v6320_v43 = vld [vmem:[#allocation3 + $0x30] sm:$0xff]  ;;  %6243 = vst.msk [vmem:[#allocation4 + $0xc8] sm:$0xff] %vm583_vm2, %v6232_v22  ;;  %v11917_v49 = vld [vmem:[%s12316_s3 + $0x6a0] sm:$0xff]  }
 0x90e   : > { %v6017_v2 = vadd.f32 %v9020_v37, %v5937_v10  ;;  %6331 = vst.msk [vmem:[#allocation4 + $0xd0] sm:$0xff] %vm583_vm2, %v6320_v43  ;;  %6505 = vst.msk [vmem:[#allocation4 + $0x90] sm:$0xff] %vm583_vm2, %v6320_v43  ;;  %9103 = vmatpush3.bf16.msra.mxu1 %v9598_v18  ;;  %v6425_v33 = vld [vmem:[#allocation3 + $0x11] sm:$0xff]  ;;  %9280 = vmatprep.subr.bf16.mxu0 %v11917_v49  ;;  %v6428_v25 = vld [vmem:[#allocation3 + $0x29] sm:$0xff] }
 0x90f   : > { %6418 = vst.msk [vmem:[#allocation4 + $0xb0] sm:$0xff] %vm583_vm2, %v6320_v43  ;;  %6139 = vst.msk [vmem:[#allocation3 + $0x48] sm:$0xff] %vm583_vm2, %v6128_v3  ;;  %v6020_v56 = vadd.f32 %v9023_v40, %v5940_v38  ;;  %v6321_v6 = vld [vmem:[#allocation3 + $0x38] sm:$0xff]  ;;  %9104 = vmatprep.subr.bf16.mxu1 %v9599_v47  ;;  %v6254_v61 = vld [vmem:[#allocation3 + $0x2f] sm:$0xff] }
 0x910   : > { %v6097_v0 = vadd.f32 %v11785_v51, %v6017_v2  ;;  %v6233_v50 = vld [vmem:[#allocation3 + $0x36] sm:$0xff]  ;;  %6332 = vst.msk [vmem:[#allocation4 + $0xf8] sm:$0xff] %vm583_vm2, %v6321_v6  ;;  %6506 = vst.msk [vmem:[#allocation4 + $0xb8] sm:$0xff] %vm583_vm2, %v6321_v6  ;;  %v6581_v51 = vld [vmem:[#allocation3 + $0x2a] sm:$0xff] }
 0x911   : > { %6363 = vrot.lane.b32.xlu1 %v6339_v29, %s9683_s24  ;;  %6361 = vrot.lane.b32.xlu0 %v6338_v54, %s9683_s24  ;;  %6244 = vst.msk [vmem:[#allocation4 + $0xf0] sm:$0xff] %vm583_vm2, %v6233_v50  ;;  %6419 = vst.msk [vmem:[#allocation4 + $0xd8] sm:$0xff] %vm583_vm2, %v6321_v6  ;;  %v6582_v1 = vld [vmem:[#allocation3 + $0x32] sm:$0xff]  ;;  %v6100_v11 = vadd.f32 %v11800_v63, %v6020_v56  ;;  %v9024_v48 = vpop.f32.mrb[140].mxu0 }
 0x912   : > { %v6118_v44 = vmax.f32 %v6097_v0, 0.0  ;;  %6592 = vst.msk [vmem:[#allocation4 + $0x70] sm:$0xff] %vm583_vm2, %v6581_v51  ;;  %6593 = vst.msk [vmem:[#allocation4 + $0x98] sm:$0xff] %vm583_vm2, %v6582_v1  ;;  %v9025_v24 = vpop.f32.mrb[141].mxu0  ;;  %9105 = vmatpush3.bf16.msra.mxu1 %v9600_v46  ;;  %v6342_v43 = vld [vmem:[#allocation3 + $0x37] sm:$0xff]  ;;  %v6522_v1 = vld [vmem:[#allocation3 + $0x61] sm:$0xff] }
 0x913   : > { %v6119_v28 = vmax.f32 %v6100_v11, 0.0  ;;  %v9026_v31 = vadd.f32 %v9025_v24, %v9024_v48  ;;  %v9027_v63 = vpop.f32.mrb[142].mxu0  ;;  %9106 = vmatprep.subr.bf16.mxu1 %v9601_v16  ;;  %v6435_v11 = vld [vmem:[#allocation3 + $0x61] sm:$0x1] }
 0x914   : > { %v6129_v59 = vmul.f32 %v6118_v44, %v10003_v14  ;;  %v9028_v8 = vpop.f32.mrb[143].mxu0  ;;  %v6322_v17 = vld [vmem:[#allocation3 + $0x40] sm:$0xff]  ;;  %v6523_v44 = vld [vmem:[#allocation3 + $0x69] sm:$0x1] }
 0x915   : > { %6275 = vrot.lane.b32.xlu1 %v6338_v54, %s9683_s24  ;;  %6277 = vrot.lane.b32.xlu0 %v6339_v29, %s9683_s24  ;;  %v6130_v19 = vmul.f32 %v6119_v28, %v10054_v55  ;;  %v6025_v20 = vadd.f32 %v9026_v31, %v5945_v5  ;;  %v6234_v53 = vld [vmem:[#allocation3 + $0x3e] sm:$0xff]  ;;  %6333 = vst.msk [vmem:[#allocation4 + $0x120] sm:$0xff] %vm583_vm2, %v6322_v17  ;;  %6507 = vst.msk [vmem:[#allocation4 + $0xe0] sm:$0xff] %vm583_vm2, %v6322_v17  ;;  %v6516_v54 = vld [vmem:[#allocation3 + $0x31] sm:$0xff] }
 0x916   : > { %6140 = vst.msk [vmem:[#allocation3 + $0x50] sm:$0xff] %vm583_vm2, %v6129_v59  ;;  %v6583_v27 = vld [vmem:[#allocation3 + $0x3a] sm:$0xff]  ;;  %v6235_v62 = vld [vmem:[#allocation3 + $0x46] sm:$0xff]  ;;  %6245 = vst.msk [vmem:[#allocation4 + $0x118] sm:$0xff] %vm583_vm2, %v6234_v53  ;;  %9107 = vmatpush3.bf16.msra.mxu1 %v9602_v21 }
 0x917   : > { %6420 = vst.msk [vmem:[#allocation4 + $0x100] sm:$0xff] %vm583_vm2, %v6322_v17  ;;  %6594 = vst.msk [vmem:[#allocation4 + $0xc0] sm:$0xff] %vm583_vm2, %v6583_v27  ;;  %v6105_v30 = vadd.f32 %v11780_v32, %v6025_v20  ;;  %v6323_v9 = vld [vmem:[#allocation3 + $0x48] sm:$0xff]  ;;  %v6343_v22 = vld [vmem:[#allocation3 + $0x3f] sm:$0xff] }
 0x918   : > { %6141 = vst.msk [vmem:[#allocation3 + $0x58] sm:$0xff] %vm583_vm2, %v6130_v19  ;;  %6246 = vst.msk [vmem:[#allocation4 + $0x140] sm:$0xff] %vm583_vm2, %v6235_v62  ;;  %v6584_v7 = vld [vmem:[#allocation3 + $0x42] sm:$0xff]  ;;  %v6517_v29 = vld [vmem:[#allocation3 + $0x39] sm:$0xff] }
 0x919   : > { %6535 = vrot.lane.b32.xlu1 %v6513_v52, %s9683_s24  ;;  %6449 = vrot.lane.b32.xlu0 %v6513_v52, %s9683_s24  ;;  %6334 = vst.msk [vmem:[#allocation4 + $0x148] sm:$0xff] %vm583_vm2, %v6323_v9  ;;  %6508 = vst.msk [vmem:[#allocation4 + $0x108] sm:$0xff] %vm583_vm2, %v6323_v9  ;;  %v6120_v32 = vmax.f32 %v6105_v30, 0.0  ;;  %v6344_v38 = vld [vmem:[#allocation3 + $0x47] sm:$0xff]  ;;  %v6601_v19 = vld [vmem:[#allocation4] sm:$0xff] }
 0x91a   : > { %6421 = vst.msk [vmem:[#allocation4 + $0x128] sm:$0xff] %vm583_vm2, %v6323_v9  ;;  %6595 = vst.msk [vmem:[#allocation4 + $0xe8] sm:$0xff] %vm583_vm2, %v6584_v7  ;;  %v6518_v18 = vld [vmem:[#allocation3 + $0x41] sm:$0xff] }
 0x91b   : > { %v6131_v26 = vmul.f32 %v6120_v32, %v10035_v45  ;;  %v9604_v32 = vld [vmem:[%s12316_s3 + $0x6a8] sm:$0xff]  }
 0x91d   : > { %6447 = vrot.lane.b32.xlu1 %v6425_v33, %s9683_s24  ;;  %6281 = vrot.lane.b32.xlu0 %v6254_v61, %s9683_s24  ;;  %6142 = vst.msk [vmem:[#allocation3 + $0x60] sm:$0x1] %vm862_vm3, %v6131_v26  ;;  %v6236_v12 = vld [vmem:[#allocation3 + $0x4e] sm:$0xff]  ;;  %v6237_v13 = vld [vmem:[#allocation3 + $0x56] sm:$0x1] }
 0x91e   : > { %v6324_v10 = vld [vmem:[#allocation3 + $0x50] sm:$0xff]  ;;  %6247 = vst.msk [vmem:[#allocation4 + $0x168] sm:$0xff] %vm583_vm2, %v6236_v12  ;;  %v9605_v12 = vld [vmem:[%s12316_s3 + $0x6b0] sm:$0xff]  }
 0x91f   : > { %6335 = vst.msk [vmem:[#allocation4 + $0x170] sm:$0xff] %vm583_vm2, %v6324_v10  ;;  %6509 = vst.msk [vmem:[#allocation4 + $0x130] sm:$0xff] %vm583_vm2, %v6324_v10  ;;  %v6325_v37 = vld [vmem:[#allocation3 + $0x58] sm:$0x1]  ;;  %v6585_v58 = vld [vmem:[#allocation3 + $0x4a] sm:$0xff] }
 0x920   : > { %6248 = vst.msk [vmem:[#allocation4 + $0x190] sm:$0x1] %vm862_vm3, %v6237_v13  ;;  %v6499_v23 = vld [vmem:[#allocation3 + $0x58] sm:$0xff]  ;;  %6336 = vst.msk [vmem:[#allocation4 + $0x198] sm:$0x1] %vm862_vm3, %v6325_v37  ;;  %v6345_v47 = vld [vmem:[#allocation3 + $0x4f] sm:$0xff] }
 0x921   : > { %6422 = vst.msk [vmem:[#allocation4 + $0x150] sm:$0xff] %vm583_vm2, %v6324_v10  ;;  %6367 = vrot.lane.b32.xlu1 %v6254_v61, %s9683_s24  ;;  %6453 = vrot.lane.b32.xlu0 %v6428_v25, %s9683_s24  ;;  %6510 = vst.msk [vmem:[#allocation4 + $0x158] sm:$0xff] %vm583_vm2, %v6499_v23  ;;  %v6586_v41 = vld [vmem:[#allocation3 + $0x52] sm:$0xff]  ;;  %v6347_v56 = vld [vmem:[#allocation3 + $0x5f] sm:$0x1] }
 0x922   : > { %6423 = vst.msk [vmem:[#allocation4 + $0x178] sm:$0xff] %vm583_vm2, %v6499_v23  ;;  %6596 = vst.msk [vmem:[#allocation4 + $0x110] sm:$0xff] %vm583_vm2, %v6585_v58  ;;  %v6346_v0 = vld [vmem:[#allocation3 + $0x57] sm:$0xff]  ;;  %v6519_v6 = vld [vmem:[#allocation3 + $0x49] sm:$0xff] }
 0x923   : > { %6597 = vst.msk [vmem:[#allocation4 + $0x138] sm:$0xff] %vm583_vm2, %v6586_v41  ;;  %v6259_v50 = vld [vmem:[#allocation3 + $0x57] sm:$0x1] }
 0x924   : > { %v6500_v3 = vld [vmem:[#allocation3 + $0x60] sm:$0xff]  ;;  %v6520_v46 = vld [vmem:[#allocation3 + $0x51] sm:$0xff] }
 0x925   : > { %6539 = vrot.lane.b32.xlu1 %v6428_v25, %s9683_s24  ;;  %6373 = vrot.lane.b32.xlu0 %v6344_v38, %s9683_s24  ;;  %v6413_v40 = vld [vmem:[#allocation3 + $0x60] sm:$0x1]  ;;  %6511 = vst.msk [vmem:[#allocation4 + $0x180] sm:$0xff] %vm583_vm2, %v6500_v3 }
 0x926   : > { %6424 = vst.msk [vmem:[#allocation4 + $0x1a0] sm:$0x1] %vm862_vm3, %v6413_v40  ;;  %v6587_v2 = vld [vmem:[#allocation3 + $0x5a] sm:$0xff] }
 0x927   : > { %6598 = vst.msk [vmem:[#allocation4 + $0x160] sm:$0xff] %vm583_vm2, %v6587_v2  ;;  %v6521_v51 = vld [vmem:[#allocation3 + $0x59] sm:$0xff] }
 0x929   : > { %6287 = vrot.lane.b32.xlu1 %v6344_v38, %s9683_s24  ;;  %6545 = vrot.lane.b32.xlu0 %v6518_v18, %s9683_s24 }
 0x92d   : > { %6371 = vrot.lane.b32.xlu1 %v6343_v22, %s9683_s24  ;;  %6369 = vrot.lane.b32.xlu0 %v6342_v43, %s9683_s24 }
 0x931   : > { %6283 = vrot.lane.b32.xlu1 %v6342_v43, %s9683_s24  ;;  %6285 = vrot.lane.b32.xlu0 %v6343_v22, %s9683_s24 }
 0x935   : > { %6543 = vrot.lane.b32.xlu1 %v6517_v29, %s9683_s24  ;;  %6541 = vrot.lane.b32.xlu0 %v6516_v54, %s9683_s24 }
 0x939   : > { %6375 = vrot.lane.b32.xlu1 %v6345_v47, %s9683_s24  ;;  %6289 = vrot.lane.b32.xlu0 %v6345_v47, %s9683_s24 }
 0x93d   : > { %6457 = vrot.lane.b32.xlu1 %v6517_v29, %s9683_s24  ;;  %6377 = vrot.lane.b32.xlu0 %v6346_v0, %s9683_s24 }
 0x941   : > { %6379 = vrot.lane.b32.xlu1 %v6347_v56, %s9683_s24  ;;  %6455 = vrot.lane.b32.xlu0 %v6516_v54, %s9683_s24 }
 0x945   : > { %6547 = vrot.lane.b32.xlu1 %v6519_v6, %s9683_s24  ;;  %6291 = vrot.lane.b32.xlu0 %v6259_v50, %s9683_s24 }
 0x949   : > { %6459 = vrot.lane.b32.xlu1 %v6518_v18, %s9683_s24  ;;  %6549 = vrot.lane.b32.xlu0 %v6520_v46, %s9683_s24 }
 0x94d   : > { %6551 = vrot.lane.b32.xlu1 %v6521_v51, %s9683_s24  ;;  %6461 = vrot.lane.b32.xlu0 %v6519_v6, %s9683_s24 }
 0x951   : > { %6463 = vrot.lane.b32.xlu1 %v6520_v46, %s9683_s24  ;;  %6553 = vrot.lane.b32.xlu0 %v6522_v1, %s9683_s24 }
 0x955   : > { %6465 = vrot.lane.b32.xlu0 %v6521_v51, %s9683_s24  ;;  %6555 = vrot.lane.b32.xlu1 %v6523_v44, %s9683_s24 }
 0x959   : > { %6467 = vrot.lane.b32.xlu0 %v6435_v11, %s9683_s24  ;;  %s7719_s24 = sshll.u32 %s554_s19, 4  ;;  %s12272_s24 = int_to_ptr.vmem [resolvable:$true] %s7719_s24 }
 0x95a   : > { %s9617_s28 = scalar_lea.vmem %s12272_s24, 16  ;;  %p9624_p0 = scmp.lt.s32.totalorder %s12272_s24, %s9622_s26 }
 0x95b   : > { %p9618_p11 = scmp.ne.s32.totalorder %s12272_s24, %s9617_s28 }
 0x95d   : > { %p9619_p12 = pnand %p9618_p11, %p9818_p5 }
 0x95f   : > { %p9620_p13 = pneg %p9619_p12 }
 0x96f   : > { %v6360_v48 = vpop.permute.xlu1 %6359 }
 0x970   : > { %v6274_v24 = vpop.permute.xlu0 %6273  ;;  %6392 = vst.msk [vmem:[#allocation4 + $0x8] sm:$0xff] %vm1013_vm4, %v6360_v48 }
 0x971   : > { %6305 = vst.msk [vmem:[#allocation4 + $0x28] sm:$0xff] %vm1013_vm4, %v6274_v24 }
 0x977   : > { %v6602_v27 = vld [vmem:[#allocation4 + $0x8] sm:$0xff] }
 0x978   : > { %v6606_v20 = vld [vmem:[#allocation4 + $0x28] sm:$0xff] }
 0x979   : > { %v6656_v9 = vpack.c.bf16 %v6606_v20, %v6601_v19 }
 0x97a   : > { %v6280_v16 = vpop.permute.xlu1 %6279  ;;  %v6366_v5 = vpop.permute.xlu0 %6365 }
 0x97b   : > { %6308 = vst.msk [vmem:[#allocation4 + $0xa0] sm:$0xff] %vm1013_vm4, %v6280_v16  ;;  %6395 = vst.msk [vmem:[#allocation4 + $0x80] sm:$0xff] %vm1013_vm4, %v6366_v5 }
 0x97f   : > { %v6452_v59 = vpop.permute.xlu1 %6451  ;;  %v6538_v28 = vpop.permute.xlu0 %6537 }
 0x980   : > { %6482 = vst.msk [vmem:[#allocation4 + $0x60] sm:$0xff] %vm1013_vm4, %v6452_v59  ;;  %6569 = vst.msk [vmem:[#allocation4 + $0x40] sm:$0xff] %vm1013_vm4, %v6538_v28 }
 0x982   : > { %v6617_v7 = vld [vmem:[#allocation4 + $0x80] sm:$0xff] }
 0x983   : > { %v6364_v31 = vpop.permute.xlu1 %6363  ;;  %v6362_v63 = vpop.permute.xlu0 %6361  ;;  %v6621_v48 = vld [vmem:[#allocation4 + $0xa0] sm:$0xff] }
 0x984   : > { %6394 = vst.msk [vmem:[#allocation4 + $0x58] sm:$0xff] %vm1013_vm4, %v6364_v31  ;;  %6393 = vst.msk [vmem:[#allocation4 + $0x30] sm:$0xff] %vm1013_vm4, %v6362_v63 }
 0x987   : > { %v6276_v8 = vpop.permute.xlu1 %6275  ;;  %v6278_v21 = vpop.permute.xlu0 %6277  ;;  %v6609_v58 = vld [vmem:[#allocation4 + $0x40] sm:$0xff] }
 0x988   : > { %6306 = vst.msk [vmem:[#allocation4 + $0x50] sm:$0xff] %vm1013_vm4, %v6276_v8  ;;  %6307 = vst.msk [vmem:[#allocation4 + $0x78] sm:$0xff] %vm1013_vm4, %v6278_v21 }
 0x98b   : > { %v6536_v17 = vpop.permute.xlu1 %6535  ;;  %v6450_v53 = vpop.permute.xlu0 %6449  ;;  %v6607_v52 = vld [vmem:[#allocation4 + $0x30] sm:$0xff]  ;;  %v6612_v62 = vld [vmem:[#allocation4 + $0x58] sm:$0xff] }
 0x98c   : > { %6568 = vst.msk [vmem:[#allocation4 + $0x18] sm:$0xff] %vm1013_vm4, %v6536_v17  ;;  %6481 = vst.msk [vmem:[#allocation4 + $0x38] sm:$0xff] %vm1013_vm4, %v6450_v53  ;;  %v6657_v30 = vpack.c.bf16 %v6607_v52, %v6602_v27  ;;  %v6662_v33 = vpack.c.bf16 %v6617_v7, %v6612_v62  ;;  %v6613_v52 = vld [vmem:[#allocation4 + $0x60] sm:$0xff] }
 0x98e   : > { %6960 = vmatprep.mubr.bf16.mxu0 %v6657_v30 }
 0x98f   : > { %v6448_v61 = vpop.permute.xlu1 %6447  ;;  %v6282_v26 = vpop.permute.xlu0 %6281  ;;  %6961 = vmatmul.mubr.bf16.vlgmr.msra.gmra.mrb[144].mxu0 %v6656_v9  ;;  %v6611_v10 = vld [vmem:[#allocation4 + $0x50] sm:$0xff]  ;;  %v6616_v13 = vld [vmem:[#allocation4 + $0x78] sm:$0xff] }
 0x990   : > { %6480 = vst.msk [vmem:[#allocation4 + $0x10] sm:$0xff] %vm1013_vm4, %v6448_v61  ;;  %6309 = vst.msk [vmem:[#allocation4 + $0xc8] sm:$0xff] %vm1013_vm4, %v6282_v26  ;;  %6968 = vmatprep.mubr.bf16.mxu0 %v6662_v33  ;;  %9281 = vmatpush3.bf16.msra.mxu0 %v11917_v49  ;;  %v6661_v38 = vpack.c.bf16 %v6616_v13, %v6611_v10  ;;  %v9606_v49 = vld [vmem:[%s12316_s3 + $0x6b8] sm:$0xff]  }
 0x991   : > { %9282 = vmatprep.subr.bf16.mxu0 %v9604_v32 }
 0x993   : > { %v6368_v25 = vpop.permute.xlu1 %6367  ;;  %v6454_v37 = vpop.permute.xlu0 %6453  ;;  %v6604_v23 = vld [vmem:[#allocation4 + $0x18] sm:$0xff] }
 0x994   : > { %6396 = vst.msk [vmem:[#allocation4 + $0xa8] sm:$0xff] %vm1013_vm4, %v6368_v25  ;;  %6483 = vst.msk [vmem:[#allocation4 + $0x88] sm:$0xff] %vm1013_vm4, %v6454_v37  ;;  %v6659_v41 = vpack.c.bf16 %v6609_v58, %v6604_v23  ;;  %9283 = vmatpush3.bf16.msra.mxu0 %v9604_v32  ;;  %v6608_v18 = vld [vmem:[#allocation4 + $0x38] sm:$0xff] }
 0x995   : > { %9284 = vmatprep.subr.bf16.mxu0 %v9605_v12 }
 0x996   : > { %7040 = vmatprep.mubr.bf16.mxu1 %v6659_v41 }
 0x997   : > { %v6540_v3 = vpop.permute.xlu1 %6539  ;;  %v6374_v40 = vpop.permute.xlu0 %6373  ;;  %6969 = vmatmul.mubr.bf16.gmra.mrb[148].mxu0 %v6661_v38  ;;  %v6603_v2 = vld [vmem:[#allocation4 + $0x10] sm:$0xff]  ;;  %v6626_v6 = vld [vmem:[#allocation4 + $0xc8] sm:$0xff] }
 0x998   : > { %6570 = vst.msk [vmem:[#allocation4 + $0x68] sm:$0xff] %vm1013_vm4, %v6540_v3  ;;  %6399 = vst.msk [vmem:[#allocation4 + $0x120] sm:$0xff] %vm1013_vm4, %v6374_v40  ;;  %v6658_v22 = vpack.c.bf16 %v6608_v18, %v6603_v2  ;;  %9285 = vmatpush3.bf16.msra.mxu0 %v9605_v12  ;;  %v6666_v24 = vpack.c.bf16 %v6626_v6, %v6621_v48 }
 0x999   : > { %9286 = vmatprep.subr.bf16.mxu0 %v9606_v49 }
 0x99a   : > { %7041 = vmatmul.mubr.bf16.vlgmr.msra.gmra.mrb[168].mxu1 %v6658_v22 }
 0x99b   : > { %v6288_v43 = vpop.permute.xlu1 %6287  ;;  %v6546_v29 = vpop.permute.xlu0 %6545  ;;  %v6622_v51 = vld [vmem:[#allocation4 + $0xa8] sm:$0xff] }
 0x99c   : > { %6312 = vst.msk [vmem:[#allocation4 + $0x140] sm:$0xff] %vm1013_vm4, %v6288_v43  ;;  %6573 = vst.msk [vmem:[#allocation4 + $0xe0] sm:$0xff] %vm1013_vm4, %v6546_v29  ;;  %9287 = vmatpush3.bf16.msra.mxu0 %v9606_v49  ;;  %v6618_v31 = vld [vmem:[#allocation4 + $0x88] sm:$0xff] }
 0x99d   : > { %v6663_v62 = vpack.c.bf16 %v6618_v31, %v6613_v52  ;;  %v6610_v29 = vld [vmem:[#allocation4 + $0x48] sm:$0xff]  ;;  %v6625_v31 = vld [vmem:[#allocation4 + $0xc0] sm:$0xff] }
 0x99f   : > { %v6372_v54 = vpop.permute.xlu1 %6371  ;;  %v6370_v47 = vpop.permute.xlu0 %6369  ;;  %v6637_v16 = vld [vmem:[#allocation4 + $0x120] sm:$0xff]  ;;  %v6614_v20 = vld [vmem:[#allocation4 + $0x68] sm:$0xff] }
 0x9a0   : > { %6398 = vst.msk [vmem:[#allocation4 + $0xf8] sm:$0xff] %vm1013_vm4, %v6372_v54  ;;  %6397 = vst.msk [vmem:[#allocation4 + $0xd0] sm:$0xff] %vm1013_vm4, %v6370_v47  ;;  %v6605_v47 = vld [vmem:[#allocation4 + $0x20] sm:$0xff] }
 0x9a3   : > { %v6284_v0 = vpop.permute.xlu1 %6283  ;;  %v6286_v56 = vpop.permute.xlu0 %6285  ;;  %v6629_v9 = vld [vmem:[#allocation4 + $0xe0] sm:$0xff] }
 0x9a4   : > { %6310 = vst.msk [vmem:[#allocation4 + $0xf0] sm:$0xff] %vm1013_vm4, %v6284_v0  ;;  %6311 = vst.msk [vmem:[#allocation4 + $0x118] sm:$0xff] %vm1013_vm4, %v6286_v56  ;;  %v6641_v37 = vld [vmem:[#allocation4 + $0x140] sm:$0xff]  ;;  %v6660_v0 = vpack.c.bf16 %v6610_v29, %v6605_v47 }
 0x9a7   : > { %v6544_v50 = vpop.permute.xlu1 %6543  ;;  %v6542_v46 = vpop.permute.xlu0 %6541  ;;  %v6627_v1 = vld [vmem:[#allocation4 + $0xd0] sm:$0xff]  ;;  %v6632_v44 = vld [vmem:[#allocation4 + $0xf8] sm:$0xff] }
 0x9a8   : > { %6572 = vst.msk [vmem:[#allocation4 + $0xb8] sm:$0xff] %vm1013_vm4, %v6544_v50  ;;  %6571 = vst.msk [vmem:[#allocation4 + $0x90] sm:$0xff] %vm1013_vm4, %v6542_v46  ;;  %v6667_v11 = vpack.c.bf16 %v6627_v1, %v6622_v51  ;;  %v6672_v5 = vpack.c.bf16 %v6637_v16, %v6632_v44  ;;  %v6620_v1 = vld [vmem:[#allocation4 + $0x98] sm:$0xff] }
 0x9aa   : > { %6976 = vmatprep.mubr.bf16.mxu0 %v6667_v11 }
 0x9ab   : > { %v6376_v59 = vpop.permute.xlu1 %6375  ;;  %v6290_v28 = vpop.permute.xlu0 %6289  ;;  %6977 = vmatmul.mubr.bf16.gmra.mrb[152].mxu0 %v6666_v24  ;;  %v6631_v63 = vld [vmem:[#allocation4 + $0xf0] sm:$0xff]  ;;  %v6636_v8 = vld [vmem:[#allocation4 + $0x118] sm:$0xff]  ;;  %v6630_v24 = vld [vmem:[#allocation4 + $0xe8] sm:$0xff] }
 0x9ac   : > { %6400 = vst.msk [vmem:[#allocation4 + $0x148] sm:$0xff] %vm1013_vm4, %v6376_v59  ;;  %6313 = vst.msk [vmem:[#allocation4 + $0x168] sm:$0xff] %vm1013_vm4, %v6290_v28  ;;  %6984 = vmatprep.mubr.bf16.mxu0 %v6672_v5  ;;  %v6671_v30 = vpack.c.bf16 %v6636_v8, %v6631_v63  ;;  %v6615_v59 = vld [vmem:[#allocation4 + $0x70] sm:$0xff]  ;;  %v6670_v63 = vpack.c.bf16 %v6630_v24, %v6625_v31 }
 0x9ad   : > { %v6665_v28 = vpack.c.bf16 %v6620_v1, %v6615_v59 }
 0x9af   : > { %v6458_v21 = vpop.permute.xlu1 %6457  ;;  %v6378_v19 = vpop.permute.xlu0 %6377  ;;  %v6619_v17 = vld [vmem:[#allocation4 + $0x90] sm:$0xff]  ;;  %v6624_v53 = vld [vmem:[#allocation4 + $0xb8] sm:$0xff] }
 0x9b0   : > { %6485 = vst.msk [vmem:[#allocation4 + $0xd8] sm:$0xff] %vm1013_vm4, %v6458_v21  ;;  %6401 = vst.msk [vmem:[#allocation4 + $0x170] sm:$0xff] %vm1013_vm4, %v6378_v19  ;;  %v6664_v27 = vpack.c.bf16 %v6619_v17, %v6614_v20  ;;  %v6669_v7 = vpack.c.bf16 %v6629_v9, %v6624_v53  ;;  %v6640_v17 = vld [vmem:[#allocation4 + $0x138] sm:$0xff]  ;;  %v6645_v53 = vld [vmem:[#allocation4 + $0x160] sm:$0xff] }
 0x9b2   : > { %7048 = vmatprep.mubr.bf16.mxu1 %v6664_v27  ;;  %v6650_v27 = vld [vmem:[#allocation4 + $0x188] sm:$0xff] }
 0x9b3   : > { %v6380_v32 = vpop.permute.xlu1 %6379  ;;  %7049 = vmatmul.mubr.bf16.gmra.mrb[172].mxu1 %v6663_v62  ;;  %v6456_v33 = vpop.permute.xlu0 %6455  ;;  %6985 = vmatmul.mubr.bf16.gmra.mrb[156].mxu0 %v6671_v30  ;;  %v6646_v61 = vld [vmem:[#allocation4 + $0x168] sm:$0xff] }
 0x9b4   : > { %6402 = vst.msk [vmem:[#allocation4 + $0x198] sm:$0x1] %vm1024_vm5, %v6380_v32  ;;  %7056 = vmatprep.mubr.bf16.mxu1 %v6669_v7  ;;  %v6642_v10 = vld [vmem:[#allocation4 + $0x148] sm:$0xff]  ;;  %v6676_v23 = vpack.c.bf16 %v6646_v61, %v6641_v37  ;;  %v6635_v7 = vld [vmem:[#allocation4 + $0x110] sm:$0xff]  ;;  %v6680_v61 = vpack.c.bf16 %v6650_v27, %v6645_v53  ;;  %v9608_v37 = vld [vmem:[%s12319_s6 + $0x8] sm:$0xff]  }
 0x9b5   : > { %6484 = vst.msk [vmem:[#allocation4 + $0xb0] sm:$0xff] %vm1013_vm4, %v6456_v33  ;;  %v6675_v33 = vpack.c.bf16 %v6640_v17, %v6635_v7 }
 0x9b7   : > { %v6548_v26 = vpop.permute.xlu1 %6547  ;;  %v6292_v12 = vpop.permute.xlu0 %6291  ;;  %v6647_v13 = vld [vmem:[#allocation4 + $0x170] sm:$0xff]  ;;  %v6628_v3 = vld [vmem:[#allocation4 + $0xd8] sm:$0xff] }
 0x9b8   : > { %6574 = vst.msk [vmem:[#allocation4 + $0x108] sm:$0xff] %vm1013_vm4, %v6548_v26  ;;  %v6677_v25 = vpack.c.bf16 %v6647_v13, %v6642_v10 }
 0x9b9   : > { %6314 = vst.msk [vmem:[#allocation4 + $0x190] sm:$0x1] %vm1024_vm5, %v6292_v12  ;;  %v6655_v12 = vld [vmem:[#allocation4 + $0x1b0] sm:$0x1] }
 0x9ba   : > { %6992 = vmatprep.mubr.bf16.mxu0 %v6677_v25  ;;  %v6685_v13 = vpack.c.bf16 %v6655_v12, %v6655_v12  ;;  %v9607_v25 = vld [vmem:[%s12319_s6] sm:$0xff]  }
 0x9bb   : > { %v6460_v58 = vpop.permute.xlu1 %6459  ;;  %v6550_v41 = vpop.permute.xlu0 %6549  ;;  %6993 = vmatmul.mubr.bf16.gmra.mrb[160].mxu0 %v6676_v23  ;;  %v6652_v38 = vld [vmem:[#allocation4 + $0x198] sm:$0x1]  ;;  %9300 = vmatprep.subr.bf16.mxu0 %v9607_v25  ;;  %v9609_v23 = vld [vmem:[%s12319_s6 + $0x10] sm:$0xff]  }
 0x9bc   : > { %v6623_v49 = vld [vmem:[#allocation4 + $0xb0] sm:$0xff]  ;;  %6486 = vst.msk [vmem:[#allocation4 + $0x100] sm:$0xff] %vm1013_vm4, %v6460_v58  ;;  %6575 = vst.msk [vmem:[#allocation4 + $0x130] sm:$0xff] %vm1013_vm4, %v6550_v41  ;;  %v6682_v40 = vpack.c.bf16 %v6652_v38, %v6652_v38  ;;  %v9610_v58 = vld [vmem:[%s12319_s6 + $0x18] sm:$0xff]  }
 0x9bd   : > { %v6668_v2 = vpack.c.bf16 %v6628_v3, %v6623_v49 }
 0x9be   : > { %7000 = vmatprep.mubr.bf16.mxu0 %v6682_v40 }
 0x9bf   : > { %7057 = vmatmul.mubr.bf16.gmra.mrb[176].mxu1 %v6668_v2  ;;  %v6552_v18 = vpop.permute.xlu1 %6551  ;;  %v6462_v22 = vpop.permute.xlu0 %6461  ;;  %v6634_v50 = vld [vmem:[#allocation4 + $0x108] sm:$0xff] }
 0x9c0   : > { %v6651_v43 = vld [vmem:[#allocation4 + $0x190] sm:$0x1]  ;;  %6576 = vst.msk [vmem:[#allocation4 + $0x158] sm:$0xff] %vm1013_vm4, %v6552_v18  ;;  %6487 = vst.msk [vmem:[#allocation4 + $0x128] sm:$0xff] %vm1013_vm4, %v6462_v22 }
 0x9c1   : > { %v6681_v54 = vpack.c.bf16 %v6651_v43, %v6651_v43  ;;  %v12044_v43 = vld [vmem:[%s12317_s4 + $0x5] ss:$0 sm:$0xff] }
 0x9c3   : > { %v6464_v56 = vpop.permute.xlu1 %6463  ;;  %v6554_v6 = vpop.permute.xlu0 %6553  ;;  %7001 = vmatmul.mubr.bf16.gmra.mrb[164].mxu0 %v6681_v54  ;;  %v6639_v46 = vld [vmem:[#allocation4 + $0x130] sm:$0xff]  ;;  %v6633_v11 = vld [vmem:[#allocation4 + $0x100] sm:$0xff] }
 0x9c4   : > { %6488 = vst.msk [vmem:[#allocation4 + $0x150] sm:$0xff] %vm1013_vm4, %v6464_v56  ;;  %6577 = vst.msk [vmem:[#allocation4 + $0x180] sm:$0xff] %vm1013_vm4, %v6554_v6  ;;  %9288 = vmatprep.mubr.msk.bf16.mxu0 %vm583_vm2, %v6660_v0  ;;  %v6674_v51 = vpack.c.bf16 %v6639_v46, %v6634_v50 }
 0x9c6   : > { %7064 = vmatprep.mubr.bf16.mxu1 %v6674_v51 }
 0x9c7   : > { %v6466_v44 = vpop.permute.xlu0 %6465  ;;  %v6638_v48 = vld [vmem:[#allocation4 + $0x128] sm:$0xff]  ;;  %v6556_v16 = vpop.permute.xlu1 %6555  ;;  %v6644_v8 = vld [vmem:[#allocation4 + $0x158] sm:$0xff] }
 0x9c8   : > { %6489 = vst.msk [vmem:[#allocation4 + $0x178] sm:$0xff] %vm1013_vm4, %v6466_v44  ;;  %v6673_v5 = vpack.c.bf16 %v6638_v48, %v6633_v11 }
 0x9c9   : > { %6578 = vst.msk [vmem:[#allocation4 + $0x1a8] sm:$0x1] %vm1024_vm5, %v6556_v16 }
 0x9ca   : > { %7065 = vmatmul.mubr.bf16.gmra.mrb[180].mxu1 %v6673_v5 }
 0x9cb   : > { %9289 = vmatmul.mubr.msk.bf16.vlgmr.msra.gmra.mrb[168].mxu0 %vm583_vm2, %v6665_v28  ;;  %v6649_v21 = vld [vmem:[#allocation4 + $0x180] sm:$0xff]  ;;  %v6468_v19 = vpop.permute.xlu0 %6467  ;;  %v6643_v52 = vld [vmem:[#allocation4 + $0x150] sm:$0xff] }
 0x9cc   : > { %9292 = vmatprep.mubr.msk.bf16.mxu0 %vm583_vm2, %v6670_v63  ;;  %v6679_v20 = vpack.c.bf16 %v6649_v21, %v6644_v8  ;;  %6490 = vst.msk [vmem:[#allocation4 + $0x1a0] sm:$0x1] %vm1024_vm5, %v6468_v19  ;;  %9301 = vmatpush3.bf16.msra.mxu0 %v9607_v25 }
 0x9cd   : > { %9302 = vmatprep.subr.bf16.mxu0 %v9608_v37 }
 0x9ce   : > { %7072 = vmatprep.mubr.bf16.mxu1 %v6679_v20 }
 0x9cf   : > { %v6648_v62 = vld [vmem:[#allocation4 + $0x178] sm:$0xff] }
 0x9d0   : > { %v6654_v30 = vld [vmem:[#allocation4 + $0x1a8] sm:$0x1]  ;;  %v6678_v9 = vpack.c.bf16 %v6648_v62, %v6643_v52  ;;  %9303 = vmatpush3.bf16.msra.mxu0 %v9608_v37 }
 0x9d1   : > { %v6684_v32 = vpack.c.bf16 %v6654_v30, %v6654_v30  ;;  %9304 = vmatprep.subr.bf16.mxu0 %v9609_v23 }
 0x9d2   : > { %7073 = vmatmul.mubr.bf16.gmra.mrb[184].mxu1 %v6678_v9 }
 0x9d3   : > { %9293 = vmatmul.mubr.msk.bf16.gmra.mrb[172].mxu0 %vm583_vm2, %v6675_v33  ;;  %7080 = vmatprep.mubr.bf16.mxu1 %v6684_v32  ;;  %v6653_v26 = vld [vmem:[#allocation4 + $0x1a0] sm:$0x1] }
 0x9d4   : > { %9296 = vmatprep.mubr.msk.bf16.mxu0 %vm583_vm2, %v6680_v61  ;;  %v6683_v10 = vpack.c.bf16 %v6653_v26, %v6653_v26  ;;  %9305 = vmatpush3.bf16.msra.mxu0 %v9609_v23 }
 0x9d5   : > { %9306 = vmatprep.subr.bf16.mxu0 %v9610_v58 }
 0x9d8   : > { %9307 = vmatpush3.bf16.msra.mxu0 %v9610_v58 }
 0x9da   : > { %7081 = vmatmul.mubr.bf16.gmra.mrb[188].mxu1 %v6683_v10 }
 0x9db   : > { %9297 = vmatmul.mubr.msk.bf16.gmra.mrb[176].mxu0 %vm583_vm2, %v6685_v13 }
 0xa62   : > { %v9056_v41 = vpop.f32.mrb[144].mxu0 }
 0xa63   : > { %v9057_v38 = vpop.f32.mrb[145].mxu0 }
 0xa64   : > { %v9058_v49 = vadd.f32 %v9057_v38, %v9056_v41  ;;  %v9059_v3 = vpop.f32.mrb[146].mxu0 }
 0xa65   : > { %v9060_v40 = vpop.f32.mrb[147].mxu0 }
 0xa66   : > { %v9061_v2 = vadd.f32 %v9060_v40, %v9059_v3  ;;  %v6963_v50 = vadd.f32 %v9058_v49, %v12044_v43 }
 0xa68   : > { %v6966_v44 = vadd.f32 %v9061_v2, %v12044_v43 }
 0xa6a   : > { %v9062_v18 = vpop.f32.mrb[148].mxu0 }
 0xa6b   : > { %v9063_v22 = vpop.f32.mrb[149].mxu0 }
 0xa6c   : > { %v9064_v29 = vadd.f32 %v9063_v22, %v9062_v18  ;;  %v9065_v54 = vpop.f32.mrb[150].mxu0 }
 0xa6d   : > { %v9066_v47 = vpop.f32.mrb[151].mxu0  ;;  %v9108_v0 = vpop.f32.mrb[168].mxu1 }
 0xa6e   : > { %v9067_v56 = vadd.f32 %v9066_v47, %v9065_v54  ;;  %v9109_v6 = vpop.f32.mrb[169].mxu1  ;;  %v6971_v17 = vadd.f32 %v9064_v29, %v12044_v43 }
 0xa6f   : > { %v9110_v46 = vadd.f32 %v9109_v6, %v9108_v0  ;;  %v9111_v51 = vpop.f32.mrb[170].mxu1 }
 0xa70   : > { %v9112_v1 = vpop.f32.mrb[171].mxu1  ;;  %v6974_v7 = vadd.f32 %v9067_v56, %v12044_v43 }
 0xa71   : > { %v9113_v11 = vadd.f32 %v9112_v1, %v9111_v51  ;;  %v7043_v48 = vadd.f32 %v9110_v46, %v6963_v50 }
 0xa73   : > { %v12048_v24 = vadd.f32 %v9113_v11, %v6966_v44 }
 0xa7e   : > { %v9068_v16 = vpop.f32.mrb[152].mxu0 }
 0xa7f   : > { %v9069_v5 = vpop.f32.mrb[153].mxu0 }
 0xa80   : > { %v9070_v59 = vadd.f32 %v9069_v5, %v9068_v16  ;;  %v9071_v28 = vpop.f32.mrb[154].mxu0 }
 0xa81   : > { %v9072_v31 = vpop.f32.mrb[155].mxu0 }
 0xa82   : > { %v9073_v63 = vadd.f32 %v9072_v31, %v9071_v28  ;;  %v6979_v38 = vadd.f32 %v9070_v59, %v12044_v43  ;;  %v6145_v28 = vld [vmem:[#allocation2 + $0x20] sm:$0xff] }
 0xa84   : > { %v6982_v2 = vadd.f32 %v9073_v63, %v12044_v43 }
 0xa86   : > { %v9074_v8 = vpop.f32.mrb[156].mxu0  ;;  %v9114_v21 = vpop.f32.mrb[172].mxu1 }
 0xa87   : > { %v9075_v19 = vpop.f32.mrb[157].mxu0  ;;  %v9115_v20 = vpop.f32.mrb[173].mxu1 }
 0xa88   : > { %v9076_v53 = vadd.f32 %v9075_v19, %v9074_v8  ;;  %v9116_v27 = vadd.f32 %v9115_v20, %v9114_v21  ;;  %v9077_v52 = vpop.f32.mrb[158].mxu0  ;;  %v9117_v62 = vpop.f32.mrb[174].mxu1  ;;  %v6143_v19 = vld [vmem:[#allocation2 + $0x10] sm:$0xff] }
 0xa89   : > { %v9078_v30 = vpop.f32.mrb[159].mxu0  ;;  %v9118_v9 = vpop.f32.mrb[175].mxu1 }
 0xa8a   : > { %v9079_v32 = vadd.f32 %v9078_v30, %v9077_v52  ;;  %v9119_v33 = vadd.f32 %v9118_v9, %v9117_v62  ;;  %v7051_v61 = vadd.f32 %v9116_v27, %v6971_v17  ;;  %v6987_v1 = vadd.f32 %v9076_v53, %v12044_v43  ;;  %v6146_v30 = vld [vmem:[#allocation2 + $0x28] sm:$0xff] }
 0xa8c   : > { %v7054_v26 = vadd.f32 %v9119_v33, %v6974_v7  ;;  %v6990_v59 = vadd.f32 %v9079_v32, %v12044_v43  ;;  %v6144_v33 = vld [vmem:[#allocation2 + $0x18] sm:$0xff] }
 0xa8e   : > { %v9080_v12 = vpop.f32.mrb[160].mxu0 }
 0xa8f   : > { %v9081_v10 = vpop.f32.mrb[161].mxu0 }
 0xa90   : > { %v9082_v13 = vadd.f32 %v9081_v10, %v9080_v12  ;;  %v9083_v25 = vpop.f32.mrb[162].mxu0 }
 0xa91   : > { %v9084_v37 = vpop.f32.mrb[163].mxu0 }
 0xa92   : > { %v9120_v23 = vpop.f32.mrb[176].mxu1  ;;  %v9085_v58 = vadd.f32 %v9084_v37, %v9083_v25 }
 0xa93   : > { %v9121_v41 = vpop.f32.mrb[177].mxu1 }
 0xa94   : > { %v9122_v49 = vadd.f32 %v9121_v41, %v9120_v23  ;;  %v9123_v3 = vpop.f32.mrb[178].mxu1 }
 0xa95   : > { %v9124_v40 = vpop.f32.mrb[179].mxu1 }
 0xa96   : > { %v9125_v18 = vadd.f32 %v9124_v40, %v9123_v3  ;;  %v7059_v22 = vadd.f32 %v9122_v49, %v6979_v38  ;;  %v9086_v29 = vpop.f32.mrb[164].mxu0  ;;  %v6995_v38 = vadd.f32 %v9082_v13, %v12044_v43 }
 0xa97   : > { %v9087_v54 = vpop.f32.mrb[165].mxu0 }
 0xa98   : > { %v12054_v47 = vadd.f32 %v9125_v18, %v6982_v2  ;;  %v12056_v0 = vadd.f32 %v9087_v54, %v9086_v29  ;;  %v9089_v56 = vpop.f32.mrb[166].mxu0  ;;  %v6998_v18 = vadd.f32 %v9085_v58, %v12044_v43  ;;  %v6150_v58 = vld [vmem:[#allocation2 + $0x48] sm:$0xff] }
 0xa99   : > { %v9090_v6 = vpop.f32.mrb[167].mxu0 }
 0xa9a   : > { %v6147_v6 = vld [vmem:[#allocation2 + $0x30] sm:$0xff] }
 0xa9d   : > { %v9126_v50 = vpop.f32.mrb[180].mxu1 }
 0xa9e   : > { %v9127_v46 = vpop.f32.mrb[181].mxu1  ;;  %v9290_v51 = vpop.f32.mrb[168].mxu0 }
 0xa9f   : > { %v9128_v44 = vadd.f32 %v9127_v46, %v9126_v50  ;;  %v7131_v11 = vadd.f32 %v9290_v51, %v7051_v61  ;;  %v9129_v16 = vpop.f32.mrb[182].mxu1  ;;  %v7122_v5 = vpop.f32.mrb[169].mxu0 }
 0xaa0   : > { %v7123_v31 = vadd.f32 %v7122_v5, %v7043_v48  ;;  %v9130_v63 = vpop.f32.mrb[183].mxu1  ;;  %v9291_v8 = vpop.f32.mrb[170].mxu0 }
 0xaa1   : > { %v7170_v21 = vadd.f32 %v7131_v11, %v6145_v28  ;;  %v9131_v20 = vadd.f32 %v9130_v63, %v9129_v16  ;;  %v7134_v17 = vadd.f32 %v9291_v8, %v7054_v26  ;;  %v7125_v27 = vpop.f32.mrb[171].mxu0  ;;  %v7067_v52 = vadd.f32 %v9128_v44, %v6987_v1  ;;  %v6148_v16 = vld [vmem:[#allocation2 + $0x38] sm:$0xff] }
 0xaa2   : > { %v7168_v62 = vadd.f32 %v7123_v31, %v6143_v19  ;;  %v7126_v53 = vadd.f32 %v7125_v27, %v12048_v24 }
 0xaa3   : > { %v7181_v9 = vmax.f32 %v7170_v21, 0.0  ;;  %v7171_v7 = vadd.f32 %v7134_v17, %v6146_v30  ;;  %v7070_v61 = vadd.f32 %v9131_v20, %v6990_v59  ;;  %v7003_v17 = vadd.f32 %v12056_v0, %v12044_v43 }
 0xaa4   : > { %v7179_v12 = vmax.f32 %v7168_v62, 0.0  ;;  %v7169_v32 = vadd.f32 %v7126_v53, %v6144_v33  ;;  %v6151_v33 = vld [vmem:[#allocation2 + $0x50] sm:$0xff] }
 0xaa5   : > { %v7192_v48 = vmul.f32 %v7181_v9, %v9950_v35  ;;  %v7182_v10 = vmax.f32 %v7171_v7, 0.0  ;;  %v9132_v25 = vpop.f32.mrb[184].mxu1 }
 0xaa6   : > { %v7190_v37 = vmul.f32 %v7179_v12, %v9948_v34  ;;  %v7180_v23 = vmax.f32 %v7169_v32, 0.0  ;;  %v9133_v26 = vpop.f32.mrb[185].mxu1  ;;  %v9294_v41 = vpop.f32.mrb[172].mxu0  ;;  %v6149_v34 = vld [vmem:[#allocation2 + $0x40] sm:$0xff] }
 0xaa7   : > { %7203 = vst.msk [vmem:[#allocation2 + $0x20] sm:$0xff] %vm583_vm2, %v7192_v48  ;;  %v7193_v24 = vmul.f32 %v7182_v10, %v9959_v39  ;;  %v9134_v49 = vadd.f32 %v9133_v26, %v9132_v25  ;;  %v7147_v3 = vadd.f32 %v9294_v41, %v7067_v52  ;;  %v9135_v40 = vpop.f32.mrb[186].mxu1  ;;  %v7138_v2 = vpop.f32.mrb[173].mxu0  ;;  %v6152_v25 = vld [vmem:[#allocation2 + $0x58] sm:$0xff] }
 0xaa8   : > { %7201 = vst.msk [vmem:[#allocation2 + $0x10] sm:$0xff] %vm583_vm2, %v7190_v37  ;;  %v7191_v35 = vmul.f32 %v7180_v23, %v9952_v36  ;;  %v7139_v29 = vadd.f32 %v7138_v2, %v7059_v22  ;;  %v9136_v54 = vpop.f32.mrb[187].mxu1  ;;  %v9295_v56 = vpop.f32.mrb[174].mxu0  ;;  %v6153_v37 = vld [vmem:[#allocation2 + $0x60] sm:$0x1] }
 0xaa9   : > { %7204 = vst.msk [vmem:[#allocation2 + $0x28] sm:$0xff] %vm583_vm2, %v7193_v24  ;;  %v7174_v13 = vadd.f32 %v7147_v3, %v6149_v34  ;;  %v9137_v50 = vadd.f32 %v9136_v54, %v9135_v40  ;;  %v7150_v39 = vadd.f32 %v9295_v56, %v7070_v61  ;;  %v7141_v46 = vpop.f32.mrb[175].mxu0  ;;  %v7075_v51 = vadd.f32 %v9134_v49, %v6995_v38 }
 0xaaa   : > { %7202 = vst.msk [vmem:[#allocation2 + $0x18] sm:$0xff] %vm583_vm2, %v7191_v35  ;;  %v7172_v1 = vadd.f32 %v7139_v29, %v6147_v6  ;;  %v7142_v44 = vadd.f32 %v7141_v46, %v12054_v47 }
 0xaab   : > { %v7185_v11 = vmax.f32 %v7174_v13, 0.0  ;;  %v7175_v36 = vadd.f32 %v7150_v39, %v6150_v58  ;;  %v7078_v22 = vadd.f32 %v9137_v50, %v6998_v18 }
 0xaac   : > { %v7183_v5 = vmax.f32 %v7172_v1, 0.0  ;;  %v7173_v59 = vadd.f32 %v7142_v44, %v6148_v16 }
 0xaad   : > { %v7196_v28 = vmul.f32 %v7185_v11, %v9982_v60  ;;  %v7186_v31 = vmax.f32 %v7175_v36, 0.0  ;;  %v9138_v63 = vpop.f32.mrb[188].mxu1 }
 0xaae   : > { %v7194_v8 = vmul.f32 %v7183_v5, %v9962_v42  ;;  %v7184_v21 = vmax.f32 %v7173_v59, 0.0  ;;  %v9139_v19 = vpop.f32.mrb[189].mxu1  ;;  %v9298_v20 = vpop.f32.mrb[176].mxu0  ;;  %v7214_v48 = vld [vmem:[#allocation2 + $0x20] sm:$0xff]  ;;  %v9684_v59 = vmov 1  }
 0xaaf   : > { %7207 = vst.msk [vmem:[#allocation2 + $0x40] sm:$0xff] %vm583_vm2, %v7196_v28  ;;  %v7197_v47 = vmul.f32 %v7186_v31, %v10005_v15  ;;  %v9140_v27 = vadd.f32 %v9139_v19, %v9138_v63  ;;  %v7154_v52 = vpop.f32.mrb[177].mxu0  ;;  %v9141_v62 = vpop.f32.mrb[190].mxu1  ;;  %v7212_v0 = vld [vmem:[#allocation2 + $0x10] sm:$0xff] }
 0xab0   : > { %7205 = vst.msk [vmem:[#allocation2 + $0x30] sm:$0xff] %vm583_vm2, %v7194_v8  ;;  %v7195_v60 = vmul.f32 %v7184_v21, %v9977_v57  ;;  %v7155_v30 = vadd.f32 %v7154_v52, %v7075_v51  ;;  %v9299_v53 = vpop.f32.mrb[178].mxu0  ;;  %v7215_v42 = vld [vmem:[#allocation2 + $0x28] sm:$0xff]  ;;  %v9142_v9 = vpop.f32.mrb[191].mxu1 }
 0xab1   : > { %7208 = vst.msk [vmem:[#allocation2 + $0x48] sm:$0xff] %vm583_vm2, %v7197_v47  ;;  %v7083_v7 = vadd.f32 %v9140_v27, %v7003_v17  ;;  %v7157_v43 = vpop.f32.mrb[179].mxu0  ;;  %v7213_v61 = vld [vmem:[#allocation2 + $0x18] sm:$0xff]  ;;  %v7224_v57 = vpack.c.bf16 %v7215_v42, %v7214_v48 }
 0xab2   : > { %7206 = vst.msk [vmem:[#allocation2 + $0x38] sm:$0xff] %vm583_vm2, %v7195_v60  ;;  %v7176_v15 = vadd.f32 %v7155_v30, %v6151_v33  ;;  %v7158_v12 = vadd.f32 %v7157_v43, %v7078_v22  ;;  %v7223_v32 = vpack.c.bf16 %v7213_v61, %v7212_v0  ;;  %v9685_v0 = vmov 2  }
 0xab3   : > { %v7163_v10 = vadd.f32 %v9298_v20, %v7083_v7 }
 0xab4   : > { %v7187_v23 = vmax.f32 %v7176_v15, 0.0  ;;  %v7177_v26 = vadd.f32 %v7158_v12, %v6152_v25  ;;  %9308 = vmatprep.mubr.msk.bf16.mxu0 %vm583_vm2, %v7223_v32 }
 0xab5   : > { %v7178_v41 = vadd.f32 %v7163_v10, %v6153_v37  ;;  %9309 = vmatmul.mubr.msk.bf16.vlgmr.msra.gmra.mrb[180].mxu0 %vm583_vm2, %v7224_v57 }
 0xab6   : > { %v7198_v38 = vmul.f32 %v7187_v23, %v10003_v14  ;;  %v7188_v24 = vmax.f32 %v7177_v26, 0.0  ;;  %v7218_v29 = vld [vmem:[#allocation2 + $0x40] sm:$0xff] }
 0xab7   : > { %v7189_v49 = vmax.f32 %v7178_v41, 0.0  ;;  %v7216_v18 = vld [vmem:[#allocation2 + $0x30] sm:$0xff]  ;;  %v7483_v23 = vld [vmem:[%s12322_s9] sm:$0xff]  ;;  %v7484_v41 = vld [vmem:[%s12322_s9 + $0x8] sm:$0xff] }
 0xab8   : > { %7209 = vst.msk [vmem:[#allocation2 + $0x50] sm:$0xff] %vm583_vm2, %v7198_v38  ;;  %v7199_v3 = vmul.f32 %v7188_v24, %v10054_v55  ;;  %v7219_v40 = vld [vmem:[#allocation2 + $0x48] sm:$0xff]  ;;  %v7377_v38 = vld [vmem:[%s12321_s8] sm:$0xff] }
 0xab9   : > { %v7200_v2 = vmul.f32 %v7189_v49, %v10035_v45  ;;  %v7217_v35 = vld [vmem:[#allocation2 + $0x38] sm:$0xff]  ;;  %v7226_v54 = vpack.c.bf16 %v7219_v40, %v7218_v29  ;;  %v8448_v45 = vld [vmem:[%s12320_s7] ss:$0 sm:$0xff]  ;;  %v7378_v49 = vld [vmem:[%s12321_s8 + $0x8] sm:$0xff] }
 0xaba   : > { %7210 = vst.msk [vmem:[#allocation2 + $0x58] sm:$0xff] %vm583_vm2, %v7199_v3  ;;  %v7225_v34 = vpack.c.bf16 %v7217_v35, %v7216_v18 }
 0xabb   : > { %7211 = vst.msk [vmem:[#allocation2 + $0x60] sm:$0x1] %vm862_vm3, %v7200_v2  ;;  %v7485_v2 = vld [vmem:[%s12322_s9 + $0x10] sm:$0xff] }
 0xabc   : > { %9312 = vmatprep.mubr.msk.bf16.mxu0 %vm583_vm2, %v7225_v34 }
 0xabd   : > { %9313 = vmatmul.mubr.msk.bf16.gmra.mrb[184].mxu0 %vm583_vm2, %v7226_v54  ;;  %v7486_v54 = vld [vmem:[%s12322_s9 + $0x18] sm:$0xff] }
 0xabf   : > { %v7220_v14 = vld [vmem:[#allocation2 + $0x50] sm:$0xff] }
 0xac1   : > { %v7221_v56 = vld [vmem:[#allocation2 + $0x58] sm:$0xff] }
 0xac2   : > { %v7227_v13 = vpack.c.bf16 %v7221_v56, %v7220_v14  ;;  %v7222_v55 = vld [vmem:[#allocation2 + $0x60] sm:$0x1]  ;;  %v7379_v14 = vld [vmem:[%s12321_s8 + $0x10] sm:$0xff] }
 0xac3   : > { %v7228_v6 = vpack.c.bf16 %v7222_v55, %v7222_v55 }
 0xac4   : > { %9316 = vmatprep.mubr.msk.bf16.mxu0 %vm583_vm2, %v7227_v13 }
 0xac5   : > { %9317 = vmatmul.mubr.msk.bf16.gmra.mrb[188].mxu0 %vm583_vm2, %v7228_v6 }
 0xb88   : > { %v9310_v50 = vpop.f32.mrb[180].mxu0 }
 0xb89   : > { %v7329_v39 = vadd.f32 %v9310_v50, %v8448_v45  ;;  %v7320_v46 = vpop.f32.mrb[181].mxu0 }
 0xb8a   : > { %v9311_v51 = vpop.f32.mrb[182].mxu0  ;;  %v7321_v22 = vadd.f32 %v8448_v45, %v7320_v46 }
 0xb8b   : > { %v7368_v1 = vmax.f32 %v7329_v39, 0.0  ;;  %v7332_v58 = vadd.f32 %v9311_v51, %v8448_v45  ;;  %v7323_v44 = vpop.f32.mrb[183].mxu0  ;;  %v7487_v51 = vld [vmem:[%s12322_s9 + $0x20] sm:$0xff] }
 0xb8c   : > { %v7324_v36 = vadd.f32 %v8448_v45, %v7323_v44  ;;  %v7366_v8 = vmax.f32 %v7321_v22, 0.0 }
 0xb8d   : > { %v12097_v11 = vmax.f32 %v7332_v58, 0.0  ;;  %7400 = vperm.xlu1 %9367, %v7368_v1   ;;  %v7380_v58 = vld [vmem:[%s12321_s8 + $0x18] sm:$0xff] }
 0xb8e   : > { %v12100_v5 = vmax.f32 %v7324_v36, 0.0  ;;  %v7381_v36 = vld [vmem:[%s12321_s8 + $0x20] sm:$0xff] }
 0xb8f   : > { %7405 = vperm.xlu0 %9366, %v12097_v11  }
 0xb90   : > { %v9314_v16 = vpop.f32.mrb[184].mxu0 }
 0xb91   : > { %9368 = vset.pattern.permute.xlu1 %v9684_v59  ;;  %v7336_v28 = vpop.f32.mrb[185].mxu0  ;;  %v7345_v21 = vadd.f32 %v9314_v16, %v8448_v45 }
 0xb92   : > { %7503 = vperm.xlu1 %9368, %v7368_v1   ;;  %v9315_v31 = vpop.f32.mrb[186].mxu0  ;;  %v7337_v52 = vadd.f32 %v8448_v45, %v7336_v28  ;;  %v7382_v28 = vld [vmem:[%s12321_s8 + $0x28] sm:$0xff] }
 0xb93   : > { %v7339_v63 = vpop.f32.mrb[187].mxu0  ;;  %7395 = vperm.xlu0 %9366, %v12100_v5   ;;  %v7372_v47 = vmax.f32 %v7345_v21, 0.0  ;;  %v7348_v60 = vadd.f32 %v9315_v31, %v8448_v45  ;;  %v7488_v21 = vld [vmem:[%s12322_s9 + $0x28] sm:$0xff] }
 0xb94   : > { %v7370_v62 = vmax.f32 %v7337_v52, 0.0  ;;  %v7340_v7 = vadd.f32 %v8448_v45, %v7339_v63 }
 0xb95   : > { %v7373_v30 = vmax.f32 %v7348_v60, 0.0 }
 0xb96   : > { %9369 = vset.pattern.permute.xlu1 %v9681_v4  ;;  %v7371_v43 = vmax.f32 %v7340_v7, 0.0 }
 0xb97   : > { %9371 = vset.pattern.permute.xlu0 %v9684_v59  ;;  %7390 = vperm.xlu1 %9369, %v7366_v8  }
 0xb98   : > { %v9318_v19 = vpop.f32.mrb[188].mxu0  ;;  %7499 = vperm.xlu0 %9371, %v12100_v5  }
 0xb99   : > { %v7352_v20 = vpop.f32.mrb[189].mxu0  ;;  %v7361_v9 = vadd.f32 %v9318_v19, %v8448_v45 }
 0xb9a   : > { %v9319_v17 = vpop.f32.mrb[190].mxu0  ;;  %v7353_v61 = vadd.f32 %v8448_v45, %v7352_v20 }
 0xb9b   : > { %v7355_v27 = vpop.f32.mrb[191].mxu0  ;;  %9370 = vset.pattern.permute.xlu1 %v9684_v59  ;;  %v7376_v33 = vmax.f32 %v7361_v9, 0.0 }
 0xb9c   : > { %9372 = vset.pattern.permute.xlu0 %v9681_v4  ;;  %7495 = vperm.xlu1 %9370, %v7366_v8   ;;  %v7356_v53 = vadd.f32 %v8448_v45, %v7355_v27  ;;  %v7374_v15 = vmax.f32 %v7353_v61, 0.0 }
 0xb9d   : > { %7420 = vperm.xlu0 %9372, %v7372_v47  }
 0xb9e   : > { %v7375_v42 = vmax.f32 %v7356_v53, 0.0 }
 0xba0   : > { %7507 = vperm.xlu1 %9370, %v12097_v11  }
 0xba1   : > { %9374 = vset.pattern.permute.xlu0 %v9684_v59 }
 0xba2   : > { %7511 = vperm.xlu0 %9374, %v7370_v62  }
 0xba4   : > { %7519 = vperm.xlu1 %9370, %v7372_v47  }
 0xba6   : > { %7523 = vperm.xlu0 %9374, %v7373_v30  }
 0xba8   : > { %9373 = vset.pattern.permute.xlu1 %v9681_v4 }
 0xba9   : > { %7410 = vperm.xlu1 %9373, %v7370_v62  }
 0xbaa   : > { %9378 = vset.pattern.permute.xlu0 %v9681_v4 }
 0xbab   : > { %7435 = vperm.xlu0 %9378, %v7375_v42  }
 0xbad   : > { %7425 = vperm.xlu1 %9373, %v7373_v30  }
 0xbaf   : > { %9380 = vset.pattern.permute.xlu0 %v9684_v59 }
 0xbb0   : > { %7535 = vperm.xlu0 %9380, %v7376_v33  }
 0xbb1   : > { %7415 = vperm.xlu1 %9373, %v7371_v43  }
 0xbb4   : > { %9382 = vset.pattern.permute.xlu0 %v9685_v0 }
 0xbb5   : > { %7615 = vperm.xlu0 %9382, %v7368_v1   ;;  %9375 = vset.pattern.permute.xlu1 %v9684_v59 }
 0xbb6   : > { %7515 = vperm.xlu1 %9375, %v7371_v43  }
 0xbb9   : > { %7627 = vperm.xlu0 %9382, %v7371_v43  }
 0xbba   : > { %9376 = vset.pattern.permute.xlu1 %v9681_v4 }
 0xbbb   : > { %7430 = vperm.xlu1 %9376, %v7374_v15  }
 0xbbd   : > { %7635 = vperm.xlu0 %9382, %v7373_v30   ;;  %v7489_v30 = vld [vmem:[%s12322_s9 + $0x30] sm:$0xff] }
 0xbbf   : > { %9377 = vset.pattern.permute.xlu1 %v9684_v59 }
 0xbc0   : > { %7527 = vperm.xlu1 %9377, %v7374_v15  }
 0xbc4   : > { %7531 = vperm.xlu1 %9377, %v7375_v42  }
 0xbc8   : > { %9379 = vset.pattern.permute.xlu1 %v9681_v4 }
 0xbc9   : > { %7440 = vperm.xlu1 %9379, %v7376_v33  }
 0xbcd   : > { %9381 = vset.pattern.permute.xlu1 %v9685_v0 }
 0xbce   : > { %7607 = vperm.xlu1 %9381, %v7366_v8  }
 0xbd2   : > { %7611 = vperm.xlu1 %9381, %v12100_v5  }
 0xbd6   : > { %7619 = vperm.xlu1 %9381, %v12097_v11  }
 0xbda   : > { %7623 = vperm.xlu1 %9381, %v7370_v62  }
 0xbde   : > { %7631 = vperm.xlu1 %9381, %v7372_v47  }
 0xbe2   : > { %7639 = vperm.xlu1 %9381, %v7374_v15  }
 0xbe6   : > { %7643 = vperm.xlu1 %9381, %v7375_v42   ;;  %v7383_v42 = vld [vmem:[%s12321_s8 + $0x30] sm:$0xff] }
 0xbea   : > { %7647 = vperm.xlu1 %9381, %v7376_v33  }
 0xc0c   : > { %v7401_v12 = vpop.permute.xlu1 %7400 }
 0xc0d   : > { %v7445_v39 = vmul.f32 %v7401_v12, %v7379_v14 }
 0xc0e   : > { %v7406_v10 = vpop.permute.xlu0 %7405 }
 0xc0f   : > { %v7458_v31 = vsel %vm7454_vm6, %v7445_v39, 0.0  ;;  %v7446_v63 = vmul.f32 %v7406_v10, %v7380_v58 }
 0xc11   : > { %v7504_v32 = vpop.permute.xlu1 %7503  ;;  %v7460_v60 = vsel %vm7454_vm6, %v7446_v63, 0.0 }
 0xc12   : > { %v7396_v57 = vpop.permute.xlu0 %7395  ;;  %v7540_v56 = vmul.f32 %v7504_v32, %v7485_v2  ;;  %v7490_v32 = vld [vmem:[%s12322_s9 + $0x38] sm:$0xff] }
 0xc13   : > { %v7444_v29 = vmul.f32 %v7396_v57, %v7378_v49 }
 0xc14   : > { %v7552_v44 = vsel %vm7454_vm6, %v7540_v56, 0.0 }
 0xc15   : > { %v7456_v46 = vsel %vm7454_vm6, %v7444_v29, 0.0 }
 0xc16   : > { %v7391_v48 = vpop.permute.xlu1 %7390 }
 0xc17   : > { %v7500_v4 = vpop.permute.xlu0 %7499  ;;  %v7443_v18 = vmul.f32 %v7391_v48, %v7377_v38 }
 0xc18   : > { %v7539_v3 = vmul.f32 %v7500_v4, %v7484_v41  ;;  %v7491_v4 = vld [vmem:[%s12322_s9 + $0x40] sm:$0xff] }
 0xc19   : > { %v7455_v6 = vsel %vm7454_vm6, %v7443_v18, 0.0  ;;  %v7493_v18 = vld [vmem:[%s12322_s9 + $0x50] sm:$0x1] }
 0xc1a   : > { %v7550_v13 = vsel %vm7454_vm6, %v7539_v3, 0.0  ;;  %v7457_v11 = vadd.f32 %v7456_v46, %v7455_v6 }
 0xc1b   : > { %v7496_v25 = vpop.permute.xlu1 %7495 }
 0xc1c   : > { %v7538_v24 = vmul.f32 %v7496_v25, %v7483_v23  ;;  %v7421_v35 = vpop.permute.xlu0 %7420  ;;  %v7459_v19 = vadd.f32 %v7458_v31, %v7457_v11  ;;  %v7384_v25 = vld [vmem:[%s12321_s8 + $0x38] sm:$0xff] }
 0xc1d   : > { %v7449_v12 = vmul.f32 %v7421_v35, %v7383_v42 }
 0xc1e   : > { %v7549_v34 = vsel %vm7454_vm6, %v7538_v24, 0.0  ;;  %v7461_v9 = vadd.f32 %v7460_v60, %v7459_v19  ;;  %v7595_v19 = vld [vmem:[%s12324_s11] sm:$0xff] }
 0xc1f   : > { %v7508_v37 = vpop.permute.xlu1 %7507  ;;  %v7551_v45 = vadd.f32 %v7550_v13, %v7549_v34  ;;  %v7466_v41 = vsel %vm7454_vm6, %v7449_v12, 0.0  ;;  %v7492_v34 = vld [vmem:[%s12322_s9 + $0x48] sm:$0xff] }
 0xc20   : > { %v7541_v50 = vmul.f32 %v7508_v37, %v7486_v54  ;;  %v7385_v37 = vld [vmem:[%s12321_s8 + $0x40] sm:$0xff]  ;;  %v7386_v54 = vld [vmem:[%s12321_s8 + $0x48] sm:$0xff] }
 0xc21   : > { %v7512_v1 = vpop.permute.xlu0 %7511  ;;  %v7553_v22 = vadd.f32 %v7552_v44, %v7551_v45  ;;  %v7387_v44 = vld [vmem:[%s12321_s8 + $0x50] sm:$0x1] }
 0xc22   : > { %v7554_v5 = vsel %vm7454_vm6, %v7541_v50, 0.0  ;;  %v7542_v59 = vmul.f32 %v7512_v1, %v7487_v51 }
 0xc23   : > { %v7520_v26 = vpop.permute.xlu1 %7519  ;;  %v7555_v20 = vadd.f32 %v7554_v5, %v7553_v22 }
 0xc24   : > { %v7556_v52 = vsel %vm7454_vm6, %v7542_v59, 0.0  ;;  %v7544_v0 = vmul.f32 %v7520_v26, %v7489_v30 }
 0xc25   : > { %v7524_v17 = vpop.permute.xlu0 %7523  ;;  %v7557_v33 = vadd.f32 %v7556_v52, %v7555_v20 }
 0xc26   : > { %v7560_v23 = vsel %vm7454_vm6, %v7544_v0, 0.0  ;;  %v7545_v26 = vmul.f32 %v7524_v17, %v7490_v32 }
 0xc28   : > { %v7411_v40 = vpop.permute.xlu1 %7410  ;;  %v7562_v29 = vsel %vm7454_vm6, %v7545_v26, 0.0  ;;  %v7599_v26 = vld [vmem:[%s12324_s11 + $0x20] sm:$0xff] }
 0xc29   : > { %v7447_v8 = vmul.f32 %v7411_v40, %v7381_v36 }
 0xc2a   : > { %v7436_v48 = vpop.permute.xlu0 %7435 }
 0xc2b   : > { %v7462_v53 = vsel %vm7454_vm6, %v7447_v8, 0.0  ;;  %v7452_v46 = vmul.f32 %v7436_v48, %v7386_v54 }
 0xc2c   : > { %v7426_v55 = vpop.permute.xlu1 %7425  ;;  %v7463_v61 = vadd.f32 %v7462_v53, %v7461_v9 }
 0xc2d   : > { %v7450_v38 = vmul.f32 %v7426_v55, %v7384_v25  ;;  %v7472_v22 = vsel %vm7454_vm6, %v7452_v46, 0.0 }
 0xc2f   : > { %v7536_v35 = vpop.permute.xlu0 %7535  ;;  %v7468_v56 = vsel %vm7454_vm6, %v7450_v38, 0.0 }
 0xc30   : > { %v7416_v16 = vpop.permute.xlu1 %7415  ;;  %v7548_v45 = vmul.f32 %v7536_v35, %v7493_v18 }
 0xc31   : > { %v7448_v47 = vmul.f32 %v7416_v16, %v7382_v28 }
 0xc32   : > { %v7568_v36 = vsel %vm7474_vm7, %v7548_v45, 0.0 }
 0xc33   : > { %v7464_v43 = vsel %vm7454_vm6, %v7448_v47, 0.0  ;;  %v7597_v47 = vld [vmem:[%s12324_s11 + $0x10] sm:$0xff] }
 0xc34   : > { %v7465_v57 = vadd.f32 %v7464_v43, %v7463_v61  ;;  %v7598_v43 = vld [vmem:[%s12324_s11 + $0x18] sm:$0xff] }
 0xc35   : > { %v7516_v27 = vpop.permute.xlu1 %7515 }
 0xc36   : > { %v7543_v62 = vmul.f32 %v7516_v27, %v7488_v21  ;;  %v7467_v40 = vadd.f32 %v7466_v41, %v7465_v57  ;;  %v7616_v27 = vpop.permute.xlu0 %7615 }
 0xc37   : > { %v7652_v9 = vmul.f32 %v7616_v27, %v7597_v47 }
 0xc38   : > { %v7558_v7 = vsel %vm7454_vm6, %v7543_v62, 0.0  ;;  %v7469_v50 = vadd.f32 %v7468_v56, %v7467_v40  ;;  %v7596_v62 = vld [vmem:[%s12324_s11 + $0x8] sm:$0xff]  ;;  %v7577_v40 = vld [vmem:[%s12323_s10] sm:$0x1]  ;;  %v7602_v56 = vld [vmem:[%s12324_s11 + $0x38] sm:$0xff] }
 0xc39   : > { %v7559_v10 = vadd.f32 %v7558_v7, %v7557_v33 }
 0xc3a   : > { %v7431_v15 = vpop.permute.xlu1 %7430 }
 0xc3b   : > { %v7561_v24 = vadd.f32 %v7560_v23, %v7559_v10  ;;  %v7451_v49 = vmul.f32 %v7431_v15, %v7385_v37  ;;  %v7665_v10 = vsel %vm7661_vm8, %v7652_v9, 0.0  ;;  %v7600_v37 = vld [vmem:[%s12324_s11 + $0x28] sm:$0xff]  ;;  %v7690_v9 = vld [vmem:[%s12325_s12] sm:$0x1] }
 0xc3d   : > { %v7470_v13 = vsel %vm7454_vm6, %v7451_v49, 0.0  ;;  %v7563_v55 = vadd.f32 %v7562_v29, %v7561_v24  ;;  %v7579_v49 = vld [vmem:[%s567_s21] sm:$0x1]  ;;  %v7601_v29 = vld [vmem:[%s12324_s11 + $0x30] sm:$0xff]  ;;  %s9623_s21 = scalar_lea.vmem %s9622_s26, 32 }
 0xc3e   : > { %v7471_v1 = vadd.f32 %v7470_v13, %v7469_v50  ;;  %vm7580_vm9 = vcmp.ne.s32.totalorder %v7579_v49, 0  ;;  %p9625_p1 = scmp.lt.s32.totalorder %s9623_s21, %s9617_s28 }
 0xc3f   : > { %v7528_v3 = vpop.permute.xlu1 %7527 }
 0xc40   : > { %v7546_v2 = vmul.f32 %v7528_v3, %v7491_v4  ;;  %v7473_v28 = vadd.f32 %v7472_v22, %v7471_v1  ;;  %v7628_v4 = vpop.permute.xlu0 %7627  ;;  %v7603_v1 = vld [vmem:[%s12324_s11 + $0x40] sm:$0xff]  ;;  %v7604_v22 = vld [vmem:[%s12324_s11 + $0x48] sm:$0xff]  ;;  %p9626_p2 = por %p9625_p1, %p9624_p0 }
 0xc42   : > { %v7564_v14 = vsel %vm7454_vm6, %v7546_v2, 0.0  ;;  %v7655_v2 = vmul.f32 %v7628_v4, %v7600_v37  ;;  %p9627_p3 = pnand %p9626_p2, %p9620_p13 }
 0xc43   : > { %v7532_v6 = vpop.permute.xlu1 %7531  ;;  %v7565_v51 = vadd.f32 %v7564_v14, %v7563_v55 }
 0xc44   : > { %v7547_v39 = vmul.f32 %v7532_v6, %v7492_v34  ;;  %v7636_v13 = vpop.permute.xlu0 %7635  ;;  %v7671_v45 = vsel %vm7661_vm8, %v7655_v2, 0.0 }
 0xc46   : > { %v7566_v58 = vsel %vm7454_vm6, %v7547_v39, 0.0 }
 0xc47   : > { %v7567_v11 = vadd.f32 %v7566_v58, %v7565_v51  ;;  %v7657_v58 = vmul.f32 %v7636_v13, %v7602_v56 }
 0xc48   : > { %v7441_v16 = vpop.permute.xlu1 %7440 }
 0xc49   : > { %v7569_v5 = vadd.f32 %v7568_v36, %v7567_v11  ;;  %v7453_v59 = vmul.f32 %v7441_v16, %v7387_v44 }
 0xc4b   : > { %v7570_v31 = vrot.slane %v7569_v5, 4  ;;  %v7475_v63 = vsel %vm7474_vm7, %v7453_v59, 0.0 }
 0xc4c   : > { %v7476_v8 = vadd.f32 %v7475_v63, %v7473_v28 }
 0xc4d   : > { %v7571_v21 = vadd.f32 %v7570_v31, %v7569_v5  ;;  %v7608_v20 = vpop.permute.xlu1 %7607  ;;  %v7675_v5 = vsel %vm7661_vm8, %v7657_v58, 0.0 }
 0xc4e   : > { %v7477_v17 = vrot.slane %v7476_v8, 4  ;;  %v7650_v30 = vmul.f32 %v7608_v20, %v7595_v19 }
 0xc4f   : > { %v7572_v52 = vrot.slane %v7571_v21, 2 }
 0xc50   : > { %v7478_v60 = vadd.f32 %v7477_v17, %v7476_v8  ;;  %v7662_v61 = vsel %vm7661_vm8, %v7650_v30, 0.0  ;;  %v7605_v8 = vld [vmem:[%s12324_s11 + $0x50] sm:$0x1] }
 0xc51   : > { %v7573_v53 = vadd.f32 %v7572_v52, %v7571_v21  ;;  %v7612_v42 = vpop.permute.xlu1 %7611 }
 0xc52   : > { %v7479_v7 = vrot.slane %v7478_v60, 2  ;;  %v7651_v33 = vmul.f32 %v7612_v42, %v7596_v62 }
 0xc53   : > { %v7574_v12 = vrot.slane %v7573_v53, 1 }
 0xc54   : > { %v7480_v0 = vadd.f32 %v7479_v7, %v7478_v60  ;;  %v7663_v15 = vsel %vm7661_vm8, %v7651_v33, 0.0 }
 0xc55   : > { %v7664_v32 = vadd.f32 %v7663_v15, %v7662_v61  ;;  %v7620_v48 = vpop.permute.xlu1 %7619  ;;  %v7575_v24 = vadd.f32 %v7574_v12, %v7573_v53 }
 0xc56   : > { %v7481_v25 = vrot.slane %v7480_v0, 1  ;;  %v7653_v57 = vmul.f32 %v7620_v48, %v7598_v43  ;;  %v7693_v43 = vld [vmem:[%s12326_s13] sm:$0x1] }
 0xc57   : > { %v7666_v23 = vadd.f32 %v7665_v10, %v7664_v32 }
 0xc58   : > { %v7667_v41 = vsel %vm7661_vm8, %v7653_v57, 0.0  ;;  %v7482_v38 = vadd.f32 %v7481_v25, %v7480_v0  ;;  %v7698_v57 = vld [vmem:[#allocation5] sm:$0x1] }
 0xc59   : > { %v7624_v3 = vpop.permute.xlu1 %7623  ;;  %v7668_v34 = vadd.f32 %v7667_v41, %v7666_v23 }
 0xc5a   : > { %v7654_v18 = vmul.f32 %v7624_v3, %v7599_v26  ;;  %v7576_v35 = vadd.f32 %v7575_v24, %v7482_v38 }
 0xc5c   : > { %v7669_v54 = vsel %vm7661_vm8, %v7654_v18, 0.0  ;;  %v7578_v14 = vadd.f32 %v7577_v40, %v7576_v35 }
 0xc5d   : > { %v7670_v55 = vadd.f32 %v7669_v54, %v7668_v34  ;;  %v7632_v6 = vpop.permute.xlu1 %7631 }
 0xc5e   : > { %v7656_v50 = vmul.f32 %v7632_v6, %v7601_v29  ;;  %v7581_v39 = vsel %vm7580_vm9, %v7578_v14, -1e+09 }
 0xc5f   : > { %v7672_v46 = vadd.f32 %v7671_v45, %v7670_v55  ;;  %v7582_v51 = vsel %vm7474_vm7, %v7581_v39, -inf }
 0xc60   : > { %v7673_v44 = vsel %vm7661_vm8, %v7656_v50, 0.0  ;;  %7583 = vmax.xlane.f32.xlu0 %v7582_v51 }
 0xc61   : > { %v7674_v11 = vadd.f32 %v7673_v44, %v7672_v46  ;;  %v7640_v36 = vpop.permute.xlu1 %7639 }
 0xc62   : > { %v7658_v16 = vmul.f32 %v7640_v36, %v7603_v1 }
 0xc63   : > { %v7676_v59 = vadd.f32 %v7675_v5, %v7674_v11 }
 0xc64   : > { %v7677_v31 = vsel %vm7661_vm8, %v7658_v16, 0.0 }
 0xc65   : > { %v7644_v28 = vpop.permute.xlu1 %7643  ;;  %v7678_v19 = vadd.f32 %v7677_v31, %v7676_v59 }
 0xc66   : > { %v7659_v63 = vmul.f32 %v7644_v28, %v7604_v22 }
 0xc68   : > { %v7679_v21 = vsel %vm7661_vm8, %v7659_v63, 0.0 }
 0xc69   : > { %v7648_v20 = vpop.permute.xlu1 %7647  ;;  %v7680_v47 = vadd.f32 %v7679_v21, %v7678_v19 }
 0xc6a   : > { %v7660_v17 = vmul.f32 %v7648_v20, %v7605_v8 }
 0xc6c   : > { %v7682_v27 = vsel %vm7681_vm10, %v7660_v17, 0.0 }
 0xc6d   : > { %v7683_v52 = vadd.f32 %v7682_v27, %v7680_v47 }
 0xc6f   : > { %v7684_v62 = vrot.slane %v7683_v52, 4 }
 0xc71   : > { %v7685_v60 = vadd.f32 %v7684_v62, %v7683_v52 }
 0xc73   : > { %v7686_v30 = vrot.slane %v7685_v60, 2 }
 0xc75   : > { %v7687_v53 = vadd.f32 %v7686_v30, %v7685_v60 }
 0xc77   : > { %v7688_v42 = vrot.slane %v7687_v53, 1 }
 0xc79   : > { %v7689_v7 = vadd.f32 %v7688_v42, %v7687_v53 }
 0xc7b   : > { %v7691_v33 = vadd.f32 %v7690_v9, %v7689_v7 }
 0xc7d   : > { %v7692_v0 = vmax.f32 %v7691_v33, 0.0 }
 0xc7f   : > { %v7694_v61 = vmul.f32 %v7693_v43, %v7692_v0 }
 0xc81   : > { %v7695_v15 = vsel %vm7681_vm10, %v7694_v61, 0.0 }
 0xc82   : > { %7696 = vadd.xlane.f32.xlu0 %v7695_v15 }
 0xced   : > { %v7584_v12 = vpop.xlane.xlu0 %7583 }
 0xcee   : > { %v7585_v32 = vsub.f32 %v7581_v39, %v7584_v12 }
 0xcf0   : > { %v7586_v48 = vmul.f32 1.442695, %v7585_v32 }
 0xcf2   : > { %9611 = vpow2.f32 %v7586_v48 }
 0xcfc   : > { %v9612_v10 = vpop.eup %9611 }
 0xcfd   : > { %v7588_v25 = vsel %vm7474_vm7, %v9612_v10, 0.0 }
 0xcfe   : > { %7589 = vadd.xlane.f32.xlu1 %v7588_v25 }
 0xd0f   : > { %v7697_v37 = vpop.xlane.xlu0 %7696 }
 0xd10   : > { %v7699_v4 = vadd.f32 %v7698_v57, %v7697_v37 }
 0xd12   : > { %9613 = vtanh.f32 %v7699_v4 }
 0xd1c   : > { %v9614_v23 = vpop.eup %9613 }
 0xd1d   : > { %7702 = vst.msk [vmem:[%s570_s25] sm:$0x1] %vm7701_vm11, %v9614_v23 }
 0xd8b   : > { %v7590_v26 = vpop.xlane.xlu1 %7589 }
 0xd8c   : > { %9615 = vlog2.f32 %v7590_v26 }
 0xd96   : > { %v9616_v41 = vpop.eup %9615 }
 0xd97   : > { %v7592_v38 = vmul.f32 0.6931472, %v9616_v41 }
 0xd99   : > { %v7593_v24 = vsub.f32 %v7585_v32, %v7592_v38 }
 0xd9b   : > { %7594 = vst.msk [vmem:[%s554_s19] sm:$0x1] %vm7474_vm7, %v7593_v24 }
 0xd9c   : > { %9630 = shalt.err (!%p9627_p3)
}
 0xd9d   : > { %s9631_s25 = scalar_lea.hbm %s12270_s23, 16  ;;  %s9635_s19 = scalar_lea.hbm %s12329_s16, 32 }
 0xd9e   : > { %p9632_p4 = scmp.ne.s32.totalorder %s12270_s23, %s9631_s25  ;;  %p9636_p9 = scmp.lt.u32.totalorder %s12270_s23, %s12329_s16 }
 0xd9f   : > { %p9637_p10 = scmp.lt.u32.totalorder %s9635_s19, %s9631_s25  ;;  %p9639_p12 = scmp.lt.u32.totalorder %s9631_s25, %s12270_s23 }
 0xda0   : > { %p9633_p7 = pnand %p9632_p4, %p9818_p5 }
 0xda1   : > { %p9638_p11 = por %p9637_p10, %p9636_p9 }
 0xda2   : > { %p9634_p8 = pneg %p9633_p7 }
 0xda3   : > { %p9640_p13 = por %p9639_p12, %p9638_p11 }
 0xda5   : > { %p9641_p0 = pnand %p9640_p13, %p9634_p8 }
 0xda7   : > { %9644 = shalt.err (!%p9641_p0)
}
 0xda8   : > { %9322 = dma.vmem_to_hbm [thread:$0]  (%p9818_p5), %s12272_s24, 16, %s12270_s23, %s7704_s1  }
 0xda9 PF: > { %s12349_s28 = sld [smem:[#allocation9_spill]]  ;;  %p9328_p1 = scmp.ge.s32.totalorder %s9679_s29, 2 }
 0xdab   : > { %p9325_p2 = pnand %p9328_p1, %p9822_p6 }
 0xdaf   : > { %s7734_s26 = sand.u32 1, %s12349_s28  }
 0xdb0   : > { %s7735_s21 = scalar_lea.sflag [#allocation7], %s7734_s26 }
 0xdb1   : > { %9662 = dma.done.wait (!%p9325_p2), %s7735_s21, 16  }
 0xdb2   : > { %9664 = vsyncadd (!%p9325_p2), %s7735_s21, 4294967280  ;;  %s12351_s29 = sld [smem:[#allocation11_spill]]  ;;  %s12352_s25 = sld [smem:[#allocation10_spill]] }
 0xdb3   : > { %s12353_s28 = sld [smem:[#allocation12_spill]]  ;;  %s12354_s26 = smov %s9671_s27 }
 0xdb8   : > { %p30_p3 = scmp.ge.s32.totalorder %s12351_s29, 4   ;;  %s12355_s27 = smov %s12352_s25 }
 0xdba   :  { %32 = sbr.rel (!%p30_p3) target bundleno = 6 (0x6), region = 144 }
 0xdc1   :  { %7745 = vsyncpa [#allocation7], 1 }
 0xdc2   :  { %7747 = vsyncpa [#allocation7 + $0x1], 1 }

</bundles_post_ra>
